<compile_context>
chip_gen: v5e
topology: v5e:2x2
jax: 0.10.0
libtpu: 0.0.40
codegen_flags: <defaults>
</compile_context>

<pallas_src>
import functools

import numpy as np
import jax
import jax.numpy as jnp
from jax.experimental import pallas as pl
from jax.experimental.pallas import tpu as pltpu

_BB = 8          # batch rows processed per grid step (>= 8 sublanes, dense stores)
_HEAD_PAD = 128  # fc5 output lanes padded to a full vreg width (lane-dense store)


# ----------------------------------------------------------------------------
# Fused Pallas kernel: entire ConvNet forward for one batch block (VMEM resident)
# ----------------------------------------------------------------------------
def _fused_forward_kernel(p1_ref, p2sel_ref, p3sel_ref, s4_ref,
                          w1_ref, b1_ref, w2_ref, b2_ref,
                          w3_ref, b3_ref, w4_ref, b4_ref,
                          w5_ref, b5_ref, o_ref):
    """conv1..conv3 + flatten + fc4 + fc5 (+ReLUs) in a single kernel.

    im2col for conv2/conv3 and the NCHW flatten are one-hot row-selection
    matmuls (exact gather of bf16 values), so everything lowers to MXU dots
    plus f32 bias/ReLU epilogues.
    """
    f32, bf16 = jnp.float32, jnp.bfloat16

    def mm(a, b):
        return jnp.dot(a, b, preferred_element_type=f32)

    def sel_layer(act, sel_ref, w_ref, b_ref):
        # sum over kernel positions kk of (row-select) @ (per-position weights)
        acc = None
        for kk in range(sel_ref.shape[0]):
            rows = mm(sel_ref[kk], act).astype(bf16)      # exact row gather
            term = mm(rows, w_ref[kk])                    # f32 accumulate
            acc = term if acc is None else acc + term
        return jnp.maximum(acc + b_ref[...], 0.0).astype(bf16)

    # conv1 (+ReLU): patches were im2col'd (jit-fused) in the wrapper.
    a1 = jnp.maximum(mm(p1_ref[...], w1_ref[...]) + b1_ref[...], 0.0).astype(bf16)
    # conv2 (+ReLU) and conv3 (+ReLU): im2col via selection matmuls.
    a2 = sel_layer(a1, p2sel_ref, w2_ref, b2_ref)
    a3 = sel_layer(a2, p3sel_ref, w3_ref, b3_ref)
    # flatten (NCHW ordering folded into the w4 layout) + fc4 (+ReLU).
    a4 = sel_layer(a3, s4_ref, w4_ref, b4_ref)
    # fc5 head: output lanes padded to 128 -> dense, unmasked vreg store.
    o_ref[...] = mm(a4, w5_ref[...]) + b5_ref[...]


# ----------------------------------------------------------------------------
# Wrapper-side helpers (all run once per compile / once at init)
# ----------------------------------------------------------------------------
def _im2col(x_nhwc, k, stride):
    """Patch extraction for conv1; runs inside jit, fused by XLA."""
    B, H, W, C = x_nhwc.shape
    Ho = (H - k) // stride + 1
    Wo = (W - k) // stride + 1
    cols = []
    for i in range(k):
        for j in range(k):
            cols.append(x_nhwc[:, i:i + stride * Ho:stride, j:j + stride * Wo:stride, :])
    patches = jnp.concatenate(cols, axis=-1)              # (B, Ho, Wo, k*k*C)
    return patches.reshape(B * Ho * Wo, k * k * C), Ho, Wo


@functools.lru_cache(maxsize=None)
def _build_selectors(H, W):
    """One-hot selection matrices (per batch block of _BB) implementing im2col
    for conv2/conv3 and the per-spatial-position flatten. Built once per size."""
    def cdim(h, k, s):
        return (h - k) // s + 1

    H1, W1 = cdim(H, 8, 4), cdim(W, 8, 4)
    H2, W2 = cdim(H1, 4, 2), cdim(W1, 4, 2)
    H3, W3 = cdim(H2, 3, 1), cdim(W2, 3, 1)

    def im2col_selector(Hi, Wi, k, s):
        Ho, Wo = cdim(Hi, k, s), cdim(Wi, k, s)
        P = np.zeros((k * k, _BB * Ho * Wo, _BB * Hi * Wi), np.float32)
        for b in range(_BB):
            for ho in range(Ho):
                for wo in range(Wo):
                    m_out = (b * Ho + ho) * Wo + wo
                    for i in range(k):
                        for j in range(k):
                            m_in = (b * Hi + ho * s + i) * Wi + (wo * s + j)
                            P[i * k + j, m_out, m_in] = 1.0
        return jnp.asarray(P, jnp.bfloat16)

    P2 = im2col_selector(H1, W1, 4, 2)
    P3 = im2col_selector(H2, W2, 3, 1)

    hw3 = H3 * W3
    S4 = np.zeros((hw3, _BB, _BB * hw3), np.float32)
    for hw in range(hw3):
        for b in range(_BB):
            S4[hw, b, b * hw3 + hw] = 1.0
    return P2, P3, jnp.asarray(S4, jnp.bfloat16)


def init_params(key, in_channels, n_features, action_space):
    """Raw parameters in the PyTorch-equivalent layout."""
    ks = jax.random.split(key, 10)
    scale = 0.05
    return {
        "w1": scale * jax.random.normal(ks[0], (32, in_channels, 8, 8), jnp.float32),
        "b1": scale * jax.random.normal(ks[1], (32,), jnp.float32),
        "w2": scale * jax.random.normal(ks[2], (64, 32, 4, 4), jnp.float32),
        "b2": scale * jax.random.normal(ks[3], (64,), jnp.float32),
        "w3": scale * jax.random.normal(ks[4], (64, 64, 3, 3), jnp.float32),
        "b3": scale * jax.random.normal(ks[5], (64,), jnp.float32),
        # Linear weights stored as (in, out); forward computes x @ W + b.
        "w4": scale * jax.random.normal(ks[6], (n_features, 512), jnp.float32),
        "b4": scale * jax.random.normal(ks[7], (512,), jnp.float32),
        "w5": scale * jax.random.normal(ks[8], (512, action_space), jnp.float32),
        "b5": scale * jax.random.normal(ks[9], (action_space,), jnp.float32),
    }


def prepare_params(raw):
    """One-time conversion to the fused-kernel layout (hoisted out of forward):
    conv weights -> (k*k, Cin, Cout), bf16 casts, fc4 rows regrouped per spatial
    position (NCHW flatten folded into the matmul), fc5 padded to 128 lanes."""
    bf16, f32 = jnp.bfloat16, jnp.float32

    def conv_w_grouped(w):                    # (Cout, Cin, kh, kw) -> (kh*kw, Cin, Cout)
        cout, cin, kh, kw = w.shape
        return jnp.transpose(w, (2, 3, 1, 0)).reshape(kh * kw, cin, cout).astype(bf16)

    cout1, cin1, k1, _ = raw["w1"].shape
    w1 = jnp.transpose(raw["w1"], (2, 3, 1, 0)).reshape(k1 * k1 * cin1, cout1).astype(bf16)

    c3 = raw["w3"].shape[0]
    n_features, n_hidden = raw["w4"].shape
    hw3 = n_features // c3
    assert c3 * hw3 == n_features, "n_features must be a multiple of conv3 channels"
    w4 = jnp.transpose(raw["w4"].reshape(c3, hw3, n_hidden), (1, 0, 2)).astype(bf16)

    a = raw["w5"].shape[1]
    n5 = max(_HEAD_PAD, -(-a // _HEAD_PAD) * _HEAD_PAD)
    w5 = jnp.zeros((raw["w5"].shape[0], n5), f32).at[:, :a].set(raw["w5"]).astype(bf16)
    b5 = jnp.zeros((1, n5), f32).at[0, :a].set(raw["b5"])

    return {
        "w1": w1, "b1": raw["b1"].reshape(1, -1).astype(f32),
        "w2": conv_w_grouped(raw["w2"]), "b2": raw["b2"].reshape(1, -1).astype(f32),
        "w3": conv_w_grouped(raw["w3"]), "b3": raw["b3"].reshape(1, -1).astype(f32),
        "w4": w4, "b4": raw["b4"].reshape(1, -1).astype(f32),
        "w5": w5, "b5": b5,
    }


# ----------------------------------------------------------------------------
# Jitted forward: pad batch, im2col conv1, one fused pallas_call, slice result
# ----------------------------------------------------------------------------
@functools.partial(jax.jit, static_argnames=("action_space",))
def _convnet_forward(x_nchw, params, selectors, *, action_space):
    P2, P3, S4 = selectors
    B = x_nchw.shape[0]
    B_pad = -(-B // _BB) * _BB                       # make M >= 8, dense sublanes
    nb = B_pad // _BB

    x = jnp.transpose(x_nchw, (0, 2, 3, 1)).astype(jnp.bfloat16)   # NCHW -> NHWC
    if B_pad > B:
        x = jnp.pad(x, ((0, B_pad - B), (0, 0), (0, 0), (0, 0)))

    p1, H1, W1 = _im2col(x, k=8, stride=4)           # (B_pad*H1*W1, 8*8*Cin), bf16
    M1 = _BB * H1 * W1
    K1 = p1.shape[1]
    N5 = params["w5"].shape[1]

    def full_spec(arr):
        zeros = (0,) * arr.ndim
        return pl.BlockSpec(arr.shape, lambda i: zeros)

    out = pl.pallas_call(
        _fused_forward_kernel,
        out_shape=jax.ShapeDtypeStruct((B_pad, N5), jnp.float32),
        grid=(nb,),
        in_specs=[
            pl.BlockSpec((M1, K1), lambda i: (i, 0)),   # conv1 patches (batch-blocked)
            full_spec(P2), full_spec(P3), full_spec(S4),
            full_spec(params["w1"]), full_spec(params["b1"]),
            full_spec(params["w2"]), full_spec(params["b2"]),
            full_spec(params["w3"]), full_spec(params["b3"]),
            full_spec(params["w4"]), full_spec(params["b4"]),
            full_spec(params["w5"]), full_spec(params["b5"]),
        ],
        out_specs=pl.BlockSpec((_BB, N5), lambda i: (i, 0)),
        compiler_params=pltpu.CompilerParams(
            dimension_semantics=("parallel",)),         # batch blocks across TCs (v7x)
    )(p1, P2, P3, S4,
      params["w1"], params["b1"], params["w2"], params["b2"],
      params["w3"], params["b3"], params["w4"], params["b4"],
      params["w5"], params["b5"])

    return out[:B, :action_space]


def convnet_forward(x_nchw, params, action_space):
    H, W = int(x_nchw.shape[2]), int(x_nchw.shape[3])
    selectors = _build_selectors(H, W)
    assert params["w4"].shape[0] == selectors[2].shape[0], (
        "n_features is inconsistent with the input spatial size")
    return _convnet_forward(x_nchw, params, selectors, action_space=action_space)


class ConvNetPallas:
    """Mirrors ConvNet: 'online' and 'target' nets (target is an identical copy)."""

    def __init__(self, input_shape, action_space, n_features, key):
        raw = init_params(key, input_shape, n_features, action_space)
        self.online = prepare_params(raw)
        self.target = jax.tree_util.tree_map(jnp.copy, self.online)   # deepcopy
        self.action_space = action_space

    def forward(self, x, model):
        if model == "online":
            return convnet_forward(x, self.online, self.action_space)
        elif model == "target":
            return convnet_forward(x, self.target, self.action_space)


if __name__ == "__main__":
    # Small DQN-like shapes: batch=2, in_channels=4, spatial=36.
    # Conv chain: 36 -(k8,s4)-> 8 -(k4,s2)-> 3 -(k3,s1)-> 1  => n_features = 64*1*1
    B, C, H, W = 2, 4, 36, 36
    action_space = 6
    n_features = 64 * 1 * 1

    key = jax.random.PRNGKey(0)
    k_param, k_x = jax.random.split(key)
    net = ConvNetPallas(C, action_space, n_features, k_param)

    x = jax.random.normal(k_x, (B, C, H, W), jnp.float32)

    q_online = net.forward(x, "online")
    q_target = net.forward(x, "target")
    jax.block_until_ready(q_online)
    jax.block_until_ready(q_target)

    assert q_online.shape == (B, action_space), q_online.shape
    assert q_target.shape == (B, action_space), q_target.shape
    assert bool(jnp.all(jnp.isfinite(q_online)))
    assert bool(jnp.allclose(q_online, q_target))   # target is an exact copy
    print("KERNEL_OK")
</pallas_src>

<mosaic_0001>
module attributes {stable_mosaic.version = 11 : i64} {
  func.func @_fused_forward_kernel(%arg0: i32, %arg1: memref<512x256xbf16, #tpu.memory_space<vmem>>, %arg2: memref<16x72x512xbf16, #tpu.memory_space<vmem>>, %arg3: memref<9x8x72xbf16, #tpu.memory_space<vmem>>, %arg4: memref<1x8x8xbf16, #tpu.memory_space<vmem>>, %arg5: memref<256x32xbf16, #tpu.memory_space<vmem>>, %arg6: memref<1x32xf32, #tpu.memory_space<vmem>>, %arg7: memref<16x32x64xbf16, #tpu.memory_space<vmem>>, %arg8: memref<1x64xf32, #tpu.memory_space<vmem>>, %arg9: memref<9x64x64xbf16, #tpu.memory_space<vmem>>, %arg10: memref<1x64xf32, #tpu.memory_space<vmem>>, %arg11: memref<1x64x512xbf16, #tpu.memory_space<vmem>>, %arg12: memref<1x512xf32, #tpu.memory_space<vmem>>, %arg13: memref<512x128xbf16, #tpu.memory_space<vmem>>, %arg14: memref<1x128xf32, #tpu.memory_space<vmem>>, %arg15: memref<8x128xf32, #tpu.memory_space<vmem>>) attributes {dimension_semantics = [#tpu.dimension_semantics<parallel>], iteration_bounds = array<i64: 1>, scalar_prefetch = 0 : i64, scratch_operands = 0 : i64, tpu.core_type = #tpu.core_type<tc>, window_params = [{transform_indices = @transform_0, window_bounds = array<i64: 512, 256>}, {pipeline_mode = #tpu.pipeline_mode<synchronous>, transform_indices = @transform_1, window_bounds = array<i64: 16, 72, 512>}, {pipeline_mode = #tpu.pipeline_mode<synchronous>, transform_indices = @transform_2, window_bounds = array<i64: 9, 8, 72>}, {pipeline_mode = #tpu.pipeline_mode<synchronous>, transform_indices = @transform_3, window_bounds = array<i64: 1, 8, 8>}, {pipeline_mode = #tpu.pipeline_mode<synchronous>, transform_indices = @transform_4, window_bounds = array<i64: 256, 32>}, {pipeline_mode = #tpu.pipeline_mode<synchronous>, transform_indices = @transform_5, window_bounds = array<i64: 1, 32>}, {pipeline_mode = #tpu.pipeline_mode<synchronous>, transform_indices = @transform_6, window_bounds = array<i64: 16, 32, 64>}, {pipeline_mode = #tpu.pipeline_mode<synchronous>, transform_indices = @transform_7, window_bounds = array<i64: 1, 64>}, {pipeline_mode = #tpu.pipeline_mode<synchronous>, transform_indices = @transform_8, window_bounds = array<i64: 9, 64, 64>}, {pipeline_mode = #tpu.pipeline_mode<synchronous>, transform_indices = @transform_9, window_bounds = array<i64: 1, 64>}, {pipeline_mode = #tpu.pipeline_mode<synchronous>, transform_indices = @transform_10, window_bounds = array<i64: 1, 64, 512>}, {pipeline_mode = #tpu.pipeline_mode<synchronous>, transform_indices = @transform_11, window_bounds = array<i64: 1, 512>}, {pipeline_mode = #tpu.pipeline_mode<synchronous>, transform_indices = @transform_12, window_bounds = array<i64: 512, 128>}, {pipeline_mode = #tpu.pipeline_mode<synchronous>, transform_indices = @transform_13, window_bounds = array<i64: 1, 128>}, {transform_indices = @transform_14, window_bounds = array<i64: 8, 128>}]} {
    %c0 = arith.constant 0 : index
    %c0_0 = arith.constant 0 : index
    %0 = vector.load %arg1[%c0, %c0_0] : memref<512x256xbf16, #tpu.memory_space<vmem>>, vector<512x256xbf16>
    %c0_1 = arith.constant 0 : index
    %c0_2 = arith.constant 0 : index
    %1 = vector.load %arg5[%c0_1, %c0_2] : memref<256x32xbf16, #tpu.memory_space<vmem>>, vector<256x32xbf16>
    %cst = arith.constant dense<0.000000e+00> : vector<512x32xf32>
    %2 = tpu.matmul %0, %1, %cst {dimension_numbers = #tpu.dot_dimension_numbers<[1], [0], [0], [1], [0, 0, 1, 1], [], []>} : vector<512x256xbf16>, vector<256x32xbf16>, vector<512x32xf32> -> vector<512x32xf32>
    %c0_3 = arith.constant 0 : index
    %c0_4 = arith.constant 0 : index
    %3 = vector.load %arg6[%c0_3, %c0_4] : memref<1x32xf32, #tpu.memory_space<vmem>>, vector<1x32xf32>
    %4 = vector.broadcast %3 : vector<1x32xf32> to vector<512x32xf32>
    %5 = arith.addf %2, %4 : vector<512x32xf32>
    %cst_5 = arith.constant 0.000000e+00 : f32
    %6 = vector.broadcast %cst_5 : f32 to vector<512x32xf32>
    %7 = arith.maximumf %5, %6 : vector<512x32xf32>
    %8 = arith.truncf %7 : vector<512x32xf32> to vector<512x32xbf16>
    %c0_6 = arith.constant 0 : index
    %c0_7 = arith.constant 0 : index
    %c0_8 = arith.constant 0 : index
    %9 = vector.load %arg2[%c0_6, %c0_7, %c0_8] : memref<16x72x512xbf16, #tpu.memory_space<vmem>>, vector<1x72x512xbf16>
    %10 = vector.shape_cast %9 : vector<1x72x512xbf16> to vector<72x512xbf16>
    %cst_9 = arith.constant dense<0.000000e+00> : vector<72x32xf32>
    %11 = tpu.matmul %10, %8, %cst_9 {dimension_numbers = #tpu.dot_dimension_numbers<[1], [0], [0], [1], [0, 0, 1, 1], [], []>} : vector<72x512xbf16>, vector<512x32xbf16>, vector<72x32xf32> -> vector<72x32xf32>
    %12 = arith.truncf %11 : vector<72x32xf32> to vector<72x32xbf16>
    %c0_10 = arith.constant 0 : index
    %c0_11 = arith.constant 0 : index
    %c0_12 = arith.constant 0 : index
    %13 = vector.load %arg7[%c0_10, %c0_11, %c0_12] : memref<16x32x64xbf16, #tpu.memory_space<vmem>>, vector<1x32x64xbf16>
    %14 = vector.shape_cast %13 : vector<1x32x64xbf16> to vector<32x64xbf16>
    %cst_13 = arith.constant dense<0.000000e+00> : vector<72x64xf32>
    %15 = tpu.matmul %12, %14, %cst_13 {dimension_numbers = #tpu.dot_dimension_numbers<[1], [0], [0], [1], [0, 0, 1, 1], [], []>} : vector<72x32xbf16>, vector<32x64xbf16>, vector<72x64xf32> -> vector<72x64xf32>
    %c1 = arith.constant 1 : index
    %c0_14 = arith.constant 0 : index
    %c0_15 = arith.constant 0 : index
    %16 = vector.load %arg2[%c1, %c0_14, %c0_15] : memref<16x72x512xbf16, #tpu.memory_space<vmem>>, vector<1x72x512xbf16>
    %17 = vector.shape_cast %16 : vector<1x72x512xbf16> to vector<72x512xbf16>
    %cst_16 = arith.constant dense<0.000000e+00> : vector<72x32xf32>
    %18 = tpu.matmul %17, %8, %cst_16 {dimension_numbers = #tpu.dot_dimension_numbers<[1], [0], [0], [1], [0, 0, 1, 1], [], []>} : vector<72x512xbf16>, vector<512x32xbf16>, vector<72x32xf32> -> vector<72x32xf32>
    %19 = arith.truncf %18 : vector<72x32xf32> to vector<72x32xbf16>
    %c1_17 = arith.constant 1 : index
    %c0_18 = arith.constant 0 : index
    %c0_19 = arith.constant 0 : index
    %20 = vector.load %arg7[%c1_17, %c0_18, %c0_19] : memref<16x32x64xbf16, #tpu.memory_space<vmem>>, vector<1x32x64xbf16>
    %21 = vector.shape_cast %20 : vector<1x32x64xbf16> to vector<32x64xbf16>
    %cst_20 = arith.constant dense<0.000000e+00> : vector<72x64xf32>
    %22 = tpu.matmul %19, %21, %cst_20 {dimension_numbers = #tpu.dot_dimension_numbers<[1], [0], [0], [1], [0, 0, 1, 1], [], []>} : vector<72x32xbf16>, vector<32x64xbf16>, vector<72x64xf32> -> vector<72x64xf32>
    %23 = arith.addf %15, %22 : vector<72x64xf32>
    %c2 = arith.constant 2 : index
    %c0_21 = arith.constant 0 : index
    %c0_22 = arith.constant 0 : index
    %24 = vector.load %arg2[%c2, %c0_21, %c0_22] : memref<16x72x512xbf16, #tpu.memory_space<vmem>>, vector<1x72x512xbf16>
    %25 = vector.shape_cast %24 : vector<1x72x512xbf16> to vector<72x512xbf16>
    %cst_23 = arith.constant dense<0.000000e+00> : vector<72x32xf32>
    %26 = tpu.matmul %25, %8, %cst_23 {dimension_numbers = #tpu.dot_dimension_numbers<[1], [0], [0], [1], [0, 0, 1, 1], [], []>} : vector<72x512xbf16>, vector<512x32xbf16>, vector<72x32xf32> -> vector<72x32xf32>
    %27 = arith.truncf %26 : vector<72x32xf32> to vector<72x32xbf16>
    %c2_24 = arith.constant 2 : index
    %c0_25 = arith.constant 0 : index
    %c0_26 = arith.constant 0 : index
    %28 = vector.load %arg7[%c2_24, %c0_25, %c0_26] : memref<16x32x64xbf16, #tpu.memory_space<vmem>>, vector<1x32x64xbf16>
    %29 = vector.shape_cast %28 : vector<1x32x64xbf16> to vector<32x64xbf16>
    %cst_27 = arith.constant dense<0.000000e+00> : vector<72x64xf32>
    %30 = tpu.matmul %27, %29, %cst_27 {dimension_numbers = #tpu.dot_dimension_numbers<[1], [0], [0], [1], [0, 0, 1, 1], [], []>} : vector<72x32xbf16>, vector<32x64xbf16>, vector<72x64xf32> -> vector<72x64xf32>
    %31 = arith.addf %23, %30 : vector<72x64xf32>
    %c3 = arith.constant 3 : index
    %c0_28 = arith.constant 0 : index
    %c0_29 = arith.constant 0 : index
    %32 = vector.load %arg2[%c3, %c0_28, %c0_29] : memref<16x72x512xbf16, #tpu.memory_space<vmem>>, vector<1x72x512xbf16>
    %33 = vector.shape_cast %32 : vector<1x72x512xbf16> to vector<72x512xbf16>
    %cst_30 = arith.constant dense<0.000000e+00> : vector<72x32xf32>
    %34 = tpu.matmul %33, %8, %cst_30 {dimension_numbers = #tpu.dot_dimension_numbers<[1], [0], [0], [1], [0, 0, 1, 1], [], []>} : vector<72x512xbf16>, vector<512x32xbf16>, vector<72x32xf32> -> vector<72x32xf32>
    %35 = arith.truncf %34 : vector<72x32xf32> to vector<72x32xbf16>
    %c3_31 = arith.constant 3 : index
    %c0_32 = arith.constant 0 : index
    %c0_33 = arith.constant 0 : index
    %36 = vector.load %arg7[%c3_31, %c0_32, %c0_33] : memref<16x32x64xbf16, #tpu.memory_space<vmem>>, vector<1x32x64xbf16>
    %37 = vector.shape_cast %36 : vector<1x32x64xbf16> to vector<32x64xbf16>
    %cst_34 = arith.constant dense<0.000000e+00> : vector<72x64xf32>
    %38 = tpu.matmul %35, %37, %cst_34 {dimension_numbers = #tpu.dot_dimension_numbers<[1], [0], [0], [1], [0, 0, 1, 1], [], []>} : vector<72x32xbf16>, vector<32x64xbf16>, vector<72x64xf32> -> vector<72x64xf32>
    %39 = arith.addf %31, %38 : vector<72x64xf32>
    %c4 = arith.constant 4 : index
    %c0_35 = arith.constant 0 : index
    %c0_36 = arith.constant 0 : index
    %40 = vector.load %arg2[%c4, %c0_35, %c0_36] : memref<16x72x512xbf16, #tpu.memory_space<vmem>>, vector<1x72x512xbf16>
    %41 = vector.shape_cast %40 : vector<1x72x512xbf16> to vector<72x512xbf16>
    %cst_37 = arith.constant dense<0.000000e+00> : vector<72x32xf32>
    %42 = tpu.matmul %41, %8, %cst_37 {dimension_numbers = #tpu.dot_dimension_numbers<[1], [0], [0], [1], [0, 0, 1, 1], [], []>} : vector<72x512xbf16>, vector<512x32xbf16>, vector<72x32xf32> -> vector<72x32xf32>
    %43 = arith.truncf %42 : vector<72x32xf32> to vector<72x32xbf16>
    %c4_38 = arith.constant 4 : index
    %c0_39 = arith.constant 0 : index
    %c0_40 = arith.constant 0 : index
    %44 = vector.load %arg7[%c4_38, %c0_39, %c0_40] : memref<16x32x64xbf16, #tpu.memory_space<vmem>>, vector<1x32x64xbf16>
    %45 = vector.shape_cast %44 : vector<1x32x64xbf16> to vector<32x64xbf16>
    %cst_41 = arith.constant dense<0.000000e+00> : vector<72x64xf32>
    %46 = tpu.matmul %43, %45, %cst_41 {dimension_numbers = #tpu.dot_dimension_numbers<[1], [0], [0], [1], [0, 0, 1, 1], [], []>} : vector<72x32xbf16>, vector<32x64xbf16>, vector<72x64xf32> -> vector<72x64xf32>
    %47 = arith.addf %39, %46 : vector<72x64xf32>
    %c5 = arith.constant 5 : index
    %c0_42 = arith.constant 0 : index
    %c0_43 = arith.constant 0 : index
    %48 = vector.load %arg2[%c5, %c0_42, %c0_43] : memref<16x72x512xbf16, #tpu.memory_space<vmem>>, vector<1x72x512xbf16>
    %49 = vector.shape_cast %48 : vector<1x72x512xbf16> to vector<72x512xbf16>
    %cst_44 = arith.constant dense<0.000000e+00> : vector<72x32xf32>
    %50 = tpu.matmul %49, %8, %cst_44 {dimension_numbers = #tpu.dot_dimension_numbers<[1], [0], [0], [1], [0, 0, 1, 1], [], []>} : vector<72x512xbf16>, vector<512x32xbf16>, vector<72x32xf32> -> vector<72x32xf32>
    %51 = arith.truncf %50 : vector<72x32xf32> to vector<72x32xbf16>
    %c5_45 = arith.constant 5 : index
    %c0_46 = arith.constant 0 : index
    %c0_47 = arith.constant 0 : index
    %52 = vector.load %arg7[%c5_45, %c0_46, %c0_47] : memref<16x32x64xbf16, #tpu.memory_space<vmem>>, vector<1x32x64xbf16>
    %53 = vector.shape_cast %52 : vector<1x32x64xbf16> to vector<32x64xbf16>
    %cst_48 = arith.constant dense<0.000000e+00> : vector<72x64xf32>
    %54 = tpu.matmul %51, %53, %cst_48 {dimension_numbers = #tpu.dot_dimension_numbers<[1], [0], [0], [1], [0, 0, 1, 1], [], []>} : vector<72x32xbf16>, vector<32x64xbf16>, vector<72x64xf32> -> vector<72x64xf32>
    %55 = arith.addf %47, %54 : vector<72x64xf32>
    %c6 = arith.constant 6 : index
    %c0_49 = arith.constant 0 : index
    %c0_50 = arith.constant 0 : index
    %56 = vector.load %arg2[%c6, %c0_49, %c0_50] : memref<16x72x512xbf16, #tpu.memory_space<vmem>>, vector<1x72x512xbf16>
    %57 = vector.shape_cast %56 : vector<1x72x512xbf16> to vector<72x512xbf16>
    %cst_51 = arith.constant dense<0.000000e+00> : vector<72x32xf32>
    %58 = tpu.matmul %57, %8, %cst_51 {dimension_numbers = #tpu.dot_dimension_numbers<[1], [0], [0], [1], [0, 0, 1, 1], [], []>} : vector<72x512xbf16>, vector<512x32xbf16>, vector<72x32xf32> -> vector<72x32xf32>
    %59 = arith.truncf %58 : vector<72x32xf32> to vector<72x32xbf16>
    %c6_52 = arith.constant 6 : index
    %c0_53 = arith.constant 0 : index
    %c0_54 = arith.constant 0 : index
    %60 = vector.load %arg7[%c6_52, %c0_53, %c0_54] : memref<16x32x64xbf16, #tpu.memory_space<vmem>>, vector<1x32x64xbf16>
    %61 = vector.shape_cast %60 : vector<1x32x64xbf16> to vector<32x64xbf16>
    %cst_55 = arith.constant dense<0.000000e+00> : vector<72x64xf32>
    %62 = tpu.matmul %59, %61, %cst_55 {dimension_numbers = #tpu.dot_dimension_numbers<[1], [0], [0], [1], [0, 0, 1, 1], [], []>} : vector<72x32xbf16>, vector<32x64xbf16>, vector<72x64xf32> -> vector<72x64xf32>
    %63 = arith.addf %55, %62 : vector<72x64xf32>
    %c7 = arith.constant 7 : index
    %c0_56 = arith.constant 0 : index
    %c0_57 = arith.constant 0 : index
    %64 = vector.load %arg2[%c7, %c0_56, %c0_57] : memref<16x72x512xbf16, #tpu.memory_space<vmem>>, vector<1x72x512xbf16>
    %65 = vector.shape_cast %64 : vector<1x72x512xbf16> to vector<72x512xbf16>
    %cst_58 = arith.constant dense<0.000000e+00> : vector<72x32xf32>
    %66 = tpu.matmul %65, %8, %cst_58 {dimension_numbers = #tpu.dot_dimension_numbers<[1], [0], [0], [1], [0, 0, 1, 1], [], []>} : vector<72x512xbf16>, vector<512x32xbf16>, vector<72x32xf32> -> vector<72x32xf32>
    %67 = arith.truncf %66 : vector<72x32xf32> to vector<72x32xbf16>
    %c7_59 = arith.constant 7 : index
    %c0_60 = arith.constant 0 : index
    %c0_61 = arith.constant 0 : index
    %68 = vector.load %arg7[%c7_59, %c0_60, %c0_61] : memref<16x32x64xbf16, #tpu.memory_space<vmem>>, vector<1x32x64xbf16>
    %69 = vector.shape_cast %68 : vector<1x32x64xbf16> to vector<32x64xbf16>
    %cst_62 = arith.constant dense<0.000000e+00> : vector<72x64xf32>
    %70 = tpu.matmul %67, %69, %cst_62 {dimension_numbers = #tpu.dot_dimension_numbers<[1], [0], [0], [1], [0, 0, 1, 1], [], []>} : vector<72x32xbf16>, vector<32x64xbf16>, vector<72x64xf32> -> vector<72x64xf32>
    %71 = arith.addf %63, %70 : vector<72x64xf32>
    %c8 = arith.constant 8 : index
    %c0_63 = arith.constant 0 : index
    %c0_64 = arith.constant 0 : index
    %72 = vector.load %arg2[%c8, %c0_63, %c0_64] : memref<16x72x512xbf16, #tpu.memory_space<vmem>>, vector<1x72x512xbf16>
    %73 = vector.shape_cast %72 : vector<1x72x512xbf16> to vector<72x512xbf16>
    %cst_65 = arith.constant dense<0.000000e+00> : vector<72x32xf32>
    %74 = tpu.matmul %73, %8, %cst_65 {dimension_numbers = #tpu.dot_dimension_numbers<[1], [0], [0], [1], [0, 0, 1, 1], [], []>} : vector<72x512xbf16>, vector<512x32xbf16>, vector<72x32xf32> -> vector<72x32xf32>
    %75 = arith.truncf %74 : vector<72x32xf32> to vector<72x32xbf16>
    %c8_66 = arith.constant 8 : index
    %c0_67 = arith.constant 0 : index
    %c0_68 = arith.constant 0 : index
    %76 = vector.load %arg7[%c8_66, %c0_67, %c0_68] : memref<16x32x64xbf16, #tpu.memory_space<vmem>>, vector<1x32x64xbf16>
    %77 = vector.shape_cast %76 : vector<1x32x64xbf16> to vector<32x64xbf16>
    %cst_69 = arith.constant dense<0.000000e+00> : vector<72x64xf32>
    %78 = tpu.matmul %75, %77, %cst_69 {dimension_numbers = #tpu.dot_dimension_numbers<[1], [0], [0], [1], [0, 0, 1, 1], [], []>} : vector<72x32xbf16>, vector<32x64xbf16>, vector<72x64xf32> -> vector<72x64xf32>
    %79 = arith.addf %71, %78 : vector<72x64xf32>
    %c9 = arith.constant 9 : index
    %c0_70 = arith.constant 0 : index
    %c0_71 = arith.constant 0 : index
    %80 = vector.load %arg2[%c9, %c0_70, %c0_71] : memref<16x72x512xbf16, #tpu.memory_space<vmem>>, vector<1x72x512xbf16>
    %81 = vector.shape_cast %80 : vector<1x72x512xbf16> to vector<72x512xbf16>
    %cst_72 = arith.constant dense<0.000000e+00> : vector<72x32xf32>
    %82 = tpu.matmul %81, %8, %cst_72 {dimension_numbers = #tpu.dot_dimension_numbers<[1], [0], [0], [1], [0, 0, 1, 1], [], []>} : vector<72x512xbf16>, vector<512x32xbf16>, vector<72x32xf32> -> vector<72x32xf32>
    %83 = arith.truncf %82 : vector<72x32xf32> to vector<72x32xbf16>
    %c9_73 = arith.constant 9 : index
    %c0_74 = arith.constant 0 : index
    %c0_75 = arith.constant 0 : index
    %84 = vector.load %arg7[%c9_73, %c0_74, %c0_75] : memref<16x32x64xbf16, #tpu.memory_space<vmem>>, vector<1x32x64xbf16>
    %85 = vector.shape_cast %84 : vector<1x32x64xbf16> to vector<32x64xbf16>
    %cst_76 = arith.constant dense<0.000000e+00> : vector<72x64xf32>
    %86 = tpu.matmul %83, %85, %cst_76 {dimension_numbers = #tpu.dot_dimension_numbers<[1], [0], [0], [1], [0, 0, 1, 1], [], []>} : vector<72x32xbf16>, vector<32x64xbf16>, vector<72x64xf32> -> vector<72x64xf32>
    %87 = arith.addf %79, %86 : vector<72x64xf32>
    %c10 = arith.constant 10 : index
    %c0_77 = arith.constant 0 : index
    %c0_78 = arith.constant 0 : index
    %88 = vector.load %arg2[%c10, %c0_77, %c0_78] : memref<16x72x512xbf16, #tpu.memory_space<vmem>>, vector<1x72x512xbf16>
    %89 = vector.shape_cast %88 : vector<1x72x512xbf16> to vector<72x512xbf16>
    %cst_79 = arith.constant dense<0.000000e+00> : vector<72x32xf32>
    %90 = tpu.matmul %89, %8, %cst_79 {dimension_numbers = #tpu.dot_dimension_numbers<[1], [0], [0], [1], [0, 0, 1, 1], [], []>} : vector<72x512xbf16>, vector<512x32xbf16>, vector<72x32xf32> -> vector<72x32xf32>
    %91 = arith.truncf %90 : vector<72x32xf32> to vector<72x32xbf16>
    %c10_80 = arith.constant 10 : index
    %c0_81 = arith.constant 0 : index
    %c0_82 = arith.constant 0 : index
    %92 = vector.load %arg7[%c10_80, %c0_81, %c0_82] : memref<16x32x64xbf16, #tpu.memory_space<vmem>>, vector<1x32x64xbf16>
    %93 = vector.shape_cast %92 : vector<1x32x64xbf16> to vector<32x64xbf16>
    %cst_83 = arith.constant dense<0.000000e+00> : vector<72x64xf32>
    %94 = tpu.matmul %91, %93, %cst_83 {dimension_numbers = #tpu.dot_dimension_numbers<[1], [0], [0], [1], [0, 0, 1, 1], [], []>} : vector<72x32xbf16>, vector<32x64xbf16>, vector<72x64xf32> -> vector<72x64xf32>
    %95 = arith.addf %87, %94 : vector<72x64xf32>
    %c11 = arith.constant 11 : index
    %c0_84 = arith.constant 0 : index
    %c0_85 = arith.constant 0 : index
    %96 = vector.load %arg2[%c11, %c0_84, %c0_85] : memref<16x72x512xbf16, #tpu.memory_space<vmem>>, vector<1x72x512xbf16>
    %97 = vector.shape_cast %96 : vector<1x72x512xbf16> to vector<72x512xbf16>
    %cst_86 = arith.constant dense<0.000000e+00> : vector<72x32xf32>
    %98 = tpu.matmul %97, %8, %cst_86 {dimension_numbers = #tpu.dot_dimension_numbers<[1], [0], [0], [1], [0, 0, 1, 1], [], []>} : vector<72x512xbf16>, vector<512x32xbf16>, vector<72x32xf32> -> vector<72x32xf32>
    %99 = arith.truncf %98 : vector<72x32xf32> to vector<72x32xbf16>
    %c11_87 = arith.constant 11 : index
    %c0_88 = arith.constant 0 : index
    %c0_89 = arith.constant 0 : index
    %100 = vector.load %arg7[%c11_87, %c0_88, %c0_89] : memref<16x32x64xbf16, #tpu.memory_space<vmem>>, vector<1x32x64xbf16>
    %101 = vector.shape_cast %100 : vector<1x32x64xbf16> to vector<32x64xbf16>
    %cst_90 = arith.constant dense<0.000000e+00> : vector<72x64xf32>
    %102 = tpu.matmul %99, %101, %cst_90 {dimension_numbers = #tpu.dot_dimension_numbers<[1], [0], [0], [1], [0, 0, 1, 1], [], []>} : vector<72x32xbf16>, vector<32x64xbf16>, vector<72x64xf32> -> vector<72x64xf32>
    %103 = arith.addf %95, %102 : vector<72x64xf32>
    %c12 = arith.constant 12 : index
    %c0_91 = arith.constant 0 : index
    %c0_92 = arith.constant 0 : index
    %104 = vector.load %arg2[%c12, %c0_91, %c0_92] : memref<16x72x512xbf16, #tpu.memory_space<vmem>>, vector<1x72x512xbf16>
    %105 = vector.shape_cast %104 : vector<1x72x512xbf16> to vector<72x512xbf16>
    %cst_93 = arith.constant dense<0.000000e+00> : vector<72x32xf32>
    %106 = tpu.matmul %105, %8, %cst_93 {dimension_numbers = #tpu.dot_dimension_numbers<[1], [0], [0], [1], [0, 0, 1, 1], [], []>} : vector<72x512xbf16>, vector<512x32xbf16>, vector<72x32xf32> -> vector<72x32xf32>
    %107 = arith.truncf %106 : vector<72x32xf32> to vector<72x32xbf16>
    %c12_94 = arith.constant 12 : index
    %c0_95 = arith.constant 0 : index
    %c0_96 = arith.constant 0 : index
    %108 = vector.load %arg7[%c12_94, %c0_95, %c0_96] : memref<16x32x64xbf16, #tpu.memory_space<vmem>>, vector<1x32x64xbf16>
    %109 = vector.shape_cast %108 : vector<1x32x64xbf16> to vector<32x64xbf16>
    %cst_97 = arith.constant dense<0.000000e+00> : vector<72x64xf32>
    %110 = tpu.matmul %107, %109, %cst_97 {dimension_numbers = #tpu.dot_dimension_numbers<[1], [0], [0], [1], [0, 0, 1, 1], [], []>} : vector<72x32xbf16>, vector<32x64xbf16>, vector<72x64xf32> -> vector<72x64xf32>
    %111 = arith.addf %103, %110 : vector<72x64xf32>
    %c13 = arith.constant 13 : index
    %c0_98 = arith.constant 0 : index
    %c0_99 = arith.constant 0 : index
    %112 = vector.load %arg2[%c13, %c0_98, %c0_99] : memref<16x72x512xbf16, #tpu.memory_space<vmem>>, vector<1x72x512xbf16>
    %113 = vector.shape_cast %112 : vector<1x72x512xbf16> to vector<72x512xbf16>
    %cst_100 = arith.constant dense<0.000000e+00> : vector<72x32xf32>
    %114 = tpu.matmul %113, %8, %cst_100 {dimension_numbers = #tpu.dot_dimension_numbers<[1], [0], [0], [1], [0, 0, 1, 1], [], []>} : vector<72x512xbf16>, vector<512x32xbf16>, vector<72x32xf32> -> vector<72x32xf32>
    %115 = arith.truncf %114 : vector<72x32xf32> to vector<72x32xbf16>
    %c13_101 = arith.constant 13 : index
    %c0_102 = arith.constant 0 : index
    %c0_103 = arith.constant 0 : index
    %116 = vector.load %arg7[%c13_101, %c0_102, %c0_103] : memref<16x32x64xbf16, #tpu.memory_space<vmem>>, vector<1x32x64xbf16>
    %117 = vector.shape_cast %116 : vector<1x32x64xbf16> to vector<32x64xbf16>
    %cst_104 = arith.constant dense<0.000000e+00> : vector<72x64xf32>
    %118 = tpu.matmul %115, %117, %cst_104 {dimension_numbers = #tpu.dot_dimension_numbers<[1], [0], [0], [1], [0, 0, 1, 1], [], []>} : vector<72x32xbf16>, vector<32x64xbf16>, vector<72x64xf32> -> vector<72x64xf32>
    %119 = arith.addf %111, %118 : vector<72x64xf32>
    %c14 = arith.constant 14 : index
    %c0_105 = arith.constant 0 : index
    %c0_106 = arith.constant 0 : index
    %120 = vector.load %arg2[%c14, %c0_105, %c0_106] : memref<16x72x512xbf16, #tpu.memory_space<vmem>>, vector<1x72x512xbf16>
    %121 = vector.shape_cast %120 : vector<1x72x512xbf16> to vector<72x512xbf16>
    %cst_107 = arith.constant dense<0.000000e+00> : vector<72x32xf32>
    %122 = tpu.matmul %121, %8, %cst_107 {dimension_numbers = #tpu.dot_dimension_numbers<[1], [0], [0], [1], [0, 0, 1, 1], [], []>} : vector<72x512xbf16>, vector<512x32xbf16>, vector<72x32xf32> -> vector<72x32xf32>
    %123 = arith.truncf %122 : vector<72x32xf32> to vector<72x32xbf16>
    %c14_108 = arith.constant 14 : index
    %c0_109 = arith.constant 0 : index
    %c0_110 = arith.constant 0 : index
    %124 = vector.load %arg7[%c14_108, %c0_109, %c0_110] : memref<16x32x64xbf16, #tpu.memory_space<vmem>>, vector<1x32x64xbf16>
    %125 = vector.shape_cast %124 : vector<1x32x64xbf16> to vector<32x64xbf16>
    %cst_111 = arith.constant dense<0.000000e+00> : vector<72x64xf32>
    %126 = tpu.matmul %123, %125, %cst_111 {dimension_numbers = #tpu.dot_dimension_numbers<[1], [0], [0], [1], [0, 0, 1, 1], [], []>} : vector<72x32xbf16>, vector<32x64xbf16>, vector<72x64xf32> -> vector<72x64xf32>
    %127 = arith.addf %119, %126 : vector<72x64xf32>
    %c15 = arith.constant 15 : index
    %c0_112 = arith.constant 0 : index
    %c0_113 = arith.constant 0 : index
    %128 = vector.load %arg2[%c15, %c0_112, %c0_113] : memref<16x72x512xbf16, #tpu.memory_space<vmem>>, vector<1x72x512xbf16>
    %129 = vector.shape_cast %128 : vector<1x72x512xbf16> to vector<72x512xbf16>
    %cst_114 = arith.constant dense<0.000000e+00> : vector<72x32xf32>
    %130 = tpu.matmul %129, %8, %cst_114 {dimension_numbers = #tpu.dot_dimension_numbers<[1], [0], [0], [1], [0, 0, 1, 1], [], []>} : vector<72x512xbf16>, vector<512x32xbf16>, vector<72x32xf32> -> vector<72x32xf32>
    %131 = arith.truncf %130 : vector<72x32xf32> to vector<72x32xbf16>
    %c15_115 = arith.constant 15 : index
    %c0_116 = arith.constant 0 : index
    %c0_117 = arith.constant 0 : index
    %132 = vector.load %arg7[%c15_115, %c0_116, %c0_117] : memref<16x32x64xbf16, #tpu.memory_space<vmem>>, vector<1x32x64xbf16>
    %133 = vector.shape_cast %132 : vector<1x32x64xbf16> to vector<32x64xbf16>
    %cst_118 = arith.constant dense<0.000000e+00> : vector<72x64xf32>
    %134 = tpu.matmul %131, %133, %cst_118 {dimension_numbers = #tpu.dot_dimension_numbers<[1], [0], [0], [1], [0, 0, 1, 1], [], []>} : vector<72x32xbf16>, vector<32x64xbf16>, vector<72x64xf32> -> vector<72x64xf32>
    %135 = arith.addf %127, %134 : vector<72x64xf32>
    %c0_119 = arith.constant 0 : index
    %c0_120 = arith.constant 0 : index
    %136 = vector.load %arg8[%c0_119, %c0_120] : memref<1x64xf32, #tpu.memory_space<vmem>>, vector<1x64xf32>
    %137 = vector.broadcast %136 : vector<1x64xf32> to vector<72x64xf32>
    %138 = arith.addf %135, %137 : vector<72x64xf32>
    %cst_121 = arith.constant 0.000000e+00 : f32
    %139 = vector.broadcast %cst_121 : f32 to vector<72x64xf32>
    %140 = arith.maximumf %138, %139 : vector<72x64xf32>
    %141 = arith.truncf %140 : vector<72x64xf32> to vector<72x64xbf16>
    %c0_122 = arith.constant 0 : index
    %c0_123 = arith.constant 0 : index
    %c0_124 = arith.constant 0 : index
    %142 = vector.load %arg3[%c0_122, %c0_123, %c0_124] : memref<9x8x72xbf16, #tpu.memory_space<vmem>>, vector<1x8x72xbf16>
    %143 = vector.shape_cast %142 : vector<1x8x72xbf16> to vector<8x72xbf16>
    %cst_125 = arith.constant dense<0.000000e+00> : vector<8x64xf32>
    %144 = tpu.matmul %143, %141, %cst_125 {dimension_numbers = #tpu.dot_dimension_numbers<[1], [0], [0], [1], [0, 0, 1, 1], [], []>} : vector<8x72xbf16>, vector<72x64xbf16>, vector<8x64xf32> -> vector<8x64xf32>
    %145 = arith.truncf %144 : vector<8x64xf32> to vector<8x64xbf16>
    %c0_126 = arith.constant 0 : index
    %c0_127 = arith.constant 0 : index
    %c0_128 = arith.constant 0 : index
    %146 = vector.load %arg9[%c0_126, %c0_127, %c0_128] : memref<9x64x64xbf16, #tpu.memory_space<vmem>>, vector<1x64x64xbf16>
    %147 = vector.shape_cast %146 : vector<1x64x64xbf16> to vector<64x64xbf16>
    %cst_129 = arith.constant dense<0.000000e+00> : vector<8x64xf32>
    %148 = tpu.matmul %145, %147, %cst_129 {dimension_numbers = #tpu.dot_dimension_numbers<[1], [0], [0], [1], [0, 0, 1, 1], [], []>} : vector<8x64xbf16>, vector<64x64xbf16>, vector<8x64xf32> -> vector<8x64xf32>
    %c1_130 = arith.constant 1 : index
    %c0_131 = arith.constant 0 : index
    %c0_132 = arith.constant 0 : index
    %149 = vector.load %arg3[%c1_130, %c0_131, %c0_132] : memref<9x8x72xbf16, #tpu.memory_space<vmem>>, vector<1x8x72xbf16>
    %150 = vector.shape_cast %149 : vector<1x8x72xbf16> to vector<8x72xbf16>
    %cst_133 = arith.constant dense<0.000000e+00> : vector<8x64xf32>
    %151 = tpu.matmul %150, %141, %cst_133 {dimension_numbers = #tpu.dot_dimension_numbers<[1], [0], [0], [1], [0, 0, 1, 1], [], []>} : vector<8x72xbf16>, vector<72x64xbf16>, vector<8x64xf32> -> vector<8x64xf32>
    %152 = arith.truncf %151 : vector<8x64xf32> to vector<8x64xbf16>
    %c1_134 = arith.constant 1 : index
    %c0_135 = arith.constant 0 : index
    %c0_136 = arith.constant 0 : index
    %153 = vector.load %arg9[%c1_134, %c0_135, %c0_136] : memref<9x64x64xbf16, #tpu.memory_space<vmem>>, vector<1x64x64xbf16>
    %154 = vector.shape_cast %153 : vector<1x64x64xbf16> to vector<64x64xbf16>
    %cst_137 = arith.constant dense<0.000000e+00> : vector<8x64xf32>
    %155 = tpu.matmul %152, %154, %cst_137 {dimension_numbers = #tpu.dot_dimension_numbers<[1], [0], [0], [1], [0, 0, 1, 1], [], []>} : vector<8x64xbf16>, vector<64x64xbf16>, vector<8x64xf32> -> vector<8x64xf32>
    %156 = arith.addf %148, %155 : vector<8x64xf32>
    %c2_138 = arith.constant 2 : index
    %c0_139 = arith.constant 0 : index
    %c0_140 = arith.constant 0 : index
    %157 = vector.load %arg3[%c2_138, %c0_139, %c0_140] : memref<9x8x72xbf16, #tpu.memory_space<vmem>>, vector<1x8x72xbf16>
    %158 = vector.shape_cast %157 : vector<1x8x72xbf16> to vector<8x72xbf16>
    %cst_141 = arith.constant dense<0.000000e+00> : vector<8x64xf32>
    %159 = tpu.matmul %158, %141, %cst_141 {dimension_numbers = #tpu.dot_dimension_numbers<[1], [0], [0], [1], [0, 0, 1, 1], [], []>} : vector<8x72xbf16>, vector<72x64xbf16>, vector<8x64xf32> -> vector<8x64xf32>
    %160 = arith.truncf %159 : vector<8x64xf32> to vector<8x64xbf16>
    %c2_142 = arith.constant 2 : index
    %c0_143 = arith.constant 0 : index
    %c0_144 = arith.constant 0 : index
    %161 = vector.load %arg9[%c2_142, %c0_143, %c0_144] : memref<9x64x64xbf16, #tpu.memory_space<vmem>>, vector<1x64x64xbf16>
    %162 = vector.shape_cast %161 : vector<1x64x64xbf16> to vector<64x64xbf16>
    %cst_145 = arith.constant dense<0.000000e+00> : vector<8x64xf32>
    %163 = tpu.matmul %160, %162, %cst_145 {dimension_numbers = #tpu.dot_dimension_numbers<[1], [0], [0], [1], [0, 0, 1, 1], [], []>} : vector<8x64xbf16>, vector<64x64xbf16>, vector<8x64xf32> -> vector<8x64xf32>
    %164 = arith.addf %156, %163 : vector<8x64xf32>
    %c3_146 = arith.constant 3 : index
    %c0_147 = arith.constant 0 : index
    %c0_148 = arith.constant 0 : index
    %165 = vector.load %arg3[%c3_146, %c0_147, %c0_148] : memref<9x8x72xbf16, #tpu.memory_space<vmem>>, vector<1x8x72xbf16>
    %166 = vector.shape_cast %165 : vector<1x8x72xbf16> to vector<8x72xbf16>
    %cst_149 = arith.constant dense<0.000000e+00> : vector<8x64xf32>
    %167 = tpu.matmul %166, %141, %cst_149 {dimension_numbers = #tpu.dot_dimension_numbers<[1], [0], [0], [1], [0, 0, 1, 1], [], []>} : vector<8x72xbf16>, vector<72x64xbf16>, vector<8x64xf32> -> vector<8x64xf32>
    %168 = arith.truncf %167 : vector<8x64xf32> to vector<8x64xbf16>
    %c3_150 = arith.constant 3 : index
    %c0_151 = arith.constant 0 : index
    %c0_152 = arith.constant 0 : index
    %169 = vector.load %arg9[%c3_150, %c0_151, %c0_152] : memref<9x64x64xbf16, #tpu.memory_space<vmem>>, vector<1x64x64xbf16>
    %170 = vector.shape_cast %169 : vector<1x64x64xbf16> to vector<64x64xbf16>
    %cst_153 = arith.constant dense<0.000000e+00> : vector<8x64xf32>
    %171 = tpu.matmul %168, %170, %cst_153 {dimension_numbers = #tpu.dot_dimension_numbers<[1], [0], [0], [1], [0, 0, 1, 1], [], []>} : vector<8x64xbf16>, vector<64x64xbf16>, vector<8x64xf32> -> vector<8x64xf32>
    %172 = arith.addf %164, %171 : vector<8x64xf32>
    %c4_154 = arith.constant 4 : index
    %c0_155 = arith.constant 0 : index
    %c0_156 = arith.constant 0 : index
    %173 = vector.load %arg3[%c4_154, %c0_155, %c0_156] : memref<9x8x72xbf16, #tpu.memory_space<vmem>>, vector<1x8x72xbf16>
    %174 = vector.shape_cast %173 : vector<1x8x72xbf16> to vector<8x72xbf16>
    %cst_157 = arith.constant dense<0.000000e+00> : vector<8x64xf32>
    %175 = tpu.matmul %174, %141, %cst_157 {dimension_numbers = #tpu.dot_dimension_numbers<[1], [0], [0], [1], [0, 0, 1, 1], [], []>} : vector<8x72xbf16>, vector<72x64xbf16>, vector<8x64xf32> -> vector<8x64xf32>
    %176 = arith.truncf %175 : vector<8x64xf32> to vector<8x64xbf16>
    %c4_158 = arith.constant 4 : index
    %c0_159 = arith.constant 0 : index
    %c0_160 = arith.constant 0 : index
    %177 = vector.load %arg9[%c4_158, %c0_159, %c0_160] : memref<9x64x64xbf16, #tpu.memory_space<vmem>>, vector<1x64x64xbf16>
    %178 = vector.shape_cast %177 : vector<1x64x64xbf16> to vector<64x64xbf16>
    %cst_161 = arith.constant dense<0.000000e+00> : vector<8x64xf32>
    %179 = tpu.matmul %176, %178, %cst_161 {dimension_numbers = #tpu.dot_dimension_numbers<[1], [0], [0], [1], [0, 0, 1, 1], [], []>} : vector<8x64xbf16>, vector<64x64xbf16>, vector<8x64xf32> -> vector<8x64xf32>
    %180 = arith.addf %172, %179 : vector<8x64xf32>
    %c5_162 = arith.constant 5 : index
    %c0_163 = arith.constant 0 : index
    %c0_164 = arith.constant 0 : index
    %181 = vector.load %arg3[%c5_162, %c0_163, %c0_164] : memref<9x8x72xbf16, #tpu.memory_space<vmem>>, vector<1x8x72xbf16>
    %182 = vector.shape_cast %181 : vector<1x8x72xbf16> to vector<8x72xbf16>
    %cst_165 = arith.constant dense<0.000000e+00> : vector<8x64xf32>
    %183 = tpu.matmul %182, %141, %cst_165 {dimension_numbers = #tpu.dot_dimension_numbers<[1], [0], [0], [1], [0, 0, 1, 1], [], []>} : vector<8x72xbf16>, vector<72x64xbf16>, vector<8x64xf32> -> vector<8x64xf32>
    %184 = arith.truncf %183 : vector<8x64xf32> to vector<8x64xbf16>
    %c5_166 = arith.constant 5 : index
    %c0_167 = arith.constant 0 : index
    %c0_168 = arith.constant 0 : index
    %185 = vector.load %arg9[%c5_166, %c0_167, %c0_168] : memref<9x64x64xbf16, #tpu.memory_space<vmem>>, vector<1x64x64xbf16>
    %186 = vector.shape_cast %185 : vector<1x64x64xbf16> to vector<64x64xbf16>
    %cst_169 = arith.constant dense<0.000000e+00> : vector<8x64xf32>
    %187 = tpu.matmul %184, %186, %cst_169 {dimension_numbers = #tpu.dot_dimension_numbers<[1], [0], [0], [1], [0, 0, 1, 1], [], []>} : vector<8x64xbf16>, vector<64x64xbf16>, vector<8x64xf32> -> vector<8x64xf32>
    %188 = arith.addf %180, %187 : vector<8x64xf32>
    %c6_170 = arith.constant 6 : index
    %c0_171 = arith.constant 0 : index
    %c0_172 = arith.constant 0 : index
    %189 = vector.load %arg3[%c6_170, %c0_171, %c0_172] : memref<9x8x72xbf16, #tpu.memory_space<vmem>>, vector<1x8x72xbf16>
    %190 = vector.shape_cast %189 : vector<1x8x72xbf16> to vector<8x72xbf16>
    %cst_173 = arith.constant dense<0.000000e+00> : vector<8x64xf32>
    %191 = tpu.matmul %190, %141, %cst_173 {dimension_numbers = #tpu.dot_dimension_numbers<[1], [0], [0], [1], [0, 0, 1, 1], [], []>} : vector<8x72xbf16>, vector<72x64xbf16>, vector<8x64xf32> -> vector<8x64xf32>
    %192 = arith.truncf %191 : vector<8x64xf32> to vector<8x64xbf16>
    %c6_174 = arith.constant 6 : index
    %c0_175 = arith.constant 0 : index
    %c0_176 = arith.constant 0 : index
    %193 = vector.load %arg9[%c6_174, %c0_175, %c0_176] : memref<9x64x64xbf16, #tpu.memory_space<vmem>>, vector<1x64x64xbf16>
    %194 = vector.shape_cast %193 : vector<1x64x64xbf16> to vector<64x64xbf16>
    %cst_177 = arith.constant dense<0.000000e+00> : vector<8x64xf32>
    %195 = tpu.matmul %192, %194, %cst_177 {dimension_numbers = #tpu.dot_dimension_numbers<[1], [0], [0], [1], [0, 0, 1, 1], [], []>} : vector<8x64xbf16>, vector<64x64xbf16>, vector<8x64xf32> -> vector<8x64xf32>
    %196 = arith.addf %188, %195 : vector<8x64xf32>
    %c7_178 = arith.constant 7 : index
    %c0_179 = arith.constant 0 : index
    %c0_180 = arith.constant 0 : index
    %197 = vector.load %arg3[%c7_178, %c0_179, %c0_180] : memref<9x8x72xbf16, #tpu.memory_space<vmem>>, vector<1x8x72xbf16>
    %198 = vector.shape_cast %197 : vector<1x8x72xbf16> to vector<8x72xbf16>
    %cst_181 = arith.constant dense<0.000000e+00> : vector<8x64xf32>
    %199 = tpu.matmul %198, %141, %cst_181 {dimension_numbers = #tpu.dot_dimension_numbers<[1], [0], [0], [1], [0, 0, 1, 1], [], []>} : vector<8x72xbf16>, vector<72x64xbf16>, vector<8x64xf32> -> vector<8x64xf32>
    %200 = arith.truncf %199 : vector<8x64xf32> to vector<8x64xbf16>
    %c7_182 = arith.constant 7 : index
    %c0_183 = arith.constant 0 : index
    %c0_184 = arith.constant 0 : index
    %201 = vector.load %arg9[%c7_182, %c0_183, %c0_184] : memref<9x64x64xbf16, #tpu.memory_space<vmem>>, vector<1x64x64xbf16>
    %202 = vector.shape_cast %201 : vector<1x64x64xbf16> to vector<64x64xbf16>
    %cst_185 = arith.constant dense<0.000000e+00> : vector<8x64xf32>
    %203 = tpu.matmul %200, %202, %cst_185 {dimension_numbers = #tpu.dot_dimension_numbers<[1], [0], [0], [1], [0, 0, 1, 1], [], []>} : vector<8x64xbf16>, vector<64x64xbf16>, vector<8x64xf32> -> vector<8x64xf32>
    %204 = arith.addf %196, %203 : vector<8x64xf32>
    %c8_186 = arith.constant 8 : index
    %c0_187 = arith.constant 0 : index
    %c0_188 = arith.constant 0 : index
    %205 = vector.load %arg3[%c8_186, %c0_187, %c0_188] : memref<9x8x72xbf16, #tpu.memory_space<vmem>>, vector<1x8x72xbf16>
    %206 = vector.shape_cast %205 : vector<1x8x72xbf16> to vector<8x72xbf16>
    %cst_189 = arith.constant dense<0.000000e+00> : vector<8x64xf32>
    %207 = tpu.matmul %206, %141, %cst_189 {dimension_numbers = #tpu.dot_dimension_numbers<[1], [0], [0], [1], [0, 0, 1, 1], [], []>} : vector<8x72xbf16>, vector<72x64xbf16>, vector<8x64xf32> -> vector<8x64xf32>
    %208 = arith.truncf %207 : vector<8x64xf32> to vector<8x64xbf16>
    %c8_190 = arith.constant 8 : index
    %c0_191 = arith.constant 0 : index
    %c0_192 = arith.constant 0 : index
    %209 = vector.load %arg9[%c8_190, %c0_191, %c0_192] : memref<9x64x64xbf16, #tpu.memory_space<vmem>>, vector<1x64x64xbf16>
    %210 = vector.shape_cast %209 : vector<1x64x64xbf16> to vector<64x64xbf16>
    %cst_193 = arith.constant dense<0.000000e+00> : vector<8x64xf32>
    %211 = tpu.matmul %208, %210, %cst_193 {dimension_numbers = #tpu.dot_dimension_numbers<[1], [0], [0], [1], [0, 0, 1, 1], [], []>} : vector<8x64xbf16>, vector<64x64xbf16>, vector<8x64xf32> -> vector<8x64xf32>
    %212 = arith.addf %204, %211 : vector<8x64xf32>
    %c0_194 = arith.constant 0 : index
    %c0_195 = arith.constant 0 : index
    %213 = vector.load %arg10[%c0_194, %c0_195] : memref<1x64xf32, #tpu.memory_space<vmem>>, vector<1x64xf32>
    %214 = vector.broadcast %213 : vector<1x64xf32> to vector<8x64xf32>
    %215 = arith.addf %212, %214 : vector<8x64xf32>
    %cst_196 = arith.constant 0.000000e+00 : f32
    %216 = vector.broadcast %cst_196 : f32 to vector<8x64xf32>
    %217 = arith.maximumf %215, %216 : vector<8x64xf32>
    %218 = arith.truncf %217 : vector<8x64xf32> to vector<8x64xbf16>
    %c0_197 = arith.constant 0 : index
    %c0_198 = arith.constant 0 : index
    %c0_199 = arith.constant 0 : index
    %219 = vector.load %arg4[%c0_197, %c0_198, %c0_199] : memref<1x8x8xbf16, #tpu.memory_space<vmem>>, vector<1x8x8xbf16>
    %220 = vector.shape_cast %219 : vector<1x8x8xbf16> to vector<8x8xbf16>
    %cst_200 = arith.constant dense<0.000000e+00> : vector<8x64xf32>
    %221 = tpu.matmul %220, %218, %cst_200 {dimension_numbers = #tpu.dot_dimension_numbers<[1], [0], [0], [1], [0, 0, 1, 1], [], []>} : vector<8x8xbf16>, vector<8x64xbf16>, vector<8x64xf32> -> vector<8x64xf32>
    %222 = arith.truncf %221 : vector<8x64xf32> to vector<8x64xbf16>
    %c0_201 = arith.constant 0 : index
    %c0_202 = arith.constant 0 : index
    %c0_203 = arith.constant 0 : index
    %223 = vector.load %arg11[%c0_201, %c0_202, %c0_203] : memref<1x64x512xbf16, #tpu.memory_space<vmem>>, vector<1x64x512xbf16>
    %224 = vector.shape_cast %223 : vector<1x64x512xbf16> to vector<64x512xbf16>
    %cst_204 = arith.constant dense<0.000000e+00> : vector<8x512xf32>
    %225 = tpu.matmul %222, %224, %cst_204 {dimension_numbers = #tpu.dot_dimension_numbers<[1], [0], [0], [1], [0, 0, 1, 1], [], []>} : vector<8x64xbf16>, vector<64x512xbf16>, vector<8x512xf32> -> vector<8x512xf32>
    %c0_205 = arith.constant 0 : index
    %c0_206 = arith.constant 0 : index
    %226 = vector.load %arg12[%c0_205, %c0_206] : memref<1x512xf32, #tpu.memory_space<vmem>>, vector<1x512xf32>
    %227 = vector.broadcast %226 : vector<1x512xf32> to vector<8x512xf32>
    %228 = arith.addf %225, %227 : vector<8x512xf32>
    %cst_207 = arith.constant 0.000000e+00 : f32
    %229 = vector.broadcast %cst_207 : f32 to vector<8x512xf32>
    %230 = arith.maximumf %228, %229 : vector<8x512xf32>
    %231 = arith.truncf %230 : vector<8x512xf32> to vector<8x512xbf16>
    %c0_208 = arith.constant 0 : index
    %c0_209 = arith.constant 0 : index
    %232 = vector.load %arg13[%c0_208, %c0_209] : memref<512x128xbf16, #tpu.memory_space<vmem>>, vector<512x128xbf16>
    %cst_210 = arith.constant dense<0.000000e+00> : vector<8x128xf32>
    %233 = tpu.matmul %231, %232, %cst_210 {dimension_numbers = #tpu.dot_dimension_numbers<[1], [0], [0], [1], [0, 0, 1, 1], [], []>} : vector<8x512xbf16>, vector<512x128xbf16>, vector<8x128xf32> -> vector<8x128xf32>
    %c0_211 = arith.constant 0 : index
    %c0_212 = arith.constant 0 : index
    %234 = vector.load %arg14[%c0_211, %c0_212] : memref<1x128xf32, #tpu.memory_space<vmem>>, vector<1x128xf32>
    %235 = vector.broadcast %234 : vector<1x128xf32> to vector<8x128xf32>
    %236 = arith.addf %233, %235 : vector<8x128xf32>
    %c0_213 = arith.constant 0 : index
    %c0_214 = arith.constant 0 : index
    %237 = vector.load %arg15[%c0_213, %c0_214] : memref<8x128xf32, #tpu.memory_space<vmem>>, vector<8x128xf32>
    tpu.vector_store %arg15[%c0_213, %c0_214], %236 {strides = array<i32>} : memref<8x128xf32, #tpu.memory_space<vmem>>, vector<8x128xf32>,
    return
  }
  func.func @transform_0(%arg0: i32) -> (i32, i32) {
    %c0_i32 = arith.constant 0 : i32
    %c0_i32_0 = arith.constant 0 : i32
    return %arg0, %c0_i32 : i32, i32
  }
  func.func @transform_1(%arg0: i32) -> (i32, i32, i32) {
    %c0_i32 = arith.constant 0 : i32
    %c0_i32_0 = arith.constant 0 : i32
    %c0_i32_1 = arith.constant 0 : i32
    %c0_i32_2 = arith.constant 0 : i32
    return %c0_i32, %c0_i32_0, %c0_i32_1 : i32, i32, i32
  }
  func.func @transform_2(%arg0: i32) -> (i32, i32, i32) {
    %c0_i32 = arith.constant 0 : i32
    %c0_i32_0 = arith.constant 0 : i32
    %c0_i32_1 = arith.constant 0 : i32
    %c0_i32_2 = arith.constant 0 : i32
    return %c0_i32, %c0_i32_0, %c0_i32_1 : i32, i32, i32
  }
  func.func @transform_3(%arg0: i32) -> (i32, i32, i32) {
    %c0_i32 = arith.constant 0 : i32
    %c0_i32_0 = arith.constant 0 : i32
    %c0_i32_1 = arith.constant 0 : i32
    %c0_i32_2 = arith.constant 0 : i32
    return %c0_i32, %c0_i32_0, %c0_i32_1 : i32, i32, i32
  }
  func.func @transform_4(%arg0: i32) -> (i32, i32) {
    %c0_i32 = arith.constant 0 : i32
    %c0_i32_0 = arith.constant 0 : i32
    %c0_i32_1 = arith.constant 0 : i32
    return %c0_i32, %c0_i32_0 : i32, i32
  }
  func.func @transform_5(%arg0: i32) -> (i32, i32) {
    %c0_i32 = arith.constant 0 : i32
    %c0_i32_0 = arith.constant 0 : i32
    %c0_i32_1 = arith.constant 0 : i32
    return %c0_i32, %c0_i32_0 : i32, i32
  }
  func.func @transform_6(%arg0: i32) -> (i32, i32, i32) {
    %c0_i32 = arith.constant 0 : i32
    %c0_i32_0 = arith.constant 0 : i32
    %c0_i32_1 = arith.constant 0 : i32
    %c0_i32_2 = arith.constant 0 : i32
    return %c0_i32, %c0_i32_0, %c0_i32_1 : i32, i32, i32
  }
  func.func @transform_7(%arg0: i32) -> (i32, i32) {
    %c0_i32 = arith.constant 0 : i32
    %c0_i32_0 = arith.constant 0 : i32
    %c0_i32_1 = arith.constant 0 : i32
    return %c0_i32, %c0_i32_0 : i32, i32
  }
  func.func @transform_8(%arg0: i32) -> (i32, i32, i32) {
    %c0_i32 = arith.constant 0 : i32
    %c0_i32_0 = arith.constant 0 : i32
    %c0_i32_1 = arith.constant 0 : i32
    %c0_i32_2 = arith.constant 0 : i32
    return %c0_i32, %c0_i32_0, %c0_i32_1 : i32, i32, i32
  }
  func.func @transform_9(%arg0: i32) -> (i32, i32) {
    %c0_i32 = arith.constant 0 : i32
    %c0_i32_0 = arith.constant 0 : i32
    %c0_i32_1 = arith.constant 0 : i32
    return %c0_i32, %c0_i32_0 : i32, i32
  }
  func.func @transform_10(%arg0: i32) -> (i32, i32, i32) {
    %c0_i32 = arith.constant 0 : i32
    %c0_i32_0 = arith.constant 0 : i32
    %c0_i32_1 = arith.constant 0 : i32
    %c0_i32_2 = arith.constant 0 : i32
    return %c0_i32, %c0_i32_0, %c0_i32_1 : i32, i32, i32
  }
  func.func @transform_11(%arg0: i32) -> (i32, i32) {
    %c0_i32 = arith.constant 0 : i32
    %c0_i32_0 = arith.constant 0 : i32
    %c0_i32_1 = arith.constant 0 : i32
    return %c0_i32, %c0_i32_0 : i32, i32
  }
  func.func @transform_12(%arg0: i32) -> (i32, i32) {
    %c0_i32 = arith.constant 0 : i32
    %c0_i32_0 = arith.constant 0 : i32
    %c0_i32_1 = arith.constant 0 : i32
    return %c0_i32, %c0_i32_0 : i32, i32
  }
  func.func @transform_13(%arg0: i32) -> (i32, i32) {
    %c0_i32 = arith.constant 0 : i32
    %c0_i32_0 = arith.constant 0 : i32
    %c0_i32_1 = arith.constant 0 : i32
    return %c0_i32, %c0_i32_0 : i32, i32
  }
  func.func @transform_14(%arg0: i32) -> (i32, i32) {
    %c0_i32 = arith.constant 0 : i32
    %c0_i32_0 = arith.constant 0 : i32
    return %arg0, %c0_i32 : i32, i32
  }
}

</mosaic_0001>

<bundles_post_ra>
// kernel: _convnet_forward.1
= control target key start
LH: loop header
LB: loop body
LE: loop exit
PB: predicated region body
PF: predicated region fallthrough
CT: control target
= control target key end

     0   :  { %vm1518_vm0 = vcmask 261120   ;;  %vm6195_vm1 = vcmask 1043456   ;;  %vm6191_vm2 = vcmask 588800   ;;  %vm6273_vm3 = vcmask 523264   ;;  %s14210_s4 = inlined_call_operand.vmem [shape: bf16[256,32], index: 4, kind: input, shape index: {}]   ;;  %s14211_s5 = inlined_call_operand.vmem [shape: f32[1,32], index: 5, kind: input, shape index: {}]   ;;  %s14212_s0 = inlined_call_operand.vmem [shape: bf16[512,256], index: 0, kind: input, shape index: {}]   ;;  %s14213_s1 = inlined_call_operand.vmem [shape: bf16[16,72,512], index: 1, kind: input, shape index: {}]   ;;  %s14214_s6 = inlined_call_operand.vmem [shape: bf16[16,32,64], index: 6, kind: input, shape index: {}]   ;;  %s14215_s7 = inlined_call_operand.vmem [shape: f32[1,64], index: 7, kind: input, shape index: {}]   ;;  %s14216_s8 = inlined_call_operand.vmem [shape: bf16[9,64,64], index: 8, kind: input, shape index: {}]   ;;  %s14217_s2 = inlined_call_operand.vmem [shape: bf16[9,8,72], index: 2, kind: input, shape index: {}]   ;;  %s14218_s9 = inlined_call_operand.vmem [shape: f32[1,64], index: 9, kind: input, shape index: {}]   ;;  %s14219_s10 = inlined_call_operand.vmem [shape: bf16[1,64,512], index: 10, kind: input, shape index: {}]   ;;  %s14220_s3 = inlined_call_operand.vmem [shape: bf16[1,8,8], index: 3, kind: input, shape index: {}]   ;;  %s14221_s12 = inlined_call_operand.vmem [shape: bf16[512,128], index: 12, kind: input, shape index: {}]   ;;  %s14222_s11 = inlined_call_operand.vmem [shape: f32[1,512], index: 11, kind: input, shape index: {}]   ;;  %s14223_s13 = inlined_call_operand.vmem [shape: f32[1,128], index: 13, kind: input, shape index: {}]   ;;  %s14224_s14 = inlined_call_operand.vmem [shape: f32[8,128], index: 14, kind: output, shape index: {}]  }
   0x1   :  { %v9712_v0 = vld [vmem:[%s14210_s4 + $0x38] sm:$0xff]  ;;  %v9711_v2 = vld [vmem:[%s14210_s4 + $0x30] sm:$0xff]  ;;  %v9710_v4 = vld [vmem:[%s14210_s4 + $0x28] sm:$0xff]  ;;  %vm6821_vm4 = vcmask 64512  }
   0x2   :  { %v9720_v1 = vld [vmem:[%s14210_s4 + $0x78] sm:$0xff]  ;;  %564 = vmatpush.bf16.msra.mxu0 %v9712_v0  ;;  %v9719_v3 = vld [vmem:[%s14210_s4 + $0x70] sm:$0xff]  ;;  %v9718_v5 = vld [vmem:[%s14210_s4 + $0x68] sm:$0xff] }
   0x3   :  { %733 = vmatpush.bf16.msra.mxu1 %v9720_v1  ;;  %v9709_v6 = vld [vmem:[%s14210_s4 + $0x20] sm:$0xff]  ;;  %v9708_v8 = vld [vmem:[%s14210_s4 + $0x18] sm:$0xff]  ;;  %v9707_v10 = vld [vmem:[%s14210_s4 + $0x10] sm:$0xff] }
   0x4   :  { %v9717_v7 = vld [vmem:[%s14210_s4 + $0x60] sm:$0xff]  ;;  %v9716_v9 = vld [vmem:[%s14210_s4 + $0x58] sm:$0xff]  ;;  %v9715_v11 = vld [vmem:[%s14210_s4 + $0x50] sm:$0xff] }
   0x5   :  { %v9706_v12 = vld [vmem:[%s14210_s4 + $0x8] sm:$0xff]  ;;  %v9705_v14 = vld [vmem:[%s14210_s4] sm:$0xff]  ;;  %v7338_v22 = vld [vmem:[%s14212_s0 + $0x10] sm:$0xf] }
   0x6   :  { %565 = vmatpush.bf16.msra.mxu0 %v9711_v2  ;;  %v9714_v13 = vld [vmem:[%s14210_s4 + $0x48] sm:$0xff]  ;;  %v9713_v15 = vld [vmem:[%s14210_s4 + $0x40] sm:$0xff]  ;;  %v9644_v23 = vld [vmem:[%s14212_s0 + $0x14] sm:$0xf0] }
   0x7   :  { %734 = vmatpush.bf16.msra.mxu1 %v9719_v3  ;;  %v7330_v16 = vld [vmem:[%s14212_s0] sm:$0xf]  ;;  %v9642_v17 = vld [vmem:[%s14212_s0 + $0x4] sm:$0xf0]  ;;  %v9641_v18 = vld [vmem:[%s14212_s0 + $0x4] sm:$0xf]  ;;  %v7339_v26 = vor.u32 %v9644_v23, %v7338_v22 }
   0x8   :  { %v7332_v19 = vld [vmem:[%s14212_s0 + $0x8] sm:$0xf0]  ;;  %v7331_v20 = vor.u32 %v9642_v17, %v7330_v16  ;;  %v9643_v24 = vld [vmem:[%s14212_s0 + $0x14] sm:$0xf]  ;;  %v7340_v25 = vld [vmem:[%s14212_s0 + $0x18] sm:$0xf0] }
   0x9   :  { %v7335_v21 = vor.u32 %v9641_v18, %v7332_v19  ;;  %v7343_v27 = vor.u32 %v9643_v24, %v7340_v25  ;;  %v7346_v28 = vld [vmem:[%s14212_s0 + $0x20] sm:$0xf]  ;;  %v9646_v29 = vld [vmem:[%s14212_s0 + $0x24] sm:$0xf0]  ;;  %v9645_v30 = vld [vmem:[%s14212_s0 + $0x24] sm:$0xf] }
   0xa   :  { %566 = vmatpush.bf16.msra.mxu0 %v9710_v4  ;;  %v7348_v31 = vld [vmem:[%s14212_s0 + $0x28] sm:$0xf0]  ;;  %v7347_v32 = vor.u32 %v9646_v29, %v7346_v28  ;;  %v7354_v34 = vld [vmem:[%s14212_s0 + $0x30] sm:$0xf]  ;;  %v9648_v35 = vld [vmem:[%s14212_s0 + $0x34] sm:$0xf0] }
   0xb   :  { %735 = vmatpush.bf16.msra.mxu1 %v9718_v5  ;;  %v7351_v33 = vor.u32 %v9645_v30, %v7348_v31  ;;  %v9647_v36 = vld [vmem:[%s14212_s0 + $0x34] sm:$0xf]  ;;  %v7356_v37 = vld [vmem:[%s14212_s0 + $0x38] sm:$0xf0]  ;;  %v7355_v38 = vor.u32 %v9648_v35, %v7354_v34  ;;  %v7362_v40 = vld [vmem:[%s14212_s0 + $0x40] sm:$0xf] }
   0xc   :  { %v7359_v39 = vor.u32 %v9647_v36, %v7356_v37  ;;  %v9650_v41 = vld [vmem:[%s14212_s0 + $0x44] sm:$0xf0]  ;;  %v9649_v42 = vld [vmem:[%s14212_s0 + $0x44] sm:$0xf]  ;;  %v7364_v43 = vld [vmem:[%s14212_s0 + $0x48] sm:$0xf0] }
   0xd   :  { %v7363_v44 = vor.u32 %v9650_v41, %v7362_v40  ;;  %v7367_v45 = vor.u32 %v9649_v42, %v7364_v43  ;;  %v7370_v46 = vld [vmem:[%s14212_s0 + $0x50] sm:$0xf]  ;;  %v9652_v47 = vld [vmem:[%s14212_s0 + $0x54] sm:$0xf0]  ;;  %v9651_v48 = vld [vmem:[%s14212_s0 + $0x54] sm:$0xf] }
   0xe   :  { %567 = vmatpush.bf16.msra.mxu0 %v9709_v6  ;;  %v7372_v49 = vld [vmem:[%s14212_s0 + $0x58] sm:$0xf0]  ;;  %v7371_v50 = vor.u32 %v9652_v47, %v7370_v46  ;;  %v7378_v52 = vld [vmem:[%s14212_s0 + $0x60] sm:$0xf]  ;;  %v9654_v53 = vld [vmem:[%s14212_s0 + $0x64] sm:$0xf0] }
   0xf   :  { %736 = vmatpush.bf16.msra.mxu1 %v9717_v7  ;;  %v7375_v51 = vor.u32 %v9651_v48, %v7372_v49  ;;  %v9653_v54 = vld [vmem:[%s14212_s0 + $0x64] sm:$0xf]  ;;  %v7380_v55 = vld [vmem:[%s14212_s0 + $0x68] sm:$0xf0]  ;;  %v7379_v56 = vor.u32 %v9654_v53, %v7378_v52  ;;  %v7386_v58 = vld [vmem:[%s14212_s0 + $0x70] sm:$0xf] }
  0x10   :  { %v7383_v57 = vor.u32 %v9653_v54, %v7380_v55  ;;  %v9656_v59 = vld [vmem:[%s14212_s0 + $0x74] sm:$0xf0]  ;;  %v9655_v60 = vld [vmem:[%s14212_s0 + $0x74] sm:$0xf]  ;;  %v7388_v61 = vld [vmem:[%s14212_s0 + $0x78] sm:$0xf0] }
  0x11   :  { %v7387_v62 = vor.u32 %v9656_v59, %v7386_v58  ;;  %v7391_v63 = vor.u32 %v9655_v60, %v7388_v61  ;;  %v7394_v0 = vld [vmem:[%s14212_s0 + $0x80] sm:$0xf]  ;;  %v9658_v1 = vld [vmem:[%s14212_s0 + $0x84] sm:$0xf0]  ;;  %v9657_v2 = vld [vmem:[%s14212_s0 + $0x84] sm:$0xf] }
  0x12   :  { %568 = vmatpush.bf16.msra.mxu0 %v9708_v8  ;;  %v7396_v3 = vld [vmem:[%s14212_s0 + $0x88] sm:$0xf0]  ;;  %v10332_v4 = vld [vmem:[%s14211_s5] ss:$0 sm:$0xff]  ;;  %v7395_v5 = vor.u32 %v9658_v1, %v7394_v0  ;;  %v9660_v16 = vld [vmem:[%s14212_s0 + $0x94] sm:$0xf0] }
  0x13   :  { %737 = vmatpush.bf16.msra.mxu1 %v9716_v9  ;;  %v7399_v6 = vor.u32 %v9657_v2, %v7396_v3  ;;  %v9659_v17 = vld [vmem:[%s14212_s0 + $0x94] sm:$0xf]  ;;  %v7404_v18 = vld [vmem:[%s14212_s0 + $0x98] sm:$0xf0]  ;;  %v9661_v34 = vld [vmem:[%s14212_s0 + $0xa4] sm:$0xf] }
  0x14   :  { %v7407_v23 = vor.u32 %v9659_v17, %v7404_v18  ;;  %v7412_v35 = vld [vmem:[%s14212_s0 + $0xa8] sm:$0xf0]  ;;  %v7418_v49 = vld [vmem:[%s14212_s0 + $0xb0] sm:$0xf]  ;;  %v7420_v52 = vld [vmem:[%s14212_s0 + $0xb8] sm:$0xf0] }
  0x15   :  { %v7415_v40 = vor.u32 %v9661_v34, %v7412_v35  ;;  %v7426_v2 = vld [vmem:[%s14212_s0 + $0xc0] sm:$0xf]  ;;  %v9666_v3 = vld [vmem:[%s14212_s0 + $0xc4] sm:$0xf0]  ;;  %v7434_v18 = vld [vmem:[%s14212_s0 + $0xd0] sm:$0xf] }
  0x16   :  { %569 = vmatpush.bf16.msra.mxu0 %v9707_v10 }
  0x17   :  { %738 = vmatpush.bf16.msra.mxu1 %v9715_v11 }
  0x1a   :  { %570 = vmatpush.bf16.msra.mxu0 %v9706_v12 }
  0x1b   :  { %739 = vmatpush.bf16.msra.mxu1 %v9714_v13 }
  0x1e   :  { %571 = vmatpush.bf16.msra.mxu0 %v9705_v14 }
  0x1f   :  { %740 = vmatpush.bf16.msra.mxu1 %v9713_v15  ;;  %v7402_v15 = vld [vmem:[%s14212_s0 + $0x90] sm:$0xf] }
  0x20   :  { %v7403_v22 = vor.u32 %v9660_v16, %v7402_v15 }
  0x21   :  { %572 = vmatmul.bf16.vlgmr.msra.gmra.mxu0 %v7331_v20 }
  0x22   :  { %741 = vmatmul.bf16.vlgmr.msra.gmra.mxu1 %v7335_v21 }
  0x31   :  { %577 = vmatmul.bf16.gmra.mxu0 %v7339_v26 }
  0x32   :  { %746 = vmatmul.bf16.gmra.mxu1 %v7343_v27 }
  0x41   :  { %582 = vmatmul.bf16.gmra.mxu0 %v7347_v32  ;;  %v7410_v32 = vld [vmem:[%s14212_s0 + $0xa0] sm:$0xf] }
  0x42   :  { %751 = vmatmul.bf16.gmra.mxu1 %v7351_v33  ;;  %v9662_v33 = vld [vmem:[%s14212_s0 + $0xa4] sm:$0xf0] }
  0x51   :  { %587 = vmatmul.bf16.gmra.mxu0 %v7355_v38 }
  0x52   :  { %756 = vmatmul.bf16.gmra.mxu1 %v7359_v39  ;;  %v7411_v39 = vor.u32 %v9662_v33, %v7410_v32  ;;  %v7444_v32 = vld [vmem:[%s14212_s0 + $0xe8] sm:$0xf0] }
  0x61   :  { %592 = vmatmul.bf16.gmra.mxu0 %v7363_v44 }
  0x62   :  { %761 = vmatmul.bf16.gmra.mxu1 %v7367_v45 }
  0x71   :  { %597 = vmatmul.bf16.gmra.mxu0 %v7371_v50  ;;  %v9664_v50 = vld [vmem:[%s14212_s0 + $0xb4] sm:$0xf0] }
  0x72   :  { %766 = vmatmul.bf16.gmra.mxu1 %v7375_v51  ;;  %v9663_v51 = vld [vmem:[%s14212_s0 + $0xb4] sm:$0xf] }
  0x81   :  { %602 = vmatmul.bf16.gmra.mxu0 %v7379_v56  ;;  %v7419_v56 = vor.u32 %v9664_v50, %v7418_v49 }
  0x82   :  { %771 = vmatmul.bf16.gmra.mxu1 %v7383_v57  ;;  %v7423_v57 = vor.u32 %v9663_v51, %v7420_v52 }
  0x91   :  { %607 = vmatmul.bf16.gmra.mxu0 %v7387_v62 }
  0x92   :  { %776 = vmatmul.bf16.gmra.mxu1 %v7391_v63 }
  0x9e   :  { %v573_v7 = vpop.f32.mrf.mxu0 }
  0x9f   :  { %v742_v8 = vpop.f32.mrf.mxu1  ;;  %v574_v9 = vadd.f32 %v10332_v4, %v573_v7 }
  0xa1   :  { %v743_v10 = vadd.f32 %v742_v8, %v574_v9  ;;  %612 = vmatmul.bf16.gmra.mxu0 %v7395_v5  ;;  %v9665_v5 = vld [vmem:[%s14212_s0 + $0xc4] sm:$0xf] }
  0xa2   :  { %781 = vmatmul.bf16.gmra.mxu1 %v7399_v6  ;;  %v7428_v6 = vld [vmem:[%s14212_s0 + $0xc8] sm:$0xf0] }
  0xa3   :  { %v902_v19 = vmax.f32 %v743_v10, 0.0  ;;  %v7427_v10 = vor.u32 %v9666_v3, %v7426_v2 }
  0xa6   :  { %v575_v11 = vpop.f32.mrf.mxu0 }
  0xa7   :  { %v744_v12 = vpop.f32.mrf.mxu1  ;;  %v576_v13 = vadd.f32 %v10332_v4, %v575_v11  ;;  %v7431_v11 = vor.u32 %v9665_v5, %v7428_v6 }
  0xa9   :  { %v745_v14 = vadd.f32 %v744_v12, %v576_v13 }
  0xab   :  { %v903_v20 = vmax.f32 %v745_v14, 0.0 }
  0xad   :  { %v10348_v21 = vpack.c.bf16 %v903_v20, %v902_v19  ;;  %v9668_v19 = vld [vmem:[%s14212_s0 + $0xd4] sm:$0xf0]  ;;  %v9667_v20 = vld [vmem:[%s14212_s0 + $0xd4] sm:$0xf] }
  0xae   :  { %v578_v24 = vpop.f32.mrf.mxu0 }
  0xaf   :  { %14255 = vst [vmem:[#allocation2_spill] sm:$0xff] %v10348_v21  ;;  %v747_v25 = vpop.f32.mrf.mxu1  ;;  %v579_v26 = vadd.f32 %v10332_v4, %v578_v24 }
  0xb1   :  { %v748_v27 = vadd.f32 %v747_v25, %v579_v26  ;;  %617 = vmatmul.bf16.gmra.mxu0 %v7403_v22  ;;  %v7436_v22 = vld [vmem:[%s14212_s0 + $0xd8] sm:$0xf0] }
  0xb2   :  { %786 = vmatmul.bf16.gmra.mxu1 %v7407_v23  ;;  %v7435_v23 = vor.u32 %v9668_v19, %v7434_v18  ;;  %v7439_v24 = vor.u32 %v9667_v20, %v7436_v22 }
  0xb3   :  { %v904_v36 = vmax.f32 %v748_v27, 0.0 }
  0xb6   :  { %v580_v28 = vpop.f32.mrf.mxu0 }
  0xb7   :  { %v749_v29 = vpop.f32.mrf.mxu1  ;;  %v581_v30 = vadd.f32 %v10332_v4, %v580_v28 }
  0xb9   :  { %v750_v31 = vadd.f32 %v749_v29, %v581_v30  ;;  %v7442_v29 = vld [vmem:[%s14212_s0 + $0xe0] sm:$0xf]  ;;  %v9670_v30 = vld [vmem:[%s14212_s0 + $0xe4] sm:$0xf0] }
  0xba   :  { %v7443_v33 = vor.u32 %v9670_v30, %v7442_v29 }
  0xbb   :  { %v905_v37 = vmax.f32 %v750_v31, 0.0  ;;  %v9669_v31 = vld [vmem:[%s14212_s0 + $0xe4] sm:$0xf] }
  0xbc   :  { %v7447_v34 = vor.u32 %v9669_v31, %v7444_v32  ;;  %v7466_v31 = vld [vmem:[%s14212_s0 + $0x110] sm:$0xf]  ;;  %v9676_v32 = vld [vmem:[%s14212_s0 + $0x114] sm:$0xf0] }
  0xbd   :  { %v10364_v38 = vpack.c.bf16 %v905_v37, %v904_v36 }
  0xbe   :  { %v583_v41 = vpop.f32.mrf.mxu0 }
  0xbf   :  { %14256 = vst [vmem:[#allocation3_spill] sm:$0xff] %v10364_v38  ;;  %v752_v42 = vpop.f32.mrf.mxu1  ;;  %v584_v43 = vadd.f32 %v10332_v4, %v583_v41  ;;  %v9672_v41 = vld [vmem:[%s14212_s0 + $0xf4] sm:$0xf0] }
  0xc1   :  { %v753_v44 = vadd.f32 %v752_v42, %v584_v43  ;;  %622 = vmatmul.bf16.gmra.mxu0 %v7411_v39  ;;  %v9671_v42 = vld [vmem:[%s14212_s0 + $0xf4] sm:$0xf]  ;;  %v7452_v43 = vld [vmem:[%s14212_s0 + $0xf8] sm:$0xf0] }
  0xc2   :  { %791 = vmatmul.bf16.gmra.mxu1 %v7415_v40  ;;  %v7450_v40 = vld [vmem:[%s14212_s0 + $0xf0] sm:$0xf] }
  0xc3   :  { %v906_v53 = vmax.f32 %v753_v44, 0.0  ;;  %v7451_v44 = vor.u32 %v9672_v41, %v7450_v40 }
  0xc6   :  { %v585_v45 = vpop.f32.mrf.mxu0 }
  0xc7   :  { %v754_v46 = vpop.f32.mrf.mxu1  ;;  %v586_v47 = vadd.f32 %v10332_v4, %v585_v45  ;;  %v7455_v45 = vor.u32 %v9671_v42, %v7452_v43 }
  0xc9   :  { %v755_v48 = vadd.f32 %v754_v46, %v586_v47 }
  0xcb   :  { %v907_v54 = vmax.f32 %v755_v48, 0.0 }
  0xcd   :  { %v10380_v55 = vpack.c.bf16 %v907_v54, %v906_v53 }
  0xce   :  { %v588_v58 = vpop.f32.mrf.mxu0 }
  0xcf   :  { %14257 = vst [vmem:[#allocation4_spill] sm:$0xff] %v10380_v55  ;;  %v757_v59 = vpop.f32.mrf.mxu1  ;;  %v589_v60 = vadd.f32 %v10332_v4, %v588_v58 }
  0xd1   :  { %v758_v61 = vadd.f32 %v757_v59, %v589_v60  ;;  %627 = vmatmul.bf16.gmra.mxu0 %v7419_v56  ;;  %v7458_v59 = vld [vmem:[%s14212_s0 + $0x100] sm:$0xf]  ;;  %v9674_v60 = vld [vmem:[%s14212_s0 + $0x104] sm:$0xf0] }
  0xd2   :  { %796 = vmatmul.bf16.gmra.mxu1 %v7423_v57 }
  0xd3   :  { %v908_v7 = vmax.f32 %v758_v61, 0.0  ;;  %v9673_v61 = vld [vmem:[%s14212_s0 + $0x104] sm:$0xf] }
  0xd6   :  { %v590_v62 = vpop.f32.mrf.mxu0 }
  0xd7   :  { %v759_v63 = vpop.f32.mrf.mxu1  ;;  %v591_v0 = vadd.f32 %v10332_v4, %v590_v62  ;;  %v7460_v62 = vld [vmem:[%s14212_s0 + $0x108] sm:$0xf0] }
  0xd9   :  { %v760_v1 = vadd.f32 %v759_v63, %v591_v0 }
  0xdb   :  { %v909_v8 = vmax.f32 %v760_v1, 0.0 }
  0xdd   :  { %v10396_v9 = vpack.c.bf16 %v909_v8, %v908_v7  ;;  %v7459_v8 = vor.u32 %v9674_v60, %v7458_v59 }
  0xde   :  { %v593_v12 = vpop.f32.mrf.mxu0 }
  0xdf   :  { %14258 = vst [vmem:[#allocation5_spill] sm:$0xff] %v10396_v9  ;;  %v762_v13 = vpop.f32.mrf.mxu1  ;;  %v594_v14 = vadd.f32 %v10332_v4, %v593_v12 }
  0xe1   :  { %v10399_v15 = vadd.f32 %v762_v13, %v594_v14  ;;  %632 = vmatmul.bf16.gmra.mxu0 %v7427_v10  ;;  %v7463_v10 = vor.u32 %v9673_v61, %v7460_v62 }
  0xe2   :  { %801 = vmatmul.bf16.gmra.mxu1 %v7431_v11 }
  0xe6   :  { %v595_v16 = vpop.f32.mrf.mxu0 }
  0xe7   :  { %v10401_v17 = vpop.f32.mrf.mxu1  ;;  %v596_v3 = vadd.f32 %v10332_v4, %v595_v16 }
  0xe9   :  { %v765_v19 = vadd.f32 %v10401_v17, %v596_v3  ;;  %v9680_v3 = vld [vmem:[%s14212_s0 + $0x134] sm:$0xf0] }
  0xee   :  { %v598_v25 = vpop.f32.mrf.mxu0 }
  0xef   :  { %v767_v26 = vpop.f32.mrf.mxu1  ;;  %v599_v63 = vadd.f32 %v10332_v4, %v598_v25 }
  0xf1   :  { %637 = vmatmul.bf16.gmra.mxu0 %v7435_v23  ;;  %v768_v13 = vadd.f32 %v767_v26, %v599_v63 }
  0xf2   :  { %806 = vmatmul.bf16.gmra.mxu1 %v7439_v24  ;;  %v911_v24 = vmax.f32 %v765_v19, 0.0 }
  0xf3   :  { %v912_v23 = vmax.f32 %v768_v13, 0.0 }
  0xf6   :  { %v600_v27 = vpop.f32.mrf.mxu0 }
  0xf7   :  { %v769_v28 = vpop.f32.mrf.mxu1  ;;  %v601_v56 = vadd.f32 %v10332_v4, %v600_v27 }
  0xf9   :  { %v770_v5 = vadd.f32 %v769_v28, %v601_v56  ;;  %v910_v28 = vmax.f32 %v10399_v15, 0.0  ;;  %v9675_v15 = vld [vmem:[%s14212_s0 + $0x114] sm:$0xf] }
  0xfb   :  { %v913_v20 = vmax.f32 %v770_v5, 0.0  ;;  %v10474_v29 = vpack.c.bf16 %v911_v24, %v910_v28  ;;  %v9679_v5 = vld [vmem:[%s14212_s0 + $0x134] sm:$0xf]  ;;  %v9682_v28 = vld [vmem:[%s14212_s0 + $0x144] sm:$0xf0] }
  0xfd   :  { %v10468_v25 = vpack.c.bf16 %v913_v20, %v912_v23  ;;  %14261 = vst [vmem:[#allocation8_spill] sm:$0xff] %v10474_v29 }
  0xfe   :  { %v603_v35 = vpop.f32.mrf.mxu0 }
  0xff   :  { %v772_v36 = vpop.f32.mrf.mxu1  ;;  %v604_v52 = vadd.f32 %v10332_v4, %v603_v35  ;;  %14260 = vst [vmem:[#allocation7_spill] sm:$0xff] %v10468_v25 }
 0x101   :  { %642 = vmatmul.bf16.gmra.mxu0 %v7443_v33  ;;  %v773_v0 = vadd.f32 %v772_v36, %v604_v52  ;;  %v7468_v33 = vld [vmem:[%s14212_s0 + $0x118] sm:$0xf0] }
 0x102   :  { %811 = vmatmul.bf16.gmra.mxu1 %v7447_v34 }
 0x103   :  { %v914_v14 = vmax.f32 %v773_v0, 0.0 }
 0x106   :  { %v605_v37 = vpop.f32.mrf.mxu0 }
 0x107   :  { %v774_v39 = vpop.f32.mrf.mxu1  ;;  %v606_v49 = vadd.f32 %v10332_v4, %v605_v37  ;;  %v7467_v37 = vor.u32 %v9676_v32, %v7466_v31 }
 0x109   :  { %v775_v57 = vadd.f32 %v774_v39, %v606_v49  ;;  %v7471_v39 = vor.u32 %v9675_v15, %v7468_v33  ;;  %v9678_v49 = vld [vmem:[%s14212_s0 + $0x124] sm:$0xf0] }
 0x10b   :  { %v915_v6 = vmax.f32 %v775_v57, 0.0 }
 0x10d   :  { %v10464_v16 = vpack.c.bf16 %v915_v6, %v914_v14  ;;  %v7484_v6 = vld [vmem:[%s14212_s0 + $0x138] sm:$0xf0] }
 0x10e   :  { %v608_v46 = vpop.f32.mrf.mxu0  ;;  %v7487_v13 = vor.u32 %v9679_v5, %v7484_v6  ;;  %v7516_v5 = vld [vmem:[%s14212_s0 + $0x178] sm:$0xf0] }
 0x10f   :  { %v777_v47 = vpop.f32.mrf.mxu1  ;;  %v609_v48 = vadd.f32 %v10332_v4, %v608_v46  ;;  %14259 = vst [vmem:[#allocation6_spill] sm:$0xff] %v10464_v16 }
 0x111   :  { %647 = vmatmul.bf16.gmra.mxu0 %v7451_v44  ;;  %v778_v53 = vadd.f32 %v777_v47, %v609_v48  ;;  %v7474_v48 = vld [vmem:[%s14212_s0 + $0x120] sm:$0xf] }
 0x112   :  { %816 = vmatmul.bf16.gmra.mxu1 %v7455_v45  ;;  %v7475_v56 = vor.u32 %v9678_v49, %v7474_v48 }
 0x113   :  { %v916_v1 = vmax.f32 %v778_v53, 0.0 }
 0x116   :  { %v610_v50 = vpop.f32.mrf.mxu0 }
 0x117   :  { %v779_v51 = vpop.f32.mrf.mxu1  ;;  %v611_v54 = vadd.f32 %v10332_v4, %v610_v50  ;;  %v9677_v50 = vld [vmem:[%s14212_s0 + $0x124] sm:$0xf] }
 0x119   :  { %v780_v58 = vadd.f32 %v779_v51, %v611_v54  ;;  %v7476_v51 = vld [vmem:[%s14212_s0 + $0x128] sm:$0xf0] }
 0x11a   :  { %v7479_v57 = vor.u32 %v9677_v50, %v7476_v51 }
 0x11b   :  { %v917_v2 = vmax.f32 %v780_v58, 0.0 }
 0x11d   :  { %v10458_v7 = vpack.c.bf16 %v917_v2, %v916_v1  ;;  %v7482_v2 = vld [vmem:[%s14212_s0 + $0x130] sm:$0xf] }
 0x11e   :  { %v613_v11 = vpop.f32.mrf.mxu0 }
 0x11f   :  { %v782_v12 = vpop.f32.mrf.mxu1  ;;  %v614_v18 = vadd.f32 %v10332_v4, %v613_v11  ;;  %1110 = vmatpush.bf16.msra.mxu2 %v10458_v7  ;;  %2064 = vmatpush.bf16.msrb.mxu1 %v10458_v7 }
 0x121   :  { %v783_v22 = vadd.f32 %v782_v12, %v614_v18  ;;  %652 = vmatmul.bf16.gmra.mxu0 %v7459_v8  ;;  %v7483_v12 = vor.u32 %v9680_v3, %v7482_v2  ;;  %v9688_v2 = vld [vmem:[%s14212_s0 + $0x174] sm:$0xf0]  ;;  %v9687_v3 = vld [vmem:[%s14212_s0 + $0x174] sm:$0xf] }
 0x122   :  { %821 = vmatmul.bf16.gmra.mxu1 %v7463_v10 }
 0x123   :  { %1111 = vmatpush.bf16.msra.mxu2 %v10464_v16  ;;  %2065 = vmatpush.bf16.msrb.mxu1 %v10464_v16  ;;  %v918_v34 = vmax.f32 %v783_v22, 0.0 }
 0x126   :  { %v615_v26 = vpop.f32.mrf.mxu0 }
 0x127   :  { %v784_v27 = vpop.f32.mrf.mxu1  ;;  %v616_v17 = vadd.f32 %v10332_v4, %v615_v26  ;;  %1112 = vmatpush.bf16.msra.mxu2 %v10468_v25  ;;  %2066 = vmatpush.bf16.msrb.mxu1 %v10468_v25 }
 0x129   :  { %v785_v30 = vadd.f32 %v784_v27, %v616_v17  ;;  %v7490_v27 = vld [vmem:[%s14212_s0 + $0x140] sm:$0xf]  ;;  %v9681_v17 = vld [vmem:[%s14212_s0 + $0x144] sm:$0xf] }
 0x12a   :  { %v7491_v33 = vor.u32 %v9682_v28, %v7490_v27  ;;  %v7522_v28 = vld [vmem:[%s14212_s0 + $0x180] sm:$0xf] }
 0x12b   :  { %v919_v35 = vmax.f32 %v785_v30, 0.0  ;;  %1113 = vmatpush.bf16.msra.mxu2 %v10474_v29  ;;  %2067 = vmatpush.bf16.msrb.mxu1 %v10474_v29  ;;  %v7492_v30 = vld [vmem:[%s14212_s0 + $0x148] sm:$0xf0] }
 0x12d   :  { %v10490_v36 = vpack.c.bf16 %v919_v35, %v918_v34  ;;  %v7495_v34 = vor.u32 %v9681_v17, %v7492_v30  ;;  %v9690_v17 = vld [vmem:[%s14212_s0 + $0x184] sm:$0xf0]  ;;  %v9689_v30 = vld [vmem:[%s14212_s0 + $0x184] sm:$0xf] }
 0x12e   :  { %v618_v40 = vpop.f32.mrf.mxu0 }
 0x12f   :  { %v787_v41 = vpop.f32.mrf.mxu1  ;;  %v619_v42 = vadd.f32 %v10332_v4, %v618_v40  ;;  %1114 = vmatpush.bf16.msra.mxu2 %v10396_v9  ;;  %2068 = vmatpush.bf16.msrb.mxu1 %v10396_v9 }
 0x131   :  { %v788_v43 = vadd.f32 %v787_v41, %v619_v42  ;;  %657 = vmatmul.bf16.gmra.mxu0 %v7467_v37 }
 0x132   :  { %826 = vmatmul.bf16.gmra.mxu1 %v7471_v39 }
 0x133   :  { %1115 = vmatpush.bf16.msra.mxu2 %v10380_v55  ;;  %2069 = vmatpush.bf16.msrb.mxu1 %v10380_v55  ;;  %v920_v52 = vmax.f32 %v788_v43, 0.0  ;;  %v7498_v43 = vld [vmem:[%s14212_s0 + $0x150] sm:$0xf] }
 0x136   :  { %v620_v44 = vpop.f32.mrf.mxu0 }
 0x137   :  { %v789_v45 = vpop.f32.mrf.mxu1  ;;  %v621_v46 = vadd.f32 %v10332_v4, %v620_v44  ;;  %1116 = vmatpush.bf16.msra.mxu2 %v10364_v38  ;;  %2070 = vmatpush.bf16.msrb.mxu1 %v10364_v38  ;;  %v9684_v44 = vld [vmem:[%s14212_s0 + $0x154] sm:$0xf0] }
 0x139   :  { %v790_v47 = vadd.f32 %v789_v45, %v621_v46  ;;  %v9683_v45 = vld [vmem:[%s14212_s0 + $0x154] sm:$0xf]  ;;  %v7500_v46 = vld [vmem:[%s14212_s0 + $0x158] sm:$0xf0] }
 0x13a   :  { %v7503_v48 = vor.u32 %v9683_v45, %v7500_v46  ;;  %v7523_v45 = vor.u32 %v9690_v17, %v7522_v28  ;;  %v9693_v28 = vld [vmem:[%s14212_s0 + $0x1a4] sm:$0xf]  ;;  %v7540_v17 = vld [vmem:[%s14212_s0 + $0x1a8] sm:$0xf0] }
 0x13b   :  { %v921_v53 = vmax.f32 %v790_v47, 0.0  ;;  %1117 = vmatpush.bf16.msra.mxu2 %v10348_v21  ;;  %2071 = vmatpush.bf16.msrb.mxu1 %v10348_v21  ;;  %v7499_v47 = vor.u32 %v9684_v44, %v7498_v43 }
 0x13d   :  { %v10514_v54 = vpack.c.bf16 %v921_v53, %v920_v52  ;;  %v7506_v53 = vld [vmem:[%s14212_s0 + $0x160] sm:$0xf] }
 0x13e   :  { %v623_v58 = vpop.f32.mrf.mxu0 }
 0x13f   :  { %v792_v59 = vpop.f32.mrf.mxu1  ;;  %v624_v60 = vadd.f32 %v10332_v4, %v623_v58  ;;  %v7508_v58 = vld [vmem:[%s14212_s0 + $0x168] sm:$0xf0] }
 0x141   :  { %v793_v61 = vadd.f32 %v792_v59, %v624_v60  ;;  %662 = vmatmul.bf16.gmra.mxu0 %v7475_v56  ;;  %v9686_v56 = vld [vmem:[%s14212_s0 + $0x164] sm:$0xf0] }
 0x142   :  { %831 = vmatmul.bf16.gmra.mxu1 %v7479_v57  ;;  %v9685_v57 = vld [vmem:[%s14212_s0 + $0x164] sm:$0xf]  ;;  %v7507_v59 = vor.u32 %v9686_v56, %v7506_v53 }
 0x143   :  { %v922_v8 = vmax.f32 %v793_v61, 0.0  ;;  %v7511_v60 = vor.u32 %v9685_v57, %v7508_v58 }
 0x146   :  { %v625_v62 = vpop.f32.mrf.mxu0 }
 0x147   :  { %v794_v63 = vpop.f32.mrf.mxu1  ;;  %v626_v0 = vadd.f32 %v10332_v4, %v625_v62 }
 0x149   :  { %v795_v1 = vadd.f32 %v794_v63, %v626_v0 }
 0x14b   :  { %v923_v10 = vmax.f32 %v795_v1, 0.0  ;;  %v7514_v1 = vld [vmem:[%s14212_s0 + $0x170] sm:$0xf] }
 0x14c   :  { %v7515_v6 = vor.u32 %v9688_v2, %v7514_v1  ;;  %v7530_v1 = vld [vmem:[%s14212_s0 + $0x190] sm:$0xf]  ;;  %v9692_v2 = vld [vmem:[%s14212_s0 + $0x194] sm:$0xf0] }
 0x14d   :  { %v10530_v11 = vpack.c.bf16 %v923_v10, %v922_v8  ;;  %v7519_v8 = vor.u32 %v9687_v3, %v7516_v5  ;;  %v9691_v3 = vld [vmem:[%s14212_s0 + $0x194] sm:$0xf] }
 0x14e   :  { %v628_v14 = vpop.f32.mrf.mxu0 }
 0x14f   :  { %v797_v18 = vpop.f32.mrf.mxu1  ;;  %v629_v19 = vadd.f32 %v10332_v4, %v628_v14 }
 0x151   :  { %v798_v20 = vadd.f32 %v797_v18, %v629_v19  ;;  %667 = vmatmul.bf16.gmra.mxu0 %v7483_v12 }
 0x152   :  { %836 = vmatmul.bf16.gmra.mxu1 %v7487_v13 }
 0x153   :  { %v924_v31 = vmax.f32 %v798_v20, 0.0 }
 0x156   :  { %v630_v22 = vpop.f32.mrf.mxu0 }
 0x157   :  { %v799_v23 = vpop.f32.mrf.mxu1  ;;  %v631_v24 = vadd.f32 %v10332_v4, %v630_v22 }
 0x159   :  { %v800_v26 = vadd.f32 %v799_v23, %v631_v24 }
 0x15b   :  { %v925_v32 = vmax.f32 %v800_v26, 0.0 }
 0x15d   :  { %v10546_v15 = vpack.c.bf16 %v925_v32, %v924_v31  ;;  %v7524_v31 = vld [vmem:[%s14212_s0 + $0x188] sm:$0xf0] }
 0x15e   :  { %v633_v35 = vpop.f32.mrf.mxu0  ;;  %v7527_v46 = vor.u32 %v9689_v30, %v7524_v31 }
 0x15f   :  { %v802_v37 = vpop.f32.mrf.mxu1  ;;  %v634_v39 = vadd.f32 %v10332_v4, %v633_v35 }
 0x161   :  { %v10549_v40 = vadd.f32 %v802_v37, %v634_v39  ;;  %672 = vmatmul.bf16.gmra.mxu0 %v7491_v33 }
 0x162   :  { %841 = vmatmul.bf16.gmra.mxu1 %v7495_v34 }
 0x166   :  { %v635_v41 = vpop.f32.mrf.mxu0 }
 0x167   :  { %v10551_v42 = vpop.f32.mrf.mxu1  ;;  %v636_v37 = vadd.f32 %v10332_v4, %v635_v41 }
 0x16e   :  { %v638_v49 = vpop.f32.mrf.mxu0 }
 0x16f   :  { %v807_v50 = vpop.f32.mrf.mxu1  ;;  %v639_v32 = vadd.f32 %v10332_v4, %v638_v49  ;;  %v805_v49 = vadd.f32 %v10551_v42, %v636_v37 }
 0x171   :  { %677 = vmatmul.bf16.gmra.mxu0 %v7499_v47 }
 0x172   :  { %846 = vmatmul.bf16.gmra.mxu1 %v7503_v48 }
 0x176   :  { %v640_v51 = vpop.f32.mrf.mxu0 }
 0x177   :  { %v809_v52 = vpop.f32.mrf.mxu1  ;;  %v641_v24 = vadd.f32 %v10332_v4, %v640_v51  ;;  %v808_v51 = vadd.f32 %v807_v50, %v639_v32 }
 0x179   :  { %v810_v39 = vadd.f32 %v809_v52, %v641_v24  ;;  %v928_v52 = vmax.f32 %v808_v51, 0.0  ;;  %v7546_v51 = vld [vmem:[%s14212_s0 + $0x1b0] sm:$0xf] }
 0x17b   :  { %v929_v57 = vmax.f32 %v810_v39, 0.0 }
 0x17e   :  { %v643_v61 = vpop.f32.mrf.mxu0 }
 0x17f   :  { %v812_v62 = vpop.f32.mrf.mxu1  ;;  %v644_v20 = vadd.f32 %v10332_v4, %v643_v61 }
 0x181   :  { %682 = vmatmul.bf16.gmra.mxu0 %v7507_v59  ;;  %v813_v33 = vadd.f32 %v812_v62, %v644_v20  ;;  %v927_v59 = vmax.f32 %v805_v49, 0.0  ;;  %v926_v62 = vmax.f32 %v10549_v40, 0.0  ;;  %v7532_v40 = vld [vmem:[%s14212_s0 + $0x198] sm:$0xf0] }
 0x182   :  { %851 = vmatmul.bf16.gmra.mxu1 %v7511_v60  ;;  %v10616_v60 = vpack.c.bf16 %v929_v57, %v928_v52  ;;  %v7548_v49 = vld [vmem:[%s14212_s0 + $0x1b8] sm:$0xf0]  ;;  %v7650_v52 = vld [vmem:[%s14213_s1] sm:$0xf] }
 0x183   :  { %v930_v53 = vmax.f32 %v813_v33, 0.0  ;;  %v10621_v42 = vpack.c.bf16 %v927_v59, %v926_v62  ;;  %v9723_v59 = vld [vmem:[%s14213_s1 + $0xc] sm:$0xf0] }
 0x186   :  { %v645_v63 = vpop.f32.mrf.mxu0 }
 0x187   :  { %v814_v0 = vpop.f32.mrf.mxu1  ;;  %v646_v14 = vadd.f32 %v10332_v4, %v645_v63 }
 0x189   :  { %v815_v26 = vadd.f32 %v814_v0, %v646_v14 }
 0x18b   :  { %v931_v43 = vmax.f32 %v815_v26, 0.0  ;;  %v7538_v26 = vld [vmem:[%s14212_s0 + $0x1a0] sm:$0xf] }
 0x18d   :  { %v10613_v58 = vpack.c.bf16 %v931_v43, %v930_v53  ;;  %v9696_v53 = vld [vmem:[%s14212_s0 + $0x1b4] sm:$0xf0] }
 0x18e   :  { %v648_v10 = vpop.f32.mrf.mxu0  ;;  %v7547_v62 = vor.u32 %v9696_v53, %v7546_v51 }
 0x18f   :  { %v817_v12 = vpop.f32.mrf.mxu1  ;;  %v649_v13 = vadd.f32 %v10332_v4, %v648_v10  ;;  %v7531_v10 = vor.u32 %v9692_v2, %v7530_v1 }
 0x191   :  { %687 = vmatmul.bf16.gmra.mxu0 %v7515_v6  ;;  %v818_v22 = vadd.f32 %v817_v12, %v649_v13  ;;  %v7535_v12 = vor.u32 %v9691_v3, %v7532_v40 }
 0x192   :  { %856 = vmatmul.bf16.gmra.mxu1 %v7519_v8 }
 0x193   :  { %v932_v34 = vmax.f32 %v818_v22, 0.0 }
 0x196   :  { %v650_v18 = vpop.f32.mrf.mxu0 }
 0x197   :  { %v819_v19 = vpop.f32.mrf.mxu1  ;;  %v651_v23 = vadd.f32 %v10332_v4, %v650_v18 }
 0x199   :  { %v820_v27 = vadd.f32 %v819_v19, %v651_v23 }
 0x19b   :  { %v933_v35 = vmax.f32 %v820_v27, 0.0  ;;  %v9694_v27 = vld [vmem:[%s14212_s0 + $0x1a4] sm:$0xf0] }
 0x19c   :  { %v7539_v33 = vor.u32 %v9694_v27, %v7538_v26 }
 0x19d   :  { %v10608_v44 = vpack.c.bf16 %v933_v35, %v932_v34  ;;  %v7543_v34 = vor.u32 %v9693_v28, %v7540_v17 }
 0x19e   :  { %v653_v47 = vpop.f32.mrf.mxu0 }
 0x19f   :  { %v822_v48 = vpop.f32.mrf.mxu1  ;;  %v654_v56 = vadd.f32 %v10332_v4, %v653_v47  ;;  %1143 = vmatpush.bf16.msra.mxu3 %v10608_v44 }
 0x1a1   :  { %v823_v41 = vadd.f32 %v822_v48, %v654_v56  ;;  %692 = vmatmul.bf16.gmra.mxu0 %v7523_v45  ;;  %v9695_v56 = vld [vmem:[%s14212_s0 + $0x1b4] sm:$0xf] }
 0x1a2   :  { %861 = vmatmul.bf16.gmra.mxu1 %v7527_v46 }
 0x1a3   :  { %1144 = vmatpush.bf16.msra.mxu3 %v10613_v58  ;;  %v934_v5 = vmax.f32 %v823_v41, 0.0 }
 0x1a6   :  { %v655_v50 = vpop.f32.mrf.mxu0 }
 0x1a7   :  { %v824_v61 = vpop.f32.mrf.mxu1  ;;  %v656_v63 = vadd.f32 %v10332_v4, %v655_v50  ;;  %1145 = vmatpush.bf16.msra.mxu3 %v10616_v60  ;;  %v7651_v50 = vor.u32 %v9723_v59, %v7650_v52  ;;  %v7570_v52 = vld [vmem:[%s14212_s0 + $0x1e0] sm:$0xf]  ;;  %v9702_v59 = vld [vmem:[%s14212_s0 + $0x1e4] sm:$0xf0] }
 0x1a9   :  { %v825_v0 = vadd.f32 %v824_v61, %v656_v63  ;;  %v7551_v63 = vor.u32 %v9695_v56, %v7548_v49  ;;  %1118 = vmatmul.bf16.vlgmr.msra.gmra.mxu2 %v7651_v50  ;;  %v9701_v50 = vld [vmem:[%s14212_s0 + $0x1e4] sm:$0xf] }
 0x1ab   :  { %v935_v6 = vmax.f32 %v825_v0, 0.0  ;;  %1146 = vmatpush.bf16.msra.mxu3 %v10621_v42 }
 0x1ad   :  { %v10636_v8 = vpack.c.bf16 %v935_v6, %v934_v5 }
 0x1ae   :  { %v658_v13 = vpop.f32.mrf.mxu0 }
 0x1af   :  { %14262 = vst [vmem:[#allocation9_spill] sm:$0xff] %v10636_v8  ;;  %v827_v14 = vpop.f32.mrf.mxu1  ;;  %v659_v18 = vadd.f32 %v10332_v4, %v658_v13  ;;  %1147 = vmatpush.bf16.msra.mxu3 %v10546_v15  ;;  %v9698_v13 = vld [vmem:[%s14212_s0 + $0x1c4] sm:$0xf0] }
 0x1b1   :  { %v828_v19 = vadd.f32 %v827_v14, %v659_v18  ;;  %697 = vmatmul.bf16.gmra.mxu0 %v7531_v10  ;;  %v9697_v14 = vld [vmem:[%s14212_s0 + $0x1c4] sm:$0xf]  ;;  %v7556_v18 = vld [vmem:[%s14212_s0 + $0x1c8] sm:$0xf0] }
 0x1b2   :  { %866 = vmatmul.bf16.gmra.mxu1 %v7535_v12  ;;  %v7554_v12 = vld [vmem:[%s14212_s0 + $0x1c0] sm:$0xf]  ;;  %v7559_v28 = vor.u32 %v9697_v14, %v7556_v18  ;;  %v9704_v14 = vld [vmem:[%s14212_s0 + $0x1f4] sm:$0xf0]  ;;  %v9703_v18 = vld [vmem:[%s14212_s0 + $0x1f4] sm:$0xf] }
 0x1b3   :  { %1148 = vmatpush.bf16.msra.mxu3 %v10530_v11  ;;  %v936_v30 = vmax.f32 %v828_v19, 0.0  ;;  %v7555_v27 = vor.u32 %v9698_v13, %v7554_v12  ;;  %v7578_v12 = vld [vmem:[%s14212_s0 + $0x1f0] sm:$0xf]  ;;  %v10749_v13 = vld [vmem:[%s14213_s1 + $0x80] sm:$0xff] }
 0x1b6   :  { %v660_v20 = vpop.f32.mrf.mxu0 }
 0x1b7   :  { %v829_v22 = vpop.f32.mrf.mxu1  ;;  %v661_v23 = vadd.f32 %v10332_v4, %v660_v20  ;;  %1149 = vmatpush.bf16.msra.mxu3 %v10514_v54 }
 0x1b9   :  { %v830_v24 = vadd.f32 %v829_v22, %v661_v23  ;;  %v7666_v22 = vld [vmem:[%s14213_s1 + $0x20] sm:$0xf]  ;;  %v9727_v23 = vld [vmem:[%s14213_s1 + $0x2c] sm:$0xf0] }
 0x1bb   :  { %v937_v31 = vmax.f32 %v830_v24, 0.0  ;;  %1150 = vmatpush.bf16.msra.mxu3 %v10490_v36  ;;  %v7667_v24 = vor.u32 %v9727_v23, %v7666_v22  ;;  %v7579_v23 = vor.u32 %v9704_v14, %v7578_v12 }
 0x1bd   :  { %v10656_v32 = vpack.c.bf16 %v937_v31, %v936_v30  ;;  %1123 = vmatmul.bf16.gmra.mxu2 %v7667_v24 }
 0x1be   :  { %v663_v35 = vpop.f32.mrf.mxu0 }
 0x1bf   :  { %14263 = vst [vmem:[#allocation10_spill] sm:$0xff] %v10656_v32  ;;  %v832_v37 = vpop.f32.mrf.mxu1  ;;  %v664_v39 = vadd.f32 %v10332_v4, %v663_v35 }
 0x1c1   :  { %v833_v43 = vadd.f32 %v832_v37, %v664_v39  ;;  %702 = vmatmul.bf16.gmra.mxu0 %v7539_v33  ;;  %v7562_v37 = vld [vmem:[%s14212_s0 + $0x1d0] sm:$0xf]  ;;  %v9700_v39 = vld [vmem:[%s14212_s0 + $0x1d4] sm:$0xf0] }
 0x1c2   :  { %871 = vmatmul.bf16.gmra.mxu1 %v7543_v34  ;;  %v7563_v51 = vor.u32 %v9700_v39, %v7562_v37 }
 0x1c3   :  { %v938_v57 = vmax.f32 %v833_v43, 0.0  ;;  %v9699_v43 = vld [vmem:[%s14212_s0 + $0x1d4] sm:$0xf] }
 0x1c6   :  { %v665_v45 = vpop.f32.mrf.mxu0 }
 0x1c7   :  { %v834_v46 = vpop.f32.mrf.mxu1  ;;  %v666_v47 = vadd.f32 %v10332_v4, %v665_v45  ;;  %v7564_v45 = vld [vmem:[%s14212_s0 + $0x1d8] sm:$0xf0] }
 0x1c8   :  { %v7567_v53 = vor.u32 %v9699_v43, %v7564_v45 }
 0x1c9   :  { %v835_v48 = vadd.f32 %v834_v46, %v666_v47  ;;  %v7682_v46 = vld [vmem:[%s14213_s1 + $0x40] sm:$0xf]  ;;  %v9731_v47 = vld [vmem:[%s14213_s1 + $0x4c] sm:$0xf0] }
 0x1cb   :  { %v939_v41 = vmax.f32 %v835_v48, 0.0  ;;  %v7683_v48 = vor.u32 %v9731_v47, %v7682_v46 }
 0x1cd   :  { %v10678_v61 = vpack.c.bf16 %v939_v41, %v938_v57  ;;  %1128 = vmatmul.bf16.gmra.mxu2 %v7683_v48 }
 0x1ce   :  { %v668_v0 = vpop.f32.mrf.mxu0 }
 0x1cf   :  { %14264 = vst [vmem:[#allocation11_spill] sm:$0xff] %v10678_v61  ;;  %v837_v1 = vpop.f32.mrf.mxu1  ;;  %v669_v2 = vadd.f32 %v10332_v4, %v668_v0  ;;  %v9735_v0 = vld [vmem:[%s14213_s1 + $0x6c] sm:$0xf0] }
 0x1d1   :  { %v838_v3 = vadd.f32 %v837_v1, %v669_v2  ;;  %707 = vmatmul.bf16.gmra.mxu0 %v7547_v62  ;;  %v7572_v62 = vld [vmem:[%s14212_s0 + $0x1e8] sm:$0xf0]  ;;  %v7571_v2 = vor.u32 %v9702_v59, %v7570_v52 }
 0x1d2   :  { %876 = vmatmul.bf16.gmra.mxu1 %v7551_v63  ;;  %v7698_v63 = vld [vmem:[%s14213_s1 + $0x60] sm:$0xf] }
 0x1d3   :  { %v940_v19 = vmax.f32 %v838_v3, 0.0  ;;  %v7699_v1 = vor.u32 %v9735_v0, %v7698_v63  ;;  %v7575_v3 = vor.u32 %v9701_v50, %v7572_v62 }
 0x1d6   :  { %v670_v40 = vpop.f32.mrf.mxu0 }
 0x1d7   :  { %v839_v5 = vpop.f32.mrf.mxu1  ;;  %v671_v6 = vadd.f32 %v10332_v4, %v670_v40 }
 0x1d9   :  { %v840_v10 = vadd.f32 %v839_v5, %v671_v6 }
 0x1db   :  { %v941_v20 = vmax.f32 %v840_v10, 0.0 }
 0x1dd   :  { %v10700_v26 = vpack.c.bf16 %v941_v20, %v940_v19  ;;  %1133 = vmatmul.bf16.gmra.mxu2 %v7699_v1  ;;  %v7580_v19 = vld [vmem:[%s14212_s0 + $0x1f8] sm:$0xf0]  ;;  %v1066_v20 = vunpack.c.l.b16 %v10749_v13 }
 0x1de   :  { %v673_v17 = vpop.f32.mrf.mxu0  ;;  %v7583_v24 = vor.u32 %v9703_v18, %v7580_v19 }
 0x1df   :  { %14265 = vst [vmem:[#allocation12_spill] sm:$0xff] %v10700_v26  ;;  %v842_v30 = vpop.f32.mrf.mxu1  ;;  %v674_v31 = vadd.f32 %v10332_v4, %v673_v17  ;;  %v1086_v22 = vpack.c.b16 %v1066_v20, %v1066_v20 }
 0x1e1   :  { %v10703_v33 = vadd.f32 %v842_v30, %v674_v31  ;;  %712 = vmatmul.bf16.gmra.mxu0 %v7555_v27 }
 0x1e2   :  { %881 = vmatmul.bf16.gmra.mxu1 %v7559_v28 }
 0x1e3   :  { %v942_v18 = vmax.f32 %v10703_v33, 0.0  ;;  %v7658_v33 = vld [vmem:[%s14213_s1 + $0x8] sm:$0xf] }
 0x1e6   :  { %v675_v34 = vpop.f32.mrf.mxu0 }
 0x1e7   :  { %v10705_v35 = vpop.f32.mrf.mxu1  ;;  %v676_v50 = vadd.f32 %v10332_v4, %v675_v34 }
 0x1ed   :  { %1138 = vmatmul.bf16.gmra.mxu2 %v1086_v22 }
 0x1ee   :  { %v678_v56 = vpop.f32.mrf.mxu0 }
 0x1ef   :  { %v847_v49 = vpop.f32.mrf.mxu1 }
 0x1f1   :  { %717 = vmatmul.bf16.gmra.mxu0 %v7563_v51  ;;  %v679_v51 = vadd.f32 %v10332_v4, %v678_v56 }
 0x1f2   :  { %886 = vmatmul.bf16.gmra.mxu1 %v7567_v53 }
 0x1f6   :  { %v680_v57 = vpop.f32.mrf.mxu0 }
 0x1f7   :  { %v849_v41 = vpop.f32.mrf.mxu1  ;;  %v681_v46 = vadd.f32 %v10332_v4, %v680_v57  ;;  %v845_v57 = vadd.f32 %v10705_v35, %v676_v50 }
 0x1f9   :  { %v850_v62 = vadd.f32 %v849_v41, %v681_v46  ;;  %v943_v41 = vmax.f32 %v845_v57, 0.0  ;;  %v7690_v57 = vld [vmem:[%s14213_s1 + $0x48] sm:$0xf] }
 0x1fb   :  { %v945_v56 = vmax.f32 %v850_v62, 0.0  ;;  %v10786_v35 = vpack.c.bf16 %v943_v41, %v942_v18 }
 0x1fd   :  { %14268 = vst [vmem:[#allocation15_spill] sm:$0xff] %v10786_v35 }
 0x1fe   :  { %v683_v40 = vpop.f32.mrf.mxu0 }
 0x1ff   :  { %v852_v5 = vpop.f32.mrf.mxu1  ;;  %v684_v39 = vadd.f32 %v10332_v4, %v683_v40 }
 0x201   :  { %722 = vmatmul.bf16.gmra.mxu0 %v7571_v2  ;;  %v853_v53 = vadd.f32 %v852_v5, %v684_v39 }
 0x202   :  { %891 = vmatmul.bf16.gmra.mxu1 %v7575_v3  ;;  %v848_v3 = vadd.f32 %v847_v49, %v679_v51  ;;  %v7674_v51 = vld [vmem:[%s14213_s1 + $0x28] sm:$0xf] }
 0x203   :  { %v946_v40 = vmax.f32 %v853_v53, 0.0  ;;  %v9728_v53 = vld [vmem:[%s14213_s1 + $0x34] sm:$0xf0] }
 0x204   :  { %v944_v34 = vmax.f32 %v848_v3, 0.0 }
 0x206   :  { %v685_v6 = vpop.f32.mrf.mxu0  ;;  %v10778_v12 = vpack.c.bf16 %v945_v56, %v944_v34  ;;  %v9732_v56 = vld [vmem:[%s14213_s1 + $0x54] sm:$0xf0] }
 0x207   :  { %v854_v10 = vpop.f32.mrf.mxu1  ;;  %v686_v30 = vadd.f32 %v10332_v4, %v685_v6  ;;  %v7691_v34 = vor.u32 %v9732_v56, %v7690_v57 }
 0x208   :  { %14267 = vst [vmem:[#allocation14_spill] sm:$0xff] %v10778_v12 }
 0x209   :  { %v855_v47 = vadd.f32 %v854_v10, %v686_v30 }
 0x20b   :  { %v947_v63 = vmax.f32 %v855_v47, 0.0 }
 0x20d   :  { %v10773_v5 = vpack.c.bf16 %v947_v63, %v946_v40 }
 0x20e   :  { %v688_v27 = vpop.f32.mrf.mxu0 }
 0x20f   :  { %v857_v28 = vpop.f32.mrf.mxu1  ;;  %v689_v17 = vadd.f32 %v10332_v4, %v688_v27  ;;  %14266 = vst [vmem:[#allocation13_spill] sm:$0xff] %v10773_v5 }
 0x211   :  { %727 = vmatmul.bf16.gmra.mxu0 %v7579_v23  ;;  %v858_v43 = vadd.f32 %v857_v28, %v689_v17 }
 0x212   :  { %896 = vmatmul.bf16.gmra.mxu1 %v7583_v24 }
 0x213   :  { %v948_v52 = vmax.f32 %v858_v43, 0.0  ;;  %v9721_v43 = vld [vmem:[%s14213_s1 + $0x4] sm:$0xf] }
 0x216   :  { %v690_v31 = vpop.f32.mrf.mxu0 }
 0x217   :  { %v859_v37 = vpop.f32.mrf.mxu1  ;;  %v691_v45 = vadd.f32 %v10332_v4, %v690_v31  ;;  %v10810_v31 = vld [vmem:[%s14211_s5] ss:$0 sm:$0xff] }
 0x219   :  { %v860_v48 = vadd.f32 %v859_v37, %v691_v45  ;;  %v7652_v45 = vld [vmem:[%s14213_s1 + $0x10] sm:$0xf0] }
 0x21a   :  { %v7655_v46 = vor.u32 %v9721_v43, %v7652_v45 }
 0x21b   :  { %v949_v59 = vmax.f32 %v860_v48, 0.0 }
 0x21c   :  { %1151 = vmatmul.bf16.vlgmr.msra.gmra.mxu3 %v7655_v46 }
 0x21d   :  { %v10768_v0 = vpack.c.bf16 %v949_v59, %v948_v52  ;;  %v7675_v52 = vor.u32 %v9728_v53, %v7674_v51  ;;  %v9733_v51 = vld [vmem:[%s14213_s1 + $0x64] sm:$0xf]  ;;  %v7700_v53 = vld [vmem:[%s14213_s1 + $0x70] sm:$0xf0] }
 0x21e   :  { %v693_v1 = vpop.f32.mrf.mxu0 }
 0x21f   :  { %v862_v2 = vpop.f32.mrf.mxu1  ;;  %v694_v6 = vadd.f32 %v10332_v4, %v693_v1  ;;  %1176 = vmatpush.bf16.msrb.mxu2 %v10768_v0  ;;  %v9725_v1 = vld [vmem:[%s14213_s1 + $0x24] sm:$0xf] }
 0x221   :  { %v10775_v10 = vadd.f32 %v862_v2, %v694_v6  ;;  %v7668_v2 = vld [vmem:[%s14213_s1 + $0x30] sm:$0xf0] }
 0x222   :  { %v7671_v3 = vor.u32 %v9725_v1, %v7668_v2  ;;  %v9774_v2 = vld [vmem:[%s14214_s6 + $0x28] sm:$0xff] }
 0x223   :  { %1177 = vmatpush.bf16.msrb.mxu2 %v10773_v5  ;;  %1915 = vmatpush.bf16.msrb.mxu0 %v9774_v2 }
 0x226   :  { %v10780_v14 = vpop.f32.mrf.mxu0 }
 0x227   :  { %v10782_v49 = vpop.f32.mrf.mxu1  ;;  %1178 = vmatpush.bf16.msrb.mxu2 %v10778_v12 }
 0x22b   :  { %1179 = vmatpush.bf16.msrb.mxu2 %v10786_v35 }
 0x22c   :  { %1156 = vmatmul.bf16.gmra.mxu3 %v7671_v3  ;;  %v9792_v3 = vld [vmem:[%s14214_s6 + $0x38] sm:$0xff]  ;;  %v10904_v57 = vpop.f32.mrf.mxu2 }
 0x22d   :  { %2239 = vmatpush.bf16.msra.mxu1 %v9792_v3 }
 0x22e   :  { %v698_v19 = vpop.f32.mrf.mxu0 }
 0x22f   :  { %v867_v20 = vpop.f32.mrf.mxu1  ;;  %v699_v22 = vadd.f32 %v10332_v4, %v698_v19  ;;  %1180 = vmatpush.bf16.msrb.mxu2 %v10700_v26  ;;  %v9724_v4 = vld [vmem:[%s14213_s1 + $0x14] sm:$0xf0] }
 0x230   :  { %v7659_v28 = vor.u32 %v9724_v4, %v7658_v33  ;;  %v7684_v33 = vld [vmem:[%s14213_s1 + $0x50] sm:$0xf0] }
 0x231   :  { %v10791_v23 = vadd.f32 %v867_v20, %v699_v22  ;;  %v9729_v22 = vld [vmem:[%s14213_s1 + $0x44] sm:$0xf] }
 0x232   :  { %v7687_v4 = vor.u32 %v9729_v22, %v7684_v33 }
 0x233   :  { %1181 = vmatpush.bf16.msrb.mxu2 %v10678_v61 }
 0x236   :  { %v10794_v24 = vpop.f32.mrf.mxu0 }
 0x237   :  { %v10796_v27 = vpop.f32.mrf.mxu1  ;;  %1182 = vmatpush.bf16.msrb.mxu2 %v10656_v32 }
 0x23b   :  { %1183 = vmatpush.bf16.msrb.mxu2 %v10636_v8 }
 0x23c   :  { %1161 = vmatmul.bf16.gmra.mxu3 %v7687_v4 }
 0x23e   :  { %v703_v17 = vpop.f32.mrf.mxu0  ;;  %1184 = vmatmul.bf16.vlgmr.msrb.gmra.mxu2 %v7659_v28 }
 0x23f   :  { %1364 = vmatpush.bf16.msra.mxu2 %v10458_v7  ;;  %v872_v30 = vpop.f32.mrf.mxu1  ;;  %v704_v37 = vadd.f32 %v10810_v31, %v703_v17 }
 0x241   :  { %v10814_v39 = vadd.f32 %v872_v30, %v704_v37  ;;  %v7706_v30 = vld [vmem:[%s14213_s1 + $0x68] sm:$0xf]  ;;  %v9736_v37 = vld [vmem:[%s14213_s1 + $0x74] sm:$0xf0] }
 0x242   :  { %v7707_v43 = vor.u32 %v9736_v37, %v7706_v30  ;;  %v10918_v30 = vpop.f32.mrf.mxu2  ;;  %v1067_v37 = vunpack.c.h.b16 %v10749_v13 }
 0x243   :  { %1365 = vmatpush.bf16.msra.mxu2 %v10464_v16 }
 0x246   :  { %v10823_v47 = vpop.f32.mrf.mxu0 }
 0x247   :  { %1366 = vmatpush.bf16.msra.mxu2 %v10468_v25  ;;  %v10825_v48 = vpop.f32.mrf.mxu1 }
 0x24a   :  { %v10927_v2 = vpop.f32.mrf.mxu2 }
 0x24b   :  { %1367 = vmatpush.bf16.msra.mxu2 %v10474_v29 }
 0x24e   :  { %v708_v59 = vpop.f32.mrf.mxu0  ;;  %1189 = vmatmul.bf16.gmra.mxu2 %v7675_v52  ;;  %v7703_v52 = vor.u32 %v9733_v51, %v7700_v53 }
 0x24f   :  { %1368 = vmatpush.bf16.msra.mxu2 %v10396_v9  ;;  %v877_v50 = vpop.f32.mrf.mxu1  ;;  %v709_v62 = vadd.f32 %v10810_v31, %v708_v59  ;;  %v10894_v59 = vld [vmem:[%s14213_s1 + $0x88] sm:$0xff] }
 0x250   :  { %1166 = vmatmul.bf16.gmra.mxu3 %v7703_v52  ;;  %v1068_v1 = vunpack.c.l.b16 %v10894_v59  ;;  %v7732_v52 = vld [vmem:[%s14213_s1 + $0x90] sm:$0xf] }
 0x251   :  { %v10837_v63 = vadd.f32 %v877_v50, %v709_v62 }
 0x252   :  { %v1088_v56 = vpack.c.b16 %v1068_v1, %v1068_v1  ;;  %v9741_v1 = vld [vmem:[%s14213_s1 + $0x9c] sm:$0xf0] }
 0x253   :  { %1369 = vmatpush.bf16.msra.mxu2 %v10380_v55  ;;  %v7733_v3 = vor.u32 %v9741_v1, %v7732_v52  ;;  %v9745_v52 = vld [vmem:[%s14213_s1 + $0xbc] sm:$0xf0] }
 0x256   :  { %v10846_v40 = vpop.f32.mrf.mxu0 }
 0x257   :  { %1370 = vmatpush.bf16.msra.mxu2 %v10364_v38  ;;  %v10848_v6 = vpop.f32.mrf.mxu1 }
 0x25b   :  { %1371 = vmatpush.bf16.msra.mxu2 %v10348_v21 }
 0x25e   :  { %v713_v41 = vpop.f32.mrf.mxu0  ;;  %1194 = vmatmul.bf16.gmra.mxu2 %v7691_v34  ;;  %v9773_v34 = vld [vmem:[%s14214_s6 + $0x20] sm:$0xff] }
 0x25f   :  { %1430 = vmatpush.bf16.msrb.mxu2 %v10768_v0  ;;  %v882_v18 = vpop.f32.mrf.mxu1  ;;  %v714_v19 = vadd.f32 %v10810_v31, %v713_v41  ;;  %v9791_v41 = vld [vmem:[%s14214_s6 + $0x30] sm:$0xff]  ;;  %1916 = vmatpush.bf16.msrb.mxu0 %v9773_v34 }
 0x260   :  { %2240 = vmatpush.bf16.msra.mxu1 %v9791_v41  ;;  %v10929_v41 = vpop.f32.mrf.mxu2 }
 0x261   :  { %v10860_v20 = vadd.f32 %v882_v18, %v714_v19  ;;  %v7943_v18 = vld [vmem:[%s14213_s1 + $0x1b0] sm:$0xf]  ;;  %v9777_v19 = vld [vmem:[%s14213_s1 + $0x1bc] sm:$0xf0] }
 0x262   :  { %v7944_v4 = vor.u32 %v9777_v19, %v7943_v18 }
 0x263   :  { %1431 = vmatpush.bf16.msrb.mxu2 %v10773_v5 }
 0x264   :  { %2072 = vmatmul.bf16.vlgmr.msrb.gmra.mxu1 %v7944_v4 }
 0x266   :  { %v10870_v28 = vpop.f32.mrf.mxu0 }
 0x267   :  { %1432 = vmatpush.bf16.msrb.mxu2 %v10778_v12  ;;  %v10872_v17 = vpop.f32.mrf.mxu1 }
 0x26b   :  { %1433 = vmatpush.bf16.msrb.mxu2 %v10786_v35 }
 0x26e   :  { %v718_v45 = vpop.f32.mrf.mxu0  ;;  %1199 = vmatmul.bf16.gmra.mxu2 %v7707_v43  ;;  %v1087_v43 = vpack.c.b16 %v1067_v37, %v1067_v37 }
 0x26f   :  { %1434 = vmatpush.bf16.msrb.mxu2 %v10700_v26  ;;  %v10882_v46 = vpop.f32.mrf.mxu1  ;;  %v716_v26 = vadd.f32 %v10810_v31, %v10870_v28 }
 0x270   :  { %1171 = vmatmul.bf16.gmra.mxu3 %v1087_v43  ;;  %v7748_v43 = vld [vmem:[%s14213_s1 + $0xb0] sm:$0xf] }
 0x273   :  { %1435 = vmatpush.bf16.msrb.mxu2 %v10678_v61  ;;  %v7749_v61 = vor.u32 %v9745_v52, %v7748_v43  ;;  %v956_v43 = vmax.f32 %v10837_v63, 0.0  ;;  %v696_v52 = vadd.f32 %v10810_v31, %v10780_v14 }
 0x275   :  { %v865_v63 = vadd.f32 %v10782_v49, %v696_v52  ;;  %v9722_v49 = vld [vmem:[%s14213_s1 + $0xc] sm:$0xf] }
 0x276   :  { %v720_v50 = vpop.f32.mrf.mxu0 }
 0x277   :  { %1436 = vmatpush.bf16.msrb.mxu2 %v10656_v32  ;;  %v889_v62 = vpop.f32.mrf.mxu1 }
 0x27b   :  { %1437 = vmatpush.bf16.msrb.mxu2 %v10636_v8 }
 0x27e   :  { %v723_v22 = vpop.f32.mrf.mxu0  ;;  %1204 = vmatmul.bf16.gmra.mxu2 %v1088_v56 }
 0x27f   :  { %v892_v33 = vpop.f32.mrf.mxu1  ;;  %v724_v4 = vadd.f32 %v10810_v31, %v723_v22  ;;  %v719_v22 = vadd.f32 %v10810_v31, %v718_v45 }
 0x286   :  { %v725_v51 = vpop.f32.mrf.mxu0 }
 0x287   :  { %v894_v53 = vpop.f32.mrf.mxu1  ;;  %v726_v18 = vadd.f32 %v10810_v31, %v725_v51  ;;  %v10942_v51 = vpop.f32.mrf.mxu2 }
 0x28e   :  { %v728_v56 = vpop.f32.mrf.mxu0  ;;  %1372 = vmatmul.bf16.vlgmr.msra.gmra.mxu2 %v7733_v3  ;;  %v721_v3 = vadd.f32 %v10810_v31, %v720_v50  ;;  %v888_v50 = vadd.f32 %v10882_v46, %v719_v22  ;;  %v706_v46 = vadd.f32 %v10810_v31, %v10823_v47  ;;  %v701_v47 = vadd.f32 %v10810_v31, %v10794_v24 }
 0x28f   :  { %v897_v34 = vpop.f32.mrf.mxu1  ;;  %v729_v13 = vadd.f32 %v10810_v31, %v728_v56  ;;  %v895_v56 = vadd.f32 %v894_v53, %v726_v18 }
 0x290   :  { %v890_v35 = vadd.f32 %v889_v62, %v721_v3  ;;  %v10958_v62 = vpop.f32.mrf.mxu2  ;;  %v870_v24 = vadd.f32 %v10796_v27, %v701_v47  ;;  %v954_v3 = vmax.f32 %v10814_v39, 0.0  ;;  %v952_v27 = vmax.f32 %v10791_v23, 0.0  ;;  %v7660_v23 = vld [vmem:[%s14213_s1 + $0x18] sm:$0xf0] }
 0x291   :  { %v898_v37 = vadd.f32 %v897_v34, %v729_v13  ;;  %v893_v34 = vadd.f32 %v892_v33, %v724_v4  ;;  %v963_v12 = vmax.f32 %v895_v56, 0.0 }
 0x292   :  { %v961_v28 = vmax.f32 %v890_v35, 0.0  ;;  %v9749_v35 = vld [vmem:[%s14213_s1 + $0xdc] sm:$0xf0]  ;;  %v953_v56 = vmax.f32 %v870_v24, 0.0  ;;  %v7692_v24 = vld [vmem:[%s14213_s1 + $0x58] sm:$0xf0] }
 0x293   :  { %v964_v13 = vmax.f32 %v898_v37, 0.0  ;;  %v962_v53 = vmax.f32 %v893_v34, 0.0  ;;  %v950_v34 = vmax.f32 %v10775_v10, 0.0  ;;  %v9753_v10 = vld [vmem:[%s14213_s1 + $0xfc] sm:$0xf0] }
 0x294   :  { %v11007_v39 = vpack.c.bf16 %v953_v56, %v952_v27 }
 0x295   :  { %v10956_v45 = vpack.c.bf16 %v963_v12, %v962_v53  ;;  %v7764_v12 = vld [vmem:[%s14213_s1 + $0xd0] sm:$0xf] }
 0x296   :  { %v730_v19 = vpop.f32.mrf.mxu0  ;;  %v7765_v37 = vor.u32 %v9749_v35, %v7764_v12 }
 0x297   :  { %v731_v8 = vadd.f32 %v10810_v31, %v730_v19  ;;  %v899_v1 = vpop.f32.mrf.mxu1 }
 0x298   :  { %v10983_v4 = vpop.f32.mrf.mxu2 }
 0x299   :  { %v900_v32 = vadd.f32 %v899_v1, %v731_v8  ;;  %v711_v8 = vadd.f32 %v10810_v31, %v10846_v40  ;;  %v951_v31 = vmax.f32 %v865_v63, 0.0 }
 0x29b   :  { %v965_v19 = vmax.f32 %v900_v32, 0.0  ;;  %v885_v32 = vadd.f32 %v10872_v17, %v716_v26  ;;  %v880_v33 = vadd.f32 %v10848_v6, %v711_v8  ;;  %v958_v26 = vmax.f32 %v10860_v20, 0.0 }
 0x29c   :  { %v875_v6 = vadd.f32 %v10825_v48, %v706_v46  ;;  %v7663_v8 = vor.u32 %v9722_v49, %v7660_v23  ;;  %v11043_v46 = vld [vmem:[%s14213_s1 + $0x110] sm:$0xff] }
 0x29d   :  { %v10947_v5 = vpack.c.bf16 %v965_v19, %v964_v13  ;;  %v959_v40 = vmax.f32 %v885_v32, 0.0  ;;  %v957_v20 = vmax.f32 %v880_v33, 0.0  ;;  %v7780_v13 = vld [vmem:[%s14213_s1 + $0xf0] sm:$0xf]  ;;  %v9756_v19 = vld [vmem:[%s14214_s6 + $0x18] sm:$0xff]  ;;  %v1320_v33 = vunpack.c.l.b16 %v11043_v46 }
 0x29e   :  { %1377 = vmatmul.bf16.gmra.mxu2 %v7749_v61  ;;  %v960_v61 = vmax.f32 %v888_v50, 0.0  ;;  %v955_v48 = vmax.f32 %v875_v6, 0.0  ;;  %v11028_v50 = vpack.c.bf16 %v951_v31, %v950_v34  ;;  %v7781_v32 = vor.u32 %v9753_v10, %v7780_v13  ;;  %v7708_v10 = vld [vmem:[%s14213_s1 + $0x78] sm:$0xf0] }
 0x29f   :  { %1209 = vmatpush.bf16.msrb.mxu3 %v10947_v5  ;;  %2163 = vmatpush.bf16.msra.mxu0 %v10947_v5  ;;  %v10981_v17 = vpack.c.bf16 %v959_v40, %v958_v26  ;;  %v10992_v1 = vpack.c.bf16 %v957_v20, %v956_v43  ;;  %v9726_v40 = vld [vmem:[%s14213_s1 + $0x2c] sm:$0xf]  ;;  %v7676_v26 = vld [vmem:[%s14213_s1 + $0x38] sm:$0xf0]  ;;  %v1152_v12 = vpop.f32.mrf.mxu3  ;;  %v1340_v20 = vpack.c.b16 %v1320_v33, %v1320_v33 }
 0x2a0   :  { %2487 = vmatpush.bf16.msrb.mxu1 %v10947_v5  ;;  %v10966_v18 = vpack.c.bf16 %v961_v28, %v960_v61  ;;  %v10999_v22 = vpack.c.bf16 %v955_v48, %v954_v3  ;;  %v11001_v14 = vpop.f32.mrf.mxu2  ;;  %1540 = vmatpush.bf16.msra.mxu2 %v9756_v19  ;;  %v9755_v28 = vld [vmem:[%s14214_s6 + $0x10] sm:$0xff]  ;;  %v1153_v35 = vadd.f32 %v1152_v12, %v10904_v57  ;;  %v9730_v57 = vld [vmem:[%s14213_s1 + $0x4c] sm:$0xf]  ;;  %v7740_v48 = vld [vmem:[%s14213_s1 + $0x98] sm:$0xf] }
 0x2a1   :  { %v7679_v6 = vor.u32 %v9726_v40, %v7676_v26  ;;  %v9742_v3 = vld [vmem:[%s14213_s1 + $0xa4] sm:$0xf0]  ;;  %v7695_v31 = vor.u32 %v9730_v57, %v7692_v24 }
 0x2a2   :  { %v7741_v34 = vor.u32 %v9742_v3, %v7740_v48  ;;  %v9739_v48 = vld [vmem:[%s14213_s1 + $0x94] sm:$0xf]  ;;  %v7734_v3 = vld [vmem:[%s14213_s1 + $0xa0] sm:$0xf0] }
 0x2a3   :  { %1210 = vmatpush.bf16.msrb.mxu3 %v10956_v45  ;;  %2164 = vmatpush.bf16.msra.mxu0 %v10956_v45 }
 0x2a4   :  { %2488 = vmatpush.bf16.msrb.mxu1 %v10956_v45  ;;  %1541 = vmatpush.bf16.msra.mxu2 %v9755_v28 }
 0x2a7   :  { %1211 = vmatpush.bf16.msrb.mxu3 %v10966_v18  ;;  %2165 = vmatpush.bf16.msra.mxu0 %v10966_v18  ;;  %v11058_v43 = vpop.f32.mrf.mxu3 }
 0x2a8   :  { %2489 = vmatpush.bf16.msrb.mxu1 %v10966_v18  ;;  %v11030_v53 = vpop.f32.mrf.mxu2 }
 0x2ab   :  { %1212 = vmatpush.bf16.msrb.mxu3 %v10981_v17  ;;  %2166 = vmatpush.bf16.msra.mxu0 %v10981_v17 }
 0x2ac   :  { %2490 = vmatpush.bf16.msrb.mxu1 %v10981_v17 }
 0x2ae   :  { %1382 = vmatmul.bf16.gmra.mxu2 %v7765_v37 }
 0x2af   :  { %1213 = vmatpush.bf16.msrb.mxu3 %v10992_v1  ;;  %2167 = vmatpush.bf16.msra.mxu0 %v10992_v1  ;;  %v1157_v63 = vpop.f32.mrf.mxu3 }
 0x2b0   :  { %2491 = vmatpush.bf16.msrb.mxu1 %v10992_v1  ;;  %v1141_v61 = vpop.f32.mrf.mxu2  ;;  %v1158_v56 = vadd.f32 %v1157_v63, %v10927_v2  ;;  %v9734_v2 = vld [vmem:[%s14213_s1 + $0x6c] sm:$0xf]  ;;  %v7737_v63 = vor.u32 %v9739_v48, %v7734_v3  ;;  %v11167_v3 = vld [vmem:[%s14213_s1 + $0x118] sm:$0xff] }
 0x2b1   :  { %v7711_v28 = vor.u32 %v9734_v2, %v7708_v10 }
 0x2b3   :  { %1214 = vmatpush.bf16.msrb.mxu3 %v10999_v22  ;;  %2168 = vmatpush.bf16.msra.mxu0 %v10999_v22 }
 0x2b4   :  { %2492 = vmatpush.bf16.msrb.mxu1 %v10999_v22 }
 0x2b7   :  { %1215 = vmatpush.bf16.msrb.mxu3 %v11007_v39  ;;  %2169 = vmatpush.bf16.msra.mxu0 %v11007_v39  ;;  %v11083_v23 = vpop.f32.mrf.mxu3 }
 0x2b8   :  { %2493 = vmatpush.bf16.msrb.mxu1 %v11007_v39 }
 0x2bb   :  { %1216 = vmatpush.bf16.msrb.mxu3 %v11028_v50  ;;  %2170 = vmatpush.bf16.msra.mxu0 %v11028_v50 }
 0x2bc   :  { %2494 = vmatpush.bf16.msrb.mxu1 %v11028_v50 }
 0x2be   :  { %1217 = vmatmul.bf16.vlgmr.msrb.gmra.mxu3 %v7663_v8  ;;  %1387 = vmatmul.bf16.gmra.mxu2 %v7781_v32 }
 0x2bf   :  { %1397 = vmatpush.bf16.msra.mxu3 %v10608_v44  ;;  %v1162_v19 = vpop.f32.mrf.mxu3 }
 0x2c0   :  { %v1163_v8 = vadd.f32 %v1162_v19, %v10942_v51  ;;  %v1069_v51 = vunpack.c.h.b16 %v10894_v59  ;;  %v9746_v59 = vld [vmem:[%s14213_s1 + $0xc4] sm:$0xf0] }
 0x2c1   :  { %v1185_v47 = vpop.f32.mrf.mxu2 }
 0x2c2   :  { %v11055_v37 = vadd.f32 %v1185_v47, %v1153_v35  ;;  %v1089_v47 = vpack.c.b16 %v1069_v51, %v1069_v51 }
 0x2c3   :  { %1398 = vmatpush.bf16.msra.mxu3 %v10613_v58 }
 0x2c7   :  { %1399 = vmatpush.bf16.msra.mxu3 %v10616_v60  ;;  %v11104_v33 = vpop.f32.mrf.mxu3 }
 0x2c9   :  { %v11061_v52 = vpop.f32.mrf.mxu2 }
 0x2cb   :  { %1400 = vmatpush.bf16.msra.mxu3 %v10621_v42 }
 0x2ce   :  { %1222 = vmatmul.bf16.gmra.mxu3 %v7679_v6  ;;  %1392 = vmatmul.bf16.gmra.mxu2 %v1340_v20  ;;  %v7756_v20 = vld [vmem:[%s14213_s1 + $0xb8] sm:$0xf] }
 0x2cf   :  { %1401 = vmatpush.bf16.msra.mxu3 %v10546_v15  ;;  %v7757_v57 = vor.u32 %v9746_v59, %v7756_v20  ;;  %v9747_v20 = vld [vmem:[%s14213_s1 + $0xd4] sm:$0xf]  ;;  %v7766_v59 = vld [vmem:[%s14213_s1 + $0xe0] sm:$0xf0] }
 0x2d1   :  { %v1190_v27 = vpop.f32.mrf.mxu2 }
 0x2d2   :  { %v11079_v49 = vadd.f32 %v1190_v27, %v1158_v56 }
 0x2d3   :  { %1402 = vmatpush.bf16.msra.mxu3 %v10530_v11  ;;  %v1167_v26 = vpop.f32.mrf.mxu3 }
 0x2d4   :  { %v1168_v12 = vadd.f32 %v1167_v26, %v10983_v4  ;;  %v7788_v26 = vld [vmem:[%s14213_s1 + $0xf8] sm:$0xf] }
 0x2d7   :  { %1403 = vmatpush.bf16.msra.mxu3 %v10514_v54 }
 0x2d9   :  { %v11086_v13 = vpop.f32.mrf.mxu2 }
 0x2db   :  { %1404 = vmatpush.bf16.msra.mxu3 %v10490_v36  ;;  %v11123_v24 = vpop.f32.mrf.mxu3 }
 0x2de   :  { %1227 = vmatmul.bf16.gmra.mxu3 %v7695_v31  ;;  %1438 = vmatmul.bf16.vlgmr.msrb.gmra.mxu2 %v7741_v34  ;;  %v7772_v31 = vld [vmem:[%s14213_s1 + $0xd8] sm:$0xf]  ;;  %v9750_v34 = vld [vmem:[%s14213_s1 + $0xe4] sm:$0xf0] }
 0x2df   :  { %1463 = vmatpush.bf16.msrb.mxu3 %v10947_v5  ;;  %1740 = vmatpush.bf16.msrb.mxu2 %v10458_v7  ;;  %v7773_v10 = vor.u32 %v9750_v34, %v7772_v31  ;;  %v9751_v31 = vld [vmem:[%s14213_s1 + $0xf4] sm:$0xf]  ;;  %v7782_v34 = vld [vmem:[%s14213_s1 + $0x100] sm:$0xf0] }
 0x2e1   :  { %v1195_v32 = vpop.f32.mrf.mxu2 }
 0x2e2   :  { %v11099_v61 = vadd.f32 %v1195_v32, %v1163_v8 }
 0x2e3   :  { %1464 = vmatpush.bf16.msrb.mxu3 %v10956_v45  ;;  %1741 = vmatpush.bf16.msrb.mxu2 %v10464_v16 }
 0x2e7   :  { %1465 = vmatpush.bf16.msrb.mxu3 %v10966_v18  ;;  %1742 = vmatpush.bf16.msrb.mxu2 %v10468_v25 }
 0x2e9   :  { %v11107_v40 = vpop.f32.mrf.mxu2 }
 0x2eb   :  { %1466 = vmatpush.bf16.msrb.mxu3 %v10981_v17  ;;  %1743 = vmatpush.bf16.msrb.mxu2 %v10474_v29 }
 0x2ee   :  { %1232 = vmatmul.bf16.gmra.mxu3 %v7711_v28  ;;  %1443 = vmatmul.bf16.gmra.mxu2 %v7757_v57  ;;  %v7750_v28 = vld [vmem:[%s14213_s1 + $0xc0] sm:$0xf0]  ;;  %v7769_v57 = vor.u32 %v9747_v20, %v7766_v59 }
 0x2ef   :  { %1467 = vmatpush.bf16.msrb.mxu3 %v10992_v1  ;;  %1744 = vmatpush.bf16.msrb.mxu2 %v10396_v9 }
 0x2f1   :  { %v1200_v35 = vpop.f32.mrf.mxu2 }
 0x2f2   :  { %v11114_v6 = vadd.f32 %v1200_v35, %v1168_v12  ;;  %v9754_v12 = vld [vmem:[%s14213_s1 + $0x104] sm:$0xf0] }
 0x2f3   :  { %1468 = vmatpush.bf16.msrb.mxu3 %v10999_v22  ;;  %1745 = vmatpush.bf16.msrb.mxu2 %v10380_v55  ;;  %v1172_v56 = vpop.f32.mrf.mxu3  ;;  %v7789_v35 = vor.u32 %v9754_v12, %v7788_v26  ;;  %v1321_v12 = vunpack.c.h.b16 %v11043_v46 }
 0x2f4   :  { %v1173_v27 = vadd.f32 %v1172_v56, %v11030_v53  ;;  %v9743_v53 = vld [vmem:[%s14213_s1 + $0xb4] sm:$0xf] }
 0x2f5   :  { %v7753_v51 = vor.u32 %v9743_v53, %v7750_v28 }
 0x2f7   :  { %1469 = vmatpush.bf16.msrb.mxu3 %v11007_v39  ;;  %1746 = vmatpush.bf16.msrb.mxu2 %v10364_v38 }
 0x2f9   :  { %v11125_v4 = vpop.f32.mrf.mxu2 }
 0x2fb   :  { %1470 = vmatpush.bf16.msrb.mxu3 %v11028_v50  ;;  %1747 = vmatpush.bf16.msrb.mxu2 %v10348_v21  ;;  %v1174_v8 = vpop.f32.mrf.mxu3 }
 0x2fe   :  { %1237 = vmatmul.bf16.gmra.mxu3 %v1089_v47  ;;  %1448 = vmatmul.bf16.gmra.mxu2 %v7773_v10  ;;  %v7785_v10 = vor.u32 %v9751_v31, %v7782_v34 }
 0x301   :  { %v1205_v2 = vpop.f32.mrf.mxu2 }
 0x302   :  { %v11140_v19 = vadd.f32 %v1205_v2, %v1173_v27  ;;  %v9738_v2 = vld [vmem:[%s14214_s6 + $0x8] sm:$0xff] }
 0x309   :  { %v1207_v32 = vpop.f32.mrf.mxu2 }
 0x30a   :  { %v9737_v32 = vld [vmem:[%s14214_s6] sm:$0xff] }
 0x30e   :  { %1405 = vmatmul.bf16.vlgmr.msra.gmra.mxu3 %v7737_v63  ;;  %1453 = vmatmul.bf16.gmra.mxu2 %v7789_v35  ;;  %v1322_v63 = vunpack.c.l.b16 %v11167_v3 }
 0x30f   :  { %1600 = vmatpush.bf16.msra.mxu3 %v9738_v2 }
 0x310   :  { %v1342_v56 = vpack.c.b16 %v1322_v63, %v1322_v63 }
 0x311   :  { %v11154_v47 = vpop.f32.mrf.mxu2 }
 0x313   :  { %1601 = vmatpush.bf16.msra.mxu3 %v9737_v32 }
 0x319   :  { %v11162_v48 = vpop.f32.mrf.mxu2 }
 0x31e   :  { %1410 = vmatmul.bf16.gmra.mxu3 %v7753_v51  ;;  %1458 = vmatmul.bf16.gmra.mxu2 %v1342_v56  ;;  %v1155_v51 = vadd.f32 %v11058_v43, %v10918_v30  ;;  %v1160_v30 = vadd.f32 %v11083_v23, %v10929_v41  ;;  %v9740_v43 = vld [vmem:[%s14213_s1 + $0x9c] sm:$0xf] }
 0x320   :  { %v1188_v35 = vadd.f32 %v11061_v52, %v1155_v51  ;;  %v7742_v52 = vld [vmem:[%s14213_s1 + $0xa8] sm:$0xf0]  ;;  %v1193_v34 = vadd.f32 %v11086_v13, %v1160_v30  ;;  %v1165_v13 = vadd.f32 %v11104_v33, %v10958_v62 }
 0x321   :  { %v11170_v27 = vpop.f32.mrf.mxu2 }
 0x329   :  { %v11181_v8 = vpop.f32.mrf.mxu2 }
 0x32e   :  { %1415 = vmatmul.bf16.gmra.mxu3 %v7769_v57  ;;  %v1341_v57 = vpack.c.b16 %v1321_v12, %v1321_v12  ;;  %v9744_v12 = vld [vmem:[%s14213_s1 + $0xbc] sm:$0xf] }
 0x331   :  { %v11191_v26 = vpop.f32.mrf.mxu2 }
 0x339   :  { %v11199_v56 = vpop.f32.mrf.mxu2 }
 0x33e   :  { %1420 = vmatmul.bf16.gmra.mxu3 %v7785_v10 }
 0x341   :  { %v1218_v53 = vpop.f32.mrf.mxu3  ;;  %v11206_v46 = vpop.f32.mrf.mxu2 }
 0x342   :  { %v11187_v28 = vadd.f32 %v1218_v53, %v11055_v37 }
 0x349   :  { %v1220_v20 = vpop.f32.mrf.mxu3  ;;  %v11219_v41 = vpop.f32.mrf.mxu2 }
 0x34a   :  { %v11195_v59 = vadd.f32 %v1220_v20, %v1188_v35  ;;  %v7758_v35 = vld [vmem:[%s14213_s1 + $0xc8] sm:$0xf0] }
 0x34c   :  { %v1242_v63 = vpack.c.bf16 %v11195_v59, %v11187_v28 }
 0x34e   :  { %1425 = vmatmul.bf16.gmra.mxu3 %v1341_v57 }
 0x351   :  { %v1223_v37 = vpop.f32.mrf.mxu3  ;;  %v11228_v51 = vpop.f32.mrf.mxu2 }
 0x352   :  { %v11202_v31 = vadd.f32 %v1223_v37, %v11079_v49  ;;  %v7745_v49 = vor.u32 %v9740_v43, %v7742_v52  ;;  %v7761_v37 = vor.u32 %v9744_v12, %v7758_v35 }
 0x359   :  { %v1225_v2 = vpop.f32.mrf.mxu3  ;;  %v1395_v33 = vpop.f32.mrf.mxu2 }
 0x35a   :  { %v11215_v10 = vadd.f32 %v1225_v2, %v1193_v34  ;;  %v9748_v34 = vld [vmem:[%s14213_s1 + $0xdc] sm:$0xf]  ;;  %v7774_v2 = vld [vmem:[%s14213_s1 + $0xe8] sm:$0xf0] }
 0x35c   :  { %v1243_v32 = vpack.c.bf16 %v11215_v10, %v11202_v31 }
 0x35e   :  { %1471 = vmatmul.bf16.vlgmr.msrb.gmra.mxu3 %v7745_v49 }
 0x35f   :  { %1773 = vmatpush.bf16.msrb.mxu3 %v10608_v44 }
 0x361   :  { %v1228_v23 = vpop.f32.mrf.mxu3  ;;  %v1439_v52 = vpop.f32.mrf.mxu2 }
 0x362   :  { %v11223_v53 = vadd.f32 %v1228_v23, %v11099_v61  ;;  %v1198_v61 = vadd.f32 %v11107_v40, %v1165_v13  ;;  %v1170_v40 = vadd.f32 %v11123_v24, %v11001_v14  ;;  %v7777_v13 = vor.u32 %v9748_v34, %v7774_v2 }
 0x363   :  { %1774 = vmatpush.bf16.msrb.mxu3 %v10613_v58 }
 0x364   :  { %v1203_v49 = vadd.f32 %v11125_v4, %v1170_v40  ;;  %v7790_v4 = vld [vmem:[%s14213_s1 + $0x108] sm:$0xf0] }
 0x367   :  { %1775 = vmatpush.bf16.msrb.mxu3 %v10616_v60 }
 0x369   :  { %v1230_v20 = vpop.f32.mrf.mxu3  ;;  %v1441_v24 = vpop.f32.mrf.mxu2 }
 0x36a   :  { %v11238_v57 = vadd.f32 %v1230_v20, %v1198_v61  ;;  %v9752_v20 = vld [vmem:[%s14213_s1 + $0xfc] sm:$0xf] }
 0x36b   :  { %1776 = vmatpush.bf16.msrb.mxu3 %v10621_v42  ;;  %v7793_v33 = vor.u32 %v9752_v20, %v7790_v4 }
 0x36e   :  { %1476 = vmatmul.bf16.gmra.mxu3 %v7761_v37 }
 0x36f   :  { %1777 = vmatpush.bf16.msrb.mxu3 %v10546_v15 }
 0x371   :  { %v1233_v30 = vpop.f32.mrf.mxu3  ;;  %v1444_v61 = vpop.f32.mrf.mxu2 }
 0x372   :  { %v11245_v43 = vadd.f32 %v1233_v30, %v11114_v6 }
 0x373   :  { %1778 = vmatpush.bf16.msrb.mxu3 %v10530_v11 }
 0x377   :  { %1779 = vmatpush.bf16.msrb.mxu3 %v10514_v54 }
 0x379   :  { %v1235_v6 = vpop.f32.mrf.mxu3  ;;  %v1446_v30 = vpop.f32.mrf.mxu2 }
 0x37a   :  { %v1236_v23 = vadd.f32 %v1235_v6, %v1203_v49 }
 0x37b   :  { %1780 = vmatpush.bf16.msrb.mxu3 %v10490_v36 }
 0x37c   :  { %v1245_v14 = vpack.c.bf16 %v1236_v23, %v11245_v43 }
 0x37e   :  { %1481 = vmatmul.bf16.gmra.mxu3 %v7777_v13 }
 0x381   :  { %v1238_v12 = vpop.f32.mrf.mxu3  ;;  %v1449_v2 = vpop.f32.mrf.mxu2 }
 0x382   :  { %v1239_v35 = vadd.f32 %v1238_v12, %v11140_v19  ;;  %v1323_v19 = vunpack.c.h.b16 %v11167_v3 }
 0x384   :  { %v1343_v6 = vpack.c.b16 %v1323_v19, %v1323_v19 }
 0x389   :  { %v1240_v37 = vpop.f32.mrf.mxu3  ;;  %v11269_v23 = vpop.f32.mrf.mxu2 }
 0x38e   :  { %1486 = vmatmul.bf16.gmra.mxu3 %v7793_v33 }
 0x391   :  { %v1406_v40 = vpop.f32.mrf.mxu3  ;;  %v1454_v37 = vpop.f32.mrf.mxu2 }
 0x392   :  { %v1407_v43 = vadd.f32 %v1406_v40, %v11154_v47  ;;  %v14269_v40 = vpack.c.bf16 %v11238_v57, %v11223_v53 }
 0x394   :  { %v1440_v34 = vadd.f32 %v1439_v52, %v1407_v43 }
 0x399   :  { %v1408_v49 = vpop.f32.mrf.mxu3  ;;  %v11272_v4 = vpop.f32.mrf.mxu2 }
 0x39e   :  { %1491 = vmatmul.bf16.gmra.mxu3 %v1343_v6 }
 0x3a1   :  { %v1411_v13 = vpop.f32.mrf.mxu3 }
 0x3a2   :  { %v1412_v12 = vadd.f32 %v1411_v13, %v11170_v27  ;;  %v1459_v27 = vpop.f32.mrf.mxu2 }
 0x3a4   :  { %v1445_v62 = vadd.f32 %v1444_v61, %v1412_v12 }
 0x3a9   :  { %v1413_v20 = vpop.f32.mrf.mxu3 }
 0x3aa   :  { %v1461_v33 = vpop.f32.mrf.mxu2  ;;  %v1414_v57 = vadd.f32 %v1413_v20, %v11181_v8  ;;  %v14273_v8 = vld [vmem:[#allocation12_spill] sm:$0xff] }
 0x3ab   :  { %v14272_v33 = vld [vmem:[#allocation15_spill] sm:$0xff] }
 0x3ae   :  { %7819 = vmatmul.msk.bf16.vlgmr.msra.gmra.mxu3 %vm1518_vm0, %v1242_v63 }
 0x3af   :  { %1839 = vmatpush.bf16.msra.mxu3 %v10947_v5 }
 0x3b1   :  { %v1416_v47 = vpop.f32.mrf.mxu3 }
 0x3b2   :  { %v1417_v3 = vadd.f32 %v1416_v47, %v11191_v26 }
 0x3b3   :  { %1840 = vmatpush.bf16.msra.mxu3 %v10956_v45 }
 0x3b4   :  { %v1450_v52 = vadd.f32 %v1449_v2, %v1417_v3  ;;  %v1409_v2 = vadd.f32 %v1408_v49, %v11162_v48  ;;  %v9757_v48 = vld [vmem:[%s14213_s1 + $0x124] sm:$0xf] }
 0x3b6   :  { %v1442_v19 = vadd.f32 %v1441_v24, %v1409_v2  ;;  %v7846_v24 = vld [vmem:[%s14213_s1 + $0x130] sm:$0xf0] }
 0x3b7   :  { %1841 = vmatpush.bf16.msra.mxu3 %v10966_v18 }
 0x3b9   :  { %v1418_v61 = vpop.f32.mrf.mxu3 }
 0x3bb   :  { %1842 = vmatpush.bf16.msra.mxu3 %v10981_v17 }
 0x3be   :  { %7820 = vmatmul.msk.bf16.gmra.mxu3 %vm1518_vm0, %v1243_v32 }
 0x3bf   :  { %1843 = vmatpush.bf16.msra.mxu3 %v10992_v1 }
 0x3c1   :  { %v1421_v28 = vpop.f32.mrf.mxu3 }
 0x3c2   :  { %v1422_v26 = vadd.f32 %v1421_v28, %v11206_v46 }
 0x3c3   :  { %1844 = vmatpush.bf16.msra.mxu3 %v10999_v22 }
 0x3c4   :  { %v11290_v59 = vadd.f32 %v1454_v37, %v1422_v26  ;;  %v1246_v37 = vpack.c.bf16 %v1239_v35, %v1239_v35  ;;  %v1447_v35 = vadd.f32 %v1446_v30, %v1414_v57  ;;  %v14274_v26 = vld [vmem:[#allocation11_spill] sm:$0xff]  ;;  %v1419_v30 = vadd.f32 %v1418_v61, %v11199_v56 }
 0x3c7   :  { %1845 = vmatpush.bf16.msra.mxu3 %v11007_v39 }
 0x3c9   :  { %v1423_v63 = vpop.f32.mrf.mxu3 }
 0x3cb   :  { %1846 = vmatpush.bf16.msra.mxu3 %v11028_v50 }
 0x3ce   :  { %7821 = vmatmul.msk.bf16.gmra.mxu3 %vm1518_vm0, %v14269_v40  ;;  %v9761_v40 = vld [vmem:[%s14213_s1 + $0x144] sm:$0xf] }
 0x3d1   :  { %v1426_v31 = vpop.f32.mrf.mxu3 }
 0x3d2   :  { %v1427_v10 = vadd.f32 %v1426_v31, %v11228_v51  ;;  %v14270_v51 = vld [vmem:[#allocation13_spill] sm:$0xff]  ;;  %v7862_v31 = vld [vmem:[%s14213_s1 + $0x150] sm:$0xf0] }
 0x3d4   :  { %v11299_v32 = vadd.f32 %v1459_v27, %v1427_v10  ;;  %v7849_v27 = vor.u32 %v9757_v48, %v7846_v24  ;;  %v1452_v10 = vadd.f32 %v11269_v23, %v1419_v30  ;;  %v9765_v23 = vld [vmem:[%s14213_s1 + $0x164] sm:$0xf] }
 0x3d5   :  { %v9769_v48 = vld [vmem:[%s14213_s1 + $0x184] sm:$0xf] }
 0x3d9   :  { %v1428_v46 = vpop.f32.mrf.mxu3 }
 0x3de   :  { %7822 = vmatmul.msk.bf16.gmra.mxu3 %vm1518_vm0, %v1245_v14  ;;  %v14271_v14 = vld [vmem:[#allocation14_spill] sm:$0xff] }
 0x3e1   :  { %v1472_v43 = vpop.f32.mrf.mxu3 }
 0x3e2   :  { %v1473_v13 = vadd.f32 %v1472_v43, %v1440_v34 }
 0x3e9   :  { %v1474_v6 = vpop.f32.mrf.mxu3 }
 0x3ea   :  { %v1475_v12 = vadd.f32 %v1474_v6, %v1442_v19  ;;  %v7865_v19 = vor.u32 %v9761_v40, %v7862_v31  ;;  %v14276_v6 = vld [vmem:[#allocation9_spill] sm:$0xff] }
 0x3ec   :  { %v1496_v47 = vpack.c.bf16 %v1475_v12, %v1473_v13  ;;  %v1424_v13 = vadd.f32 %v1423_v63, %v11219_v41 }
 0x3ee   :  { %7806 = vmatmul.msk.bf16.vlgmr.msra.gmra.mxu2 %vm1518_vm0, %v1496_v47  ;;  %7823 = vmatmul.msk.bf16.gmra.mxu3 %vm1518_vm0, %v1246_v37  ;;  %v1457_v12 = vadd.f32 %v11272_v4, %v1424_v13  ;;  %v7894_v4 = vld [vmem:[%s14213_s1 + $0x190] sm:$0xf0] }
 0x3ef   :  { %1806 = vmatpush.bf16.msra.mxu2 %v10768_v0 }
 0x3f1   :  { %v1477_v53 = vpop.f32.mrf.mxu3 }
 0x3f2   :  { %v1478_v49 = vadd.f32 %v1477_v53, %v1445_v62  ;;  %v14275_v62 = vld [vmem:[#allocation10_spill] sm:$0xff] }
 0x3f3   :  { %1807 = vmatpush.bf16.msra.mxu2 %v14270_v51 }
 0x3f7   :  { %1808 = vmatpush.bf16.msra.mxu2 %v14271_v14 }
 0x3f9   :  { %v1479_v34 = vpop.f32.mrf.mxu3 }
 0x3fa   :  { %v1480_v3 = vadd.f32 %v1479_v34, %v1447_v35  ;;  %v7897_v35 = vor.u32 %v9769_v48, %v7894_v4  ;;  %v9771_v48 = vld [vmem:[%s14213_s1 + $0x18c] sm:$0xf0]  ;;  %v9766_v4 = vld [vmem:[%s14213_s1 + $0x16c] sm:$0xf] }
 0x3fb   :  { %1809 = vmatpush.bf16.msra.mxu2 %v14272_v33 }
 0x3fc   :  { %v1497_v28 = vpack.c.bf16 %v1480_v3, %v1478_v49  ;;  %v11359_v3 = vld [vmem:[%s14213_s1 + $0x1a0] sm:$0xff] }
 0x3fe   :  { %7807 = vmatmul.msk.bf16.gmra.mxu2 %vm1518_vm0, %v1497_v28  ;;  %1781 = vmatmul.bf16.vlgmr.msrb.gmra.mxu3 %v7849_v27  ;;  %v1697_v27 = vunpack.c.h.b16 %v11359_v3  ;;  %v7844_v28 = vld [vmem:[%s14213_s1 + $0x120] sm:$0xf] }
 0x3ff   :  { %1810 = vmatpush.bf16.msra.mxu2 %v14273_v8  ;;  %2130 = vmatpush.bf16.msrb.mxu3 %v10768_v0 }
 0x400   :  { %v1717_v40 = vpack.c.b16 %v1697_v27, %v1697_v27 }
 0x401   :  { %v1482_v20 = vpop.f32.mrf.mxu3 }
 0x402   :  { %v1483_v43 = vadd.f32 %v1482_v20, %v1450_v52  ;;  %v7878_v52 = vld [vmem:[%s14213_s1 + $0x170] sm:$0xf0] }
 0x403   :  { %1811 = vmatpush.bf16.msra.mxu2 %v14274_v26  ;;  %2131 = vmatpush.bf16.msrb.mxu3 %v14270_v51  ;;  %v7881_v57 = vor.u32 %v9765_v23, %v7878_v52  ;;  %v7876_v23 = vld [vmem:[%s14213_s1 + $0x160] sm:$0xf]  ;;  %v9767_v52 = vld [vmem:[%s14213_s1 + $0x16c] sm:$0xf0] }
 0x407   :  { %1812 = vmatpush.bf16.msra.mxu2 %v14275_v62  ;;  %2132 = vmatpush.bf16.msrb.mxu3 %v14271_v14 }
 0x409   :  { %v1484_v46 = vpop.f32.mrf.mxu3 }
 0x40a   :  { %v1485_v2 = vadd.f32 %v1484_v46, %v1452_v10  ;;  %v7860_v10 = vld [vmem:[%s14213_s1 + $0x140] sm:$0xf]  ;;  %v9763_v46 = vld [vmem:[%s14213_s1 + $0x14c] sm:$0xf0] }
 0x40b   :  { %1813 = vmatpush.bf16.msra.mxu2 %v14276_v6  ;;  %2133 = vmatpush.bf16.msrb.mxu3 %v14272_v33 }
 0x40c   :  { %v1498_v56 = vpack.c.bf16 %v1485_v2, %v1483_v43  ;;  %v9758_v43 = vld [vmem:[%s14213_s1 + $0x12c] sm:$0xf]  ;;  %v7854_v2 = vld [vmem:[%s14213_s1 + $0x138] sm:$0xf0] }
 0x40e   :  { %7808 = vmatmul.msk.bf16.gmra.mxu2 %vm1518_vm0, %v1498_v56  ;;  %1786 = vmatmul.bf16.gmra.mxu3 %v7865_v19  ;;  %v7861_v56 = vor.u32 %v9763_v46, %v7860_v10  ;;  %v7902_v10 = vld [vmem:[%s14213_s1 + $0x198] sm:$0xf0] }
 0x40f   :  { %2134 = vmatpush.bf16.msrb.mxu3 %v14273_v8 }
 0x411   :  { %v1487_v61 = vpop.f32.mrf.mxu3 }
 0x412   :  { %v1488_v47 = vadd.f32 %v1487_v61, %v11290_v59  ;;  %v7857_v61 = vor.u32 %v9758_v43, %v7854_v2 }
 0x413   :  { %2135 = vmatpush.bf16.msrb.mxu3 %v14274_v26 }
 0x417   :  { %2136 = vmatpush.bf16.msrb.mxu3 %v14275_v62 }
 0x419   :  { %v1489_v37 = vpop.f32.mrf.mxu3 }
 0x41a   :  { %v1490_v53 = vadd.f32 %v1489_v37, %v1457_v12  ;;  %v9762_v12 = vld [vmem:[%s14213_s1 + $0x14c] sm:$0xf]  ;;  %v7870_v37 = vld [vmem:[%s14213_s1 + $0x158] sm:$0xf0] }
 0x41b   :  { %2137 = vmatpush.bf16.msrb.mxu3 %v14276_v6 }
 0x41c   :  { %v1499_v41 = vpack.c.bf16 %v1490_v53, %v1488_v47  ;;  %v7877_v53 = vor.u32 %v9767_v52, %v7876_v23 }
 0x41e   :  { %7809 = vmatmul.msk.bf16.gmra.mxu2 %vm1518_vm0, %v1499_v41  ;;  %1791 = vmatmul.bf16.gmra.mxu3 %v7881_v57  ;;  %v7873_v57 = vor.u32 %v9762_v12, %v7870_v37  ;;  %v7852_v12 = vld [vmem:[%s14213_s1 + $0x128] sm:$0xf] }
 0x421   :  { %v1492_v63 = vpop.f32.mrf.mxu3 }
 0x422   :  { %v1493_v24 = vadd.f32 %v1492_v63, %v11299_v32  ;;  %v9759_v32 = vld [vmem:[%s14213_s1 + $0x12c] sm:$0xf0]  ;;  %v7892_v63 = vld [vmem:[%s14213_s1 + $0x180] sm:$0xf] }
 0x423   :  { %v7845_v30 = vor.u32 %v9759_v32, %v7844_v28 }
 0x424   :  { %v1500_v34 = vpack.c.bf16 %v1493_v24, %v1493_v24  ;;  %v7886_v24 = vld [vmem:[%s14213_s1 + $0x178] sm:$0xf0] }
 0x429   :  { %v1494_v59 = vpop.f32.mrf.mxu3 }
 0x42e   :  { %7810 = vmatmul.msk.bf16.gmra.mxu2 %vm1518_vm0, %v1500_v34  ;;  %1796 = vmatmul.bf16.gmra.mxu3 %v7897_v35  ;;  %v7893_v35 = vor.u32 %v9771_v48, %v7892_v63  ;;  %v7889_v34 = vor.u32 %v9766_v4, %v7886_v24  ;;  %v7868_v24 = vld [vmem:[%s14213_s1 + $0x148] sm:$0xf] }
 0x431   :  { %v1603_v49 = vpop.f32.mrf.mxu3 }
 0x439   :  { %v1605_v20 = vpop.f32.mrf.mxu3 }
 0x43e   :  { %1748 = vmatmul.bf16.vlgmr.msrb.gmra.mxu2 %v7845_v30  ;;  %1801 = vmatmul.bf16.gmra.mxu3 %v1717_v40  ;;  %v1696_v30 = vunpack.c.l.b16 %v11359_v3  ;;  %v9770_v40 = vld [vmem:[%s14213_s1 + $0x18c] sm:$0xf] }
 0x43f   :  { %2097 = vmatpush.bf16.msrb.mxu2 %v10608_v44  ;;  %v11440_v3 = vld [vmem:[%s14213_s1 + $0x1a8] sm:$0xff] }
 0x440   :  { %v1699_v52 = vunpack.c.h.b16 %v11440_v3 }
 0x441   :  { %v1608_v31 = vpop.f32.mrf.mxu3 }
 0x443   :  { %2098 = vmatpush.bf16.msrb.mxu2 %v10613_v58 }
 0x447   :  { %2099 = vmatpush.bf16.msrb.mxu2 %v10616_v60 }
 0x449   :  { %v1610_v19 = vpop.f32.mrf.mxu3 }
 0x44b   :  { %2100 = vmatpush.bf16.msrb.mxu2 %v10621_v42 }
 0x44e   :  { %1753 = vmatmul.bf16.gmra.mxu2 %v7861_v56  ;;  %1847 = vmatmul.bf16.vlgmr.msra.gmra.mxu3 %v7857_v61  ;;  %v1716_v56 = vpack.c.b16 %v1696_v30, %v1696_v30  ;;  %v7905_v61 = vor.u32 %v9770_v40, %v7902_v10 }
 0x44f   :  { %2101 = vmatpush.bf16.msrb.mxu2 %v10546_v15  ;;  %2421 = vmatpush.bf16.msra.mxu3 %v10608_v44 }
 0x451   :  { %v1613_v13 = vpop.f32.mrf.mxu3 }
 0x453   :  { %2102 = vmatpush.bf16.msrb.mxu2 %v10530_v11  ;;  %2422 = vmatpush.bf16.msra.mxu3 %v10613_v58 }
 0x457   :  { %2103 = vmatpush.bf16.msrb.mxu2 %v10514_v54  ;;  %2423 = vmatpush.bf16.msra.mxu3 %v10616_v60 }
 0x459   :  { %v1615_v47 = vpop.f32.mrf.mxu3 }
 0x45b   :  { %2104 = vmatpush.bf16.msrb.mxu2 %v10490_v36  ;;  %2424 = vmatpush.bf16.msra.mxu3 %v10621_v42 }
 0x45e   :  { %1758 = vmatmul.bf16.gmra.mxu2 %v7877_v53  ;;  %1852 = vmatmul.bf16.gmra.mxu3 %v7873_v57  ;;  %v1719_v57 = vpack.c.b16 %v1699_v52, %v1699_v52 }
 0x45f   :  { %2425 = vmatpush.bf16.msra.mxu3 %v10546_v15 }
 0x461   :  { %v1618_v41 = vpop.f32.mrf.mxu3 }
 0x463   :  { %2426 = vmatpush.bf16.msra.mxu3 %v10530_v11 }
 0x467   :  { %2427 = vmatpush.bf16.msra.mxu3 %v10514_v54 }
 0x469   :  { %v11419_v59 = vpop.f32.mrf.mxu3 }
 0x46b   :  { %2428 = vmatpush.bf16.msra.mxu3 %v10490_v36 }
 0x46e   :  { %1763 = vmatmul.bf16.gmra.mxu2 %v7893_v35  ;;  %1857 = vmatmul.bf16.gmra.mxu3 %v7889_v34  ;;  %v7951_v35 = vld [vmem:[%s14213_s1 + $0x1b8] sm:$0xf] }
 0x471   :  { %v1543_v27 = vpop.f32.mrf.mxu2  ;;  %v11422_v28 = vpop.f32.mrf.mxu3 }
 0x472   :  { %v11424_v32 = vadd.f32 %v1603_v49, %v1543_v27 }
 0x479   :  { %v1545_v46 = vpop.f32.mrf.mxu2  ;;  %v1625_v43 = vpop.f32.mrf.mxu3 }
 0x47a   :  { %v11433_v2 = vadd.f32 %v1605_v20, %v1545_v46  ;;  %v9760_v20 = vld [vmem:[%s14213_s1 + $0x134] sm:$0xf0] }
 0x47e   :  { %1768 = vmatmul.bf16.gmra.mxu2 %v1716_v56  ;;  %1862 = vmatmul.bf16.gmra.mxu3 %v7905_v61  ;;  %v7884_v56 = vld [vmem:[%s14213_s1 + $0x168] sm:$0xf]  ;;  %v9768_v61 = vld [vmem:[%s14213_s1 + $0x174] sm:$0xf0] }
 0x481   :  { %v1548_v49 = vpop.f32.mrf.mxu2  ;;  %v1782_v4 = vpop.f32.mrf.mxu3 }
 0x482   :  { %v11435_v23 = vadd.f32 %v1608_v31, %v1548_v49  ;;  %v7853_v31 = vor.u32 %v9760_v20, %v7852_v12  ;;  %v9782_v49 = vld [vmem:[%s14213_s1 + $0x1e4] sm:$0xf0]  ;;  %v7885_v20 = vor.u32 %v9768_v61, %v7884_v56 }
 0x489   :  { %v1550_v37 = vpop.f32.mrf.mxu2  ;;  %v1784_v10 = vpop.f32.mrf.mxu3 }
 0x48a   :  { %v11449_v53 = vadd.f32 %v1610_v19, %v1550_v37  ;;  %v9764_v19 = vld [vmem:[%s14213_s1 + $0x154] sm:$0xf0] }
 0x48b   :  { %v7869_v30 = vor.u32 %v9764_v19, %v7868_v24  ;;  %v9772_v19 = vld [vmem:[%s14213_s1 + $0x194] sm:$0xf0] }
 0x48e   :  { %1814 = vmatmul.bf16.vlgmr.msra.gmra.mxu2 %v7853_v31  ;;  %1867 = vmatmul.bf16.gmra.mxu3 %v1719_v57 }
 0x48f   :  { %2388 = vmatpush.bf16.msra.mxu2 %v10458_v7 }
 0x491   :  { %v1553_v63 = vpop.f32.mrf.mxu2 }
 0x492   :  { %v11452_v48 = vadd.f32 %v1613_v13, %v1553_v63  ;;  %v9778_v13 = vld [vmem:[%s14213_s1 + $0x1c4] sm:$0xf0] }
 0x493   :  { %2389 = vmatpush.bf16.msra.mxu2 %v10464_v16  ;;  %v7952_v40 = vor.u32 %v9778_v13, %v7951_v35  ;;  %v7983_v35 = vld [vmem:[%s14213_s1 + $0x1f8] sm:$0xf] }
 0x497   :  { %2390 = vmatpush.bf16.msra.mxu2 %v10468_v25 }
 0x499   :  { %v1555_v34 = vpop.f32.mrf.mxu2 }
 0x49a   :  { %v11468_v27 = vadd.f32 %v1615_v47, %v1555_v34  ;;  %v1787_v47 = vpop.f32.mrf.mxu3 }
 0x49b   :  { %2391 = vmatpush.bf16.msra.mxu2 %v10474_v29 }
 0x49e   :  { %1819 = vmatmul.bf16.gmra.mxu2 %v7869_v30  ;;  %2138 = vmatmul.bf16.vlgmr.msrb.gmra.mxu3 %v7952_v40 }
 0x49f   :  { %2392 = vmatpush.bf16.msra.mxu2 %v10396_v9  ;;  %2712 = vmatpush.bf16.msrb.mxu3 %v10458_v7 }
 0x4a1   :  { %v1558_v46 = vpop.f32.mrf.mxu2 }
 0x4a2   :  { %v11473_v43 = vadd.f32 %v1618_v41, %v1558_v46  ;;  %v7967_v41 = vld [vmem:[%s14213_s1 + $0x1d8] sm:$0xf]  ;;  %v1789_v31 = vpop.f32.mrf.mxu3 }
 0x4a3   :  { %2393 = vmatpush.bf16.msra.mxu2 %v10380_v55  ;;  %2713 = vmatpush.bf16.msrb.mxu3 %v10464_v16  ;;  %v7968_v37 = vor.u32 %v9782_v49, %v7967_v41  ;;  %v1698_v41 = vunpack.c.l.b16 %v11440_v3  ;;  %v7999_v49 = vld [vmem:[%s14213_s1 + $0x218] sm:$0xf] }
 0x4a4   :  { %14277 = vst [vmem:[#allocation13_spill] sm:$0xff] %v11473_v43  ;;  %v11531_v3 = vld [vmem:[%s14213_s1 + $0x238] sm:$0xff]  ;;  %v9827_v43 = vld [vmem:[%s14214_s6 + $0x50] sm:$0xff] }
 0x4a7   :  { %2394 = vmatpush.bf16.msra.mxu2 %v10364_v38  ;;  %2714 = vmatpush.bf16.msrb.mxu3 %v10468_v25 }
 0x4a9   :  { %v1560_v52 = vpop.f32.mrf.mxu2 }
 0x4aa   :  { %v11492_v12 = vadd.f32 %v11419_v59, %v1560_v52  ;;  %v1792_v24 = vpop.f32.mrf.mxu3  ;;  %v7900_v59 = vld [vmem:[%s14213_s1 + $0x188] sm:$0xf] }
 0x4ab   :  { %2395 = vmatpush.bf16.msra.mxu2 %v10348_v21  ;;  %2715 = vmatpush.bf16.msrb.mxu3 %v10474_v29  ;;  %v7901_v34 = vor.u32 %v9772_v19, %v7900_v59  ;;  %v9790_v52 = vld [vmem:[%s14213_s1 + $0x224] sm:$0xf0] }
 0x4ac   :  { %14278 = vst [vmem:[#allocation14_spill] sm:$0xff] %v11492_v12  ;;  %v8000_v59 = vor.u32 %v9790_v52, %v7999_v49 }
 0x4ae   :  { %1824 = vmatmul.bf16.gmra.mxu2 %v7885_v20  ;;  %2143 = vmatmul.bf16.gmra.mxu3 %v7968_v37 }
 0x4af   :  { %2716 = vmatpush.bf16.msrb.mxu3 %v10396_v9 }
 0x4b1   :  { %v1563_v57 = vpop.f32.mrf.mxu2 }
 0x4b2   :  { %v11498_v63 = vadd.f32 %v11422_v28, %v1563_v57  ;;  %v9786_v28 = vld [vmem:[%s14213_s1 + $0x204] sm:$0xf0]  ;;  %v1794_v40 = vpop.f32.mrf.mxu3  ;;  %v1718_v57 = vpack.c.b16 %v1698_v41, %v1698_v41 }
 0x4b3   :  { %2717 = vmatpush.bf16.msrb.mxu3 %v10380_v55  ;;  %v7984_v30 = vor.u32 %v9786_v28, %v7983_v35 }
 0x4b4   :  { %14279 = vst [vmem:[#allocation15_spill] sm:$0xff] %v11498_v63  ;;  %v7977_v63 = vld [vmem:[%s14213_s1 + $0x200] sm:$0xf0] }
 0x4b7   :  { %2718 = vmatpush.bf16.msrb.mxu3 %v10364_v38  ;;  %v7993_v38 = vld [vmem:[%s14213_s1 + $0x220] sm:$0xf0] }
 0x4b9   :  { %v1565_v13 = vpop.f32.mrf.mxu2 }
 0x4ba   :  { %v1797_v61 = vpop.f32.mrf.mxu3  ;;  %v2022_v13 = vunpack.c.l.b16 %v11531_v3 }
 0x4bb   :  { %2719 = vmatpush.bf16.msrb.mxu3 %v10348_v21  ;;  %v9787_v21 = vld [vmem:[%s14213_s1 + $0x214] sm:$0xf] }
 0x4bc   :  { %v2042_v41 = vpack.c.b16 %v2022_v13, %v2022_v13  ;;  %v8044_v13 = vld [vmem:[%s14213_s1 + $0x250] sm:$0xf0] }
 0x4be   :  { %1829 = vmatmul.bf16.gmra.mxu2 %v7901_v34  ;;  %2148 = vmatmul.bf16.gmra.mxu3 %v7984_v30  ;;  %v7945_v34 = vld [vmem:[%s14213_s1 + $0x1c0] sm:$0xf0] }
 0x4c1   :  { %v1749_v46 = vpop.f32.mrf.mxu2 }
 0x4c2   :  { %v11515_v56 = vadd.f32 %v1782_v4, %v1749_v46  ;;  %v1799_v19 = vpop.f32.mrf.mxu3 }
 0x4c9   :  { %v1751_v20 = vpop.f32.mrf.mxu2 }
 0x4ca   :  { %v11524_v37 = vadd.f32 %v1784_v10, %v1751_v20  ;;  %v1802_v28 = vpop.f32.mrf.mxu3  ;;  %v9775_v10 = vld [vmem:[%s14213_s1 + $0x1b4] sm:$0xf] }
 0x4ce   :  { %1834 = vmatmul.bf16.gmra.mxu2 %v1718_v57  ;;  %2153 = vmatmul.bf16.gmra.mxu3 %v8000_v59  ;;  %v9779_v59 = vld [vmem:[%s14213_s1 + $0x1d4] sm:$0xf] }
 0x4d1   :  { %v1754_v4 = vpop.f32.mrf.mxu2 }
 0x4d2   :  { %v11526_v35 = vadd.f32 %v1787_v47, %v1754_v4  ;;  %v7948_v47 = vor.u32 %v9775_v10, %v7945_v34  ;;  %v1804_v49 = vpop.f32.mrf.mxu3  ;;  %v7961_v4 = vld [vmem:[%s14213_s1 + $0x1e0] sm:$0xf0] }
 0x4d3   :  { %v7964_v34 = vor.u32 %v9779_v59, %v7961_v4  ;;  %v8060_v59 = vld [vmem:[%s14213_s1 + $0x270] sm:$0xf0] }
 0x4d9   :  { %v1756_v30 = vpop.f32.mrf.mxu2 }
 0x4da   :  { %v11540_v46 = vadd.f32 %v1789_v31, %v1756_v30  ;;  %v1848_v57 = vpop.f32.mrf.mxu3  ;;  %v9793_v31 = vld [vmem:[%s14213_s1 + $0x244] sm:$0xf] }
 0x4db   :  { %v8047_v30 = vor.u32 %v9793_v31, %v8044_v13 }
 0x4de   :  { %2105 = vmatmul.bf16.vlgmr.msrb.gmra.mxu2 %v7948_v47  ;;  %2158 = vmatmul.bf16.gmra.mxu3 %v2042_v41 }
 0x4e1   :  { %v1759_v52 = vpop.f32.mrf.mxu2 }
 0x4e2   :  { %v11542_v20 = vadd.f32 %v1792_v24, %v1759_v52  ;;  %v1850_v47 = vpop.f32.mrf.mxu3  ;;  %v9783_v52 = vld [vmem:[%s14213_s1 + $0x1f4] sm:$0xf] }
 0x4e3   :  { %v7980_v13 = vor.u32 %v9783_v52, %v7977_v63  ;;  %v8076_v63 = vld [vmem:[%s14213_s1 + $0x290] sm:$0xf0] }
 0x4e9   :  { %v1761_v10 = vpop.f32.mrf.mxu2 }
 0x4ea   :  { %v11556_v24 = vadd.f32 %v1794_v40, %v1761_v10  ;;  %v9797_v40 = vld [vmem:[%s14213_s1 + $0x264] sm:$0xf]  ;;  %v1853_v31 = vpop.f32.mrf.mxu3 }
 0x4eb   :  { %v8063_v10 = vor.u32 %v9797_v40, %v8060_v59  ;;  %v7996_v40 = vor.u32 %v9787_v21, %v7993_v38  ;;  %v9805_v21 = vld [vmem:[%s14213_s1 + $0x2a4] sm:$0xf]  ;;  %v8092_v38 = vld [vmem:[%s14213_s1 + $0x2b0] sm:$0xf0] }
 0x4ec   :  { %v8095_v12 = vor.u32 %v9805_v21, %v8092_v38 }
 0x4ee   :  { %2110 = vmatmul.bf16.gmra.mxu2 %v7964_v34  ;;  %2429 = vmatmul.bf16.vlgmr.msra.gmra.mxu3 %v8047_v30 }
 0x4f1   :  { %v1764_v41 = vpop.f32.mrf.mxu2 }
 0x4f2   :  { %v11558_v49 = vadd.f32 %v1797_v61, %v1764_v41  ;;  %v1855_v41 = vpop.f32.mrf.mxu3 }
 0x4f9   :  { %v1766_v4 = vpop.f32.mrf.mxu2 }
 0x4fa   :  { %v11572_v61 = vadd.f32 %v1799_v19, %v1766_v4  ;;  %v9801_v19 = vld [vmem:[%s14213_s1 + $0x284] sm:$0xf] }
 0x4fb   :  { %v8079_v59 = vor.u32 %v9801_v19, %v8076_v63  ;;  %v9809_v4 = vld [vmem:[%s14214_s6 + $0x40] sm:$0xff] }
 0x4fe   :  { %2115 = vmatmul.bf16.gmra.mxu2 %v7980_v13  ;;  %2434 = vmatmul.bf16.gmra.mxu3 %v8063_v10  ;;  %v11594_v13 = vpop.f32.mrf.mxu3 }
 0x501   :  { %v1769_v34 = vpop.f32.mrf.mxu2 }
 0x502   :  { %v11574_v30 = vadd.f32 %v1802_v28, %v1769_v34  ;;  %v9810_v28 = vld [vmem:[%s14214_s6 + $0x48] sm:$0xff]  ;;  %v11599_v34 = vld [vmem:[%s14213_s1 + $0x230] sm:$0xff] }
 0x503   :  { %2563 = vmatpush.bf16.msrb.mxu2 %v9810_v28  ;;  %v9828_v28 = vld [vmem:[%s14214_s6 + $0x58] sm:$0xff] }
 0x504   :  { %2887 = vmatpush.bf16.msra.mxu3 %v9828_v28 }
 0x506   :  { %v1860_v19 = vpop.f32.mrf.mxu3 }
 0x507   :  { %2564 = vmatpush.bf16.msrb.mxu2 %v9809_v4 }
 0x508   :  { %2888 = vmatpush.bf16.msra.mxu3 %v9827_v43 }
 0x509   :  { %v1771_v52 = vpop.f32.mrf.mxu2 }
 0x50a   :  { %v2021_v52 = vunpack.c.h.b16 %v11599_v34 }
 0x50c   :  { %v2041_v4 = vpack.c.b16 %v2021_v52, %v2021_v52 }
 0x50e   :  { %2120 = vmatmul.bf16.gmra.mxu2 %v7996_v40  ;;  %2439 = vmatmul.bf16.gmra.mxu3 %v8079_v59 }
 0x511   :  { %v1815_v10 = vpop.f32.mrf.mxu2 }
 0x512   :  { %v1816_v63 = vadd.f32 %v1815_v10, %v11515_v56  ;;  %v1863_v10 = vpop.f32.mrf.mxu3 }
 0x514   :  { %v1849_v55 = vadd.f32 %v1848_v57, %v1816_v63 }
 0x519   :  { %v1817_v40 = vpop.f32.mrf.mxu2 }
 0x51a   :  { %v1818_v59 = vadd.f32 %v1817_v40, %v11524_v37  ;;  %v11621_v37 = vld [vmem:[%s14213_s1 + $0x2c0] sm:$0xff]  ;;  %v1865_v21 = vpop.f32.mrf.mxu3 }
 0x51b   :  { %v2345_v57 = vunpack.c.h.b16 %v11621_v37 }
 0x51c   :  { %v1851_v9 = vadd.f32 %v1850_v47, %v1818_v59 }
 0x51d   :  { %v2365_v52 = vpack.c.b16 %v2345_v57, %v2345_v57 }
 0x51e   :  { %v1872_v29 = vpack.c.bf16 %v1851_v9, %v1849_v55  ;;  %2125 = vmatmul.bf16.gmra.mxu2 %v2041_v4  ;;  %2444 = vmatmul.bf16.gmra.mxu3 %v8095_v12  ;;  %v8042_v55 = vld [vmem:[%s14213_s1 + $0x240] sm:$0xf]  ;;  %v9795_v9 = vld [vmem:[%s14213_s1 + $0x24c] sm:$0xf0] }
 0x51f   :  { %v8043_v47 = vor.u32 %v9795_v9, %v8042_v55 }
 0x520   :  { %7918 = vmatmul.msk.bf16.vlgmr.msrb.gmra.mxu0 %vm1518_vm0, %v1872_v29 }
 0x521   :  { %2454 = vmatpush.bf16.msrb.mxu0 %v10768_v0  ;;  %v1820_v56 = vpop.f32.mrf.mxu2 }
 0x522   :  { %v1821_v29 = vadd.f32 %v1820_v56, %v11526_v35 }
 0x524   :  { %v1854_v38 = vadd.f32 %v1853_v31, %v1821_v29  ;;  %v8141_v31 = vld [vmem:[%s14213_s1 + $0x2d0] sm:$0xf] }
 0x525   :  { %2455 = vmatpush.bf16.msrb.mxu0 %v14270_v51 }
 0x529   :  { %2456 = vmatpush.bf16.msrb.mxu0 %v14271_v14  ;;  %v1822_v43 = vpop.f32.mrf.mxu2 }
 0x52a   :  { %v1823_v12 = vadd.f32 %v1822_v43, %v11540_v46  ;;  %v1868_v46 = vpop.f32.mrf.mxu3 }
 0x52c   :  { %v1856_v63 = vadd.f32 %v1855_v41, %v1823_v12  ;;  %v9813_v41 = vld [vmem:[%s14213_s1 + $0x2dc] sm:$0xf0] }
 0x52d   :  { %2457 = vmatpush.bf16.msrb.mxu0 %v14272_v33  ;;  %v8142_v56 = vor.u32 %v9813_v41, %v8141_v31  ;;  %v9785_v31 = vld [vmem:[%s14213_s1 + $0x1fc] sm:$0xf0] }
 0x52e   :  { %v1873_v28 = vpack.c.bf16 %v1856_v63, %v1854_v38  ;;  %2396 = vmatmul.bf16.vlgmr.msra.gmra.mxu2 %v8043_v47  ;;  %2449 = vmatmul.bf16.gmra.mxu3 %v2365_v52  ;;  %v7959_v38 = vld [vmem:[%s14213_s1 + $0x1d0] sm:$0xf] }
 0x52f   :  { %2811 = vmatpush.bf16.msra.mxu2 %v10947_v5 }
 0x530   :  { %7919 = vmatmul.msk.bf16.gmra.mxu0 %vm1518_vm0, %v1873_v28 }
 0x531   :  { %2458 = vmatpush.bf16.msrb.mxu0 %v14273_v8  ;;  %v1825_v35 = vpop.f32.mrf.mxu2 }
 0x532   :  { %v1826_v40 = vadd.f32 %v1825_v35, %v11542_v20  ;;  %v1870_v57 = vpop.f32.mrf.mxu3  ;;  %v7975_v35 = vld [vmem:[%s14213_s1 + $0x1f0] sm:$0xf] }
 0x533   :  { %2812 = vmatpush.bf16.msra.mxu2 %v10956_v45  ;;  %v7976_v41 = vor.u32 %v9785_v31, %v7975_v35  ;;  %v9780_v57 = vld [vmem:[%s14213_s1 + $0x1dc] sm:$0xf] }
 0x534   :  { %v1859_v55 = vadd.f32 %v11594_v13, %v1826_v40 }
 0x535   :  { %2459 = vmatpush.bf16.msrb.mxu0 %v14274_v26 }
 0x537   :  { %2813 = vmatpush.bf16.msra.mxu2 %v10966_v18 }
 0x539   :  { %2460 = vmatpush.bf16.msrb.mxu0 %v14275_v62  ;;  %v1827_v59 = vpop.f32.mrf.mxu2 }
 0x53a   :  { %v1828_v4 = vadd.f32 %v1827_v59, %v11556_v24  ;;  %v7991_v59 = vld [vmem:[%s14213_s1 + $0x210] sm:$0xf] }
 0x53b   :  { %2814 = vmatpush.bf16.msra.mxu2 %v10981_v17 }
 0x53c   :  { %v1861_v9 = vadd.f32 %v1860_v19, %v1828_v4  ;;  %v9789_v4 = vld [vmem:[%s14213_s1 + $0x21c] sm:$0xf0] }
 0x53d   :  { %2461 = vmatpush.bf16.msrb.mxu0 %v14276_v6 }
 0x53e   :  { %v1874_v29 = vpack.c.bf16 %v1861_v9, %v1859_v55  ;;  %2720 = vmatmul.bf16.vlgmr.msrb.gmra.mxu3 %v8142_v56  ;;  %v7992_v56 = vor.u32 %v9789_v4, %v7991_v59  ;;  %v7969_v55 = vld [vmem:[%s14213_s1 + $0x1e8] sm:$0xf0] }
 0x53f   :  { %2815 = vmatpush.bf16.msra.mxu2 %v10992_v1  ;;  %3135 = vmatpush.bf16.msrb.mxu3 %v10947_v5  ;;  %v7972_v9 = vor.u32 %v9780_v57, %v7969_v55 }
 0x540   :  { %7920 = vmatmul.msk.bf16.gmra.mxu0 %vm1518_vm0, %v1874_v29  ;;  %v2020_v29 = vunpack.c.l.b16 %v11599_v34  ;;  %v9788_v34 = vld [vmem:[%s14213_s1 + $0x21c] sm:$0xf] }
 0x541   :  { %v1830_v20 = vpop.f32.mrf.mxu2 }
 0x542   :  { %v1831_v24 = vadd.f32 %v1830_v20, %v11558_v49  ;;  %v9781_v49 = vld [vmem:[%s14213_s1 + $0x1dc] sm:$0xf0]  ;;  %v2040_v20 = vpack.c.b16 %v2020_v29, %v2020_v29 }
 0x543   :  { %2816 = vmatpush.bf16.msra.mxu2 %v10999_v22  ;;  %3136 = vmatpush.bf16.msrb.mxu3 %v10956_v45 }
 0x544   :  { %v1864_v43 = vadd.f32 %v1863_v10, %v1831_v24  ;;  %v9784_v24 = vld [vmem:[%s14213_s1 + $0x1fc] sm:$0xf] }
 0x547   :  { %2817 = vmatpush.bf16.msra.mxu2 %v11007_v39  ;;  %3137 = vmatpush.bf16.msrb.mxu3 %v10966_v18 }
 0x549   :  { %v1832_v13 = vpop.f32.mrf.mxu2 }
 0x54a   :  { %v1833_v19 = vadd.f32 %v1832_v13, %v11572_v61  ;;  %v7960_v61 = vor.u32 %v9781_v49, %v7959_v38  ;;  %v7985_v13 = vld [vmem:[%s14213_s1 + $0x208] sm:$0xf0] }
 0x54b   :  { %2818 = vmatpush.bf16.msra.mxu2 %v11028_v50  ;;  %3138 = vmatpush.bf16.msrb.mxu3 %v10981_v17 }
 0x54c   :  { %v1866_v12 = vadd.f32 %v1865_v21, %v1833_v19  ;;  %2077 = vmatmul.bf16.gmra.mxu1 %v7960_v61  ;;  %v7988_v19 = vor.u32 %v9784_v24, %v7985_v13  ;;  %v2023_v61 = vunpack.c.h.b16 %v11531_v3  ;;  %v14284_v13 = vld [vmem:[#allocation5_spill] sm:$0xff] }
 0x54e   :  { %v1875_v47 = vpack.c.bf16 %v1866_v12, %v1864_v43  ;;  %v8001_v43 = vld [vmem:[%s14213_s1 + $0x228] sm:$0xf0] }
 0x54f   :  { %3139 = vmatpush.bf16.msrb.mxu3 %v10992_v1  ;;  %v8004_v12 = vor.u32 %v9788_v34, %v8001_v43  ;;  %v14285_v43 = vld [vmem:[#allocation4_spill] sm:$0xff] }
 0x550   :  { %7921 = vmatmul.msk.bf16.gmra.mxu0 %vm1518_vm0, %v1875_v47 }
 0x551   :  { %v1835_v52 = vpop.f32.mrf.mxu2 }
 0x552   :  { %v1836_v10 = vadd.f32 %v1835_v52, %v11574_v30  ;;  %v9776_v30 = vld [vmem:[%s14213_s1 + $0x1bc] sm:$0xf] }
 0x553   :  { %3140 = vmatpush.bf16.msrb.mxu3 %v10999_v22 }
 0x554   :  { %v1869_v63 = vadd.f32 %v1868_v46, %v1836_v10  ;;  %v7953_v46 = vld [vmem:[%s14213_s1 + $0x1c8] sm:$0xf0]  ;;  %v2043_v10 = vpack.c.b16 %v2023_v61, %v2023_v61 }
 0x555   :  { %v7956_v40 = vor.u32 %v9776_v30, %v7953_v46 }
 0x556   :  { %v1876_v28 = vpack.c.bf16 %v1869_v63, %v1869_v63 }
 0x557   :  { %3141 = vmatpush.bf16.msrb.mxu3 %v11007_v39 }
 0x559   :  { %v1837_v21 = vpop.f32.mrf.mxu2 }
 0x55b   :  { %3142 = vmatpush.bf16.msrb.mxu3 %v11028_v50 }
 0x55c   :  { %2082 = vmatmul.bf16.gmra.mxu1 %v7976_v41 }
 0x560   :  { %7922 = vmatmul.msk.bf16.gmra.mxu0 %vm1518_vm0, %v1876_v28 }
 0x561   :  { %v2106_v30 = vpop.f32.mrf.mxu2 }
 0x569   :  { %v2108_v4 = vpop.f32.mrf.mxu2 }
 0x56c   :  { %2087 = vmatmul.bf16.gmra.mxu1 %v7992_v56  ;;  %v9800_v56 = vld [vmem:[%s14213_s1 + $0x274] sm:$0xf0] }
 0x570   :  { %2171 = vmatmul.bf16.vlgmr.msra.gmra.mxu0 %v7956_v40 }
 0x571   :  { %2745 = vmatpush.bf16.msra.mxu0 %v10608_v44  ;;  %v2111_v24 = vpop.f32.mrf.mxu2 }
 0x575   :  { %2746 = vmatpush.bf16.msra.mxu0 %v10613_v58 }
 0x579   :  { %2747 = vmatpush.bf16.msra.mxu0 %v10616_v60  ;;  %v2113_v61 = vpop.f32.mrf.mxu2 }
 0x57c   :  { %2092 = vmatmul.bf16.gmra.mxu1 %v2040_v20  ;;  %v14282_v20 = vld [vmem:[#allocation13_spill] sm:$0xff] }
 0x57d   :  { %2748 = vmatpush.bf16.msra.mxu0 %v10621_v42 }
 0x580   :  { %2176 = vmatmul.bf16.gmra.mxu0 %v7972_v9  ;;  %v14281_v9 = vld [vmem:[#allocation8_spill] sm:$0xff] }
 0x581   :  { %2749 = vmatpush.bf16.msra.mxu0 %v10546_v15 }
 0x585   :  { %2750 = vmatpush.bf16.msra.mxu0 %v10530_v11 }
 0x589   :  { %2751 = vmatpush.bf16.msra.mxu0 %v10514_v54 }
 0x58d   :  { %2752 = vmatpush.bf16.msra.mxu0 %v10490_v36 }
 0x590   :  { %2181 = vmatmul.bf16.gmra.mxu0 %v7988_v19 }
 0x59d   :  { %v1918_v47 = vpop.f32.mrf.mxu0 }
 0x59e   :  { %v11723_v52 = vadd.f32 %v1918_v47, %v11424_v32  ;;  %v8050_v32 = vld [vmem:[%s14213_s1 + $0x248] sm:$0xf]  ;;  %v14286_v47 = vld [vmem:[#allocation14_spill] sm:$0xff] }
 0x5a0   :  { %2186 = vmatmul.bf16.gmra.mxu0 %v8004_v12 }
 0x5a5   :  { %v1920_v38 = vpop.f32.mrf.mxu0 }
 0x5a6   :  { %v11726_v49 = vadd.f32 %v1920_v38, %v11433_v2  ;;  %v9796_v2 = vld [vmem:[%s14213_s1 + $0x254] sm:$0xf0] }
 0x5a7   :  { %v8051_v31 = vor.u32 %v9796_v2, %v8050_v32 }
 0x5ad   :  { %v1923_v21 = vpop.f32.mrf.mxu0 }
 0x5ae   :  { %v11730_v63 = vadd.f32 %v1923_v21, %v11435_v23  ;;  %v2073_v23 = vpop.f32.mrf.mxu1  ;;  %v8082_v21 = vld [vmem:[%s14213_s1 + $0x288] sm:$0xf] }
 0x5b0   :  { %2191 = vmatmul.bf16.gmra.mxu0 %v2043_v10  ;;  %v14288_v10 = vld [vmem:[#allocation3_spill] sm:$0xff] }
 0x5b5   :  { %v1925_v28 = vpop.f32.mrf.mxu0 }
 0x5b6   :  { %v11733_v35 = vadd.f32 %v1925_v28, %v11449_v53  ;;  %v2139_v53 = vpop.f32.mrf.mxu3  ;;  %v2075_v59 = vpop.f32.mrf.mxu1  ;;  %v9804_v28 = vld [vmem:[%s14213_s1 + $0x294] sm:$0xf0] }
 0x5bd   :  { %v1928_v3 = vpop.f32.mrf.mxu0 }
 0x5be   :  { %v11742_v41 = vadd.f32 %v1928_v3, %v11452_v48  ;;  %v8066_v48 = vld [vmem:[%s14213_s1 + $0x268] sm:$0xf]  ;;  %v2141_v57 = vpop.f32.mrf.mxu3  ;;  %v14289_v3 = vld [vmem:[#allocation2_spill] sm:$0xff] }
 0x5bf   :  { %v8067_v55 = vor.u32 %v9800_v56, %v8066_v48  ;;  %v14290_v48 = vld [vmem:[#allocation15_spill] sm:$0xff] }
 0x5c0   :  { %2462 = vmatmul.bf16.vlgmr.msrb.gmra.mxu0 %v8051_v31  ;;  %v8083_v31 = vor.u32 %v9804_v28, %v8082_v21 }
 0x5c1   :  { %3036 = vmatpush.bf16.msrb.mxu0 %v10458_v7 }
 0x5c5   :  { %3037 = vmatpush.bf16.msrb.mxu0 %v10464_v16  ;;  %v1930_v46 = vpop.f32.mrf.mxu0 }
 0x5c6   :  { %v11747_v40 = vadd.f32 %v1930_v46, %v11468_v27  ;;  %v2144_v34 = vpop.f32.mrf.mxu3 }
 0x5c8   :  { %14280 = vst [vmem:[#allocation12_spill] sm:$0xff] %v11747_v40 }
 0x5c9   :  { %3038 = vmatpush.bf16.msrb.mxu0 %v10468_v25  ;;  %v2078_v19 = vpop.f32.mrf.mxu1 }
 0x5cd   :  { %3039 = vmatpush.bf16.msrb.mxu0 %v14281_v9  ;;  %v1933_v29 = vpop.f32.mrf.mxu0 }
 0x5ce   :  { %v11758_v27 = vadd.f32 %v1933_v29, %v14282_v20  ;;  %v2146_v2 = vpop.f32.mrf.mxu3  ;;  %v2116_v29 = vpop.f32.mrf.mxu2 }
 0x5d0   :  { %14283 = vst [vmem:[#allocation11_spill] sm:$0xff] %v11758_v27  ;;  %2467 = vmatmul.bf16.gmra.mxu0 %v8067_v55 }
 0x5d1   :  { %3040 = vmatpush.bf16.msrb.mxu0 %v14284_v13  ;;  %v2080_v32 = vpop.f32.mrf.mxu1 }
 0x5d5   :  { %3041 = vmatpush.bf16.msrb.mxu0 %v14285_v43  ;;  %v1935_v12 = vpop.f32.mrf.mxu0  ;;  %v2107_v43 = vadd.f32 %v2106_v30, %v2073_v23 }
 0x5d6   :  { %v11763_v38 = vadd.f32 %v1935_v12, %v14286_v47  ;;  %v2149_v20 = vpop.f32.mrf.mxu3  ;;  %v8098_v47 = vld [vmem:[%s14213_s1 + $0x2a8] sm:$0xf] }
 0x5d8   :  { %14287 = vst [vmem:[#allocation10_spill] sm:$0xff] %v11763_v38 }
 0x5d9   :  { %3042 = vmatpush.bf16.msrb.mxu0 %v14288_v10  ;;  %v2083_v55 = vpop.f32.mrf.mxu1  ;;  %v9808_v10 = vld [vmem:[%s14213_s1 + $0x2b4] sm:$0xf0] }
 0x5da   :  { %v8099_v21 = vor.u32 %v9808_v10, %v8098_v47 }
 0x5dd   :  { %3043 = vmatpush.bf16.msrb.mxu0 %v14289_v3  ;;  %v1938_v46 = vpop.f32.mrf.mxu0  ;;  %v2118_v3 = vpop.f32.mrf.mxu2 }
 0x5de   :  { %v11774_v56 = vadd.f32 %v1938_v46, %v14290_v48  ;;  %v2151_v46 = vpop.f32.mrf.mxu3  ;;  %v2109_v48 = vadd.f32 %v2108_v4, %v2075_v59  ;;  %v2114_v59 = vadd.f32 %v2113_v61, %v2080_v32 }
 0x5e0   :  { %14291 = vst [vmem:[#allocation9_spill] sm:$0xff] %v11774_v56  ;;  %2472 = vmatmul.bf16.gmra.mxu0 %v8083_v31  ;;  %v2140_v31 = vadd.f32 %v2139_v53, %v2107_v43  ;;  %v2142_v56 = vadd.f32 %v2141_v57, %v2109_v48  ;;  %v2112_v53 = vadd.f32 %v2111_v24, %v2078_v19  ;;  %v9811_v24 = vld [vmem:[%s14213_s1 + $0x2d4] sm:$0xf]  ;;  %v8143_v19 = vld [vmem:[%s14213_s1 + $0x2e0] sm:$0xf0] }
 0x5e1   :  { %v2085_v28 = vpop.f32.mrf.mxu1  ;;  %v8146_v61 = vor.u32 %v9811_v24, %v8143_v19 }
 0x5e5   :  { %v1940_v12 = vpop.f32.mrf.mxu0  ;;  %v2121_v40 = vpop.f32.mrf.mxu2 }
 0x5e6   :  { %v11785_v12 = vld [vmem:[%s14213_s1 + $0x2c8] sm:$0xff]  ;;  %v2154_v16 = vpop.f32.mrf.mxu3 }
 0x5e7   :  { %v2346_v47 = vunpack.c.l.b16 %v11785_v12 }
 0x5e9   :  { %v2088_v25 = vpop.f32.mrf.mxu1  ;;  %v2366_v23 = vpack.c.b16 %v2346_v47, %v2346_v47 }
 0x5ed   :  { %v2172_v38 = vpop.f32.mrf.mxu0  ;;  %v2123_v57 = vpop.f32.mrf.mxu2 }
 0x5ee   :  { %v2173_v27 = vadd.f32 %v2172_v38, %v2140_v31  ;;  %v2156_v43 = vpop.f32.mrf.mxu3 }
 0x5f0   :  { %2477 = vmatmul.bf16.gmra.mxu0 %v8099_v21 }
 0x5f1   :  { %v2090_v4 = vpop.f32.mrf.mxu1 }
 0x5f5   :  { %v2174_v13 = vpop.f32.mrf.mxu0  ;;  %v2126_v31 = vpop.f32.mrf.mxu2 }
 0x5f6   :  { %v2175_v9 = vadd.f32 %v2174_v13, %v2142_v56  ;;  %v2145_v13 = vadd.f32 %v2144_v34, %v2112_v53  ;;  %v2159_v34 = vpop.f32.mrf.mxu3 }
 0x5f8   :  { %v2196_v10 = vpack.c.bf16 %v2175_v9, %v2173_v27  ;;  %v2147_v9 = vadd.f32 %v2146_v2, %v2114_v59  ;;  %v2117_v2 = vadd.f32 %v2116_v29, %v2083_v55  ;;  %v9815_v55 = vld [vmem:[%s14213_s1 + $0x2f4] sm:$0xf] }
 0x5f9   :  { %v2093_v48 = vpop.f32.mrf.mxu1 }
 0x5fa   :  { %8017 = vmatmul.msk.bf16.vlgmr.msra.gmra.mxu1 %vm1518_vm0, %v2196_v10  ;;  %v2119_v10 = vadd.f32 %v2118_v3, %v2085_v28  ;;  %v8159_v3 = vld [vmem:[%s14213_s1 + $0x300] sm:$0xf0]  ;;  %v2122_v28 = vadd.f32 %v2121_v40, %v2088_v25  ;;  %v9819_v25 = vld [vmem:[%s14213_s1 + $0x314] sm:$0xf] }
 0x5fb   :  { %2778 = vmatpush.bf16.msra.mxu1 %v10768_v0  ;;  %v8162_v29 = vor.u32 %v9815_v55, %v8159_v3  ;;  %v8175_v40 = vld [vmem:[%s14213_s1 + $0x320] sm:$0xf0]  ;;  %v9794_v55 = vld [vmem:[%s14213_s1 + $0x24c] sm:$0xf]  ;;  %v8052_v3 = vld [vmem:[%s14213_s1 + $0x258] sm:$0xf0] }
 0x5fc   :  { %v2152_v59 = vadd.f32 %v2151_v46, %v2119_v10  ;;  %v2124_v46 = vadd.f32 %v2123_v57, %v2090_v4  ;;  %v2155_v19 = vadd.f32 %v2154_v16, %v2122_v28  ;;  %v2127_v4 = vadd.f32 %v2126_v31, %v2093_v48  ;;  %v9823_v48 = vld [vmem:[%s14213_s1 + $0x334] sm:$0xf]  ;;  %v8191_v31 = vld [vmem:[%s14213_s1 + $0x340] sm:$0xf0]  ;;  %v8090_v28 = vld [vmem:[%s14213_s1 + $0x2a0] sm:$0xf] }
 0x5fd   :  { %v2177_v30 = vpop.f32.mrf.mxu0  ;;  %v8178_v57 = vor.u32 %v9819_v25, %v8175_v40  ;;  %v2344_v25 = vunpack.c.l.b16 %v11621_v37 }
 0x5fe   :  { %v2178_v38 = vadd.f32 %v2177_v30, %v2145_v13  ;;  %v2150_v30 = vadd.f32 %v2149_v20, %v2117_v2  ;;  %v2161_v53 = vpop.f32.mrf.mxu3  ;;  %v2160_v16 = vadd.f32 %v2159_v34, %v2127_v4  ;;  %v9846_v34 = vld [vmem:[%s14214_s6 + $0x68] sm:$0xff] }
 0x5ff   :  { %2779 = vmatpush.bf16.msra.mxu1 %v14270_v51  ;;  %v2364_v40 = vpack.c.b16 %v2344_v25, %v2344_v25  ;;  %v9802_v4 = vld [vmem:[%s14213_s1 + $0x28c] sm:$0xf] }
 0x600   :  { %2482 = vmatmul.bf16.gmra.mxu0 %v2366_v23  ;;  %v2128_v23 = vpop.f32.mrf.mxu2 }
 0x601   :  { %v2095_v47 = vpop.f32.mrf.mxu1 }
 0x603   :  { %2780 = vmatpush.bf16.msra.mxu1 %v14271_v14 }
 0x605   :  { %v2179_v27 = vpop.f32.mrf.mxu0 }
 0x606   :  { %v2180_v56 = vadd.f32 %v2179_v27, %v2147_v9 }
 0x607   :  { %2781 = vmatpush.bf16.msra.mxu1 %v14272_v33 }
 0x608   :  { %v2197_v21 = vpack.c.bf16 %v2180_v56, %v2178_v38  ;;  %v8058_v56 = vld [vmem:[%s14213_s1 + $0x260] sm:$0xf] }
 0x60a   :  { %8018 = vmatmul.msk.bf16.gmra.mxu1 %vm1518_vm0, %v2197_v21  ;;  %v9799_v21 = vld [vmem:[%s14213_s1 + $0x26c] sm:$0xf0] }
 0x60b   :  { %2782 = vmatpush.bf16.msra.mxu1 %v14273_v8  ;;  %v8059_v24 = vor.u32 %v9799_v21, %v8058_v56 }
 0x60d   :  { %v2182_v32 = vpop.f32.mrf.mxu0  ;;  %2401 = vmatmul.bf16.gmra.mxu2 %v8059_v24 }
 0x60e   :  { %v2183_v9 = vadd.f32 %v2182_v32, %v2150_v30 }
 0x60f   :  { %2783 = vmatpush.bf16.msra.mxu1 %v14274_v26 }
 0x610   :  { %2753 = vmatmul.bf16.vlgmr.msra.gmra.mxu0 %v8146_v61  ;;  %v2157_v61 = vadd.f32 %v2156_v43, %v2124_v46  ;;  %v9807_v46 = vld [vmem:[%s14213_s1 + $0x2ac] sm:$0xf0] }
 0x611   :  { %3211 = vmatpush.bf16.msra.mxu0 %v9846_v34  ;;  %v8091_v56 = vor.u32 %v9807_v46, %v8090_v28  ;;  %v14292_v28 = vld [vmem:[#allocation6_spill] sm:$0xff] }
 0x613   :  { %2784 = vmatpush.bf16.msra.mxu1 %v14275_v62 }
 0x615   :  { %v2184_v13 = vpop.f32.mrf.mxu0 }
 0x616   :  { %v2185_v27 = vadd.f32 %v2184_v13, %v2152_v59  ;;  %v8074_v59 = vld [vmem:[%s14213_s1 + $0x280] sm:$0xf]  ;;  %v9803_v13 = vld [vmem:[%s14213_s1 + $0x28c] sm:$0xf0] }
 0x617   :  { %2785 = vmatpush.bf16.msra.mxu1 %v14276_v6 }
 0x618   :  { %v2198_v38 = vpack.c.bf16 %v2185_v27, %v2183_v9  ;;  %v8075_v9 = vor.u32 %v9803_v13, %v8074_v59  ;;  %v8194_v27 = vor.u32 %v9823_v48, %v8191_v31 }
 0x61a   :  { %8019 = vmatmul.msk.bf16.gmra.mxu1 %vm1518_vm0, %v2198_v38  ;;  %v9845_v38 = vld [vmem:[%s14214_s6 + $0x60] sm:$0xff] }
 0x61b   :  { %3212 = vmatpush.bf16.msra.mxu0 %v9845_v38  ;;  %v8149_v38 = vld [vmem:[%s14213_s1 + $0x2d8] sm:$0xf] }
 0x61d   :  { %v2187_v20 = vpop.f32.mrf.mxu0  ;;  %2406 = vmatmul.bf16.gmra.mxu2 %v8075_v9  ;;  %v2347_v9 = vunpack.c.h.b16 %v11785_v12 }
 0x61e   :  { %v2188_v2 = vadd.f32 %v2187_v20, %v2155_v19  ;;  %v8055_v20 = vor.u32 %v9794_v55, %v8052_v3  ;;  %v9798_v19 = vld [vmem:[%s14213_s1 + $0x26c] sm:$0xf] }
 0x61f   :  { %v2367_v48 = vpack.c.b16 %v2347_v9, %v2347_v9 }
 0x620   :  { %2758 = vmatmul.bf16.gmra.mxu0 %v8162_v29  ;;  %v11852_v29 = vld [vmem:[%s14213_s1 + $0x350] sm:$0xff] }
 0x621   :  { %v2669_v21 = vunpack.c.h.b16 %v11852_v29 }
 0x623   :  { %v2689_v24 = vpack.c.b16 %v2669_v21, %v2669_v21 }
 0x625   :  { %v2189_v32 = vpop.f32.mrf.mxu0 }
 0x626   :  { %v2190_v10 = vadd.f32 %v2189_v32, %v2157_v61  ;;  %v8068_v61 = vld [vmem:[%s14213_s1 + $0x278] sm:$0xf0] }
 0x627   :  { %v8071_v32 = vor.u32 %v9798_v19, %v8068_v61  ;;  %v14295_v61 = vld [vmem:[#allocation7_spill] sm:$0xff] }
 0x628   :  { %v2199_v47 = vpack.c.bf16 %v2190_v10, %v2188_v2  ;;  %v8240_v2 = vld [vmem:[%s14213_s1 + $0x360] sm:$0xf]  ;;  %v9831_v10 = vld [vmem:[%s14213_s1 + $0x36c] sm:$0xf0] }
 0x62a   :  { %8020 = vmatmul.msk.bf16.gmra.mxu1 %vm1518_vm0, %v2199_v47  ;;  %v8241_v47 = vor.u32 %v9831_v10, %v8240_v2 }
 0x62d   :  { %v2192_v23 = vpop.f32.mrf.mxu0  ;;  %2411 = vmatmul.bf16.gmra.mxu2 %v8091_v56  ;;  %v14293_v56 = vld [vmem:[#allocation12_spill] sm:$0xff] }
 0x62e   :  { %v2193_v43 = vadd.f32 %v2192_v23, %v2160_v16  ;;  %v9806_v23 = vld [vmem:[%s14213_s1 + $0x2ac] sm:$0xf]  ;;  %v8100_v16 = vld [vmem:[%s14213_s1 + $0x2b8] sm:$0xf0] }
 0x630   :  { %2763 = vmatmul.bf16.gmra.mxu0 %v8178_v57  ;;  %v2200_v53 = vpack.c.bf16 %v2193_v43, %v2193_v43  ;;  %v8084_v57 = vld [vmem:[%s14213_s1 + $0x298] sm:$0xf0]  ;;  %v8103_v43 = vor.u32 %v9806_v23, %v8100_v16 }
 0x631   :  { %v8087_v37 = vor.u32 %v9802_v4, %v8084_v57  ;;  %v14299_v23 = vld [vmem:[#allocation5_spill] sm:$0xff] }
 0x635   :  { %v2194_v30 = vpop.f32.mrf.mxu0 }
 0x63a   :  { %8021 = vmatmul.msk.bf16.gmra.mxu1 %vm1518_vm0, %v2200_v53 }
 0x63d   :  { %2416 = vmatmul.bf16.gmra.mxu2 %v2364_v40  ;;  %v14297_v40 = vld [vmem:[#allocation11_spill] sm:$0xff] }
 0x640   :  { %2768 = vmatmul.bf16.gmra.mxu0 %v8194_v27 }
 0x64a   :  { %2495 = vmatmul.bf16.vlgmr.msrb.gmra.mxu1 %v8055_v20  ;;  %v2430_v20 = vpop.f32.mrf.mxu3 }
 0x64b   :  { %3069 = vmatpush.bf16.msrb.mxu1 %v10608_v44 }
 0x64f   :  { %3070 = vmatpush.bf16.msrb.mxu1 %v10613_v58 }
 0x650   :  { %2773 = vmatmul.bf16.gmra.mxu0 %v2689_v24 }
 0x652   :  { %v2432_v19 = vpop.f32.mrf.mxu3 }
 0x653   :  { %3071 = vmatpush.bf16.msrb.mxu1 %v10616_v60 }
 0x657   :  { %3072 = vmatpush.bf16.msrb.mxu1 %v10621_v42 }
 0x65a   :  { %2500 = vmatmul.bf16.gmra.mxu1 %v8071_v32  ;;  %v9818_v32 = vld [vmem:[%s14213_s1 + $0x304] sm:$0xf0] }
 0x65b   :  { %3073 = vmatpush.bf16.msrb.mxu1 %v10546_v15 }
 0x65f   :  { %3074 = vmatpush.bf16.msrb.mxu1 %v10530_v11 }
 0x660   :  { %3044 = vmatmul.bf16.vlgmr.msrb.gmra.mxu0 %v8241_v47  ;;  %v14296_v47 = vld [vmem:[#allocation8_spill] sm:$0xff] }
 0x661   :  { %3459 = vmatpush.bf16.msrb.mxu0 %v10947_v5 }
 0x663   :  { %3075 = vmatpush.bf16.msrb.mxu1 %v10514_v54 }
 0x665   :  { %3460 = vmatpush.bf16.msrb.mxu0 %v10956_v45 }
 0x667   :  { %3076 = vmatpush.bf16.msrb.mxu1 %v10490_v36 }
 0x669   :  { %3461 = vmatpush.bf16.msrb.mxu0 %v10966_v18 }
 0x66a   :  { %2505 = vmatmul.bf16.gmra.mxu1 %v8087_v37  ;;  %v2435_v37 = vpop.f32.mrf.mxu3 }
 0x66d   :  { %3462 = vmatpush.bf16.msrb.mxu0 %v10981_v17 }
 0x671   :  { %3463 = vmatpush.bf16.msrb.mxu0 %v10992_v1 }
 0x675   :  { %3464 = vmatpush.bf16.msrb.mxu0 %v10999_v22 }
 0x677   :  { %v2242_v30 = vpop.f32.mrf.mxu1 }
 0x678   :  { %v11901_v53 = vadd.f32 %v2242_v30, %v11723_v52 }
 0x679   :  { %3465 = vmatpush.bf16.msrb.mxu0 %v11007_v39 }
 0x67a   :  { %2510 = vmatmul.bf16.gmra.mxu1 %v8103_v43  ;;  %v14300_v43 = vld [vmem:[#allocation4_spill] sm:$0xff] }
 0x67d   :  { %3466 = vmatpush.bf16.msrb.mxu0 %v11028_v50 }
 0x67f   :  { %v2244_v59 = vpop.f32.mrf.mxu1 }
 0x680   :  { %v11906_v13 = vadd.f32 %v2244_v59, %v11726_v49  ;;  %v9814_v49 = vld [vmem:[%s14213_s1 + $0x2e4] sm:$0xf0]  ;;  %v14301_v59 = vld [vmem:[#allocation10_spill] sm:$0xff] }
 0x681   :  { %v8150_v55 = vor.u32 %v9814_v49, %v8149_v38  ;;  %v9822_v38 = vld [vmem:[%s14213_s1 + $0x324] sm:$0xf0] }
 0x687   :  { %v2247_v31 = vpop.f32.mrf.mxu1 }
 0x688   :  { %v11910_v34 = vadd.f32 %v2247_v31, %v11730_v63  ;;  %v2397_v63 = vpop.f32.mrf.mxu2  ;;  %v14303_v31 = vld [vmem:[#allocation3_spill] sm:$0xff] }
 0x68a   :  { %2515 = vmatmul.bf16.gmra.mxu1 %v2367_v48  ;;  %v2437_v48 = vpop.f32.mrf.mxu3 }
 0x68f   :  { %v2249_v27 = vpop.f32.mrf.mxu1 }
 0x690   :  { %v11913_v52 = vadd.f32 %v2249_v27, %v11733_v35  ;;  %v2463_v35 = vpop.f32.mrf.mxu0  ;;  %v2399_v24 = vpop.f32.mrf.mxu2  ;;  %v8181_v27 = vld [vmem:[%s14213_s1 + $0x318] sm:$0xf] }
 0x697   :  { %v2252_v12 = vpop.f32.mrf.mxu1 }
 0x698   :  { %v11922_v3 = vadd.f32 %v2252_v12, %v11742_v41  ;;  %v8165_v41 = vld [vmem:[%s14213_s1 + $0x2f8] sm:$0xf]  ;;  %v2465_v2 = vpop.f32.mrf.mxu0  ;;  %v2402_v57 = vpop.f32.mrf.mxu2  ;;  %v8182_v12 = vor.u32 %v9822_v38, %v8181_v27 }
 0x699   :  { %v8166_v10 = vor.u32 %v9818_v32, %v8165_v41  ;;  %v14305_v41 = vld [vmem:[#allocation9_spill] sm:$0xff] }
 0x69a   :  { %2786 = vmatmul.bf16.vlgmr.msra.gmra.mxu1 %v8150_v55 }
 0x69b   :  { %3360 = vmatpush.bf16.msra.mxu1 %v10458_v7 }
 0x69f   :  { %3361 = vmatpush.bf16.msra.mxu1 %v14292_v28  ;;  %v2254_v46 = vpop.f32.mrf.mxu1 }
 0x6a0   :  { %v11927_v21 = vadd.f32 %v2254_v46, %v14293_v56  ;;  %v2468_v16 = vpop.f32.mrf.mxu0  ;;  %v2404_v49 = vpop.f32.mrf.mxu2  ;;  %v14304_v46 = vld [vmem:[#allocation2_spill] sm:$0xff] }
 0x6a2   :  { %14294 = vst [vmem:[#allocation13_spill] sm:$0xff] %v11927_v21 }
 0x6a3   :  { %3362 = vmatpush.bf16.msra.mxu1 %v14295_v61 }
 0x6a7   :  { %3363 = vmatpush.bf16.msra.mxu1 %v14296_v47  ;;  %v2257_v25 = vpop.f32.mrf.mxu1 }
 0x6a8   :  { %v11938_v4 = vadd.f32 %v2257_v25, %v14297_v40  ;;  %v2470_v55 = vpop.f32.mrf.mxu0  ;;  %v2407_v25 = vpop.f32.mrf.mxu2 }
 0x6aa   :  { %14298 = vst [vmem:[#allocation14_spill] sm:$0xff] %v11938_v4  ;;  %2791 = vmatmul.bf16.gmra.mxu1 %v8166_v10  ;;  %v2440_v10 = vpop.f32.mrf.mxu3 }
 0x6ab   :  { %3364 = vmatpush.bf16.msra.mxu1 %v14299_v23 }
 0x6af   :  { %3365 = vmatpush.bf16.msra.mxu1 %v14300_v43  ;;  %v2259_v30 = vpop.f32.mrf.mxu1 }
 0x6b0   :  { %v11943_v9 = vadd.f32 %v2259_v30, %v14301_v59  ;;  %v2473_v40 = vpop.f32.mrf.mxu0  ;;  %v8197_v59 = vld [vmem:[%s14213_s1 + $0x338] sm:$0xf]  ;;  %v2409_v43 = vpop.f32.mrf.mxu2 }
 0x6b2   :  { %14302 = vst [vmem:[#allocation15_spill] sm:$0xff] %v11943_v9  ;;  %v9826_v9 = vld [vmem:[%s14213_s1 + $0x344] sm:$0xf0]  ;;  %v2442_v38 = vpop.f32.mrf.mxu3 }
 0x6b3   :  { %3366 = vmatpush.bf16.msra.mxu1 %v14303_v31  ;;  %v8198_v27 = vor.u32 %v9826_v9, %v8197_v59  ;;  %v2431_v31 = vadd.f32 %v2430_v20, %v2397_v63 }
 0x6b7   :  { %3367 = vmatpush.bf16.msra.mxu1 %v14304_v46  ;;  %v2262_v56 = vpop.f32.mrf.mxu1 }
 0x6b8   :  { %v11954_v32 = vadd.f32 %v2262_v56, %v14305_v41  ;;  %v2475_v56 = vpop.f32.mrf.mxu0  ;;  %v2433_v41 = vadd.f32 %v2432_v19, %v2399_v24  ;;  %v2412_v59 = vpop.f32.mrf.mxu2  ;;  %v2436_v24 = vadd.f32 %v2435_v37, %v2402_v57  ;;  %v2438_v19 = vadd.f32 %v2437_v48, %v2404_v49  ;;  %v9829_v57 = vld [vmem:[%s14213_s1 + $0x364] sm:$0xf]  ;;  %v8242_v37 = vld [vmem:[%s14213_s1 + $0x370] sm:$0xf0] }
 0x6b9   :  { %v8245_v49 = vor.u32 %v9829_v57, %v8242_v37 }
 0x6ba   :  { %14306 = vst [vmem:[#allocation12_spill] sm:$0xff] %v11954_v32  ;;  %2796 = vmatmul.bf16.gmra.mxu1 %v8182_v12  ;;  %v2464_v12 = vadd.f32 %v2463_v35, %v2431_v31  ;;  %v2466_v32 = vadd.f32 %v2465_v2, %v2433_v41  ;;  %v2445_v21 = vpop.f32.mrf.mxu3  ;;  %v2469_v31 = vadd.f32 %v2468_v16, %v2436_v24 }
 0x6bf   :  { %v2264_v30 = vpop.f32.mrf.mxu1 }
 0x6c0   :  { %v11965_v30 = vld [vmem:[%s14213_s1 + $0x358] sm:$0xff]  ;;  %v2478_v63 = vpop.f32.mrf.mxu0 }
 0x6c1   :  { %v2670_v9 = vunpack.c.l.b16 %v11965_v30 }
 0x6c2   :  { %v2447_v2 = vpop.f32.mrf.mxu3 }
 0x6c3   :  { %v2690_v20 = vpack.c.b16 %v2670_v9, %v2670_v9  ;;  %v2443_v9 = vadd.f32 %v2442_v38, %v2409_v43  ;;  %v8258_v43 = vld [vmem:[%s14213_s1 + $0x390] sm:$0xf0]  ;;  %v2446_v38 = vadd.f32 %v2445_v21, %v2412_v59  ;;  %v8157_v21 = vld [vmem:[%s14213_s1 + $0x2f0] sm:$0xf]  ;;  %v9817_v59 = vld [vmem:[%s14213_s1 + $0x2fc] sm:$0xf0] }
 0x6c7   :  { %v2496_v46 = vpop.f32.mrf.mxu1 }
 0x6c8   :  { %v2497_v23 = vadd.f32 %v2496_v46, %v2464_v12  ;;  %v2480_v46 = vpop.f32.mrf.mxu0  ;;  %v2441_v12 = vadd.f32 %v2440_v10, %v2407_v25  ;;  %v9833_v10 = vld [vmem:[%s14213_s1 + $0x384] sm:$0xf] }
 0x6c9   :  { %v8261_v25 = vor.u32 %v9833_v10, %v8258_v43  ;;  %v9863_v10 = vld [vmem:[%s14214_s6 + $0x70] sm:$0xff]  ;;  %v9812_v43 = vld [vmem:[%s14213_s1 + $0x2dc] sm:$0xf] }
 0x6ca   :  { %2801 = vmatmul.bf16.gmra.mxu1 %v8198_v27  ;;  %v2450_v41 = vpop.f32.mrf.mxu3 }
 0x6cf   :  { %v2498_v4 = vpop.f32.mrf.mxu1 }
 0x6d0   :  { %v2499_v47 = vadd.f32 %v2498_v4, %v2466_v32  ;;  %v2414_v4 = vpop.f32.mrf.mxu2  ;;  %v2483_v48 = vpop.f32.mrf.mxu0 }
 0x6d2   :  { %v2520_v61 = vpack.c.bf16 %v2499_v47, %v2497_v23  ;;  %v2471_v47 = vadd.f32 %v2470_v55, %v2438_v19 }
 0x6d4   :  { %8116 = vmatmul.msk.bf16.vlgmr.msrb.gmra.mxu2 %vm1518_vm0, %v2520_v61 }
 0x6d5   :  { %3102 = vmatpush.bf16.msrb.mxu2 %v10768_v0 }
 0x6d7   :  { %v2501_v35 = vpop.f32.mrf.mxu1 }
 0x6d8   :  { %v2502_v32 = vadd.f32 %v2501_v35, %v2469_v31  ;;  %v2417_v16 = vpop.f32.mrf.mxu2  ;;  %v2474_v35 = vadd.f32 %v2473_v40, %v2441_v12  ;;  %v2485_v19 = vpop.f32.mrf.mxu0  ;;  %v2476_v31 = vadd.f32 %v2475_v56, %v2443_v9  ;;  %v2448_v56 = vadd.f32 %v2447_v2, %v2414_v4  ;;  %v9837_v9 = vld [vmem:[%s14213_s1 + $0x3a4] sm:$0xf] }
 0x6d9   :  { %3103 = vmatpush.bf16.msrb.mxu2 %v14270_v51  ;;  %v8158_v2 = vor.u32 %v9817_v59, %v8157_v21  ;;  %v9820_v59 = vld [vmem:[%s14213_s1 + $0x31c] sm:$0xf] }
 0x6da   :  { %2806 = vmatmul.bf16.gmra.mxu1 %v2690_v20  ;;  %v2452_v20 = vpop.f32.mrf.mxu3  ;;  %v2481_v57 = vadd.f32 %v2480_v46, %v2448_v56 }
 0x6db   :  { %v8274_v20 = vld [vmem:[%s14213_s1 + $0x3b0] sm:$0xf0]  ;;  %2725 = vmatmul.bf16.gmra.mxu3 %v8158_v2  ;;  %v2668_v2 = vunpack.c.l.b16 %v11852_v29  ;;  %v8199_v29 = vld [vmem:[%s14213_s1 + $0x348] sm:$0xf0] }
 0x6dd   :  { %3104 = vmatpush.bf16.msrb.mxu2 %v14271_v14 }
 0x6df   :  { %v2503_v23 = vpop.f32.mrf.mxu1 }
 0x6e0   :  { %v2504_v27 = vadd.f32 %v2503_v23, %v2471_v47  ;;  %v2419_v24 = vpop.f32.mrf.mxu2 }
 0x6e1   :  { %3105 = vmatpush.bf16.msrb.mxu2 %v14272_v33 }
 0x6e2   :  { %v2521_v61 = vpack.c.bf16 %v2504_v27, %v2502_v32 }
 0x6e4   :  { %8117 = vmatmul.msk.bf16.gmra.mxu2 %vm1518_vm0, %v2521_v61  ;;  %v2479_v61 = vadd.f32 %v2478_v63, %v2446_v38  ;;  %v8277_v63 = vor.u32 %v9837_v9, %v8274_v20  ;;  %v8339_v20 = vld [vmem:[%s14213_s1 + $0x3f0] sm:$0xf] }
 0x6e5   :  { %3106 = vmatpush.bf16.msrb.mxu2 %v14273_v8 }
 0x6e7   :  { %v2506_v55 = vpop.f32.mrf.mxu1 }
 0x6e8   :  { %v2507_v23 = vadd.f32 %v2506_v55, %v2474_v35  ;;  %v2451_v35 = vadd.f32 %v2450_v41, %v2417_v16  ;;  %v9841_v41 = vld [vmem:[%s14213_s1 + $0x3c4] sm:$0xf]  ;;  %v8290_v16 = vld [vmem:[%s14213_s1 + $0x3d0] sm:$0xf0] }
 0x6e9   :  { %3107 = vmatpush.bf16.msrb.mxu2 %v14274_v26 }
 0x6ea   :  { %3077 = vmatmul.bf16.vlgmr.msrb.gmra.mxu1 %v8245_v49  ;;  %v2484_v46 = vadd.f32 %v2483_v48, %v2451_v35  ;;  %v8173_v48 = vld [vmem:[%s14213_s1 + $0x310] sm:$0xf]  ;;  %v9849_v35 = vld [vmem:[%s14213_s1 + $0x3fc] sm:$0xf0] }
 0x6eb   :  { %v8340_v21 = vor.u32 %v9849_v35, %v8339_v20  ;;  %v14310_v20 = vld [vmem:[#allocation8_spill] sm:$0xff] }
 0x6ed   :  { %3108 = vmatpush.bf16.msrb.mxu2 %v14275_v62 }
 0x6ef   :  { %v2508_v47 = vpop.f32.mrf.mxu1 }
 0x6f0   :  { %v2509_v32 = vadd.f32 %v2508_v47, %v2476_v31  ;;  %v9864_v47 = vld [vmem:[%s14214_s6 + $0x78] sm:$0xff] }
 0x6f1   :  { %3109 = vmatpush.bf16.msrb.mxu2 %v14276_v6  ;;  %3535 = vmatpush.bf16.msrb.mxu1 %v9864_v47 }
 0x6f2   :  { %v2522_v27 = vpack.c.bf16 %v2509_v32, %v2507_v23  ;;  %v9821_v23 = vld [vmem:[%s14213_s1 + $0x31c] sm:$0xf0]  ;;  %v8293_v32 = vor.u32 %v9841_v41, %v8290_v16  ;;  %v2671_v16 = vunpack.c.h.b16 %v11965_v30 }
 0x6f4   :  { %8118 = vmatmul.msk.bf16.gmra.mxu2 %vm1518_vm0, %v2522_v27  ;;  %v8174_v27 = vor.u32 %v9821_v23, %v8173_v48  ;;  %v2691_v23 = vpack.c.b16 %v2671_v16, %v2671_v16  ;;  %v8280_v16 = vld [vmem:[%s14213_s1 + $0x3a8] sm:$0xf] }
 0x6f5   :  { %3536 = vmatpush.bf16.msrb.mxu1 %v9863_v10  ;;  %v8248_v10 = vld [vmem:[%s14213_s1 + $0x368] sm:$0xf] }
 0x6f6   :  { %2730 = vmatmul.bf16.gmra.mxu3 %v8174_v27 }
 0x6f7   :  { %v2511_v40 = vpop.f32.mrf.mxu1 }
 0x6f8   :  { %v2512_v49 = vadd.f32 %v2511_v40, %v2479_v61  ;;  %v12032_v40 = vld [vmem:[%s14213_s1 + $0x3e0] sm:$0xff] }
 0x6f9   :  { %v2993_v56 = vunpack.c.h.b16 %v12032_v40 }
 0x6fa   :  { %3082 = vmatmul.bf16.gmra.mxu1 %v8261_v25  ;;  %v8151_v25 = vld [vmem:[%s14213_s1 + $0x2e8] sm:$0xf0] }
 0x6fb   :  { %v8154_v38 = vor.u32 %v9812_v43, %v8151_v25  ;;  %v3013_v61 = vpack.c.b16 %v2993_v56, %v2993_v56  ;;  %v2754_v56 = vpop.f32.mrf.mxu0 }
 0x6ff   :  { %v2513_v37 = vpop.f32.mrf.mxu1 }
 0x700   :  { %v2514_v55 = vadd.f32 %v2513_v37, %v2481_v57  ;;  %v8189_v57 = vld [vmem:[%s14213_s1 + $0x330] sm:$0xf]  ;;  %v9825_v37 = vld [vmem:[%s14213_s1 + $0x33c] sm:$0xf0] }
 0x702   :  { %v2523_v12 = vpack.c.bf16 %v2514_v55, %v2512_v49  ;;  %v8190_v49 = vor.u32 %v9825_v37, %v8189_v57  ;;  %v9816_v55 = vld [vmem:[%s14213_s1 + $0x2fc] sm:$0xf]  ;;  %v14307_v57 = vld [vmem:[#allocation7_spill] sm:$0xff]  ;;  %v9836_v37 = vld [vmem:[%s14213_s1 + $0x394] sm:$0xf0] }
 0x704   :  { %8119 = vmatmul.msk.bf16.gmra.mxu2 %vm1518_vm0, %v2523_v12  ;;  %v8167_v12 = vld [vmem:[%s14213_s1 + $0x308] sm:$0xf0] }
 0x705   :  { %v8170_v9 = vor.u32 %v9816_v55, %v8167_v12  ;;  %v14308_v55 = vld [vmem:[#allocation13_spill] sm:$0xff] }
 0x706   :  { %2735 = vmatmul.bf16.gmra.mxu3 %v8190_v49 }
 0x707   :  { %v2516_v4 = vpop.f32.mrf.mxu1 }
 0x708   :  { %v2517_v24 = vadd.f32 %v2516_v4, %v2484_v46  ;;  %v2688_v4 = vpack.c.b16 %v2668_v2, %v2668_v2  ;;  %v14312_v2 = vld [vmem:[#allocation14_spill] sm:$0xff] }
 0x70a   :  { %3087 = vmatmul.bf16.gmra.mxu1 %v8277_v63  ;;  %v2524_v31 = vpack.c.bf16 %v2517_v24, %v2517_v24  ;;  %v8183_v63 = vld [vmem:[%s14213_s1 + $0x328] sm:$0xf0]  ;;  %v9824_v24 = vld [vmem:[%s14213_s1 + $0x33c] sm:$0xf] }
 0x70b   :  { %v8186_v46 = vor.u32 %v9820_v59, %v8183_v63  ;;  %v14311_v59 = vld [vmem:[#allocation5_spill] sm:$0xff] }
 0x70f   :  { %v2518_v19 = vpop.f32.mrf.mxu1 }
 0x710   :  { %v8202_v19 = vor.u32 %v9824_v24, %v8199_v29  ;;  %v14314_v24 = vld [vmem:[#allocation4_spill] sm:$0xff] }
 0x714   :  { %8120 = vmatmul.msk.bf16.gmra.mxu2 %vm1518_vm0, %v2524_v31 }
 0x716   :  { %2740 = vmatmul.bf16.gmra.mxu3 %v2688_v4 }
 0x71a   :  { %3092 = vmatmul.bf16.gmra.mxu1 %v8293_v32 }
 0x724   :  { %2819 = vmatmul.bf16.vlgmr.msra.gmra.mxu2 %v8154_v38  ;;  %v2721_v38 = vpop.f32.mrf.mxu3 }
 0x725   :  { %3393 = vmatpush.bf16.msra.mxu2 %v10608_v44 }
 0x729   :  { %3394 = vmatpush.bf16.msra.mxu2 %v10613_v58 }
 0x72a   :  { %3097 = vmatmul.bf16.gmra.mxu1 %v3013_v61  ;;  %v2787_v61 = vpop.f32.mrf.mxu1 }
 0x72c   :  { %v2723_v35 = vpop.f32.mrf.mxu3 }
 0x72d   :  { %3395 = vmatpush.bf16.msra.mxu2 %v10616_v60 }
 0x731   :  { %3396 = vmatpush.bf16.msra.mxu2 %v10621_v42 }
 0x734   :  { %2824 = vmatmul.bf16.gmra.mxu2 %v8170_v9  ;;  %v2756_v9 = vpop.f32.mrf.mxu0 }
 0x735   :  { %3397 = vmatpush.bf16.msra.mxu2 %v10546_v15 }
 0x739   :  { %3398 = vmatpush.bf16.msra.mxu2 %v10530_v11 }
 0x73a   :  { %3368 = vmatmul.bf16.vlgmr.msra.gmra.mxu1 %v8340_v21  ;;  %v2789_v21 = vpop.f32.mrf.mxu1 }
 0x73b   :  { %3783 = vmatpush.bf16.msra.mxu1 %v10947_v5 }
 0x73d   :  { %3399 = vmatpush.bf16.msra.mxu2 %v10514_v54 }
 0x73f   :  { %3784 = vmatpush.bf16.msra.mxu1 %v10956_v45 }
 0x741   :  { %3400 = vmatpush.bf16.msra.mxu2 %v10490_v36 }
 0x743   :  { %3785 = vmatpush.bf16.msra.mxu1 %v10966_v18 }
 0x744   :  { %2829 = vmatmul.bf16.gmra.mxu2 %v8186_v46  ;;  %v2759_v46 = vpop.f32.mrf.mxu0 }
 0x747   :  { %3786 = vmatpush.bf16.msra.mxu1 %v10981_v17 }
 0x74b   :  { %3787 = vmatpush.bf16.msra.mxu1 %v10992_v1 }
 0x74f   :  { %3788 = vmatpush.bf16.msra.mxu1 %v10999_v22 }
 0x753   :  { %3789 = vmatpush.bf16.msra.mxu1 %v11007_v39 }
 0x754   :  { %2834 = vmatmul.bf16.gmra.mxu2 %v8202_v19  ;;  %v2792_v19 = vpop.f32.mrf.mxu1 }
 0x757   :  { %3790 = vmatpush.bf16.msra.mxu1 %v11028_v50  ;;  %v2566_v31 = vpop.f32.mrf.mxu2 }
 0x758   :  { %v12083_v41 = vadd.f32 %v2566_v31, %v11901_v53  ;;  %v9832_v53 = vld [vmem:[%s14213_s1 + $0x374] sm:$0xf0]  ;;  %v14315_v31 = vld [vmem:[#allocation3_spill] sm:$0xff] }
 0x75e   :  { %v2726_v29 = vpop.f32.mrf.mxu3 }
 0x75f   :  { %v2568_v47 = vpop.f32.mrf.mxu2 }
 0x760   :  { %v12087_v48 = vadd.f32 %v2568_v47, %v11906_v13  ;;  %v8249_v13 = vor.u32 %v9832_v53, %v8248_v10  ;;  %v9840_v47 = vld [vmem:[%s14213_s1 + $0x3b4] sm:$0xf0] }
 0x761   :  { %v8281_v53 = vor.u32 %v9840_v47, %v8280_v16 }
 0x764   :  { %2839 = vmatmul.bf16.gmra.mxu2 %v2691_v23 }
 0x767   :  { %v2571_v32 = vpop.f32.mrf.mxu2 }
 0x768   :  { %v12090_v27 = vadd.f32 %v2571_v32, %v11910_v34  ;;  %v14316_v32 = vld [vmem:[#allocation15_spill] sm:$0xff] }
 0x76f   :  { %v2573_v43 = vpop.f32.mrf.mxu2 }
 0x770   :  { %v12099_v30 = vadd.f32 %v2573_v43, %v11913_v52  ;;  %v8264_v52 = vld [vmem:[%s14213_s1 + $0x388] sm:$0xf]  ;;  %v14318_v43 = vld [vmem:[#allocation2_spill] sm:$0xff] }
 0x774   :  { %3110 = vmatmul.bf16.vlgmr.msrb.gmra.mxu2 %v8249_v13  ;;  %v2761_v13 = vpop.f32.mrf.mxu0 }
 0x775   :  { %3684 = vmatpush.bf16.msrb.mxu2 %v10458_v7 }
 0x777   :  { %v2576_v25 = vpop.f32.mrf.mxu2 }
 0x778   :  { %v12103_v34 = vadd.f32 %v2576_v25, %v11922_v3  ;;  %v8265_v3 = vor.u32 %v9836_v37, %v8264_v52  ;;  %v2728_v25 = vpop.f32.mrf.mxu3  ;;  %v2794_v52 = vpop.f32.mrf.mxu1 }
 0x779   :  { %3685 = vmatpush.bf16.msrb.mxu2 %v14292_v28  ;;  %v2760_v28 = vadd.f32 %v2759_v46, %v2726_v29 }
 0x77d   :  { %3686 = vmatpush.bf16.msrb.mxu2 %v14307_v57 }
 0x77f   :  { %v2578_v49 = vpop.f32.mrf.mxu2 }
 0x780   :  { %v12114_v12 = vadd.f32 %v2578_v49, %v14308_v55  ;;  %v14319_v49 = vld [vmem:[#allocation12_spill] sm:$0xff]  ;;  %v2731_v16 = vpop.f32.mrf.mxu3  ;;  %v2797_v47 = vpop.f32.mrf.mxu1 }
 0x781   :  { %3687 = vmatpush.bf16.msrb.mxu2 %v14310_v20 }
 0x782   :  { %14309 = vst [vmem:[#allocation11_spill] sm:$0xff] %v12114_v12 }
 0x784   :  { %3115 = vmatmul.bf16.gmra.mxu2 %v8265_v3  ;;  %v2764_v3 = vpop.f32.mrf.mxu0 }
 0x785   :  { %3688 = vmatpush.bf16.msrb.mxu2 %v14311_v59 }
 0x787   :  { %v2581_v63 = vpop.f32.mrf.mxu2 }
 0x788   :  { %v12119_v4 = vadd.f32 %v2581_v63, %v14312_v2  ;;  %v8296_v63 = vld [vmem:[%s14213_s1 + $0x3c8] sm:$0xf]  ;;  %v9844_v2 = vld [vmem:[%s14213_s1 + $0x3d4] sm:$0xf0] }
 0x789   :  { %3689 = vmatpush.bf16.msrb.mxu2 %v14314_v24 }
 0x78a   :  { %14313 = vst [vmem:[#allocation10_spill] sm:$0xff] %v12119_v4 }
 0x78d   :  { %3690 = vmatpush.bf16.msrb.mxu2 %v14315_v31  ;;  %v2733_v31 = vpop.f32.mrf.mxu3 }
 0x78f   :  { %v2583_v23 = vpop.f32.mrf.mxu2 }
 0x790   :  { %v12130_v10 = vadd.f32 %v2583_v23, %v14316_v32  ;;  %v8297_v32 = vor.u32 %v9844_v2, %v8296_v63 }
 0x791   :  { %3691 = vmatpush.bf16.msrb.mxu2 %v14318_v43 }
 0x792   :  { %14317 = vst [vmem:[#allocation9_spill] sm:$0xff] %v12130_v10  ;;  %v2755_v10 = vadd.f32 %v2754_v56, %v2721_v38 }
 0x794   :  { %3120 = vmatmul.bf16.gmra.mxu2 %v8281_v53  ;;  %v2766_v53 = vpop.f32.mrf.mxu0  ;;  %v2788_v24 = vadd.f32 %v2787_v61, %v2755_v10  ;;  %v2762_v61 = vadd.f32 %v2761_v13, %v2728_v25 }
 0x795   :  { %v2736_v57 = vpop.f32.mrf.mxu3 }
 0x797   :  { %v2586_v37 = vpop.f32.mrf.mxu2 }
 0x798   :  { %v12134_v55 = vadd.f32 %v2586_v37, %v14319_v49  ;;  %v2799_v37 = vpop.f32.mrf.mxu1  ;;  %v12145_v49 = vld [vmem:[%s14213_s1 + $0x3e8] sm:$0xff] }
 0x799   :  { %v2994_v4 = vunpack.c.l.b16 %v12145_v49 }
 0x79a   :  { %14320 = vst [vmem:[#allocation13_spill] sm:$0xff] %v12134_v55  ;;  %v2757_v55 = vadd.f32 %v2756_v9, %v2723_v35  ;;  %v2793_v35 = vadd.f32 %v2792_v19, %v2760_v28 }
 0x79b   :  { %v3014_v63 = vpack.c.b16 %v2994_v4, %v2994_v4 }
 0x79c   :  { %v2790_v59 = vadd.f32 %v2789_v21, %v2757_v55  ;;  %v2769_v2 = vpop.f32.mrf.mxu0  ;;  %v2765_v55 = vadd.f32 %v2764_v3, %v2731_v16 }
 0x79d   :  { %v2738_v21 = vpop.f32.mrf.mxu3 }
 0x79f   :  { %v2588_v23 = vpop.f32.mrf.mxu2 }
 0x7a0   :  { %v2802_v38 = vpop.f32.mrf.mxu1 }
 0x7a4   :  { %3125 = vmatmul.bf16.gmra.mxu2 %v8297_v32  ;;  %v2771_v9 = vpop.f32.mrf.mxu0 }
 0x7a7   :  { %v2820_v43 = vpop.f32.mrf.mxu2 }
 0x7a8   :  { %v2821_v12 = vadd.f32 %v2820_v43, %v2788_v24  ;;  %v2804_v24 = vpop.f32.mrf.mxu1  ;;  %v2741_v43 = vpop.f32.mrf.mxu3 }
 0x7ac   :  { %v2774_v19 = vpop.f32.mrf.mxu0 }
 0x7af   :  { %v2822_v20 = vpop.f32.mrf.mxu2 }
 0x7b0   :  { %v2823_v23 = vadd.f32 %v2822_v20, %v2790_v59  ;;  %v8341_v20 = vld [vmem:[%s14213_s1 + $0x400] sm:$0xf0]  ;;  %v2795_v59 = vadd.f32 %v2794_v52, %v2762_v61  ;;  %v2807_v13 = vpop.f32.mrf.mxu1  ;;  %v2767_v52 = vadd.f32 %v2766_v53, %v2733_v31  ;;  %v9851_v61 = vld [vmem:[%s14213_s1 + $0x414] sm:$0xf]  ;;  %v2770_v53 = vadd.f32 %v2769_v2, %v2736_v57 }
 0x7b2   :  { %v2844_v32 = vpack.c.bf16 %v2823_v23, %v2821_v12  ;;  %v9847_v12 = vld [vmem:[%s14213_s1 + $0x3f4] sm:$0xf] }
 0x7b3   :  { %v8344_v10 = vor.u32 %v9847_v12, %v8341_v20  ;;  %v2800_v12 = vadd.f32 %v2799_v37, %v2767_v52  ;;  %v8373_v37 = vld [vmem:[%s14213_s1 + $0x440] sm:$0xf0] }
 0x7b4   :  { %8215 = vmatmul.msk.bf16.vlgmr.msra.gmra.mxu3 %vm1518_vm0, %v2844_v32  ;;  %3130 = vmatmul.bf16.gmra.mxu2 %v3014_v63  ;;  %v2776_v23 = vpop.f32.mrf.mxu0  ;;  %v2798_v63 = vadd.f32 %v2797_v47, %v2765_v55  ;;  %v2743_v32 = vpop.f32.mrf.mxu3 }
 0x7b5   :  { %3426 = vmatpush.bf16.msra.mxu3 %v10768_v0 }
 0x7b7   :  { %v2825_v56 = vpop.f32.mrf.mxu2 }
 0x7b8   :  { %v2826_v46 = vadd.f32 %v2825_v56, %v2793_v35  ;;  %v2809_v56 = vpop.f32.mrf.mxu1  ;;  %v8357_v35 = vld [vmem:[%s14213_s1 + $0x420] sm:$0xf0] }
 0x7b9   :  { %3427 = vmatpush.bf16.msra.mxu3 %v14270_v51 }
 0x7bd   :  { %3428 = vmatpush.bf16.msra.mxu3 %v14271_v14 }
 0x7bf   :  { %v2827_v4 = vpop.f32.mrf.mxu2 }
 0x7c0   :  { %v2828_v29 = vadd.f32 %v2827_v4, %v2795_v59  ;;  %v8360_v59 = vor.u32 %v9851_v61, %v8357_v35  ;;  %v2772_v4 = vadd.f32 %v2771_v9, %v2738_v21  ;;  %v8256_v9 = vld [vmem:[%s14213_s1 + $0x380] sm:$0xf]  ;;  %v9835_v21 = vld [vmem:[%s14213_s1 + $0x38c] sm:$0xf0] }
 0x7c1   :  { %3429 = vmatpush.bf16.msra.mxu3 %v14272_v33  ;;  %v9881_v35 = vld [vmem:[%s14214_s6 + $0x80] sm:$0xff] }
 0x7c2   :  { %v2845_v28 = vpack.c.bf16 %v2828_v29, %v2826_v46  ;;  %v2803_v46 = vadd.f32 %v2802_v38, %v2770_v53  ;;  %v9855_v29 = vld [vmem:[%s14213_s1 + $0x434] sm:$0xf] }
 0x7c3   :  { %v8376_v52 = vor.u32 %v9855_v29, %v8373_v37  ;;  %v8288_v29 = vld [vmem:[%s14213_s1 + $0x3c0] sm:$0xf]  ;;  %v9843_v37 = vld [vmem:[%s14213_s1 + $0x3cc] sm:$0xf0] }
 0x7c4   :  { %8216 = vmatmul.msk.bf16.gmra.mxu3 %vm1518_vm0, %v2845_v28  ;;  %3401 = vmatmul.bf16.vlgmr.msra.gmra.mxu2 %v8344_v10  ;;  %v2805_v10 = vadd.f32 %v2804_v24, %v2772_v4  ;;  %v9859_v24 = vld [vmem:[%s14213_s1 + $0x454] sm:$0xf] }
 0x7c5   :  { %3430 = vmatpush.bf16.msra.mxu3 %v14273_v8 }
 0x7c7   :  { %v2830_v25 = vpop.f32.mrf.mxu2 }
 0x7c8   :  { %v2831_v3 = vadd.f32 %v2830_v25, %v2798_v63  ;;  %v2775_v63 = vadd.f32 %v2774_v19, %v2741_v43  ;;  %v8389_v19 = vld [vmem:[%s14213_s1 + $0x460] sm:$0xf0]  ;;  %v8257_v43 = vor.u32 %v9835_v21, %v8256_v9  ;;  %v9842_v21 = vld [vmem:[%s14213_s1 + $0x3cc] sm:$0xf] }
 0x7c9   :  { %3431 = vmatpush.bf16.msra.mxu3 %v14274_v26  ;;  %v8392_v61 = vor.u32 %v9859_v24, %v8389_v19  ;;  %v8298_v24 = vld [vmem:[%s14213_s1 + $0x3d8] sm:$0xf0] }
 0x7ca   :  { %v2808_v2 = vadd.f32 %v2807_v13, %v2775_v63  ;;  %v9882_v13 = vld [vmem:[%s14214_s6 + $0x88] sm:$0xff]  ;;  %3049 = vmatmul.bf16.gmra.mxu0 %v8257_v43  ;;  %v8301_v19 = vor.u32 %v9842_v21, %v8298_v24  ;;  %v14329_v21 = vld [vmem:[#allocation4_spill] sm:$0xff] }
 0x7cb   :  { %3859 = vmatpush.bf16.msra.mxu2 %v9882_v13  ;;  %v9838_v63 = vld [vmem:[%s14213_s1 + $0x3ac] sm:$0xf]  ;;  %v2995_v13 = vunpack.c.h.b16 %v12145_v49 }
 0x7cd   :  { %3432 = vmatpush.bf16.msra.mxu3 %v14275_v62 }
 0x7cf   :  { %v2832_v20 = vpop.f32.mrf.mxu2  ;;  %3860 = vmatpush.bf16.msra.mxu2 %v9881_v35 }
 0x7d0   :  { %v2833_v16 = vadd.f32 %v2832_v20, %v2800_v12  ;;  %v12200_v12 = vld [vmem:[%s14213_s1 + $0x470] sm:$0xff] }
 0x7d1   :  { %3433 = vmatpush.bf16.msra.mxu3 %v14276_v6  ;;  %v3317_v20 = vunpack.c.h.b16 %v12200_v12 }
 0x7d2   :  { %v2846_v31 = vpack.c.bf16 %v2833_v16, %v2831_v3  ;;  %v8272_v3 = vld [vmem:[%s14213_s1 + $0x3a0] sm:$0xf]  ;;  %v9839_v16 = vld [vmem:[%s14213_s1 + $0x3ac] sm:$0xf0] }
 0x7d3   :  { %v3337_v4 = vpack.c.b16 %v3317_v20, %v3317_v20 }
 0x7d4   :  { %8217 = vmatmul.msk.bf16.gmra.mxu3 %vm1518_vm0, %v2846_v31  ;;  %3406 = vmatmul.bf16.gmra.mxu2 %v8360_v59  ;;  %v9830_v59 = vld [vmem:[%s14213_s1 + $0x36c] sm:$0xf]  ;;  %v8250_v31 = vld [vmem:[%s14213_s1 + $0x378] sm:$0xf0] }
 0x7d5   :  { %v8253_v53 = vor.u32 %v9830_v59, %v8250_v31  ;;  %v3045_v31 = vpop.f32.mrf.mxu0 }
 0x7d7   :  { %v2835_v47 = vpop.f32.mrf.mxu2 }
 0x7d8   :  { %v2836_v25 = vadd.f32 %v2835_v47, %v2803_v46  ;;  %v8273_v47 = vor.u32 %v9839_v16, %v8272_v3  ;;  %v9834_v46 = vld [vmem:[%s14213_s1 + $0x38c] sm:$0xf]  ;;  %v8347_v3 = vld [vmem:[%s14213_s1 + $0x3f8] sm:$0xf] }
 0x7da   :  { %3054 = vmatmul.bf16.gmra.mxu0 %v8273_v47  ;;  %v3078_v47 = vpop.f32.mrf.mxu1 }
 0x7df   :  { %v2837_v28 = vpop.f32.mrf.mxu2 }
 0x7e0   :  { %v2838_v55 = vadd.f32 %v2837_v28, %v2805_v10  ;;  %v8266_v10 = vld [vmem:[%s14213_s1 + $0x398] sm:$0xf0]  ;;  %v8438_v28 = vld [vmem:[%s14213_s1 + $0x480] sm:$0xf] }
 0x7e2   :  { %v2847_v23 = vpack.c.bf16 %v2838_v55, %v2836_v25  ;;  %v9867_v25 = vld [vmem:[%s14213_s1 + $0x48c] sm:$0xf0]  ;;  %v8289_v55 = vor.u32 %v9843_v37, %v8288_v29  ;;  %v9854_v29 = vld [vmem:[%s14213_s1 + $0x424] sm:$0xf0] }
 0x7e4   :  { %8218 = vmatmul.msk.bf16.gmra.mxu3 %vm1518_vm0, %v2847_v23  ;;  %3411 = vmatmul.bf16.gmra.mxu2 %v8376_v52  ;;  %v8269_v52 = vor.u32 %v9834_v46, %v8266_v10  ;;  %v8439_v23 = vor.u32 %v9867_v25, %v8438_v28  ;;  %v14322_v46 = vld [vmem:[#allocation7_spill] sm:$0xff]  ;;  %v3080_v25 = vpop.f32.mrf.mxu1 }
 0x7e5   :  { %v14323_v10 = vld [vmem:[#allocation11_spill] sm:$0xff] }
 0x7e7   :  { %v2840_v57 = vpop.f32.mrf.mxu2 }
 0x7e8   :  { %v2841_v38 = vadd.f32 %v2840_v57, %v2808_v2  ;;  %v8282_v57 = vld [vmem:[%s14213_s1 + $0x3b8] sm:$0xf0] }
 0x7e9   :  { %v8285_v2 = vor.u32 %v9838_v63, %v8282_v57  ;;  %v14326_v63 = vld [vmem:[#allocation5_spill] sm:$0xff] }
 0x7ea   :  { %v2848_v56 = vpack.c.bf16 %v2841_v38, %v2841_v38  ;;  %3059 = vmatmul.bf16.gmra.mxu0 %v8289_v55  ;;  %v2992_v38 = vunpack.c.l.b16 %v12032_v40  ;;  %v14325_v55 = vld [vmem:[#allocation8_spill] sm:$0xff] }
 0x7ec   :  { %v3012_v9 = vpack.c.b16 %v2992_v38, %v2992_v38 }
 0x7ef   :  { %v2842_v32 = vpop.f32.mrf.mxu2 }
 0x7f4   :  { %8219 = vmatmul.msk.bf16.gmra.mxu3 %vm1518_vm0, %v2848_v56  ;;  %3416 = vmatmul.bf16.gmra.mxu2 %v8392_v61  ;;  %v3015_v61 = vpack.c.b16 %v2995_v13, %v2995_v13  ;;  %v8379_v13 = vld [vmem:[%s14213_s1 + $0x438] sm:$0xf] }
 0x7fa   :  { %3064 = vmatmul.bf16.gmra.mxu0 %v3012_v9  ;;  %v3083_v9 = vpop.f32.mrf.mxu1 }
 0x804   :  { %3143 = vmatmul.bf16.vlgmr.msrb.gmra.mxu3 %v8253_v53  ;;  %3421 = vmatmul.bf16.gmra.mxu2 %v3337_v4  ;;  %v14321_v53 = vld [vmem:[#allocation6_spill] sm:$0xff]  ;;  %v3111_v4 = vpop.f32.mrf.mxu2 }
 0x805   :  { %3717 = vmatpush.bf16.msrb.mxu3 %v10608_v44 }
 0x809   :  { %3718 = vmatpush.bf16.msrb.mxu3 %v10613_v58 }
 0x80d   :  { %3719 = vmatpush.bf16.msrb.mxu3 %v10616_v60 }
 0x811   :  { %3720 = vmatpush.bf16.msrb.mxu3 %v10621_v42 }
 0x814   :  { %3148 = vmatmul.bf16.gmra.mxu3 %v8269_v52  ;;  %3692 = vmatmul.bf16.vlgmr.msrb.gmra.mxu2 %v8439_v23  ;;  %v3047_v52 = vpop.f32.mrf.mxu0  ;;  %v3113_v23 = vpop.f32.mrf.mxu2 }
 0x815   :  { %3721 = vmatpush.bf16.msrb.mxu3 %v10546_v15  ;;  %4107 = vmatpush.bf16.msrb.mxu2 %v10947_v5 }
 0x819   :  { %3722 = vmatpush.bf16.msrb.mxu3 %v10530_v11  ;;  %4108 = vmatpush.bf16.msrb.mxu2 %v10956_v45 }
 0x81d   :  { %3723 = vmatpush.bf16.msrb.mxu3 %v10514_v54  ;;  %4109 = vmatpush.bf16.msrb.mxu2 %v10966_v18 }
 0x821   :  { %3724 = vmatpush.bf16.msrb.mxu3 %v10490_v36  ;;  %4110 = vmatpush.bf16.msrb.mxu2 %v10981_v17 }
 0x824   :  { %3153 = vmatmul.bf16.gmra.mxu3 %v8285_v2  ;;  %v14327_v2 = vld [vmem:[#allocation10_spill] sm:$0xff] }
 0x825   :  { %4111 = vmatpush.bf16.msrb.mxu2 %v10992_v1 }
 0x829   :  { %4112 = vmatpush.bf16.msrb.mxu2 %v10999_v22 }
 0x82d   :  { %4113 = vmatpush.bf16.msrb.mxu2 %v11007_v39 }
 0x831   :  { %4114 = vmatpush.bf16.msrb.mxu2 %v11028_v50 }
 0x834   :  { %3158 = vmatmul.bf16.gmra.mxu3 %v8301_v19  ;;  %v3116_v19 = vpop.f32.mrf.mxu2 }
 0x837   :  { %v2890_v40 = vpop.f32.mrf.mxu3 }
 0x838   :  { %v12263_v43 = vadd.f32 %v2890_v40, %v12083_v41  ;;  %v9850_v41 = vld [vmem:[%s14213_s1 + $0x404] sm:$0xf0] }
 0x839   :  { %v14330_v40 = vld [vmem:[#allocation3_spill] sm:$0xff] }
 0x83f   :  { %v2892_v32 = vpop.f32.mrf.mxu3 }
 0x840   :  { %v12267_v56 = vadd.f32 %v2892_v32, %v12087_v48  ;;  %v8348_v48 = vor.u32 %v9850_v41, %v8347_v3  ;;  %v9858_v32 = vld [vmem:[%s14213_s1 + $0x444] sm:$0xf0] }
 0x841   :  { %v8380_v41 = vor.u32 %v9858_v32, %v8379_v13 }
 0x844   :  { %3163 = vmatmul.bf16.gmra.mxu3 %v3015_v61 }
 0x847   :  { %v2895_v35 = vpop.f32.mrf.mxu3  ;;  %v3050_v24 = vpop.f32.mrf.mxu0 }
 0x848   :  { %v12270_v20 = vadd.f32 %v2895_v35, %v12090_v27  ;;  %v14331_v35 = vld [vmem:[#allocation9_spill] sm:$0xff] }
 0x84f   :  { %v2897_v16 = vpop.f32.mrf.mxu3 }
 0x850   :  { %v12279_v49 = vadd.f32 %v2897_v16, %v12099_v30  ;;  %v8363_v30 = vld [vmem:[%s14213_s1 + $0x418] sm:$0xf]  ;;  %v14333_v16 = vld [vmem:[#allocation2_spill] sm:$0xff] }
 0x854   :  { %3434 = vmatmul.bf16.vlgmr.msra.gmra.mxu3 %v8348_v48  ;;  %v3085_v48 = vpop.f32.mrf.mxu1 }
 0x855   :  { %4008 = vmatpush.bf16.msra.mxu3 %v10458_v7 }
 0x857   :  { %v2900_v59 = vpop.f32.mrf.mxu3 }
 0x858   :  { %v12283_v27 = vadd.f32 %v2900_v59, %v12103_v34  ;;  %v8364_v34 = vor.u32 %v9854_v29, %v8363_v30  ;;  %v3052_v59 = vpop.f32.mrf.mxu0  ;;  %v3118_v30 = vpop.f32.mrf.mxu2 }
 0x859   :  { %4009 = vmatpush.bf16.msra.mxu3 %v14321_v53  ;;  %v3084_v53 = vadd.f32 %v3083_v9, %v3050_v24 }
 0x85d   :  { %4010 = vmatpush.bf16.msra.mxu3 %v14322_v46 }
 0x85f   :  { %v2902_v37 = vpop.f32.mrf.mxu3 }
 0x860   :  { %v12294_v28 = vadd.f32 %v2902_v37, %v14323_v10  ;;  %v14334_v37 = vld [vmem:[#allocation13_spill] sm:$0xff]  ;;  %v3055_v13 = vpop.f32.mrf.mxu0  ;;  %v3121_v32 = vpop.f32.mrf.mxu2 }
 0x861   :  { %4011 = vmatpush.bf16.msra.mxu3 %v14325_v55 }
 0x862   :  { %14324 = vst [vmem:[#allocation14_spill] sm:$0xff] %v12294_v28 }
 0x864   :  { %3439 = vmatmul.bf16.gmra.mxu3 %v8364_v34  ;;  %v3088_v34 = vpop.f32.mrf.mxu1 }
 0x865   :  { %4012 = vmatpush.bf16.msra.mxu3 %v14326_v63 }
 0x867   :  { %v2905_v57 = vpop.f32.mrf.mxu3 }
 0x868   :  { %v12299_v38 = vadd.f32 %v2905_v57, %v14327_v2  ;;  %v8395_v57 = vld [vmem:[%s14213_s1 + $0x458] sm:$0xf]  ;;  %v9862_v2 = vld [vmem:[%s14213_s1 + $0x464] sm:$0xf0] }
 0x869   :  { %4013 = vmatpush.bf16.msra.mxu3 %v14329_v21 }
 0x86a   :  { %14328 = vst [vmem:[#allocation15_spill] sm:$0xff] %v12299_v38 }
 0x86d   :  { %4014 = vmatpush.bf16.msra.mxu3 %v14330_v40  ;;  %v3079_v40 = vadd.f32 %v3078_v47, %v3045_v31 }
 0x86f   :  { %v2907_v61 = vpop.f32.mrf.mxu3  ;;  %v3112_v21 = vadd.f32 %v3111_v4, %v3079_v40  ;;  %v3086_v4 = vadd.f32 %v3085_v48, %v3052_v59 }
 0x870   :  { %v12310_v3 = vadd.f32 %v2907_v61, %v14331_v35  ;;  %v8396_v35 = vor.u32 %v9862_v2, %v8395_v57 }
 0x871   :  { %4015 = vmatpush.bf16.msra.mxu3 %v14333_v16 }
 0x872   :  { %14332 = vst [vmem:[#allocation12_spill] sm:$0xff] %v12310_v3  ;;  %v3057_v3 = vpop.f32.mrf.mxu0 }
 0x874   :  { %3444 = vmatmul.bf16.gmra.mxu3 %v8380_v41  ;;  %v3090_v41 = vpop.f32.mrf.mxu1 }
 0x877   :  { %v2910_v29 = vpop.f32.mrf.mxu3 }
 0x878   :  { %v12314_v10 = vadd.f32 %v2910_v29, %v14334_v37  ;;  %v3123_v29 = vpop.f32.mrf.mxu2  ;;  %v12325_v37 = vld [vmem:[%s14213_s1 + $0x478] sm:$0xff] }
 0x879   :  { %v3318_v63 = vunpack.c.l.b16 %v12325_v37 }
 0x87a   :  { %14335 = vst [vmem:[#allocation11_spill] sm:$0xff] %v12314_v10  ;;  %v3081_v10 = vadd.f32 %v3080_v25, %v3047_v52  ;;  %v3060_v28 = vpop.f32.mrf.mxu0  ;;  %v3117_v52 = vadd.f32 %v3116_v19, %v3084_v53 }
 0x87b   :  { %v3338_v57 = vpack.c.b16 %v3318_v63, %v3318_v63  ;;  %v3119_v63 = vadd.f32 %v3118_v30, %v3086_v4  ;;  %v3091_v30 = vadd.f32 %v3090_v41, %v3057_v3  ;;  %v9869_v4 = vld [vmem:[%s14213_s1 + $0x4a4] sm:$0xf] }
 0x87c   :  { %v3114_v38 = vadd.f32 %v3113_v23, %v3081_v10  ;;  %v3093_v2 = vpop.f32.mrf.mxu1  ;;  %v3089_v10 = vadd.f32 %v3088_v34, %v3055_v13 }
 0x87d   :  { %v3094_v41 = vadd.f32 %v3093_v2, %v3060_v28  ;;  %v8355_v28 = vld [vmem:[%s14213_s1 + $0x410] sm:$0xf]  ;;  %v9853_v2 = vld [vmem:[%s14213_s1 + $0x41c] sm:$0xf0] }
 0x87f   :  { %v2912_v61 = vpop.f32.mrf.mxu3 }
 0x880   :  { %v3126_v31 = vpop.f32.mrf.mxu2 }
 0x882   :  { %v3062_v23 = vpop.f32.mrf.mxu0 }
 0x884   :  { %3449 = vmatmul.bf16.gmra.mxu3 %v8396_v35  ;;  %v3095_v25 = vpop.f32.mrf.mxu1 }
 0x887   :  { %v3144_v16 = vpop.f32.mrf.mxu3 }
 0x888   :  { %v3145_v46 = vadd.f32 %v3144_v16, %v3112_v21  ;;  %v3128_v21 = vpop.f32.mrf.mxu2 }
 0x88a   :  { %v3065_v16 = vpop.f32.mrf.mxu0 }
 0x88c   :  { %v3098_v19 = vpop.f32.mrf.mxu1 }
 0x88f   :  { %v3146_v55 = vpop.f32.mrf.mxu3 }
 0x890   :  { %v3147_v61 = vadd.f32 %v3146_v55, %v3114_v38  ;;  %v8440_v55 = vld [vmem:[%s14213_s1 + $0x490] sm:$0xf0]  ;;  %v3131_v48 = vpop.f32.mrf.mxu2 }
 0x892   :  { %v3168_v35 = vpack.c.bf16 %v3147_v61, %v3145_v46  ;;  %v9865_v46 = vld [vmem:[%s14213_s1 + $0x484] sm:$0xf] }
 0x893   :  { %v8443_v40 = vor.u32 %v9865_v46, %v8440_v55  ;;  %v3124_v46 = vadd.f32 %v3123_v29, %v3091_v30  ;;  %v8472_v29 = vld [vmem:[%s14213_s1 + $0x4d0] sm:$0xf0] }
 0x894   :  { %8314 = vmatmul.msk.bf16.vlgmr.msra.gmra.mxu0 %vm1518_vm0, %v3168_v35  ;;  %3454 = vmatmul.bf16.gmra.mxu3 %v3338_v57  ;;  %v3100_v61 = vpop.f32.mrf.mxu1  ;;  %v3122_v57 = vadd.f32 %v3121_v32, %v3089_v10  ;;  %v3067_v35 = vpop.f32.mrf.mxu0 }
 0x895   :  { %3750 = vmatpush.bf16.msra.mxu0 %v10768_v0  ;;  %v9900_v35 = vld [vmem:[%s14214_s6 + $0x98] sm:$0xff] }
 0x897   :  { %v3149_v47 = vpop.f32.mrf.mxu3 }
 0x898   :  { %v3150_v9 = vadd.f32 %v3149_v47, %v3117_v52  ;;  %v3133_v47 = vpop.f32.mrf.mxu2  ;;  %v8456_v52 = vld [vmem:[%s14213_s1 + $0x4b0] sm:$0xf0] }
 0x899   :  { %3751 = vmatpush.bf16.msra.mxu0 %v14270_v51 }
 0x89d   :  { %3752 = vmatpush.bf16.msra.mxu0 %v14271_v14 }
 0x89f   :  { %v3151_v38 = vpop.f32.mrf.mxu3 }
 0x8a0   :  { %v3152_v24 = vadd.f32 %v3151_v38, %v3119_v63  ;;  %v8459_v63 = vor.u32 %v9869_v4, %v8456_v52  ;;  %v3096_v38 = vadd.f32 %v3095_v25, %v3062_v23 }
 0x8a1   :  { %3753 = vmatpush.bf16.msra.mxu0 %v14272_v33 }
 0x8a2   :  { %v3169_v53 = vpack.c.bf16 %v3152_v24, %v3150_v9  ;;  %v3127_v9 = vadd.f32 %v3126_v31, %v3094_v41  ;;  %v9873_v24 = vld [vmem:[%s14213_s1 + $0x4c4] sm:$0xf]  ;;  %v8356_v31 = vor.u32 %v9853_v2, %v8355_v28  ;;  %v9856_v2 = vld [vmem:[%s14213_s1 + $0x43c] sm:$0xf] }
 0x8a3   :  { %v8475_v30 = vor.u32 %v9873_v24, %v8472_v29  ;;  %v9861_v24 = vld [vmem:[%s14213_s1 + $0x45c] sm:$0xf0] }
 0x8a4   :  { %8315 = vmatmul.msk.bf16.gmra.mxu0 %vm1518_vm0, %v3169_v53  ;;  %3725 = vmatmul.bf16.vlgmr.msrb.gmra.mxu3 %v8443_v40  ;;  %v3129_v40 = vadd.f32 %v3128_v21, %v3096_v38 }
 0x8a5   :  { %3754 = vmatpush.bf16.msra.mxu0 %v14273_v8  ;;  %3373 = vmatmul.bf16.gmra.mxu1 %v8356_v31  ;;  %v8381_v31 = vld [vmem:[%s14213_s1 + $0x448] sm:$0xf0] }
 0x8a6   :  { %4183 = vmatpush.bf16.msrb.mxu3 %v9900_v35 }
 0x8a7   :  { %v3154_v59 = vpop.f32.mrf.mxu3 }
 0x8a8   :  { %v3155_v34 = vadd.f32 %v3154_v59, %v3122_v57  ;;  %v3099_v57 = vadd.f32 %v3098_v19, %v3065_v16  ;;  %v9877_v19 = vld [vmem:[%s14213_s1 + $0x4e4] sm:$0xf]  ;;  %v8488_v16 = vld [vmem:[%s14213_s1 + $0x4f0] sm:$0xf0] }
 0x8a9   :  { %3755 = vmatpush.bf16.msra.mxu0 %v14274_v26  ;;  %v8491_v52 = vor.u32 %v9877_v19, %v8488_v16 }
 0x8aa   :  { %v3132_v23 = vadd.f32 %v3131_v48, %v3099_v57  ;;  %v9899_v48 = vld [vmem:[%s14214_s6 + $0x90] sm:$0xff]  ;;  %v3316_v57 = vunpack.c.l.b16 %v12200_v12  ;;  %v9860_v12 = vld [vmem:[%s14213_s1 + $0x45c] sm:$0xf] }
 0x8ab   :  { %4184 = vmatpush.bf16.msrb.mxu3 %v9899_v48 }
 0x8ac   :  { %v3336_v28 = vpack.c.b16 %v3316_v57, %v3316_v57 }
 0x8ad   :  { %3756 = vmatpush.bf16.msra.mxu0 %v14275_v62 }
 0x8af   :  { %v3156_v55 = vpop.f32.mrf.mxu3 }
 0x8b0   :  { %v3157_v13 = vadd.f32 %v3156_v55, %v3124_v46  ;;  %v8371_v46 = vld [vmem:[%s14213_s1 + $0x430] sm:$0xf]  ;;  %v9857_v55 = vld [vmem:[%s14213_s1 + $0x43c] sm:$0xf0] }
 0x8b1   :  { %3757 = vmatpush.bf16.msra.mxu0 %v14276_v6 }
 0x8b2   :  { %v3170_v3 = vpack.c.bf16 %v3157_v13, %v3155_v34  ;;  %v8372_v34 = vor.u32 %v9857_v55, %v8371_v46  ;;  %v12386_v13 = vld [vmem:[%s14213_s1 + $0x500] sm:$0xff] }
 0x8b4   :  { %8316 = vmatmul.msk.bf16.gmra.mxu0 %vm1518_vm0, %v3170_v3  ;;  %3730 = vmatmul.bf16.gmra.mxu3 %v8459_v63  ;;  %v3641_v63 = vunpack.c.h.b16 %v12386_v13  ;;  %v9848_v3 = vld [vmem:[%s14213_s1 + $0x3fc] sm:$0xf] }
 0x8b5   :  { %3378 = vmatmul.bf16.gmra.mxu1 %v8372_v34 }
 0x8b6   :  { %v3661_v38 = vpack.c.b16 %v3641_v63, %v3641_v63 }
 0x8b7   :  { %v3159_v32 = vpop.f32.mrf.mxu3 }
 0x8b8   :  { %v3160_v59 = vadd.f32 %v3159_v32, %v3127_v9  ;;  %v8349_v32 = vld [vmem:[%s14213_s1 + $0x408] sm:$0xf0]  ;;  %v8387_v9 = vld [vmem:[%s14213_s1 + $0x450] sm:$0xf] }
 0x8b9   :  { %v8352_v41 = vor.u32 %v9848_v3, %v8349_v32  ;;  %v8388_v29 = vor.u32 %v9861_v24, %v8387_v9  ;;  %v3402_v32 = vpop.f32.mrf.mxu2  ;;  %v14337_v9 = vld [vmem:[#allocation14_spill] sm:$0xff] }
 0x8bf   :  { %v3161_v53 = vpop.f32.mrf.mxu3 }
 0x8c0   :  { %v3162_v10 = vadd.f32 %v3161_v53, %v3129_v40  ;;  %v9852_v40 = vld [vmem:[%s14213_s1 + $0x41c] sm:$0xf]  ;;  %v8365_v53 = vld [vmem:[%s14213_s1 + $0x428] sm:$0xf0] }
 0x8c2   :  { %v3171_v61 = vpack.c.bf16 %v3162_v10, %v3160_v59  ;;  %v8537_v59 = vld [vmem:[%s14213_s1 + $0x510] sm:$0xf]  ;;  %v9885_v10 = vld [vmem:[%s14213_s1 + $0x51c] sm:$0xf0] }
 0x8c4   :  { %8317 = vmatmul.msk.bf16.gmra.mxu0 %vm1518_vm0, %v3171_v61  ;;  %3735 = vmatmul.bf16.gmra.mxu3 %v8475_v30  ;;  %v8368_v30 = vor.u32 %v9852_v40, %v8365_v53  ;;  %v8538_v61 = vor.u32 %v9885_v10, %v8537_v59  ;;  %v3404_v40 = vpop.f32.mrf.mxu2  ;;  %v14339_v53 = vld [vmem:[#allocation7_spill] sm:$0xff]  ;;  %v9872_v59 = vld [vmem:[%s14213_s1 + $0x4b4] sm:$0xf0] }
 0x8c5   :  { %3383 = vmatmul.bf16.gmra.mxu1 %v8388_v29 }
 0x8c7   :  { %v3164_v25 = vpop.f32.mrf.mxu3 }
 0x8c8   :  { %v3165_v21 = vadd.f32 %v3164_v25, %v3132_v23  ;;  %v8384_v25 = vor.u32 %v9856_v2, %v8381_v31  ;;  %v8397_v23 = vld [vmem:[%s14213_s1 + $0x468] sm:$0xf0] }
 0x8ca   :  { %v3172_v4 = vpack.c.bf16 %v3165_v21, %v3165_v21  ;;  %v8400_v21 = vor.u32 %v9860_v12, %v8397_v23 }
 0x8cc   :  { %v3407_v31 = vpop.f32.mrf.mxu2 }
 0x8cf   :  { %v3166_v47 = vpop.f32.mrf.mxu3 }
 0x8d4   :  { %8318 = vmatmul.msk.bf16.gmra.mxu0 %vm1518_vm0, %v3172_v4  ;;  %3740 = vmatmul.bf16.gmra.mxu3 %v8491_v52  ;;  %v3319_v4 = vunpack.c.h.b16 %v12325_v37 }
 0x8d5   :  { %3388 = vmatmul.bf16.gmra.mxu1 %v3336_v28  ;;  %v14341_v28 = vld [vmem:[#allocation15_spill] sm:$0xff] }
 0x8d6   :  { %v3339_v52 = vpack.c.b16 %v3319_v4, %v3319_v4 }
 0x8e4   :  { %3467 = vmatmul.bf16.vlgmr.msrb.gmra.mxu0 %v8352_v41  ;;  %3745 = vmatmul.bf16.gmra.mxu3 %v3661_v38  ;;  %v14336_v41 = vld [vmem:[#allocation6_spill] sm:$0xff] }
 0x8e5   :  { %4041 = vmatpush.bf16.msrb.mxu0 %v10608_v44 }
 0x8e9   :  { %4042 = vmatpush.bf16.msrb.mxu0 %v10613_v58 }
 0x8ed   :  { %4043 = vmatpush.bf16.msrb.mxu0 %v10616_v60 }
 0x8f1   :  { %4044 = vmatpush.bf16.msrb.mxu0 %v10621_v42 }
 0x8f4   :  { %3472 = vmatmul.bf16.gmra.mxu0 %v8368_v30  ;;  %4016 = vmatmul.bf16.vlgmr.msra.gmra.mxu3 %v8538_v61  ;;  %v14340_v61 = vld [vmem:[#allocation8_spill] sm:$0xff] }
 0x8f5   :  { %4045 = vmatpush.bf16.msrb.mxu0 %v10546_v15  ;;  %4431 = vmatpush.bf16.msra.mxu3 %v10947_v5 }
 0x8f9   :  { %4046 = vmatpush.bf16.msrb.mxu0 %v10530_v11  ;;  %4432 = vmatpush.bf16.msra.mxu3 %v10956_v45 }
 0x8fd   :  { %4047 = vmatpush.bf16.msrb.mxu0 %v10514_v54  ;;  %4433 = vmatpush.bf16.msra.mxu3 %v10966_v18 }
 0x901   :  { %4048 = vmatpush.bf16.msrb.mxu0 %v10490_v36  ;;  %4434 = vmatpush.bf16.msra.mxu3 %v10981_v17 }
 0x904   :  { %3477 = vmatmul.bf16.gmra.mxu0 %v8384_v25  ;;  %v14343_v25 = vld [vmem:[#allocation5_spill] sm:$0xff] }
 0x905   :  { %4435 = vmatpush.bf16.msra.mxu3 %v10992_v1 }
 0x909   :  { %4436 = vmatpush.bf16.msra.mxu3 %v10999_v22 }
 0x90d   :  { %4437 = vmatpush.bf16.msra.mxu3 %v11007_v39 }
 0x911   :  { %4438 = vmatpush.bf16.msra.mxu3 %v11028_v50  ;;  %v3214_v19 = vpop.f32.mrf.mxu0 }
 0x912   :  { %v12443_v16 = vadd.f32 %v3214_v19, %v12263_v43  ;;  %v8446_v43 = vld [vmem:[%s14213_s1 + $0x488] sm:$0xf] }
 0x914   :  { %3482 = vmatmul.bf16.gmra.mxu0 %v8400_v21  ;;  %v14344_v21 = vld [vmem:[#allocation4_spill] sm:$0xff] }
 0x919   :  { %v3216_v35 = vpop.f32.mrf.mxu0 }
 0x91a   :  { %v12446_v47 = vadd.f32 %v3216_v35, %v12267_v56  ;;  %v9868_v56 = vld [vmem:[%s14213_s1 + $0x494] sm:$0xf0]  ;;  %v14345_v35 = vld [vmem:[#allocation12_spill] sm:$0xff] }
 0x91b   :  { %v8447_v63 = vor.u32 %v9868_v56, %v8446_v43  ;;  %v9876_v43 = vld [vmem:[%s14213_s1 + $0x4d4] sm:$0xf0] }
 0x921   :  { %v3219_v48 = vpop.f32.mrf.mxu0 }
 0x922   :  { %v12450_v46 = vadd.f32 %v3219_v48, %v12270_v20  ;;  %v3369_v20 = vpop.f32.mrf.mxu1  ;;  %v14347_v48 = vld [vmem:[#allocation3_spill] sm:$0xff] }
 0x924   :  { %3487 = vmatmul.bf16.gmra.mxu0 %v3339_v52  ;;  %v3409_v52 = vpop.f32.mrf.mxu2 }
 0x929   :  { %v3221_v55 = vpop.f32.mrf.mxu0 }
 0x92a   :  { %v12453_v34 = vadd.f32 %v3221_v55, %v12279_v49  ;;  %v3435_v49 = vpop.f32.mrf.mxu3  ;;  %v3371_v29 = vpop.f32.mrf.mxu1  ;;  %v8478_v55 = vld [vmem:[%s14213_s1 + $0x4c8] sm:$0xf] }
 0x931   :  { %v3224_v37 = vpop.f32.mrf.mxu0 }
 0x932   :  { %v12462_v3 = vadd.f32 %v3224_v37, %v12283_v27  ;;  %v8462_v27 = vld [vmem:[%s14213_s1 + $0x4a8] sm:$0xf]  ;;  %v3437_v10 = vpop.f32.mrf.mxu3  ;;  %v3374_v12 = vpop.f32.mrf.mxu1  ;;  %v8479_v37 = vor.u32 %v9876_v43, %v8478_v55 }
 0x933   :  { %v8463_v30 = vor.u32 %v9872_v59, %v8462_v27  ;;  %v14349_v27 = vld [vmem:[#allocation11_spill] sm:$0xff] }
 0x934   :  { %3758 = vmatmul.bf16.vlgmr.msra.gmra.mxu0 %v8447_v63 }
 0x935   :  { %4332 = vmatpush.bf16.msra.mxu0 %v10458_v7 }
 0x939   :  { %4333 = vmatpush.bf16.msra.mxu0 %v14336_v41  ;;  %v3226_v38 = vpop.f32.mrf.mxu0 }
 0x93a   :  { %v12467_v24 = vadd.f32 %v3226_v38, %v14337_v9  ;;  %v3440_v23 = vpop.f32.mrf.mxu3  ;;  %v3376_v56 = vpop.f32.mrf.mxu1  ;;  %v14348_v38 = vld [vmem:[#allocation2_spill] sm:$0xff] }
 0x93c   :  { %14338 = vst [vmem:[#allocation10_spill] sm:$0xff] %v12467_v24 }
 0x93d   :  { %4334 = vmatpush.bf16.msra.mxu0 %v14339_v53 }
 0x941   :  { %4335 = vmatpush.bf16.msra.mxu0 %v14340_v61  ;;  %v3229_v57 = vpop.f32.mrf.mxu0 }
 0x942   :  { %v12478_v2 = vadd.f32 %v3229_v57, %v14341_v28  ;;  %v3442_v63 = vpop.f32.mrf.mxu3  ;;  %v3412_v57 = vpop.f32.mrf.mxu2 }
 0x944   :  { %14342 = vst [vmem:[#allocation9_spill] sm:$0xff] %v12478_v2  ;;  %3763 = vmatmul.bf16.gmra.mxu0 %v8463_v30  ;;  %v3379_v30 = vpop.f32.mrf.mxu1 }
 0x945   :  { %4336 = vmatpush.bf16.msra.mxu0 %v14343_v25 }
 0x949   :  { %4337 = vmatpush.bf16.msra.mxu0 %v14344_v21  ;;  %v3231_v19 = vpop.f32.mrf.mxu0  ;;  %v3403_v21 = vadd.f32 %v3402_v32, %v3369_v20 }
 0x94a   :  { %v12483_v4 = vadd.f32 %v3231_v19, %v14345_v35  ;;  %v3445_v28 = vpop.f32.mrf.mxu3  ;;  %v8494_v35 = vld [vmem:[%s14213_s1 + $0x4e8] sm:$0xf] }
 0x94c   :  { %14346 = vst [vmem:[#allocation13_spill] sm:$0xff] %v12483_v4  ;;  %v3381_v43 = vpop.f32.mrf.mxu1 }
 0x94d   :  { %4338 = vmatpush.bf16.msra.mxu0 %v14347_v48  ;;  %v9880_v48 = vld [vmem:[%s14213_s1 + $0x4f4] sm:$0xf0] }
 0x94e   :  { %v8495_v55 = vor.u32 %v9880_v48, %v8494_v35 }
 0x951   :  { %4339 = vmatpush.bf16.msra.mxu0 %v14348_v38  ;;  %v3234_v9 = vpop.f32.mrf.mxu0  ;;  %v3414_v38 = vpop.f32.mrf.mxu2 }
 0x952   :  { %v12494_v59 = vadd.f32 %v3234_v9, %v14349_v27  ;;  %v3447_v9 = vpop.f32.mrf.mxu3  ;;  %v3405_v27 = vadd.f32 %v3404_v40, %v3371_v29  ;;  %v3410_v29 = vadd.f32 %v3409_v52, %v3376_v56 }
 0x954   :  { %14350 = vst [vmem:[#allocation14_spill] sm:$0xff] %v12494_v59  ;;  %3768 = vmatmul.bf16.gmra.mxu0 %v8479_v37  ;;  %v3436_v37 = vadd.f32 %v3435_v49, %v3403_v21  ;;  %v3438_v59 = vadd.f32 %v3437_v10, %v3405_v27  ;;  %v3384_v53 = vpop.f32.mrf.mxu1  ;;  %v3408_v49 = vadd.f32 %v3407_v31, %v3374_v12  ;;  %v9883_v31 = vld [vmem:[%s14213_s1 + $0x514] sm:$0xf]  ;;  %v8539_v12 = vld [vmem:[%s14213_s1 + $0x520] sm:$0xf0] }
 0x955   :  { %v8542_v52 = vor.u32 %v9883_v31, %v8539_v12 }
 0x959   :  { %v3236_v19 = vpop.f32.mrf.mxu0  ;;  %v3417_v24 = vpop.f32.mrf.mxu2 }
 0x95a   :  { %v12505_v19 = vld [vmem:[%s14213_s1 + $0x508] sm:$0xff]  ;;  %v3450_v41 = vpop.f32.mrf.mxu3 }
 0x95b   :  { %v3642_v35 = vunpack.c.l.b16 %v12505_v19 }
 0x95c   :  { %v3386_v40 = vpop.f32.mrf.mxu1 }
 0x95d   :  { %v3662_v20 = vpack.c.b16 %v3642_v35, %v3642_v35 }
 0x961   :  { %v3468_v4 = vpop.f32.mrf.mxu0  ;;  %v3419_v10 = vpop.f32.mrf.mxu2 }
 0x962   :  { %v3469_v2 = vadd.f32 %v3468_v4, %v3436_v37  ;;  %v3452_v21 = vpop.f32.mrf.mxu3 }
 0x964   :  { %3773 = vmatmul.bf16.gmra.mxu0 %v8495_v55  ;;  %v3389_v27 = vpop.f32.mrf.mxu1 }
 0x969   :  { %v3470_v25 = vpop.f32.mrf.mxu0  ;;  %v3422_v37 = vpop.f32.mrf.mxu2 }
 0x96a   :  { %v3471_v61 = vadd.f32 %v3470_v25, %v3438_v59  ;;  %v3441_v25 = vadd.f32 %v3440_v23, %v3408_v49  ;;  %v3455_v23 = vpop.f32.mrf.mxu3 }
 0x96c   :  { %v3492_v48 = vpack.c.bf16 %v3471_v61, %v3469_v2  ;;  %v3443_v61 = vadd.f32 %v3442_v63, %v3410_v29  ;;  %v3413_v63 = vadd.f32 %v3412_v57, %v3379_v30  ;;  %v3391_v35 = vpop.f32.mrf.mxu1  ;;  %v9887_v30 = vld [vmem:[%s14213_s1 + $0x534] sm:$0xf] }
 0x96e   :  { %8413 = vmatmul.msk.bf16.vlgmr.msrb.gmra.mxu1 %vm1518_vm0, %v3492_v48  ;;  %v3415_v48 = vadd.f32 %v3414_v38, %v3381_v43  ;;  %v8555_v38 = vld [vmem:[%s14213_s1 + $0x540] sm:$0xf0]  ;;  %v3418_v43 = vadd.f32 %v3417_v24, %v3384_v53  ;;  %v9891_v24 = vld [vmem:[%s14213_s1 + $0x554] sm:$0xf] }
 0x96f   :  { %4074 = vmatpush.bf16.msrb.mxu1 %v10768_v0  ;;  %v8558_v57 = vor.u32 %v9887_v30, %v8555_v38  ;;  %v8571_v53 = vld [vmem:[%s14213_s1 + $0x560] sm:$0xf0]  ;;  %v9866_v30 = vld [vmem:[%s14213_s1 + $0x48c] sm:$0xf]  ;;  %v8448_v38 = vld [vmem:[%s14213_s1 + $0x498] sm:$0xf0] }
 0x970   :  { %v3448_v29 = vadd.f32 %v3447_v9, %v3415_v48  ;;  %v3420_v9 = vadd.f32 %v3419_v10, %v3386_v40  ;;  %v3451_v12 = vadd.f32 %v3450_v41, %v3418_v43  ;;  %v3423_v40 = vadd.f32 %v3422_v37, %v3389_v27  ;;  %v9895_v27 = vld [vmem:[%s14213_s1 + $0x574] sm:$0xf]  ;;  %v8587_v37 = vld [vmem:[%s14213_s1 + $0x580] sm:$0xf0]  ;;  %v8486_v43 = vld [vmem:[%s14213_s1 + $0x4e0] sm:$0xf] }
 0x971   :  { %v3473_v32 = vpop.f32.mrf.mxu0  ;;  %v8574_v10 = vor.u32 %v9891_v24, %v8571_v53  ;;  %v3640_v24 = vunpack.c.l.b16 %v12386_v13 }
 0x972   :  { %v3474_v4 = vadd.f32 %v3473_v32, %v3441_v25  ;;  %v3446_v32 = vadd.f32 %v3445_v28, %v3413_v63  ;;  %v3457_v49 = vpop.f32.mrf.mxu3  ;;  %v3456_v41 = vadd.f32 %v3455_v23, %v3423_v40  ;;  %v9918_v23 = vld [vmem:[%s14214_s6 + $0xa8] sm:$0xff] }
 0x973   :  { %4075 = vmatpush.bf16.msrb.mxu1 %v14270_v51  ;;  %v3660_v53 = vpack.c.b16 %v3640_v24, %v3640_v24  ;;  %v9874_v40 = vld [vmem:[%s14213_s1 + $0x4cc] sm:$0xf] }
 0x974   :  { %3778 = vmatmul.bf16.gmra.mxu0 %v3662_v20  ;;  %v3424_v20 = vpop.f32.mrf.mxu2 }
 0x977   :  { %4076 = vmatpush.bf16.msrb.mxu1 %v14271_v14 }
 0x979   :  { %v3475_v2 = vpop.f32.mrf.mxu0 }
 0x97a   :  { %v3476_v59 = vadd.f32 %v3475_v2, %v3443_v61 }
 0x97b   :  { %4077 = vmatpush.bf16.msrb.mxu1 %v14272_v33 }
 0x97c   :  { %v3493_v55 = vpack.c.bf16 %v3476_v59, %v3474_v4  ;;  %v8454_v59 = vld [vmem:[%s14213_s1 + $0x4a0] sm:$0xf] }
 0x97e   :  { %8414 = vmatmul.msk.bf16.gmra.mxu1 %vm1518_vm0, %v3493_v55  ;;  %v9871_v55 = vld [vmem:[%s14213_s1 + $0x4ac] sm:$0xf0] }
 0x97f   :  { %4078 = vmatpush.bf16.msrb.mxu1 %v14273_v8  ;;  %v8455_v31 = vor.u32 %v9871_v55, %v8454_v59 }
 0x981   :  { %v3478_v56 = vpop.f32.mrf.mxu0  ;;  %3697 = vmatmul.bf16.gmra.mxu2 %v8455_v31 }
 0x982   :  { %v3479_v61 = vadd.f32 %v3478_v56, %v3446_v32 }
 0x983   :  { %4079 = vmatpush.bf16.msrb.mxu1 %v14274_v26 }
 0x984   :  { %4049 = vmatmul.bf16.vlgmr.msrb.gmra.mxu0 %v8542_v52  ;;  %v3453_v52 = vadd.f32 %v3452_v21, %v3420_v9  ;;  %v9879_v9 = vld [vmem:[%s14213_s1 + $0x4ec] sm:$0xf0] }
 0x985   :  { %4507 = vmatpush.bf16.msrb.mxu0 %v9918_v23  ;;  %v8487_v59 = vor.u32 %v9879_v9, %v8486_v43  ;;  %v14351_v43 = vld [vmem:[#allocation6_spill] sm:$0xff] }
 0x987   :  { %4080 = vmatpush.bf16.msrb.mxu1 %v14275_v62 }
 0x989   :  { %v3480_v25 = vpop.f32.mrf.mxu0 }
 0x98a   :  { %v3481_v2 = vadd.f32 %v3480_v25, %v3448_v29  ;;  %v8470_v29 = vld [vmem:[%s14213_s1 + $0x4c0] sm:$0xf]  ;;  %v9875_v25 = vld [vmem:[%s14213_s1 + $0x4cc] sm:$0xf0] }
 0x98b   :  { %4081 = vmatpush.bf16.msrb.mxu1 %v14276_v6 }
 0x98c   :  { %v3494_v4 = vpack.c.bf16 %v3481_v2, %v3479_v61  ;;  %v8471_v61 = vor.u32 %v9875_v25, %v8470_v29  ;;  %v8590_v2 = vor.u32 %v9895_v27, %v8587_v37 }
 0x98e   :  { %8415 = vmatmul.msk.bf16.gmra.mxu1 %vm1518_vm0, %v3494_v4  ;;  %v9917_v4 = vld [vmem:[%s14214_s6 + $0xa0] sm:$0xff] }
 0x98f   :  { %4508 = vmatpush.bf16.msrb.mxu0 %v9917_v4  ;;  %v8545_v4 = vld [vmem:[%s14213_s1 + $0x518] sm:$0xf] }
 0x991   :  { %v3483_v28 = vpop.f32.mrf.mxu0  ;;  %3702 = vmatmul.bf16.gmra.mxu2 %v8471_v61  ;;  %v3643_v61 = vunpack.c.h.b16 %v12505_v19 }
 0x992   :  { %v3484_v63 = vadd.f32 %v3483_v28, %v3451_v12  ;;  %v8451_v28 = vor.u32 %v9866_v30, %v8448_v38  ;;  %v9870_v12 = vld [vmem:[%s14213_s1 + $0x4ac] sm:$0xf] }
 0x993   :  { %v3663_v27 = vpack.c.b16 %v3643_v61, %v3643_v61 }
 0x994   :  { %4054 = vmatmul.bf16.gmra.mxu0 %v8558_v57  ;;  %v12572_v57 = vld [vmem:[%s14213_s1 + $0x590] sm:$0xff] }
 0x995   :  { %v3965_v55 = vunpack.c.h.b16 %v12572_v57 }
 0x997   :  { %v3985_v31 = vpack.c.b16 %v3965_v55, %v3965_v55 }
 0x999   :  { %v3485_v56 = vpop.f32.mrf.mxu0 }
 0x99a   :  { %v3486_v48 = vadd.f32 %v3485_v56, %v3453_v52  ;;  %v8464_v52 = vld [vmem:[%s14213_s1 + $0x4b8] sm:$0xf0] }
 0x99b   :  { %v8467_v56 = vor.u32 %v9870_v12, %v8464_v52  ;;  %v14354_v52 = vld [vmem:[#allocation7_spill] sm:$0xff] }
 0x99c   :  { %v3495_v35 = vpack.c.bf16 %v3486_v48, %v3484_v63  ;;  %v8636_v63 = vld [vmem:[%s14213_s1 + $0x5a0] sm:$0xf]  ;;  %v9903_v48 = vld [vmem:[%s14213_s1 + $0x5ac] sm:$0xf0] }
 0x99e   :  { %8416 = vmatmul.msk.bf16.gmra.mxu1 %vm1518_vm0, %v3495_v35  ;;  %v8637_v35 = vor.u32 %v9903_v48, %v8636_v63 }
 0x9a1   :  { %v3488_v20 = vpop.f32.mrf.mxu0  ;;  %3707 = vmatmul.bf16.gmra.mxu2 %v8487_v59  ;;  %v14352_v59 = vld [vmem:[#allocation10_spill] sm:$0xff] }
 0x9a2   :  { %v3489_v21 = vadd.f32 %v3488_v20, %v3456_v41  ;;  %v9878_v20 = vld [vmem:[%s14213_s1 + $0x4ec] sm:$0xf]  ;;  %v8496_v41 = vld [vmem:[%s14213_s1 + $0x4f8] sm:$0xf0] }
 0x9a4   :  { %4059 = vmatmul.bf16.gmra.mxu0 %v8574_v10  ;;  %v3496_v49 = vpack.c.bf16 %v3489_v21, %v3489_v21  ;;  %v8480_v10 = vld [vmem:[%s14213_s1 + $0x4d8] sm:$0xf0]  ;;  %v8499_v21 = vor.u32 %v9878_v20, %v8496_v41 }
 0x9a5   :  { %v8483_v13 = vor.u32 %v9874_v40, %v8480_v10  ;;  %v14358_v20 = vld [vmem:[#allocation5_spill] sm:$0xff] }
 0x9a9   :  { %v3490_v32 = vpop.f32.mrf.mxu0 }
 0x9ae   :  { %8417 = vmatmul.msk.bf16.gmra.mxu1 %vm1518_vm0, %v3496_v49 }
 0x9b1   :  { %3712 = vmatmul.bf16.gmra.mxu2 %v3660_v53  ;;  %v14356_v53 = vld [vmem:[#allocation9_spill] sm:$0xff] }
 0x9b4   :  { %4064 = vmatmul.bf16.gmra.mxu0 %v8590_v2 }
 0x9be   :  { %3791 = vmatmul.bf16.vlgmr.msra.gmra.mxu1 %v8451_v28  ;;  %v3726_v28 = vpop.f32.mrf.mxu3 }
 0x9bf   :  { %4365 = vmatpush.bf16.msra.mxu1 %v10608_v44 }
 0x9c3   :  { %4366 = vmatpush.bf16.msra.mxu1 %v10613_v58 }
 0x9c4   :  { %4069 = vmatmul.bf16.gmra.mxu0 %v3985_v31 }
 0x9c6   :  { %v3728_v12 = vpop.f32.mrf.mxu3 }
 0x9c7   :  { %4367 = vmatpush.bf16.msra.mxu1 %v10616_v60 }
 0x9cb   :  { %4368 = vmatpush.bf16.msra.mxu1 %v10621_v42 }
 0x9ce   :  { %3796 = vmatmul.bf16.gmra.mxu1 %v8467_v56  ;;  %v9890_v56 = vld [vmem:[%s14213_s1 + $0x544] sm:$0xf0] }
 0x9cf   :  { %4369 = vmatpush.bf16.msra.mxu1 %v10546_v15 }
 0x9d3   :  { %4370 = vmatpush.bf16.msra.mxu1 %v10530_v11 }
 0x9d4   :  { %4340 = vmatmul.bf16.vlgmr.msra.gmra.mxu0 %v8637_v35  ;;  %v14355_v35 = vld [vmem:[#allocation8_spill] sm:$0xff] }
 0x9d5   :  { %4755 = vmatpush.bf16.msra.mxu0 %v10947_v5 }
 0x9d7   :  { %4371 = vmatpush.bf16.msra.mxu1 %v10514_v54 }
 0x9d9   :  { %4756 = vmatpush.bf16.msra.mxu0 %v10956_v45 }
 0x9db   :  { %4372 = vmatpush.bf16.msra.mxu1 %v10490_v36 }
 0x9dd   :  { %4757 = vmatpush.bf16.msra.mxu0 %v10966_v18 }
 0x9de   :  { %3801 = vmatmul.bf16.gmra.mxu1 %v8483_v13  ;;  %v3731_v13 = vpop.f32.mrf.mxu3 }
 0x9e1   :  { %4758 = vmatpush.bf16.msra.mxu0 %v10981_v17 }
 0x9e5   :  { %4759 = vmatpush.bf16.msra.mxu0 %v10992_v1 }
 0x9e9   :  { %4760 = vmatpush.bf16.msra.mxu0 %v10999_v22 }
 0x9eb   :  { %v3538_v32 = vpop.f32.mrf.mxu1 }
 0x9ec   :  { %v12621_v49 = vadd.f32 %v3538_v32, %v12443_v16 }
 0x9ed   :  { %4761 = vmatpush.bf16.msra.mxu0 %v11007_v39 }
 0x9ee   :  { %3806 = vmatmul.bf16.gmra.mxu1 %v8499_v21  ;;  %v14359_v21 = vld [vmem:[#allocation4_spill] sm:$0xff] }
 0x9f1   :  { %4762 = vmatpush.bf16.msra.mxu0 %v11028_v50 }
 0x9f3   :  { %v3540_v29 = vpop.f32.mrf.mxu1 }
 0x9f4   :  { %v12626_v25 = vadd.f32 %v3540_v29, %v12446_v47  ;;  %v9886_v47 = vld [vmem:[%s14213_s1 + $0x524] sm:$0xf0]  ;;  %v14360_v29 = vld [vmem:[#allocation13_spill] sm:$0xff] }
 0x9f5   :  { %v8546_v30 = vor.u32 %v9886_v47, %v8545_v4  ;;  %v9894_v4 = vld [vmem:[%s14213_s1 + $0x564] sm:$0xf0] }
 0x9fb   :  { %v3543_v37 = vpop.f32.mrf.mxu1 }
 0x9fc   :  { %v12630_v23 = vadd.f32 %v3543_v37, %v12450_v46  ;;  %v3693_v46 = vpop.f32.mrf.mxu2  ;;  %v14362_v37 = vld [vmem:[#allocation3_spill] sm:$0xff] }
 0x9fe   :  { %3811 = vmatmul.bf16.gmra.mxu1 %v3663_v27  ;;  %v3733_v27 = vpop.f32.mrf.mxu3 }
 0xa03   :  { %v3545_v2 = vpop.f32.mrf.mxu1 }
 0xa04   :  { %v12633_v16 = vadd.f32 %v3545_v2, %v12453_v34  ;;  %v3759_v34 = vpop.f32.mrf.mxu0  ;;  %v3695_v31 = vpop.f32.mrf.mxu2  ;;  %v8577_v2 = vld [vmem:[%s14213_s1 + $0x558] sm:$0xf] }
 0xa0b   :  { %v3548_v19 = vpop.f32.mrf.mxu1 }
 0xa0c   :  { %v12642_v38 = vadd.f32 %v3548_v19, %v12462_v3  ;;  %v8561_v3 = vld [vmem:[%s14213_s1 + $0x538] sm:$0xf]  ;;  %v3761_v63 = vpop.f32.mrf.mxu0  ;;  %v3698_v10 = vpop.f32.mrf.mxu2  ;;  %v8578_v19 = vor.u32 %v9894_v4, %v8577_v2 }
 0xa0d   :  { %v8562_v48 = vor.u32 %v9890_v56, %v8561_v3  ;;  %v14364_v3 = vld [vmem:[#allocation14_spill] sm:$0xff] }
 0xa0e   :  { %4082 = vmatmul.bf16.vlgmr.msrb.gmra.mxu1 %v8546_v30 }
 0xa0f   :  { %4656 = vmatpush.bf16.msrb.mxu1 %v10458_v7 }
 0xa13   :  { %4657 = vmatpush.bf16.msrb.mxu1 %v14351_v43  ;;  %v3550_v9 = vpop.f32.mrf.mxu1 }
 0xa14   :  { %v12647_v55 = vadd.f32 %v3550_v9, %v14352_v59  ;;  %v3764_v41 = vpop.f32.mrf.mxu0  ;;  %v3700_v47 = vpop.f32.mrf.mxu2  ;;  %v14363_v9 = vld [vmem:[#allocation2_spill] sm:$0xff] }
 0xa16   :  { %14353 = vst [vmem:[#allocation15_spill] sm:$0xff] %v12647_v55 }
 0xa17   :  { %4658 = vmatpush.bf16.msrb.mxu1 %v14354_v52 }
 0xa1b   :  { %4659 = vmatpush.bf16.msrb.mxu1 %v14355_v35  ;;  %v3553_v24 = vpop.f32.mrf.mxu1 }
 0xa1c   :  { %v12658_v40 = vadd.f32 %v3553_v24, %v14356_v53  ;;  %v3766_v30 = vpop.f32.mrf.mxu0  ;;  %v3703_v24 = vpop.f32.mrf.mxu2 }
 0xa1e   :  { %14357 = vst [vmem:[#allocation12_spill] sm:$0xff] %v12658_v40  ;;  %4087 = vmatmul.bf16.gmra.mxu1 %v8562_v48  ;;  %v3736_v48 = vpop.f32.mrf.mxu3 }
 0xa1f   :  { %4660 = vmatpush.bf16.msrb.mxu1 %v14358_v20 }
 0xa23   :  { %4661 = vmatpush.bf16.msrb.mxu1 %v14359_v21  ;;  %v3555_v32 = vpop.f32.mrf.mxu1 }
 0xa24   :  { %v12663_v61 = vadd.f32 %v3555_v32, %v14360_v29  ;;  %v3769_v53 = vpop.f32.mrf.mxu0  ;;  %v8593_v29 = vld [vmem:[%s14213_s1 + $0x578] sm:$0xf]  ;;  %v3705_v21 = vpop.f32.mrf.mxu2 }
 0xa26   :  { %14361 = vst [vmem:[#allocation11_spill] sm:$0xff] %v12663_v61  ;;  %v9898_v61 = vld [vmem:[%s14213_s1 + $0x584] sm:$0xf0]  ;;  %v3738_v4 = vpop.f32.mrf.mxu3 }
 0xa27   :  { %4662 = vmatpush.bf16.msrb.mxu1 %v14362_v37  ;;  %v8594_v2 = vor.u32 %v9898_v61, %v8593_v29  ;;  %v3727_v37 = vadd.f32 %v3726_v28, %v3693_v46 }
 0xa2b   :  { %4663 = vmatpush.bf16.msrb.mxu1 %v14363_v9  ;;  %v3558_v59 = vpop.f32.mrf.mxu1 }
 0xa2c   :  { %v12674_v56 = vadd.f32 %v3558_v59, %v14364_v3  ;;  %v3771_v59 = vpop.f32.mrf.mxu0  ;;  %v3729_v3 = vadd.f32 %v3728_v12, %v3695_v31  ;;  %v3708_v29 = vpop.f32.mrf.mxu2  ;;  %v3732_v31 = vadd.f32 %v3731_v13, %v3698_v10  ;;  %v3734_v12 = vadd.f32 %v3733_v27, %v3700_v47  ;;  %v9901_v10 = vld [vmem:[%s14213_s1 + $0x5a4] sm:$0xf]  ;;  %v8638_v13 = vld [vmem:[%s14213_s1 + $0x5b0] sm:$0xf0] }
 0xa2d   :  { %v8641_v47 = vor.u32 %v9901_v10, %v8638_v13 }
 0xa2e   :  { %14365 = vst [vmem:[#allocation10_spill] sm:$0xff] %v12674_v56  ;;  %4092 = vmatmul.bf16.gmra.mxu1 %v8578_v19  ;;  %v3760_v19 = vadd.f32 %v3759_v34, %v3727_v37  ;;  %v3762_v56 = vadd.f32 %v3761_v63, %v3729_v3  ;;  %v3741_v55 = vpop.f32.mrf.mxu3  ;;  %v3765_v37 = vadd.f32 %v3764_v41, %v3732_v31 }
 0xa33   :  { %v3560_v32 = vpop.f32.mrf.mxu1 }
 0xa34   :  { %v12685_v32 = vld [vmem:[%s14213_s1 + $0x598] sm:$0xff]  ;;  %v3774_v46 = vpop.f32.mrf.mxu0 }
 0xa35   :  { %v3966_v61 = vunpack.c.l.b16 %v12685_v32 }
 0xa36   :  { %v3743_v63 = vpop.f32.mrf.mxu3 }
 0xa37   :  { %v3986_v28 = vpack.c.b16 %v3966_v61, %v3966_v61  ;;  %v3739_v61 = vadd.f32 %v3738_v4, %v3705_v21  ;;  %v8654_v21 = vld [vmem:[%s14213_s1 + $0x5d0] sm:$0xf0]  ;;  %v3742_v4 = vadd.f32 %v3741_v55, %v3708_v29  ;;  %v8553_v55 = vld [vmem:[%s14213_s1 + $0x530] sm:$0xf]  ;;  %v9889_v29 = vld [vmem:[%s14213_s1 + $0x53c] sm:$0xf0] }
 0xa3b   :  { %v3792_v9 = vpop.f32.mrf.mxu1 }
 0xa3c   :  { %v3793_v20 = vadd.f32 %v3792_v9, %v3760_v19  ;;  %v3776_v9 = vpop.f32.mrf.mxu0  ;;  %v3737_v19 = vadd.f32 %v3736_v48, %v3703_v24  ;;  %v9905_v48 = vld [vmem:[%s14213_s1 + $0x5c4] sm:$0xf] }
 0xa3d   :  { %v8657_v24 = vor.u32 %v9905_v48, %v8654_v21  ;;  %v9935_v48 = vld [vmem:[%s14214_s6 + $0xb0] sm:$0xff]  ;;  %v9884_v21 = vld [vmem:[%s14213_s1 + $0x51c] sm:$0xf] }
 0xa3e   :  { %4097 = vmatmul.bf16.gmra.mxu1 %v8594_v2  ;;  %v3746_v3 = vpop.f32.mrf.mxu3 }
 0xa43   :  { %v3794_v40 = vpop.f32.mrf.mxu1 }
 0xa44   :  { %v3795_v35 = vadd.f32 %v3794_v40, %v3762_v56  ;;  %v3710_v40 = vpop.f32.mrf.mxu2  ;;  %v3779_v27 = vpop.f32.mrf.mxu0 }
 0xa46   :  { %v3816_v52 = vpack.c.bf16 %v3795_v35, %v3793_v20  ;;  %v3767_v35 = vadd.f32 %v3766_v30, %v3734_v12 }
 0xa48   :  { %8512 = vmatmul.msk.bf16.vlgmr.msra.gmra.mxu2 %vm1518_vm0, %v3816_v52 }
 0xa49   :  { %4398 = vmatpush.bf16.msra.mxu2 %v10768_v0 }
 0xa4b   :  { %v3797_v34 = vpop.f32.mrf.mxu1 }
 0xa4c   :  { %v3798_v56 = vadd.f32 %v3797_v34, %v3765_v37  ;;  %v3713_v41 = vpop.f32.mrf.mxu2  ;;  %v3770_v34 = vadd.f32 %v3769_v53, %v3737_v19  ;;  %v3781_v12 = vpop.f32.mrf.mxu0  ;;  %v3772_v37 = vadd.f32 %v3771_v59, %v3739_v61  ;;  %v3744_v59 = vadd.f32 %v3743_v63, %v3710_v40  ;;  %v9909_v61 = vld [vmem:[%s14213_s1 + $0x5e4] sm:$0xf] }
 0xa4d   :  { %4399 = vmatpush.bf16.msra.mxu2 %v14270_v51  ;;  %v8554_v63 = vor.u32 %v9889_v29, %v8553_v55  ;;  %v9892_v29 = vld [vmem:[%s14213_s1 + $0x55c] sm:$0xf] }
 0xa4e   :  { %4102 = vmatmul.bf16.gmra.mxu1 %v3986_v28  ;;  %v3748_v28 = vpop.f32.mrf.mxu3  ;;  %v3777_v10 = vadd.f32 %v3776_v9, %v3744_v59 }
 0xa4f   :  { %v8670_v28 = vld [vmem:[%s14213_s1 + $0x5f0] sm:$0xf0]  ;;  %4021 = vmatmul.bf16.gmra.mxu3 %v8554_v63  ;;  %v3964_v63 = vunpack.c.l.b16 %v12572_v57  ;;  %v8595_v57 = vld [vmem:[%s14213_s1 + $0x588] sm:$0xf0] }
 0xa51   :  { %4400 = vmatpush.bf16.msra.mxu2 %v14271_v14 }
 0xa53   :  { %v3799_v20 = vpop.f32.mrf.mxu1 }
 0xa54   :  { %v3800_v2 = vadd.f32 %v3799_v20, %v3767_v35  ;;  %v3715_v31 = vpop.f32.mrf.mxu2 }
 0xa55   :  { %4401 = vmatpush.bf16.msra.mxu2 %v14272_v33 }
 0xa56   :  { %v3817_v52 = vpack.c.bf16 %v3800_v2, %v3798_v56 }
 0xa58   :  { %8513 = vmatmul.msk.bf16.gmra.mxu2 %vm1518_vm0, %v3817_v52  ;;  %v3775_v52 = vadd.f32 %v3774_v46, %v3742_v4  ;;  %v8673_v46 = vor.u32 %v9909_v61, %v8670_v28  ;;  %v8735_v28 = vld [vmem:[%s14213_s1 + $0x630] sm:$0xf] }
 0xa59   :  { %4402 = vmatpush.bf16.msra.mxu2 %v14273_v8 }
 0xa5b   :  { %v3802_v30 = vpop.f32.mrf.mxu1 }
 0xa5c   :  { %v3803_v20 = vadd.f32 %v3802_v30, %v3770_v34  ;;  %v3747_v34 = vadd.f32 %v3746_v3, %v3713_v41  ;;  %v9913_v3 = vld [vmem:[%s14213_s1 + $0x604] sm:$0xf]  ;;  %v8686_v41 = vld [vmem:[%s14213_s1 + $0x610] sm:$0xf0] }
 0xa5d   :  { %4403 = vmatpush.bf16.msra.mxu2 %v14274_v26 }
 0xa5e   :  { %4373 = vmatmul.bf16.vlgmr.msra.gmra.mxu1 %v8641_v47  ;;  %v3780_v9 = vadd.f32 %v3779_v27, %v3747_v34  ;;  %v8569_v27 = vld [vmem:[%s14213_s1 + $0x550] sm:$0xf]  ;;  %v9921_v34 = vld [vmem:[%s14213_s1 + $0x63c] sm:$0xf0] }
 0xa5f   :  { %v8736_v55 = vor.u32 %v9921_v34, %v8735_v28  ;;  %v14369_v28 = vld [vmem:[#allocation8_spill] sm:$0xff] }
 0xa61   :  { %4404 = vmatpush.bf16.msra.mxu2 %v14275_v62 }
 0xa63   :  { %v3804_v35 = vpop.f32.mrf.mxu1 }
 0xa64   :  { %v3805_v56 = vadd.f32 %v3804_v35, %v3772_v37  ;;  %v9936_v35 = vld [vmem:[%s14214_s6 + $0xb8] sm:$0xff] }
 0xa65   :  { %4405 = vmatpush.bf16.msra.mxu2 %v14276_v6  ;;  %4831 = vmatpush.bf16.msra.mxu1 %v9936_v35 }
 0xa66   :  { %v3818_v2 = vpack.c.bf16 %v3805_v56, %v3803_v20  ;;  %v9893_v20 = vld [vmem:[%s14213_s1 + $0x55c] sm:$0xf0]  ;;  %v8689_v56 = vor.u32 %v9913_v3, %v8686_v41  ;;  %v3967_v41 = vunpack.c.h.b16 %v12685_v32 }
 0xa68   :  { %8514 = vmatmul.msk.bf16.gmra.mxu2 %vm1518_vm0, %v3818_v2  ;;  %v8570_v2 = vor.u32 %v9893_v20, %v8569_v27  ;;  %v3987_v20 = vpack.c.b16 %v3967_v41, %v3967_v41  ;;  %v8676_v41 = vld [vmem:[%s14213_s1 + $0x5e8] sm:$0xf] }
 0xa69   :  { %4832 = vmatpush.bf16.msra.mxu1 %v9935_v48  ;;  %v8644_v48 = vld [vmem:[%s14213_s1 + $0x5a8] sm:$0xf] }
 0xa6a   :  { %4026 = vmatmul.bf16.gmra.mxu3 %v8570_v2 }
 0xa6b   :  { %v3807_v53 = vpop.f32.mrf.mxu1 }
 0xa6c   :  { %v3808_v47 = vadd.f32 %v3807_v53, %v3775_v52  ;;  %v12752_v53 = vld [vmem:[%s14213_s1 + $0x620] sm:$0xff] }
 0xa6d   :  { %v4289_v59 = vunpack.c.h.b16 %v12752_v53 }
 0xa6e   :  { %4378 = vmatmul.bf16.gmra.mxu1 %v8657_v24  ;;  %v8547_v24 = vld [vmem:[%s14213_s1 + $0x528] sm:$0xf0] }
 0xa6f   :  { %v8550_v4 = vor.u32 %v9884_v21, %v8547_v24  ;;  %v4309_v52 = vpack.c.b16 %v4289_v59, %v4289_v59  ;;  %v4050_v59 = vpop.f32.mrf.mxu0 }
 0xa73   :  { %v3809_v13 = vpop.f32.mrf.mxu1 }
 0xa74   :  { %v3810_v30 = vadd.f32 %v3809_v13, %v3777_v10  ;;  %v8585_v10 = vld [vmem:[%s14213_s1 + $0x570] sm:$0xf]  ;;  %v9897_v13 = vld [vmem:[%s14213_s1 + $0x57c] sm:$0xf0] }
 0xa76   :  { %v3819_v19 = vpack.c.bf16 %v3810_v30, %v3808_v47  ;;  %v8586_v47 = vor.u32 %v9897_v13, %v8585_v10  ;;  %v9888_v30 = vld [vmem:[%s14213_s1 + $0x53c] sm:$0xf]  ;;  %v14366_v10 = vld [vmem:[#allocation7_spill] sm:$0xff]  ;;  %v9908_v13 = vld [vmem:[%s14213_s1 + $0x5d4] sm:$0xf0] }
 0xa78   :  { %8515 = vmatmul.msk.bf16.gmra.mxu2 %vm1518_vm0, %v3819_v19  ;;  %v8563_v19 = vld [vmem:[%s14213_s1 + $0x548] sm:$0xf0] }
 0xa79   :  { %v8566_v61 = vor.u32 %v9888_v30, %v8563_v19  ;;  %v14367_v30 = vld [vmem:[#allocation15_spill] sm:$0xff] }
 0xa7a   :  { %4031 = vmatmul.bf16.gmra.mxu3 %v8586_v47 }
 0xa7b   :  { %v3812_v40 = vpop.f32.mrf.mxu1 }
 0xa7c   :  { %v3813_v31 = vadd.f32 %v3812_v40, %v3780_v9  ;;  %v3984_v40 = vpack.c.b16 %v3964_v63, %v3964_v63  ;;  %v14371_v63 = vld [vmem:[#allocation12_spill] sm:$0xff] }
 0xa7e   :  { %4383 = vmatmul.bf16.gmra.mxu1 %v8673_v46  ;;  %v3820_v37 = vpack.c.bf16 %v3813_v31, %v3813_v31  ;;  %v8579_v46 = vld [vmem:[%s14213_s1 + $0x568] sm:$0xf0]  ;;  %v9896_v31 = vld [vmem:[%s14213_s1 + $0x57c] sm:$0xf] }
 0xa7f   :  { %v8582_v9 = vor.u32 %v9892_v29, %v8579_v46  ;;  %v14370_v29 = vld [vmem:[#allocation5_spill] sm:$0xff] }
 0xa83   :  { %v3814_v12 = vpop.f32.mrf.mxu1 }
 0xa84   :  { %v8598_v12 = vor.u32 %v9896_v31, %v8595_v57  ;;  %v14373_v31 = vld [vmem:[#allocation4_spill] sm:$0xff] }
 0xa88   :  { %8516 = vmatmul.msk.bf16.gmra.mxu2 %vm1518_vm0, %v3820_v37 }
 0xa8a   :  { %4036 = vmatmul.bf16.gmra.mxu3 %v3984_v40 }
 0xa8e   :  { %4388 = vmatmul.bf16.gmra.mxu1 %v8689_v56 }
 0xa98   :  { %4115 = vmatmul.bf16.vlgmr.msrb.gmra.mxu2 %v8550_v4  ;;  %v4017_v4 = vpop.f32.mrf.mxu3 }
 0xa99   :  { %4689 = vmatpush.bf16.msrb.mxu2 %v10608_v44 }
 0xa9d   :  { %4690 = vmatpush.bf16.msrb.mxu2 %v10613_v58 }
 0xa9e   :  { %4393 = vmatmul.bf16.gmra.mxu1 %v4309_v52  ;;  %v4083_v52 = vpop.f32.mrf.mxu1 }
 0xaa0   :  { %v4019_v34 = vpop.f32.mrf.mxu3 }
 0xaa1   :  { %4691 = vmatpush.bf16.msrb.mxu2 %v10616_v60 }
 0xaa5   :  { %4692 = vmatpush.bf16.msrb.mxu2 %v10621_v42 }
 0xaa8   :  { %4120 = vmatmul.bf16.gmra.mxu2 %v8566_v61  ;;  %v4052_v61 = vpop.f32.mrf.mxu0 }
 0xaa9   :  { %4693 = vmatpush.bf16.msrb.mxu2 %v10546_v15 }
 0xaad   :  { %4694 = vmatpush.bf16.msrb.mxu2 %v10530_v11 }
 0xaae   :  { %4664 = vmatmul.bf16.vlgmr.msrb.gmra.mxu1 %v8736_v55  ;;  %v4085_v55 = vpop.f32.mrf.mxu1 }
 0xaaf   :  { %5079 = vmatpush.bf16.msrb.mxu1 %v10947_v5 }
 0xab1   :  { %4695 = vmatpush.bf16.msrb.mxu2 %v10514_v54 }
 0xab3   :  { %5080 = vmatpush.bf16.msrb.mxu1 %v10956_v45 }
 0xab5   :  { %4696 = vmatpush.bf16.msrb.mxu2 %v10490_v36 }
 0xab7   :  { %5081 = vmatpush.bf16.msrb.mxu1 %v10966_v18 }
 0xab8   :  { %4125 = vmatmul.bf16.gmra.mxu2 %v8582_v9  ;;  %v4055_v9 = vpop.f32.mrf.mxu0 }
 0xabb   :  { %5082 = vmatpush.bf16.msrb.mxu1 %v10981_v17 }
 0xabf   :  { %5083 = vmatpush.bf16.msrb.mxu1 %v10992_v1 }
 0xac3   :  { %5084 = vmatpush.bf16.msrb.mxu1 %v10999_v22 }
 0xac7   :  { %5085 = vmatpush.bf16.msrb.mxu1 %v11007_v39 }
 0xac8   :  { %4130 = vmatmul.bf16.gmra.mxu2 %v8598_v12  ;;  %v4088_v12 = vpop.f32.mrf.mxu1 }
 0xacb   :  { %5086 = vmatpush.bf16.msrb.mxu1 %v11028_v50  ;;  %v3862_v37 = vpop.f32.mrf.mxu2 }
 0xacc   :  { %v12803_v3 = vadd.f32 %v3862_v37, %v12621_v49  ;;  %v9904_v49 = vld [vmem:[%s14213_s1 + $0x5b4] sm:$0xf0]  ;;  %v14374_v37 = vld [vmem:[#allocation3_spill] sm:$0xff] }
 0xad2   :  { %v4022_v57 = vpop.f32.mrf.mxu3 }
 0xad3   :  { %v3864_v35 = vpop.f32.mrf.mxu2 }
 0xad4   :  { %v12807_v27 = vadd.f32 %v3864_v35, %v12626_v25  ;;  %v8645_v25 = vor.u32 %v9904_v49, %v8644_v48  ;;  %v9912_v35 = vld [vmem:[%s14213_s1 + $0x5f4] sm:$0xf0] }
 0xad5   :  { %v8677_v49 = vor.u32 %v9912_v35, %v8676_v41 }
 0xad8   :  { %4135 = vmatmul.bf16.gmra.mxu2 %v3987_v20 }
 0xadb   :  { %v3867_v56 = vpop.f32.mrf.mxu2 }
 0xadc   :  { %v12810_v2 = vadd.f32 %v3867_v56, %v12630_v23  ;;  %v14375_v56 = vld [vmem:[#allocation11_spill] sm:$0xff] }
 0xae3   :  { %v3869_v21 = vpop.f32.mrf.mxu2 }
 0xae4   :  { %v12819_v32 = vadd.f32 %v3869_v21, %v12633_v16  ;;  %v8660_v16 = vld [vmem:[%s14213_s1 + $0x5c8] sm:$0xf]  ;;  %v14377_v21 = vld [vmem:[#allocation2_spill] sm:$0xff] }
 0xae8   :  { %4406 = vmatmul.bf16.vlgmr.msra.gmra.mxu2 %v8645_v25  ;;  %v4057_v25 = vpop.f32.mrf.mxu0 }
 0xae9   :  { %4980 = vmatpush.bf16.msra.mxu2 %v10458_v7 }
 0xaeb   :  { %v3872_v24 = vpop.f32.mrf.mxu2 }
 0xaec   :  { %v12823_v23 = vadd.f32 %v3872_v24, %v12642_v38  ;;  %v8661_v38 = vor.u32 %v9908_v13, %v8660_v16  ;;  %v4024_v24 = vpop.f32.mrf.mxu3  ;;  %v4090_v16 = vpop.f32.mrf.mxu1 }
 0xaed   :  { %4981 = vmatpush.bf16.msra.mxu2 %v14351_v43  ;;  %v4056_v43 = vadd.f32 %v4055_v9, %v4022_v57 }
 0xaf1   :  { %4982 = vmatpush.bf16.msra.mxu2 %v14366_v10 }
 0xaf3   :  { %v3874_v47 = vpop.f32.mrf.mxu2 }
 0xaf4   :  { %v12834_v19 = vadd.f32 %v3874_v47, %v14367_v30  ;;  %v14378_v47 = vld [vmem:[#allocation10_spill] sm:$0xff]  ;;  %v4027_v41 = vpop.f32.mrf.mxu3  ;;  %v4093_v35 = vpop.f32.mrf.mxu1 }
 0xaf5   :  { %4983 = vmatpush.bf16.msra.mxu2 %v14369_v28 }
 0xaf6   :  { %14368 = vst [vmem:[#allocation9_spill] sm:$0xff] %v12834_v19 }
 0xaf8   :  { %4411 = vmatmul.bf16.gmra.mxu2 %v8661_v38  ;;  %v4060_v38 = vpop.f32.mrf.mxu0 }
 0xaf9   :  { %4984 = vmatpush.bf16.msra.mxu2 %v14370_v29 }
 0xafb   :  { %v3877_v46 = vpop.f32.mrf.mxu2 }
 0xafc   :  { %v12839_v40 = vadd.f32 %v3877_v46, %v14371_v63  ;;  %v8692_v46 = vld [vmem:[%s14213_s1 + $0x608] sm:$0xf]  ;;  %v9916_v63 = vld [vmem:[%s14213_s1 + $0x614] sm:$0xf0] }
 0xafd   :  { %4985 = vmatpush.bf16.msra.mxu2 %v14373_v31 }
 0xafe   :  { %14372 = vst [vmem:[#allocation13_spill] sm:$0xff] %v12839_v40 }
 0xb01   :  { %4986 = vmatpush.bf16.msra.mxu2 %v14374_v37  ;;  %v4029_v37 = vpop.f32.mrf.mxu3 }
 0xb03   :  { %v3879_v20 = vpop.f32.mrf.mxu2 }
 0xb04   :  { %v12850_v48 = vadd.f32 %v3879_v20, %v14375_v56  ;;  %v8693_v56 = vor.u32 %v9916_v63, %v8692_v46 }
 0xb05   :  { %4987 = vmatpush.bf16.msra.mxu2 %v14377_v21 }
 0xb06   :  { %14376 = vst [vmem:[#allocation14_spill] sm:$0xff] %v12850_v48  ;;  %v4051_v48 = vadd.f32 %v4050_v59, %v4017_v4 }
 0xb08   :  { %4416 = vmatmul.bf16.gmra.mxu2 %v8677_v49  ;;  %v4062_v49 = vpop.f32.mrf.mxu0  ;;  %v4084_v31 = vadd.f32 %v4083_v52, %v4051_v48  ;;  %v4058_v52 = vadd.f32 %v4057_v25, %v4024_v24 }
 0xb09   :  { %v4032_v10 = vpop.f32.mrf.mxu3 }
 0xb0b   :  { %v3882_v13 = vpop.f32.mrf.mxu2 }
 0xb0c   :  { %v12854_v30 = vadd.f32 %v3882_v13, %v14378_v47  ;;  %v4095_v13 = vpop.f32.mrf.mxu1  ;;  %v12865_v47 = vld [vmem:[%s14213_s1 + $0x628] sm:$0xff] }
 0xb0d   :  { %v4290_v40 = vunpack.c.l.b16 %v12865_v47 }
 0xb0e   :  { %14379 = vst [vmem:[#allocation15_spill] sm:$0xff] %v12854_v30  ;;  %v4053_v30 = vadd.f32 %v4052_v61, %v4019_v34  ;;  %v4089_v34 = vadd.f32 %v4088_v12, %v4056_v43 }
 0xb0f   :  { %v4310_v46 = vpack.c.b16 %v4290_v40, %v4290_v40 }
 0xb10   :  { %v4086_v29 = vadd.f32 %v4085_v55, %v4053_v30  ;;  %v4065_v63 = vpop.f32.mrf.mxu0  ;;  %v4061_v30 = vadd.f32 %v4060_v38, %v4027_v41 }
 0xb11   :  { %v4034_v55 = vpop.f32.mrf.mxu3 }
 0xb13   :  { %v3884_v20 = vpop.f32.mrf.mxu2 }
 0xb14   :  { %v4098_v4 = vpop.f32.mrf.mxu1 }
 0xb18   :  { %4421 = vmatmul.bf16.gmra.mxu2 %v8693_v56  ;;  %v4067_v61 = vpop.f32.mrf.mxu0 }
 0xb1b   :  { %v4116_v21 = vpop.f32.mrf.mxu2 }
 0xb1c   :  { %v4117_v19 = vadd.f32 %v4116_v21, %v4084_v31  ;;  %v4100_v31 = vpop.f32.mrf.mxu1  ;;  %v4037_v21 = vpop.f32.mrf.mxu3 }
 0xb20   :  { %v4070_v12 = vpop.f32.mrf.mxu0 }
 0xb23   :  { %v4118_v28 = vpop.f32.mrf.mxu2 }
 0xb24   :  { %v4119_v20 = vadd.f32 %v4118_v28, %v4086_v29  ;;  %v8737_v28 = vld [vmem:[%s14213_s1 + $0x640] sm:$0xf0]  ;;  %v4091_v29 = vadd.f32 %v4090_v16, %v4058_v52  ;;  %v4103_v25 = vpop.f32.mrf.mxu1  ;;  %v4063_v16 = vadd.f32 %v4062_v49, %v4029_v37  ;;  %v9923_v52 = vld [vmem:[%s14213_s1 + $0x654] sm:$0xf]  ;;  %v4066_v49 = vadd.f32 %v4065_v63, %v4032_v10 }
 0xb26   :  { %v4140_v56 = vpack.c.bf16 %v4119_v20, %v4117_v19  ;;  %v9919_v19 = vld [vmem:[%s14213_s1 + $0x634] sm:$0xf] }
 0xb27   :  { %v8740_v48 = vor.u32 %v9919_v19, %v8737_v28  ;;  %v4096_v19 = vadd.f32 %v4095_v13, %v4063_v16  ;;  %v8769_v13 = vld [vmem:[%s14213_s1 + $0x680] sm:$0xf0] }
 0xb28   :  { %8611 = vmatmul.msk.bf16.vlgmr.msrb.gmra.mxu3 %vm1518_vm0, %v4140_v56  ;;  %4426 = vmatmul.bf16.gmra.mxu2 %v4310_v46  ;;  %v4072_v20 = vpop.f32.mrf.mxu0  ;;  %v4094_v46 = vadd.f32 %v4093_v35, %v4061_v30  ;;  %v4039_v56 = vpop.f32.mrf.mxu3 }
 0xb29   :  { %4722 = vmatpush.bf16.msrb.mxu3 %v10768_v0 }
 0xb2b   :  { %v4121_v59 = vpop.f32.mrf.mxu2 }
 0xb2c   :  { %v4122_v9 = vadd.f32 %v4121_v59, %v4089_v34  ;;  %v4105_v59 = vpop.f32.mrf.mxu1  ;;  %v8753_v34 = vld [vmem:[%s14213_s1 + $0x660] sm:$0xf0] }
 0xb2d   :  { %4723 = vmatpush.bf16.msrb.mxu3 %v14270_v51 }
 0xb31   :  { %4724 = vmatpush.bf16.msrb.mxu3 %v14271_v14 }
 0xb33   :  { %v4123_v40 = vpop.f32.mrf.mxu2 }
 0xb34   :  { %v4124_v57 = vadd.f32 %v4123_v40, %v4091_v29  ;;  %v8756_v29 = vor.u32 %v9923_v52, %v8753_v34  ;;  %v4068_v40 = vadd.f32 %v4067_v61, %v4034_v55  ;;  %v8652_v61 = vld [vmem:[%s14213_s1 + $0x5c0] sm:$0xf]  ;;  %v9907_v55 = vld [vmem:[%s14213_s1 + $0x5cc] sm:$0xf0] }
 0xb35   :  { %4725 = vmatpush.bf16.msrb.mxu3 %v14272_v33  ;;  %v9953_v34 = vld [vmem:[%s14214_s6 + $0xc0] sm:$0xff] }
 0xb36   :  { %v4141_v43 = vpack.c.bf16 %v4124_v57, %v4122_v9  ;;  %v4099_v9 = vadd.f32 %v4098_v4, %v4066_v49  ;;  %v9927_v57 = vld [vmem:[%s14213_s1 + $0x674] sm:$0xf] }
 0xb37   :  { %v8772_v16 = vor.u32 %v9927_v57, %v8769_v13  ;;  %v8684_v57 = vld [vmem:[%s14213_s1 + $0x600] sm:$0xf]  ;;  %v9915_v13 = vld [vmem:[%s14213_s1 + $0x60c] sm:$0xf0] }
 0xb38   :  { %8612 = vmatmul.msk.bf16.gmra.mxu3 %vm1518_vm0, %v4141_v43  ;;  %4697 = vmatmul.bf16.vlgmr.msrb.gmra.mxu2 %v8740_v48  ;;  %v4101_v48 = vadd.f32 %v4100_v31, %v4068_v40  ;;  %v9931_v31 = vld [vmem:[%s14213_s1 + $0x694] sm:$0xf] }
 0xb39   :  { %4726 = vmatpush.bf16.msrb.mxu3 %v14273_v8 }
 0xb3b   :  { %v4126_v24 = vpop.f32.mrf.mxu2 }
 0xb3c   :  { %v4127_v38 = vadd.f32 %v4126_v24, %v4094_v46  ;;  %v4071_v46 = vadd.f32 %v4070_v12, %v4037_v21  ;;  %v8785_v12 = vld [vmem:[%s14213_s1 + $0x6a0] sm:$0xf0]  ;;  %v8653_v21 = vor.u32 %v9907_v55, %v8652_v61  ;;  %v9914_v55 = vld [vmem:[%s14213_s1 + $0x60c] sm:$0xf] }
 0xb3d   :  { %4727 = vmatpush.bf16.msrb.mxu3 %v14274_v26  ;;  %v8788_v52 = vor.u32 %v9931_v31, %v8785_v12  ;;  %v8694_v31 = vld [vmem:[%s14213_s1 + $0x618] sm:$0xf0] }
 0xb3e   :  { %v4104_v63 = vadd.f32 %v4103_v25, %v4071_v46  ;;  %v9954_v25 = vld [vmem:[%s14214_s6 + $0xc8] sm:$0xff]  ;;  %4345 = vmatmul.bf16.gmra.mxu0 %v8653_v21  ;;  %v8697_v12 = vor.u32 %v9914_v55, %v8694_v31  ;;  %v14388_v55 = vld [vmem:[#allocation4_spill] sm:$0xff] }
 0xb3f   :  { %5155 = vmatpush.bf16.msrb.mxu2 %v9954_v25  ;;  %v9910_v46 = vld [vmem:[%s14213_s1 + $0x5ec] sm:$0xf]  ;;  %v4291_v25 = vunpack.c.h.b16 %v12865_v47 }
 0xb41   :  { %4728 = vmatpush.bf16.msrb.mxu3 %v14275_v62 }
 0xb43   :  { %v4128_v28 = vpop.f32.mrf.mxu2  ;;  %5156 = vmatpush.bf16.msrb.mxu2 %v9953_v34 }
 0xb44   :  { %v4129_v41 = vadd.f32 %v4128_v28, %v4096_v19  ;;  %v12920_v19 = vld [vmem:[%s14213_s1 + $0x6b0] sm:$0xff] }
 0xb45   :  { %4729 = vmatpush.bf16.msrb.mxu3 %v14276_v6  ;;  %v4613_v28 = vunpack.c.h.b16 %v12920_v19 }
 0xb46   :  { %v4142_v37 = vpack.c.bf16 %v4129_v41, %v4127_v38  ;;  %v8668_v38 = vld [vmem:[%s14213_s1 + $0x5e0] sm:$0xf]  ;;  %v9911_v41 = vld [vmem:[%s14213_s1 + $0x5ec] sm:$0xf0] }
 0xb47   :  { %v4633_v40 = vpack.c.b16 %v4613_v28, %v4613_v28 }
 0xb48   :  { %8613 = vmatmul.msk.bf16.gmra.mxu3 %vm1518_vm0, %v4142_v37  ;;  %4702 = vmatmul.bf16.gmra.mxu2 %v8756_v29  ;;  %v9902_v29 = vld [vmem:[%s14213_s1 + $0x5ac] sm:$0xf]  ;;  %v8646_v37 = vld [vmem:[%s14213_s1 + $0x5b8] sm:$0xf0] }
 0xb49   :  { %v8649_v49 = vor.u32 %v9902_v29, %v8646_v37  ;;  %v4341_v37 = vpop.f32.mrf.mxu0 }
 0xb4b   :  { %v4131_v35 = vpop.f32.mrf.mxu2 }
 0xb4c   :  { %v4132_v24 = vadd.f32 %v4131_v35, %v4099_v9  ;;  %v8669_v35 = vor.u32 %v9911_v41, %v8668_v38  ;;  %v9906_v9 = vld [vmem:[%s14213_s1 + $0x5cc] sm:$0xf]  ;;  %v8743_v38 = vld [vmem:[%s14213_s1 + $0x638] sm:$0xf] }
 0xb4e   :  { %4350 = vmatmul.bf16.gmra.mxu0 %v8669_v35  ;;  %v4374_v35 = vpop.f32.mrf.mxu1 }
 0xb53   :  { %v4133_v43 = vpop.f32.mrf.mxu2 }
 0xb54   :  { %v4134_v30 = vadd.f32 %v4133_v43, %v4101_v48  ;;  %v8662_v48 = vld [vmem:[%s14213_s1 + $0x5d8] sm:$0xf0]  ;;  %v8834_v43 = vld [vmem:[%s14213_s1 + $0x6c0] sm:$0xf] }
 0xb56   :  { %v4143_v20 = vpack.c.bf16 %v4134_v30, %v4132_v24  ;;  %v9939_v24 = vld [vmem:[%s14213_s1 + $0x6cc] sm:$0xf0]  ;;  %v8685_v30 = vor.u32 %v9915_v13, %v8684_v57  ;;  %v9926_v57 = vld [vmem:[%s14213_s1 + $0x664] sm:$0xf0] }
 0xb58   :  { %8614 = vmatmul.msk.bf16.gmra.mxu3 %vm1518_vm0, %v4143_v20  ;;  %4707 = vmatmul.bf16.gmra.mxu2 %v8772_v16  ;;  %v8665_v16 = vor.u32 %v9906_v9, %v8662_v48  ;;  %v8835_v20 = vor.u32 %v9939_v24, %v8834_v43  ;;  %v14381_v9 = vld [vmem:[#allocation7_spill] sm:$0xff]  ;;  %v14382_v48 = vld [vmem:[#allocation9_spill] sm:$0xff]  ;;  %v4376_v24 = vpop.f32.mrf.mxu1 }
 0xb5b   :  { %v4136_v10 = vpop.f32.mrf.mxu2 }
 0xb5c   :  { %v4137_v4 = vadd.f32 %v4136_v10, %v4104_v63  ;;  %v8678_v10 = vld [vmem:[%s14213_s1 + $0x5f8] sm:$0xf0] }
 0xb5d   :  { %v8681_v63 = vor.u32 %v9910_v46, %v8678_v10  ;;  %v14385_v46 = vld [vmem:[#allocation5_spill] sm:$0xff] }
 0xb5e   :  { %v4144_v59 = vpack.c.bf16 %v4137_v4, %v4137_v4  ;;  %4355 = vmatmul.bf16.gmra.mxu0 %v8685_v30  ;;  %v4288_v4 = vunpack.c.l.b16 %v12752_v53  ;;  %v14384_v30 = vld [vmem:[#allocation8_spill] sm:$0xff] }
 0xb60   :  { %v4308_v61 = vpack.c.b16 %v4288_v4, %v4288_v4 }
 0xb63   :  { %v4138_v56 = vpop.f32.mrf.mxu2 }
 0xb68   :  { %8615 = vmatmul.msk.bf16.gmra.mxu3 %vm1518_vm0, %v4144_v59  ;;  %4712 = vmatmul.bf16.gmra.mxu2 %v8788_v52  ;;  %v4311_v52 = vpack.c.b16 %v4291_v25, %v4291_v25  ;;  %v8775_v25 = vld [vmem:[%s14213_s1 + $0x678] sm:$0xf] }
 0xb6e   :  { %4360 = vmatmul.bf16.gmra.mxu0 %v4308_v61  ;;  %v4379_v61 = vpop.f32.mrf.mxu1 }
 0xb78   :  { %4439 = vmatmul.bf16.vlgmr.msra.gmra.mxu3 %v8649_v49  ;;  %4717 = vmatmul.bf16.gmra.mxu2 %v4633_v40  ;;  %v14380_v49 = vld [vmem:[#allocation6_spill] sm:$0xff]  ;;  %v4407_v40 = vpop.f32.mrf.mxu2 }
 0xb79   :  { %5013 = vmatpush.bf16.msra.mxu3 %v10608_v44 }
 0xb7d   :  { %5014 = vmatpush.bf16.msra.mxu3 %v10613_v58 }
 0xb81   :  { %5015 = vmatpush.bf16.msra.mxu3 %v10616_v60 }
 0xb85   :  { %5016 = vmatpush.bf16.msra.mxu3 %v10621_v42 }
 0xb88   :  { %4444 = vmatmul.bf16.gmra.mxu3 %v8665_v16  ;;  %4988 = vmatmul.bf16.vlgmr.msra.gmra.mxu2 %v8835_v20  ;;  %v4343_v16 = vpop.f32.mrf.mxu0  ;;  %v4409_v20 = vpop.f32.mrf.mxu2 }
 0xb89   :  { %5017 = vmatpush.bf16.msra.mxu3 %v10546_v15  ;;  %5403 = vmatpush.bf16.msra.mxu2 %v10947_v5 }
 0xb8d   :  { %5018 = vmatpush.bf16.msra.mxu3 %v10530_v11  ;;  %5404 = vmatpush.bf16.msra.mxu2 %v10956_v45 }
 0xb91   :  { %5019 = vmatpush.bf16.msra.mxu3 %v10514_v54  ;;  %5405 = vmatpush.bf16.msra.mxu2 %v10966_v18 }
 0xb95   :  { %5020 = vmatpush.bf16.msra.mxu3 %v10490_v36  ;;  %5406 = vmatpush.bf16.msra.mxu2 %v10981_v17 }
 0xb98   :  { %4449 = vmatmul.bf16.gmra.mxu3 %v8681_v63  ;;  %v14386_v63 = vld [vmem:[#allocation13_spill] sm:$0xff] }
 0xb99   :  { %5407 = vmatpush.bf16.msra.mxu2 %v10992_v1 }
 0xb9d   :  { %5408 = vmatpush.bf16.msra.mxu2 %v10999_v22 }
 0xba1   :  { %5409 = vmatpush.bf16.msra.mxu2 %v11007_v39 }
 0xba5   :  { %5410 = vmatpush.bf16.msra.mxu2 %v11028_v50 }
 0xba8   :  { %4454 = vmatmul.bf16.gmra.mxu3 %v8697_v12  ;;  %v4412_v12 = vpop.f32.mrf.mxu2 }
 0xbab   :  { %v4186_v53 = vpop.f32.mrf.mxu3 }
 0xbac   :  { %v12983_v21 = vadd.f32 %v4186_v53, %v12803_v3  ;;  %v9922_v3 = vld [vmem:[%s14213_s1 + $0x644] sm:$0xf0] }
 0xbad   :  { %v14389_v53 = vld [vmem:[#allocation3_spill] sm:$0xff] }
 0xbb3   :  { %v4188_v56 = vpop.f32.mrf.mxu3 }
 0xbb4   :  { %v12987_v59 = vadd.f32 %v4188_v56, %v12807_v27  ;;  %v8744_v27 = vor.u32 %v9922_v3, %v8743_v38  ;;  %v9930_v56 = vld [vmem:[%s14213_s1 + $0x684] sm:$0xf0] }
 0xbb5   :  { %v8776_v3 = vor.u32 %v9930_v56, %v8775_v25 }
 0xbb8   :  { %4459 = vmatmul.bf16.gmra.mxu3 %v4311_v52 }
 0xbbb   :  { %v4191_v34 = vpop.f32.mrf.mxu3  ;;  %v4346_v31 = vpop.f32.mrf.mxu0 }
 0xbbc   :  { %v12990_v28 = vadd.f32 %v4191_v34, %v12810_v2  ;;  %v14390_v34 = vld [vmem:[#allocation14_spill] sm:$0xff] }
 0xbc3   :  { %v4193_v41 = vpop.f32.mrf.mxu3 }
 0xbc4   :  { %v12999_v47 = vadd.f32 %v4193_v41, %v12819_v32  ;;  %v8759_v32 = vld [vmem:[%s14213_s1 + $0x658] sm:$0xf]  ;;  %v14392_v41 = vld [vmem:[#allocation2_spill] sm:$0xff] }
 0xbc8   :  { %4730 = vmatmul.bf16.vlgmr.msrb.gmra.mxu3 %v8744_v27  ;;  %v4381_v27 = vpop.f32.mrf.mxu1 }
 0xbc9   :  { %5304 = vmatpush.bf16.msrb.mxu3 %v10458_v7 }
 0xbcb   :  { %v4196_v29 = vpop.f32.mrf.mxu3 }
 0xbcc   :  { %v13003_v2 = vadd.f32 %v4196_v29, %v12823_v23  ;;  %v8760_v23 = vor.u32 %v9926_v57, %v8759_v32  ;;  %v4348_v29 = vpop.f32.mrf.mxu0  ;;  %v4414_v32 = vpop.f32.mrf.mxu2 }
 0xbcd   :  { %5305 = vmatpush.bf16.msrb.mxu3 %v14380_v49  ;;  %v4380_v49 = vadd.f32 %v4379_v61, %v4346_v31 }
 0xbd1   :  { %5306 = vmatpush.bf16.msrb.mxu3 %v14381_v9 }
 0xbd3   :  { %v4198_v13 = vpop.f32.mrf.mxu3 }
 0xbd4   :  { %v13014_v43 = vadd.f32 %v4198_v13, %v14382_v48  ;;  %v14393_v13 = vld [vmem:[#allocation15_spill] sm:$0xff]  ;;  %v4351_v25 = vpop.f32.mrf.mxu0  ;;  %v4417_v56 = vpop.f32.mrf.mxu2 }
 0xbd5   :  { %5307 = vmatpush.bf16.msrb.mxu3 %v14384_v30 }
 0xbd6   :  { %14383 = vst [vmem:[#allocation12_spill] sm:$0xff] %v13014_v43 }
 0xbd8   :  { %4735 = vmatmul.bf16.gmra.mxu3 %v8760_v23  ;;  %v4384_v23 = vpop.f32.mrf.mxu1 }
 0xbd9   :  { %5308 = vmatpush.bf16.msrb.mxu3 %v14385_v46 }
 0xbdb   :  { %v4201_v10 = vpop.f32.mrf.mxu3 }
 0xbdc   :  { %v13019_v4 = vadd.f32 %v4201_v10, %v14386_v63  ;;  %v8791_v10 = vld [vmem:[%s14213_s1 + $0x698] sm:$0xf]  ;;  %v9934_v63 = vld [vmem:[%s14213_s1 + $0x6a4] sm:$0xf0] }
 0xbdd   :  { %5309 = vmatpush.bf16.msrb.mxu3 %v14388_v55 }
 0xbde   :  { %14387 = vst [vmem:[#allocation11_spill] sm:$0xff] %v13019_v4 }
 0xbe1   :  { %5310 = vmatpush.bf16.msrb.mxu3 %v14389_v53  ;;  %v4375_v53 = vadd.f32 %v4374_v35, %v4341_v37 }
 0xbe3   :  { %v4203_v52 = vpop.f32.mrf.mxu3  ;;  %v4408_v55 = vadd.f32 %v4407_v40, %v4375_v53  ;;  %v4382_v40 = vadd.f32 %v4381_v27, %v4348_v29 }
 0xbe4   :  { %v13030_v38 = vadd.f32 %v4203_v52, %v14390_v34  ;;  %v8792_v34 = vor.u32 %v9934_v63, %v8791_v10 }
 0xbe5   :  { %5311 = vmatpush.bf16.msrb.mxu3 %v14392_v41 }
 0xbe6   :  { %14391 = vst [vmem:[#allocation10_spill] sm:$0xff] %v13030_v38  ;;  %v4353_v38 = vpop.f32.mrf.mxu0 }
 0xbe8   :  { %4740 = vmatmul.bf16.gmra.mxu3 %v8776_v3  ;;  %v4386_v3 = vpop.f32.mrf.mxu1 }
 0xbeb   :  { %v4206_v57 = vpop.f32.mrf.mxu3 }
 0xbec   :  { %v13034_v48 = vadd.f32 %v4206_v57, %v14393_v13  ;;  %v4419_v57 = vpop.f32.mrf.mxu2  ;;  %v13045_v13 = vld [vmem:[%s14213_s1 + $0x6b8] sm:$0xff] }
 0xbed   :  { %v4614_v46 = vunpack.c.l.b16 %v13045_v13 }
 0xbee   :  { %14394 = vst [vmem:[#allocation9_spill] sm:$0xff] %v13034_v48  ;;  %v4377_v48 = vadd.f32 %v4376_v24, %v4343_v16  ;;  %v4356_v43 = vpop.f32.mrf.mxu0  ;;  %v4413_v16 = vadd.f32 %v4412_v12, %v4380_v49 }
 0xbef   :  { %v4634_v10 = vpack.c.b16 %v4614_v46, %v4614_v46  ;;  %v4415_v46 = vadd.f32 %v4414_v32, %v4382_v40  ;;  %v4387_v32 = vadd.f32 %v4386_v3, %v4353_v38  ;;  %v9941_v40 = vld [vmem:[%s14213_s1 + $0x6e4] sm:$0xf] }
 0xbf0   :  { %v4410_v4 = vadd.f32 %v4409_v20, %v4377_v48  ;;  %v4389_v63 = vpop.f32.mrf.mxu1  ;;  %v4385_v48 = vadd.f32 %v4384_v23, %v4351_v25 }
 0xbf1   :  { %v4390_v3 = vadd.f32 %v4389_v63, %v4356_v43  ;;  %v8751_v43 = vld [vmem:[%s14213_s1 + $0x650] sm:$0xf]  ;;  %v9925_v63 = vld [vmem:[%s14213_s1 + $0x65c] sm:$0xf0] }
 0xbf3   :  { %v4208_v52 = vpop.f32.mrf.mxu3 }
 0xbf4   :  { %v4422_v37 = vpop.f32.mrf.mxu2 }
 0xbf6   :  { %v4358_v20 = vpop.f32.mrf.mxu0 }
 0xbf8   :  { %4745 = vmatmul.bf16.gmra.mxu3 %v8792_v34  ;;  %v4391_v24 = vpop.f32.mrf.mxu1 }
 0xbfb   :  { %v4440_v41 = vpop.f32.mrf.mxu3 }
 0xbfc   :  { %v4441_v9 = vadd.f32 %v4440_v41, %v4408_v55  ;;  %v4424_v55 = vpop.f32.mrf.mxu2 }
 0xbfe   :  { %v4361_v41 = vpop.f32.mrf.mxu0 }
 0xc00   :  { %v4394_v12 = vpop.f32.mrf.mxu1 }
 0xc03   :  { %v4442_v30 = vpop.f32.mrf.mxu3 }
 0xc04   :  { %v4443_v52 = vadd.f32 %v4442_v30, %v4410_v4  ;;  %v8836_v30 = vld [vmem:[%s14213_s1 + $0x6d0] sm:$0xf0]  ;;  %v4427_v27 = vpop.f32.mrf.mxu2 }
 0xc06   :  { %v4464_v34 = vpack.c.bf16 %v4443_v52, %v4441_v9  ;;  %v9937_v9 = vld [vmem:[%s14213_s1 + $0x6c4] sm:$0xf] }
 0xc07   :  { %v8839_v53 = vor.u32 %v9937_v9, %v8836_v30  ;;  %v4420_v9 = vadd.f32 %v4419_v57, %v4387_v32  ;;  %v8868_v57 = vld [vmem:[%s14213_s1 + $0x710] sm:$0xf0] }
 0xc08   :  { %8710 = vmatmul.msk.bf16.vlgmr.msrb.gmra.mxu0 %vm1518_vm0, %v4464_v34  ;;  %4750 = vmatmul.bf16.gmra.mxu3 %v4634_v10  ;;  %v4396_v52 = vpop.f32.mrf.mxu1  ;;  %v4418_v10 = vadd.f32 %v4417_v56, %v4385_v48  ;;  %v4363_v34 = vpop.f32.mrf.mxu0 }
 0xc09   :  { %5046 = vmatpush.bf16.msrb.mxu0 %v10768_v0  ;;  %v9972_v34 = vld [vmem:[%s14214_s6 + $0xd8] sm:$0xff] }
 0xc0b   :  { %v4445_v35 = vpop.f32.mrf.mxu3 }
 0xc0c   :  { %v4446_v61 = vadd.f32 %v4445_v35, %v4413_v16  ;;  %v4429_v35 = vpop.f32.mrf.mxu2  ;;  %v8852_v16 = vld [vmem:[%s14213_s1 + $0x6f0] sm:$0xf0] }
 0xc0d   :  { %5047 = vmatpush.bf16.msrb.mxu0 %v14270_v51 }
 0xc11   :  { %5048 = vmatpush.bf16.msrb.mxu0 %v14271_v14 }
 0xc13   :  { %v4447_v4 = vpop.f32.mrf.mxu3 }
 0xc14   :  { %v4448_v31 = vadd.f32 %v4447_v4, %v4415_v46  ;;  %v8855_v46 = vor.u32 %v9941_v40, %v8852_v16  ;;  %v4392_v4 = vadd.f32 %v4391_v24, %v4358_v20 }
 0xc15   :  { %5049 = vmatpush.bf16.msrb.mxu0 %v14272_v33 }
 0xc16   :  { %v4465_v49 = vpack.c.bf16 %v4448_v31, %v4446_v61  ;;  %v4423_v61 = vadd.f32 %v4422_v37, %v4390_v3  ;;  %v9945_v31 = vld [vmem:[%s14213_s1 + $0x704] sm:$0xf]  ;;  %v8752_v37 = vor.u32 %v9925_v63, %v8751_v43  ;;  %v9928_v63 = vld [vmem:[%s14213_s1 + $0x67c] sm:$0xf] }
 0xc17   :  { %v8871_v32 = vor.u32 %v9945_v31, %v8868_v57  ;;  %v9933_v31 = vld [vmem:[%s14213_s1 + $0x69c] sm:$0xf0] }
 0xc18   :  { %8711 = vmatmul.msk.bf16.gmra.mxu0 %vm1518_vm0, %v4465_v49  ;;  %5021 = vmatmul.bf16.vlgmr.msra.gmra.mxu3 %v8839_v53  ;;  %v4425_v53 = vadd.f32 %v4424_v55, %v4392_v4 }
 0xc19   :  { %5050 = vmatpush.bf16.msrb.mxu0 %v14273_v8  ;;  %4669 = vmatmul.bf16.gmra.mxu1 %v8752_v37  ;;  %v8777_v37 = vld [vmem:[%s14213_s1 + $0x688] sm:$0xf0] }
 0xc1a   :  { %5479 = vmatpush.bf16.msra.mxu3 %v9972_v34 }
 0xc1b   :  { %v4450_v29 = vpop.f32.mrf.mxu3 }
 0xc1c   :  { %v4451_v23 = vadd.f32 %v4450_v29, %v4418_v10  ;;  %v4395_v10 = vadd.f32 %v4394_v12, %v4361_v41  ;;  %v9949_v12 = vld [vmem:[%s14213_s1 + $0x724] sm:$0xf]  ;;  %v8884_v41 = vld [vmem:[%s14213_s1 + $0x730] sm:$0xf0] }
 0xc1d   :  { %5051 = vmatpush.bf16.msrb.mxu0 %v14274_v26  ;;  %v8887_v16 = vor.u32 %v9949_v12, %v8884_v41 }
 0xc1e   :  { %v4428_v20 = vadd.f32 %v4427_v27, %v4395_v10  ;;  %v9971_v27 = vld [vmem:[%s14214_s6 + $0xd0] sm:$0xff]  ;;  %v4612_v10 = vunpack.c.l.b16 %v12920_v19  ;;  %v9932_v19 = vld [vmem:[%s14213_s1 + $0x69c] sm:$0xf] }
 0xc1f   :  { %5480 = vmatpush.bf16.msra.mxu3 %v9971_v27 }
 0xc20   :  { %v4632_v43 = vpack.c.b16 %v4612_v10, %v4612_v10 }
 0xc21   :  { %5052 = vmatpush.bf16.msrb.mxu0 %v14275_v62 }
 0xc23   :  { %v4452_v30 = vpop.f32.mrf.mxu3 }
 0xc24   :  { %v4453_v25 = vadd.f32 %v4452_v30, %v4420_v9  ;;  %v8767_v9 = vld [vmem:[%s14213_s1 + $0x670] sm:$0xf]  ;;  %v9929_v30 = vld [vmem:[%s14213_s1 + $0x67c] sm:$0xf0] }
 0xc25   :  { %5053 = vmatpush.bf16.msrb.mxu0 %v14276_v6 }
 0xc26   :  { %v4466_v38 = vpack.c.bf16 %v4453_v25, %v4451_v23  ;;  %v8768_v23 = vor.u32 %v9929_v30, %v8767_v9  ;;  %v13106_v25 = vld [vmem:[%s14213_s1 + $0x740] sm:$0xff] }
 0xc28   :  { %8712 = vmatmul.msk.bf16.gmra.mxu0 %vm1518_vm0, %v4466_v38  ;;  %5026 = vmatmul.bf16.gmra.mxu3 %v8855_v46  ;;  %v4937_v46 = vunpack.c.h.b16 %v13106_v25  ;;  %v9920_v38 = vld [vmem:[%s14213_s1 + $0x63c] sm:$0xf] }
 0xc29   :  { %4674 = vmatmul.bf16.gmra.mxu1 %v8768_v23 }
 0xc2a   :  { %v4957_v4 = vpack.c.b16 %v4937_v46, %v4937_v46 }
 0xc2b   :  { %v4455_v56 = vpop.f32.mrf.mxu3 }
 0xc2c   :  { %v4456_v29 = vadd.f32 %v4455_v56, %v4423_v61  ;;  %v8745_v56 = vld [vmem:[%s14213_s1 + $0x648] sm:$0xf0]  ;;  %v8783_v61 = vld [vmem:[%s14213_s1 + $0x690] sm:$0xf] }
 0xc2d   :  { %v8748_v3 = vor.u32 %v9920_v38, %v8745_v56  ;;  %v8784_v57 = vor.u32 %v9933_v31, %v8783_v61  ;;  %v4698_v56 = vpop.f32.mrf.mxu2  ;;  %v14398_v61 = vld [vmem:[#allocation12_spill] sm:$0xff] }
 0xc33   :  { %v4457_v49 = vpop.f32.mrf.mxu3 }
 0xc34   :  { %v4458_v48 = vadd.f32 %v4457_v49, %v4425_v53  ;;  %v9924_v53 = vld [vmem:[%s14213_s1 + $0x65c] sm:$0xf]  ;;  %v8761_v49 = vld [vmem:[%s14213_s1 + $0x668] sm:$0xf0] }
 0xc36   :  { %v4467_v52 = vpack.c.bf16 %v4458_v48, %v4456_v29  ;;  %v8933_v29 = vld [vmem:[%s14213_s1 + $0x750] sm:$0xf]  ;;  %v9957_v48 = vld [vmem:[%s14213_s1 + $0x75c] sm:$0xf0] }
 0xc38   :  { %8713 = vmatmul.msk.bf16.gmra.mxu0 %vm1518_vm0, %v4467_v52  ;;  %5031 = vmatmul.bf16.gmra.mxu3 %v8871_v32  ;;  %v8764_v32 = vor.u32 %v9924_v53, %v8761_v49  ;;  %v8934_v52 = vor.u32 %v9957_v48, %v8933_v29  ;;  %v4700_v53 = vpop.f32.mrf.mxu2  ;;  %v14400_v49 = vld [vmem:[#allocation7_spill] sm:$0xff]  ;;  %v9944_v29 = vld [vmem:[%s14213_s1 + $0x6f4] sm:$0xf0] }
 0xc39   :  { %4679 = vmatmul.bf16.gmra.mxu1 %v8784_v57 }
 0xc3b   :  { %v4460_v24 = vpop.f32.mrf.mxu3 }
 0xc3c   :  { %v4461_v55 = vadd.f32 %v4460_v24, %v4428_v20  ;;  %v8780_v24 = vor.u32 %v9928_v63, %v8777_v37  ;;  %v8793_v20 = vld [vmem:[%s14213_s1 + $0x6a8] sm:$0xf0] }
 0xc3e   :  { %v4468_v40 = vpack.c.bf16 %v4461_v55, %v4461_v55  ;;  %v8796_v55 = vor.u32 %v9932_v19, %v8793_v20 }
 0xc40   :  { %v4703_v37 = vpop.f32.mrf.mxu2 }
 0xc43   :  { %v4462_v35 = vpop.f32.mrf.mxu3 }
 0xc48   :  { %8714 = vmatmul.msk.bf16.gmra.mxu0 %vm1518_vm0, %v4468_v40  ;;  %5036 = vmatmul.bf16.gmra.mxu3 %v8887_v16  ;;  %v4615_v40 = vunpack.c.h.b16 %v13045_v13 }
 0xc49   :  { %4684 = vmatmul.bf16.gmra.mxu1 %v4632_v43  ;;  %v14402_v43 = vld [vmem:[#allocation11_spill] sm:$0xff] }
 0xc4a   :  { %v4635_v16 = vpack.c.b16 %v4615_v40, %v4615_v40 }
 0xc58   :  { %4763 = vmatmul.bf16.vlgmr.msra.gmra.mxu0 %v8748_v3  ;;  %5041 = vmatmul.bf16.gmra.mxu3 %v4957_v4  ;;  %v14397_v3 = vld [vmem:[#allocation6_spill] sm:$0xff] }
 0xc59   :  { %5337 = vmatpush.bf16.msra.mxu0 %v10608_v44 }
 0xc5d   :  { %5338 = vmatpush.bf16.msra.mxu0 %v10613_v58 }
 0xc61   :  { %5339 = vmatpush.bf16.msra.mxu0 %v10616_v60 }
 0xc65   :  { %5340 = vmatpush.bf16.msra.mxu0 %v10621_v42 }
 0xc68   :  { %4768 = vmatmul.bf16.gmra.mxu0 %v8764_v32  ;;  %5312 = vmatmul.bf16.vlgmr.msrb.gmra.mxu3 %v8934_v52  ;;  %v14401_v52 = vld [vmem:[#allocation8_spill] sm:$0xff] }
 0xc69   :  { %5341 = vmatpush.bf16.msra.mxu0 %v10546_v15  ;;  %5727 = vmatpush.bf16.msrb.mxu3 %v10947_v5 }
 0xc6d   :  { %5342 = vmatpush.bf16.msra.mxu0 %v10530_v11  ;;  %5728 = vmatpush.bf16.msrb.mxu3 %v10956_v45 }
 0xc71   :  { %5343 = vmatpush.bf16.msra.mxu0 %v10514_v54  ;;  %5729 = vmatpush.bf16.msrb.mxu3 %v10966_v18 }
 0xc75   :  { %5344 = vmatpush.bf16.msra.mxu0 %v10490_v36  ;;  %5730 = vmatpush.bf16.msrb.mxu3 %v10981_v17 }
 0xc78   :  { %4773 = vmatmul.bf16.gmra.mxu0 %v8780_v24  ;;  %v14404_v24 = vld [vmem:[#allocation5_spill] sm:$0xff] }
 0xc79   :  { %5731 = vmatpush.bf16.msrb.mxu3 %v10992_v1 }
 0xc7d   :  { %5732 = vmatpush.bf16.msrb.mxu3 %v10999_v22 }
 0xc81   :  { %5733 = vmatpush.bf16.msrb.mxu3 %v11007_v39 }
 0xc85   :  { %5734 = vmatpush.bf16.msrb.mxu3 %v11028_v50  ;;  %v4510_v12 = vpop.f32.mrf.mxu0 }
 0xc86   :  { %v13163_v41 = vadd.f32 %v4510_v12, %v12983_v21  ;;  %v8842_v21 = vld [vmem:[%s14213_s1 + $0x6c8] sm:$0xf] }
 0xc88   :  { %4778 = vmatmul.bf16.gmra.mxu0 %v8796_v55  ;;  %v14405_v55 = vld [vmem:[#allocation4_spill] sm:$0xff] }
 0xc8d   :  { %v4512_v34 = vpop.f32.mrf.mxu0 }
 0xc8e   :  { %v13166_v35 = vadd.f32 %v4512_v34, %v12987_v59  ;;  %v9940_v59 = vld [vmem:[%s14213_s1 + $0x6d4] sm:$0xf0]  ;;  %v14406_v34 = vld [vmem:[#allocation10_spill] sm:$0xff] }
 0xc8f   :  { %v8843_v46 = vor.u32 %v9940_v59, %v8842_v21  ;;  %v9948_v21 = vld [vmem:[%s14213_s1 + $0x714] sm:$0xf0] }
 0xc90   :  { %14395 = vst [vmem:[#allocation13_spill] sm:$0xff] %v13166_v35 }
 0xc95   :  { %v4515_v27 = vpop.f32.mrf.mxu0 }
 0xc96   :  { %v13170_v9 = vadd.f32 %v4515_v27, %v12990_v28  ;;  %v4665_v28 = vpop.f32.mrf.mxu1  ;;  %v14408_v27 = vld [vmem:[#allocation3_spill] sm:$0xff] }
 0xc97   :  { %v4699_v35 = vadd.f32 %v4698_v56, %v4665_v28 }
 0xc98   :  { %4783 = vmatmul.bf16.gmra.mxu0 %v4635_v16  ;;  %v4705_v16 = vpop.f32.mrf.mxu2 }
 0xc9d   :  { %v4517_v30 = vpop.f32.mrf.mxu0 }
 0xc9e   :  { %v13173_v23 = vadd.f32 %v4517_v30, %v12999_v47  ;;  %v4731_v47 = vpop.f32.mrf.mxu3  ;;  %v4667_v57 = vpop.f32.mrf.mxu1  ;;  %v8874_v30 = vld [vmem:[%s14213_s1 + $0x708] sm:$0xf] }
 0xca0   :  { %14396 = vst [vmem:[#allocation14_spill] sm:$0xff] %v13173_v23 }
 0xca5   :  { %v4520_v13 = vpop.f32.mrf.mxu0 }
 0xca6   :  { %v13182_v38 = vadd.f32 %v4520_v13, %v13003_v2  ;;  %v8858_v2 = vld [vmem:[%s14213_s1 + $0x6e8] sm:$0xf]  ;;  %v4733_v48 = vpop.f32.mrf.mxu3  ;;  %v4670_v19 = vpop.f32.mrf.mxu1  ;;  %v8875_v13 = vor.u32 %v9948_v21, %v8874_v30 }
 0xca7   :  { %v8859_v32 = vor.u32 %v9944_v29, %v8858_v2  ;;  %v14410_v2 = vld [vmem:[#allocation9_spill] sm:$0xff]  ;;  %v4704_v56 = vadd.f32 %v4703_v37, %v4670_v19  ;;  %v9955_v37 = vld [vmem:[%s14213_s1 + $0x754] sm:$0xf]  ;;  %v8935_v19 = vld [vmem:[%s14213_s1 + $0x760] sm:$0xf0] }
 0xca8   :  { %5054 = vmatmul.bf16.vlgmr.msrb.gmra.mxu0 %v8843_v46 }
 0xca9   :  { %5628 = vmatpush.bf16.msrb.mxu0 %v10458_v7 }
 0xcad   :  { %5629 = vmatpush.bf16.msrb.mxu0 %v14397_v3  ;;  %v4522_v4 = vpop.f32.mrf.mxu0 }
 0xcae   :  { %v13187_v31 = vadd.f32 %v4522_v4, %v14398_v61  ;;  %v4736_v20 = vpop.f32.mrf.mxu3  ;;  %v4672_v59 = vpop.f32.mrf.mxu1  ;;  %v14409_v4 = vld [vmem:[#allocation2_spill] sm:$0xff] }
 0xcb0   :  { %14399 = vst [vmem:[#allocation15_spill] sm:$0xff] %v13187_v31 }
 0xcb1   :  { %5630 = vmatpush.bf16.msrb.mxu0 %v14400_v49 }
 0xcb5   :  { %5631 = vmatpush.bf16.msrb.mxu0 %v14401_v52  ;;  %v4525_v10 = vpop.f32.mrf.mxu0 }
 0xcb6   :  { %v13198_v63 = vadd.f32 %v4525_v10, %v14402_v43  ;;  %v4738_v46 = vpop.f32.mrf.mxu3  ;;  %v4708_v10 = vpop.f32.mrf.mxu2 }
 0xcb8   :  { %14403 = vst [vmem:[#allocation6_spill] sm:$0xff] %v13198_v63  ;;  %5059 = vmatmul.bf16.gmra.mxu0 %v8859_v32  ;;  %v4675_v32 = vpop.f32.mrf.mxu1 }
 0xcb9   :  { %5632 = vmatpush.bf16.msrb.mxu0 %v14404_v24 }
 0xcbd   :  { %5633 = vmatpush.bf16.msrb.mxu0 %v14405_v55  ;;  %v4527_v12 = vpop.f32.mrf.mxu0 }
 0xcbe   :  { %v13203_v40 = vadd.f32 %v4527_v12, %v14406_v34  ;;  %v4741_v43 = vpop.f32.mrf.mxu3  ;;  %v8890_v34 = vld [vmem:[%s14213_s1 + $0x728] sm:$0xf]  ;;  %v4710_v31 = vpop.f32.mrf.mxu2 }
 0xcc0   :  { %14407 = vst [vmem:[#allocation12_spill] sm:$0xff] %v13203_v40  ;;  %v9952_v40 = vld [vmem:[%s14213_s1 + $0x734] sm:$0xf0]  ;;  %v4677_v21 = vpop.f32.mrf.mxu1 }
 0xcc1   :  { %5634 = vmatpush.bf16.msrb.mxu0 %v14408_v27  ;;  %v8891_v30 = vor.u32 %v9952_v40, %v8890_v34 }
 0xcc5   :  { %5635 = vmatpush.bf16.msrb.mxu0 %v14409_v4  ;;  %v4530_v61 = vpop.f32.mrf.mxu0 }
 0xcc6   :  { %v13214_v29 = vadd.f32 %v4530_v61, %v14410_v2  ;;  %v4743_v61 = vpop.f32.mrf.mxu3  ;;  %v4701_v2 = vadd.f32 %v4700_v53, %v4667_v57  ;;  %v4713_v63 = vpop.f32.mrf.mxu2  ;;  %v4737_v53 = vadd.f32 %v4736_v20, %v4704_v56 }
 0xcc8   :  { %14411 = vst [vmem:[#allocation7_spill] sm:$0xff] %v13214_v29  ;;  %5064 = vmatmul.bf16.gmra.mxu0 %v8875_v13  ;;  %v4732_v13 = vadd.f32 %v4731_v47, %v4699_v35  ;;  %v4734_v29 = vadd.f32 %v4733_v48, %v4701_v2  ;;  %v4680_v24 = vpop.f32.mrf.mxu1  ;;  %v4706_v47 = vadd.f32 %v4705_v16, %v4672_v59 }
 0xcc9   :  { %v8938_v16 = vor.u32 %v9955_v37, %v8935_v19 }
 0xccd   :  { %v4532_v12 = vpop.f32.mrf.mxu0 }
 0xcce   :  { %v13225_v12 = vld [vmem:[%s14213_s1 + $0x748] sm:$0xff]  ;;  %v4746_v52 = vpop.f32.mrf.mxu3 }
 0xccf   :  { %v4938_v34 = vunpack.c.l.b16 %v13225_v12 }
 0xcd0   :  { %v4682_v57 = vpop.f32.mrf.mxu1 }
 0xcd1   :  { %v4958_v35 = vpack.c.b16 %v4938_v34, %v4938_v34 }
 0xcd5   :  { %v4764_v23 = vpop.f32.mrf.mxu0 }
 0xcd6   :  { %v4765_v27 = vadd.f32 %v4764_v23, %v4732_v13  ;;  %v4715_v23 = vpop.f32.mrf.mxu2  ;;  %v4748_v48 = vpop.f32.mrf.mxu3 }
 0xcd8   :  { %5069 = vmatmul.bf16.gmra.mxu0 %v8891_v30  ;;  %v4685_v2 = vpop.f32.mrf.mxu1 }
 0xcdd   :  { %v4766_v4 = vpop.f32.mrf.mxu0 }
 0xcde   :  { %v4767_v55 = vadd.f32 %v4766_v4, %v4734_v29  ;;  %v4718_v13 = vpop.f32.mrf.mxu2  ;;  %v4751_v20 = vpop.f32.mrf.mxu3 }
 0xce0   :  { %v4788_v40 = vpack.c.bf16 %v4767_v55, %v4765_v27  ;;  %v4739_v55 = vadd.f32 %v4738_v46, %v4706_v47  ;;  %v4709_v46 = vadd.f32 %v4708_v10, %v4675_v32  ;;  %v4687_v34 = vpop.f32.mrf.mxu1  ;;  %v9959_v32 = vld [vmem:[%s14213_s1 + $0x774] sm:$0xf] }
 0xce2   :  { %8809 = vmatmul.msk.bf16.vlgmr.msra.gmra.mxu1 %vm1518_vm0, %v4788_v40  ;;  %v4711_v40 = vadd.f32 %v4710_v31, %v4677_v21  ;;  %v8951_v31 = vld [vmem:[%s14213_s1 + $0x780] sm:$0xf0]  ;;  %v4714_v21 = vadd.f32 %v4713_v63, %v4680_v24  ;;  %v9963_v63 = vld [vmem:[%s14213_s1 + $0x794] sm:$0xf] }
 0xce3   :  { %5370 = vmatpush.bf16.msra.mxu1 %v10768_v0  ;;  %v8954_v10 = vor.u32 %v9959_v32, %v8951_v31  ;;  %v8967_v24 = vld [vmem:[%s14213_s1 + $0x7a0] sm:$0xf0]  ;;  %v9938_v32 = vld [vmem:[%s14213_s1 + $0x6cc] sm:$0xf]  ;;  %v8844_v31 = vld [vmem:[%s14213_s1 + $0x6d8] sm:$0xf0] }
 0xce4   :  { %v4744_v47 = vadd.f32 %v4743_v61, %v4711_v40  ;;  %v4716_v61 = vadd.f32 %v4715_v23, %v4682_v57  ;;  %v4747_v19 = vadd.f32 %v4746_v52, %v4714_v21  ;;  %v4719_v57 = vadd.f32 %v4718_v13, %v4685_v2  ;;  %v9967_v2 = vld [vmem:[%s14213_s1 + $0x7b4] sm:$0xf]  ;;  %v8983_v13 = vld [vmem:[%s14213_s1 + $0x7c0] sm:$0xf0]  ;;  %v8882_v21 = vld [vmem:[%s14213_s1 + $0x720] sm:$0xf] }
 0xce5   :  { %v4769_v28 = vpop.f32.mrf.mxu0  ;;  %v8970_v23 = vor.u32 %v9963_v63, %v8967_v24  ;;  %v4936_v63 = vunpack.c.l.b16 %v13106_v25 }
 0xce6   :  { %v4770_v4 = vadd.f32 %v4769_v28, %v4737_v53  ;;  %v4742_v28 = vadd.f32 %v4741_v43, %v4709_v46  ;;  %v4753_v56 = vpop.f32.mrf.mxu3  ;;  %v4752_v52 = vadd.f32 %v4751_v20, %v4719_v57  ;;  %v9990_v20 = vld [vmem:[%s14214_s6 + $0xe8] sm:$0xff] }
 0xce7   :  { %5371 = vmatpush.bf16.msra.mxu1 %v14270_v51  ;;  %v4956_v24 = vpack.c.b16 %v4936_v63, %v4936_v63  ;;  %v9946_v57 = vld [vmem:[%s14213_s1 + $0x70c] sm:$0xf] }
 0xce8   :  { %5074 = vmatmul.bf16.gmra.mxu0 %v4958_v35  ;;  %v4720_v35 = vpop.f32.mrf.mxu2 }
 0xceb   :  { %5372 = vmatpush.bf16.msra.mxu1 %v14271_v14 }
 0xced   :  { %v4771_v27 = vpop.f32.mrf.mxu0 }
 0xcee   :  { %v4772_v29 = vadd.f32 %v4771_v27, %v4739_v55 }
 0xcef   :  { %5373 = vmatpush.bf16.msra.mxu1 %v14272_v33 }
 0xcf0   :  { %v4789_v30 = vpack.c.bf16 %v4772_v29, %v4770_v4  ;;  %v8850_v29 = vld [vmem:[%s14213_s1 + $0x6e0] sm:$0xf] }
 0xcf2   :  { %8810 = vmatmul.msk.bf16.gmra.mxu1 %vm1518_vm0, %v4789_v30  ;;  %v9943_v30 = vld [vmem:[%s14213_s1 + $0x6ec] sm:$0xf0] }
 0xcf3   :  { %5374 = vmatpush.bf16.msra.mxu1 %v14273_v8  ;;  %v8851_v37 = vor.u32 %v9943_v30, %v8850_v29 }
 0xcf5   :  { %v4774_v59 = vpop.f32.mrf.mxu0  ;;  %4993 = vmatmul.bf16.gmra.mxu2 %v8851_v37 }
 0xcf6   :  { %v4775_v55 = vadd.f32 %v4774_v59, %v4742_v28 }
 0xcf7   :  { %5375 = vmatpush.bf16.msra.mxu1 %v14274_v26 }
 0xcf8   :  { %5345 = vmatmul.bf16.vlgmr.msra.gmra.mxu0 %v8938_v16  ;;  %v4749_v16 = vadd.f32 %v4748_v48, %v4716_v61  ;;  %v9951_v61 = vld [vmem:[%s14213_s1 + $0x72c] sm:$0xf0] }
 0xcf9   :  { %5803 = vmatpush.bf16.msra.mxu0 %v9990_v20  ;;  %v8883_v29 = vor.u32 %v9951_v61, %v8882_v21  ;;  %v14414_v61 = vld [vmem:[#allocation5_spill] sm:$0xff] }
 0xcfb   :  { %5376 = vmatpush.bf16.msra.mxu1 %v14275_v62 }
 0xcfd   :  { %v4776_v53 = vpop.f32.mrf.mxu0 }
 0xcfe   :  { %v4777_v27 = vadd.f32 %v4776_v53, %v4744_v47  ;;  %v8866_v47 = vld [vmem:[%s14213_s1 + $0x700] sm:$0xf]  ;;  %v9947_v53 = vld [vmem:[%s14213_s1 + $0x70c] sm:$0xf0] }
 0xcff   :  { %5377 = vmatpush.bf16.msra.mxu1 %v14276_v6 }
 0xd00   :  { %v4790_v4 = vpack.c.bf16 %v4777_v27, %v4775_v55  ;;  %v8867_v55 = vor.u32 %v9947_v53, %v8866_v47  ;;  %v8986_v27 = vor.u32 %v9967_v2, %v8983_v13  ;;  %v4989_v53 = vpop.f32.mrf.mxu2 }
 0xd02   :  { %8811 = vmatmul.msk.bf16.gmra.mxu1 %vm1518_vm0, %v4790_v4  ;;  %v9989_v4 = vld [vmem:[%s14214_s6 + $0xe0] sm:$0xff] }
 0xd03   :  { %5804 = vmatpush.bf16.msra.mxu0 %v9989_v4  ;;  %v14412_v4 = vld [vmem:[#allocation8_spill] sm:$0xff] }
 0xd05   :  { %v4779_v43 = vpop.f32.mrf.mxu0  ;;  %4998 = vmatmul.bf16.gmra.mxu2 %v8867_v55  ;;  %v5022_v55 = vpop.f32.mrf.mxu3 }
 0xd06   :  { %v4780_v46 = vadd.f32 %v4779_v43, %v4747_v19  ;;  %v8847_v43 = vor.u32 %v9938_v32, %v8844_v31  ;;  %v9942_v19 = vld [vmem:[%s14213_s1 + $0x6ec] sm:$0xf] }
 0xd08   :  { %5350 = vmatmul.bf16.gmra.mxu0 %v8954_v10  ;;  %v13292_v10 = vld [vmem:[%s14213_s1 + $0x7d0] sm:$0xff]  ;;  %v4991_v13 = vpop.f32.mrf.mxu2 }
 0xd09   :  { %v5261_v30 = vunpack.c.h.b16 %v13292_v10 }
 0xd0b   :  { %v5281_v37 = vpack.c.b16 %v5261_v30, %v5261_v30 }
 0xd0d   :  { %v4781_v59 = vpop.f32.mrf.mxu0  ;;  %v5024_v20 = vpop.f32.mrf.mxu3 }
 0xd0e   :  { %v4782_v40 = vadd.f32 %v4781_v59, %v4749_v16  ;;  %v8860_v16 = vld [vmem:[%s14213_s1 + $0x6f8] sm:$0xf0] }
 0xd0f   :  { %v8863_v59 = vor.u32 %v9942_v19, %v8860_v16  ;;  %v14417_v16 = vld [vmem:[#allocation2_spill] sm:$0xff] }
 0xd10   :  { %v4791_v34 = vpack.c.bf16 %v4782_v40, %v4780_v46  ;;  %v9032_v46 = vld [vmem:[%s14213_s1 + $0x7e0] sm:$0xf]  ;;  %v9975_v40 = vld [vmem:[%s14213_s1 + $0x7ec] sm:$0xf0] }
 0xd12   :  { %8812 = vmatmul.msk.bf16.gmra.mxu1 %vm1518_vm0, %v4791_v34  ;;  %v9033_v34 = vor.u32 %v9975_v40, %v9032_v46  ;;  %v14418_v46 = vld [vmem:[#allocation7_spill] sm:$0xff] }
 0xd15   :  { %v4784_v35 = vpop.f32.mrf.mxu0  ;;  %5003 = vmatmul.bf16.gmra.mxu2 %v8883_v29  ;;  %v14415_v29 = vld [vmem:[#allocation4_spill] sm:$0xff] }
 0xd16   :  { %v4785_v48 = vadd.f32 %v4784_v35, %v4752_v52  ;;  %v8892_v35 = vld [vmem:[%s14213_s1 + $0x738] sm:$0xf0] }
 0xd18   :  { %5355 = vmatmul.bf16.gmra.mxu0 %v8970_v23  ;;  %v4792_v56 = vpack.c.bf16 %v4785_v48, %v4785_v48  ;;  %v8876_v23 = vld [vmem:[%s14213_s1 + $0x718] sm:$0xf0] }
 0xd19   :  { %v8879_v25 = vor.u32 %v9946_v57, %v8876_v23 }
 0xd1d   :  { %v4786_v28 = vpop.f32.mrf.mxu0 }
 0xd22   :  { %8813 = vmatmul.msk.bf16.gmra.mxu1 %vm1518_vm0, %v4792_v56 }
 0xd25   :  { %5008 = vmatmul.bf16.gmra.mxu2 %v4956_v24 }
 0xd28   :  { %5360 = vmatmul.bf16.gmra.mxu0 %v8986_v27 }
 0xd32   :  { %5087 = vmatmul.bf16.vlgmr.msrb.gmra.mxu1 %v8847_v43  ;;  %v5027_v43 = vpop.f32.mrf.mxu3 }
 0xd33   :  { %5661 = vmatpush.bf16.msrb.mxu1 %v10608_v44 }
 0xd37   :  { %5662 = vmatpush.bf16.msrb.mxu1 %v10613_v58 }
 0xd38   :  { %5365 = vmatmul.bf16.gmra.mxu0 %v5281_v37  ;;  %v14416_v37 = vld [vmem:[#allocation3_spill] sm:$0xff] }
 0xd3a   :  { %v5029_v30 = vpop.f32.mrf.mxu3 }
 0xd3b   :  { %5663 = vmatpush.bf16.msrb.mxu1 %v10616_v60 }
 0xd3f   :  { %5664 = vmatpush.bf16.msrb.mxu1 %v10621_v42 }
 0xd42   :  { %5092 = vmatmul.bf16.gmra.mxu1 %v8863_v59 }
 0xd43   :  { %5665 = vmatpush.bf16.msrb.mxu1 %v10546_v15 }
 0xd47   :  { %5666 = vmatpush.bf16.msrb.mxu1 %v10530_v11 }
 0xd48   :  { %5636 = vmatmul.bf16.vlgmr.msrb.gmra.mxu0 %v9033_v34  ;;  %v5032_v34 = vpop.f32.mrf.mxu3 }
 0xd49   :  { %6051 = vmatpush.bf16.msrb.mxu0 %v10947_v5  ;;  %v9950_v5 = vld [vmem:[%s14213_s1 + $0x72c] sm:$0xf] }
 0xd4b   :  { %5667 = vmatpush.bf16.msrb.mxu1 %v10514_v54 }
 0xd4d   :  { %6052 = vmatpush.bf16.msrb.mxu0 %v10956_v45  ;;  %v8895_v45 = vor.u32 %v9950_v5, %v8892_v35  ;;  %v5023_v5 = vadd.f32 %v5022_v55, %v4989_v53 }
 0xd4f   :  { %5668 = vmatpush.bf16.msrb.mxu1 %v10490_v36 }
 0xd50   :  { %v5034_v23 = vpop.f32.mrf.mxu3 }
 0xd51   :  { %6053 = vmatpush.bf16.msrb.mxu0 %v10966_v18 }
 0xd52   :  { %5097 = vmatmul.bf16.gmra.mxu1 %v8879_v25 }
 0xd55   :  { %6054 = vmatpush.bf16.msrb.mxu0 %v10981_v17  ;;  %v4939_v17 = vunpack.c.h.b16 %v13225_v12 }
 0xd59   :  { %6055 = vmatpush.bf16.msrb.mxu0 %v10992_v1  ;;  %v4959_v1 = vpack.c.b16 %v4939_v17, %v4939_v17 }
 0xd5d   :  { %6056 = vmatpush.bf16.msrb.mxu0 %v10999_v22 }
 0xd5f   :  { %v4834_v52 = vpop.f32.mrf.mxu1 }
 0xd60   :  { %v13341_v48 = vadd.f32 %v4834_v52, %v13163_v41  ;;  %v8941_v41 = vld [vmem:[%s14213_s1 + $0x758] sm:$0xf]  ;;  %v5025_v52 = vadd.f32 %v5024_v20, %v4991_v13 }
 0xd61   :  { %6057 = vmatpush.bf16.msrb.mxu0 %v11007_v39  ;;  %v9958_v39 = vld [vmem:[%s14213_s1 + $0x764] sm:$0xf0] }
 0xd62   :  { %5102 = vmatmul.bf16.gmra.mxu1 %v8895_v45 }
 0xd65   :  { %6058 = vmatpush.bf16.msrb.mxu0 %v11028_v50  ;;  %v8942_v50 = vor.u32 %v9958_v39, %v8941_v41 }
 0xd67   :  { %v13345_v18 = vpop.f32.mrf.mxu1 }
 0xd6f   :  { %v4839_v28 = vpop.f32.mrf.mxu1 }
 0xd70   :  { %v13349_v56 = vadd.f32 %v4839_v28, %v13170_v9  ;;  %v5055_v9 = vpop.f32.mrf.mxu0 }
 0xd71   :  { %v5056_v17 = vadd.f32 %v5055_v9, %v5023_v5 }
 0xd72   :  { %5107 = vmatmul.bf16.gmra.mxu1 %v4959_v1 }
 0xd77   :  { %v13351_v22 = vpop.f32.mrf.mxu1 }
 0xd78   :  { %v5057_v27 = vpop.f32.mrf.mxu0  ;;  %v4994_v21 = vpop.f32.mrf.mxu2 }
 0xd79   :  { %v5058_v1 = vadd.f32 %v5057_v27, %v5025_v52 }
 0xd7f   :  { %v4844_v47 = vpop.f32.mrf.mxu1 }
 0xd80   :  { %v13360_v12 = vadd.f32 %v4844_v47, %v13182_v38  ;;  %v14413_v38 = vld [vmem:[#allocation6_spill] sm:$0xff]  ;;  %v4996_v19 = vpop.f32.mrf.mxu2 }
 0xd81   :  { %v5030_v53 = vadd.f32 %v5029_v30, %v4996_v19 }
 0xd82   :  { %5378 = vmatmul.bf16.vlgmr.msra.gmra.mxu1 %v8942_v50  ;;  %v5037_v50 = vpop.f32.mrf.mxu3 }
 0xd83   :  { %5952 = vmatpush.bf16.msra.mxu1 %v10458_v7  ;;  %v5060_v7 = vpop.f32.mrf.mxu0 }
 0xd87   :  { %5953 = vmatpush.bf16.msra.mxu1 %v14397_v3  ;;  %v13364_v2 = vpop.f32.mrf.mxu1 }
 0xd88   :  { %v4999_v63 = vpop.f32.mrf.mxu2 }
 0xd8a   :  { %v5039_v55 = vpop.f32.mrf.mxu3 }
 0xd8b   :  { %5954 = vmatpush.bf16.msra.mxu1 %v14400_v49  ;;  %v5062_v49 = vpop.f32.mrf.mxu0 }
 0xd8c   :  { %v5063_v27 = vadd.f32 %v5062_v49, %v5030_v53 }
 0xd8f   :  { %5955 = vmatpush.bf16.msra.mxu1 %v14412_v4  ;;  %v4849_v32 = vpop.f32.mrf.mxu1 }
 0xd90   :  { %v13369_v31 = vadd.f32 %v4849_v32, %v14413_v38  ;;  %v5001_v35 = vpop.f32.mrf.mxu2 }
 0xd91   :  { %v5035_v19 = vadd.f32 %v5034_v23, %v5001_v35 }
 0xd93   :  { %5956 = vmatpush.bf16.msra.mxu1 %v14414_v61  ;;  %v5065_v24 = vpop.f32.mrf.mxu0  ;;  %v5028_v61 = vadd.f32 %v5027_v43, %v4994_v21 }
 0xd95   :  { %v5061_v13 = vadd.f32 %v5060_v7, %v5028_v61  ;;  %v5033_v7 = vadd.f32 %v5032_v34, %v4999_v63 }
 0xd97   :  { %5957 = vmatpush.bf16.msra.mxu1 %v14415_v29  ;;  %v13373_v3 = vpop.f32.mrf.mxu1  ;;  %v5066_v49 = vadd.f32 %v5065_v24, %v5033_v7  ;;  %v9966_v7 = vld [vmem:[%s14213_s1 + $0x7a4] sm:$0xf0] }
 0xd98   :  { %v5004_v4 = vpop.f32.mrf.mxu2 }
 0xd99   :  { %v5038_v34 = vadd.f32 %v5037_v50, %v5004_v4 }
 0xd9b   :  { %5958 = vmatpush.bf16.msra.mxu1 %v14416_v37  ;;  %v5067_v45 = vpop.f32.mrf.mxu0 }
 0xd9c   :  { %v5068_v52 = vadd.f32 %v5067_v45, %v5035_v19  ;;  %v8949_v45 = vld [vmem:[%s14213_s1 + $0x770] sm:$0xf] }
 0xd9f   :  { %5959 = vmatpush.bf16.msra.mxu1 %v14417_v16  ;;  %v4854_v59 = vpop.f32.mrf.mxu1 }
 0xda0   :  { %v13378_v40 = vadd.f32 %v4854_v59, %v14418_v46  ;;  %v5006_v9 = vpop.f32.mrf.mxu2  ;;  %v5042_v46 = vpop.f32.mrf.mxu3 }
 0xda1   :  { %v5040_v63 = vadd.f32 %v5039_v55, %v5006_v9  ;;  %v8957_v55 = vld [vmem:[%s14213_s1 + $0x778] sm:$0xf]  ;;  %v9962_v9 = vld [vmem:[%s14213_s1 + $0x784] sm:$0xf0] }
 0xda3   :  { %v5070_v32 = vpop.f32.mrf.mxu0 }
 0xda7   :  { %v4856_v57 = vpop.f32.mrf.mxu1 }
 0xda8   :  { %v5009_v43 = vpop.f32.mrf.mxu2  ;;  %v5044_v57 = vpop.f32.mrf.mxu3 }
 0xda9   :  { %v5043_v53 = vadd.f32 %v5042_v46, %v5009_v43  ;;  %v9956_v43 = vld [vmem:[%s14213_s1 + $0x75c] sm:$0xf] }
 0xdab   :  { %v5072_v20 = vpop.f32.mrf.mxu0 }
 0xdac   :  { %v5073_v23 = vadd.f32 %v5072_v20, %v5040_v63  ;;  %v8958_v20 = vor.u32 %v9962_v9, %v8957_v55 }
 0xdae   :  { %5383 = vmatmul.bf16.gmra.mxu1 %v8958_v20 }
 0xdaf   :  { %v5088_v25 = vpop.f32.mrf.mxu1 }
 0xdb0   :  { %v5089_v41 = vadd.f32 %v5088_v25, %v5056_v17  ;;  %v5011_v25 = vpop.f32.mrf.mxu2 }
 0xdb1   :  { %v9969_v25 = vld [vmem:[%s14213_s1 + $0x7bc] sm:$0xf0] }
 0xdb3   :  { %v5075_v21 = vpop.f32.mrf.mxu0 }
 0xdb4   :  { %v5076_v4 = vadd.f32 %v5075_v21, %v5043_v53  ;;  %v8943_v21 = vld [vmem:[%s14213_s1 + $0x768] sm:$0xf0] }
 0xdb5   :  { %v8946_v57 = vor.u32 %v9956_v43, %v8943_v21 }
 0xdb7   :  { %v5090_v28 = vpop.f32.mrf.mxu1 }
 0xdb8   :  { %v5091_v39 = vadd.f32 %v5090_v28, %v5058_v1 }
 0xdba   :  { %v5112_v47 = vpack.c.bf16 %v5091_v39, %v5089_v41 }
 0xdbb   :  { %v5077_v5 = vpop.f32.mrf.mxu0 }
 0xdbc   :  { %8908 = vmatmul.msk.bf16.vlgmr.msrb.gmra.mxu2 %vm1518_vm0, %v5112_v47  ;;  %v5071_v47 = vadd.f32 %v5070_v32, %v5038_v34 }
 0xdbd   :  { %5694 = vmatpush.bf16.msrb.mxu2 %v10768_v0 }
 0xdbf   :  { %v5093_v38 = vpop.f32.mrf.mxu1 }
 0xdc0   :  { %v5094_v37 = vadd.f32 %v5093_v38, %v5061_v13  ;;  %v9961_v13 = vld [vmem:[%s14213_s1 + $0x77c] sm:$0xf0] }
 0xdc1   :  { %5695 = vmatpush.bf16.msrb.mxu2 %v14270_v51 }
 0xdc5   :  { %5696 = vmatpush.bf16.msrb.mxu2 %v14271_v14 }
 0xdc7   :  { %v5095_v29 = vpop.f32.mrf.mxu1 }
 0xdc8   :  { %v5096_v16 = vadd.f32 %v5095_v29, %v5063_v27  ;;  %v8950_v27 = vor.u32 %v9961_v13, %v8949_v45 }
 0xdc9   :  { %5697 = vmatpush.bf16.msrb.mxu2 %v14272_v33 }
 0xdca   :  { %v5113_v59 = vpack.c.bf16 %v5096_v16, %v5094_v37  ;;  %5317 = vmatmul.bf16.gmra.mxu3 %v8950_v27  ;;  %v8965_v16 = vld [vmem:[%s14213_s1 + $0x790] sm:$0xf] }
 0xdcc   :  { %8909 = vmatmul.msk.bf16.gmra.mxu2 %vm1518_vm0, %v5113_v59  ;;  %v9965_v59 = vld [vmem:[%s14213_s1 + $0x79c] sm:$0xf0] }
 0xdcd   :  { %5698 = vmatpush.bf16.msrb.mxu2 %v14273_v8  ;;  %v8966_v46 = vor.u32 %v9965_v59, %v8965_v16 }
 0xdcf   :  { %v5098_v30 = vpop.f32.mrf.mxu1 }
 0xdd0   :  { %v5099_v1 = vadd.f32 %v5098_v30, %v5066_v49  ;;  %v8973_v30 = vld [vmem:[%s14213_s1 + $0x798] sm:$0xf]  ;;  %v8981_v49 = vld [vmem:[%s14213_s1 + $0x7b0] sm:$0xf] }
 0xdd1   :  { %5699 = vmatpush.bf16.msrb.mxu2 %v14274_v26  ;;  %v8974_v19 = vor.u32 %v9966_v7, %v8973_v30  ;;  %v8982_v5 = vor.u32 %v9969_v25, %v8981_v49 }
 0xdd3   :  { %5388 = vmatmul.bf16.gmra.mxu1 %v8974_v19 }
 0xdd5   :  { %5700 = vmatpush.bf16.msrb.mxu2 %v14275_v62 }
 0xdd7   :  { %v5100_v17 = vpop.f32.mrf.mxu1 }
 0xdd8   :  { %v5101_v28 = vadd.f32 %v5100_v17, %v5068_v52  ;;  %v8989_v52 = vld [vmem:[%s14213_s1 + $0x7b8] sm:$0xf]  ;;  %v9970_v17 = vld [vmem:[%s14213_s1 + $0x7c4] sm:$0xf0] }
 0xdd9   :  { %5701 = vmatpush.bf16.msrb.mxu2 %v14276_v6 }
 0xdda   :  { %v5114_v41 = vpack.c.bf16 %v5101_v28, %v5099_v1  ;;  %5322 = vmatmul.bf16.gmra.mxu3 %v8966_v46  ;;  %v8990_v1 = vor.u32 %v9970_v17, %v8989_v52  ;;  %v9960_v28 = vld [vmem:[%s14213_s1 + $0x77c] sm:$0xf] }
 0xddc   :  { %8910 = vmatmul.msk.bf16.gmra.mxu2 %vm1518_vm0, %v5114_v41  ;;  %v8975_v41 = vld [vmem:[%s14213_s1 + $0x7a8] sm:$0xf0] }
 0xddf   :  { %v5103_v39 = vpop.f32.mrf.mxu1 }
 0xde0   :  { %v5104_v24 = vadd.f32 %v5103_v39, %v5071_v47  ;;  %v5260_v39 = vunpack.c.l.b16 %v13292_v10  ;;  %v8991_v10 = vld [vmem:[%s14213_s1 + $0x7c8] sm:$0xf0] }
 0xde2   :  { %v5280_v34 = vpack.c.b16 %v5260_v39, %v5260_v39 }
 0xde3   :  { %5393 = vmatmul.bf16.gmra.mxu1 %v8990_v1 }
 0xde7   :  { %v5105_v35 = vpop.f32.mrf.mxu1 }
 0xde8   :  { %v5106_v38 = vadd.f32 %v5105_v35, %v5073_v23 }
 0xdea   :  { %v5115_v61 = vpack.c.bf16 %v5106_v38, %v5104_v24  ;;  %5327 = vmatmul.bf16.gmra.mxu3 %v8982_v5 }
 0xdec   :  { %8911 = vmatmul.msk.bf16.gmra.mxu2 %vm1518_vm0, %v5115_v61 }
 0xdef   :  { %v5108_v50 = vpop.f32.mrf.mxu1 }
 0xdf0   :  { %v5109_v32 = vadd.f32 %v5108_v50, %v5076_v4  ;;  %v5313_v50 = vpop.f32.mrf.mxu3  ;;  %v5346_v4 = vpop.f32.mrf.mxu0 }
 0xdf2   :  { %v5116_v37 = vpack.c.bf16 %v5109_v32, %v5109_v32 }
 0xdf7   :  { %v5110_v29 = vpop.f32.mrf.mxu1 }
 0xdf8   :  { %v5348_v55 = vpop.f32.mrf.mxu0  ;;  %v5315_v9 = vpop.f32.mrf.mxu3 }
 0xdf9   :  { %v5349_v1 = vadd.f32 %v5348_v55, %v5315_v9 }
 0xdfa   :  { %5332 = vmatmul.bf16.gmra.mxu3 %v5280_v34 }
 0xdfc   :  { %8912 = vmatmul.msk.bf16.gmra.mxu2 %vm1518_vm0, %v5116_v37 }
 0xdff   :  { %v5379_v32 = vpop.f32.mrf.mxu1 }
 0xe07   :  { %v5381_v20 = vpop.f32.mrf.mxu1 }
 0xe0c   :  { %5411 = vmatmul.bf16.vlgmr.msra.gmra.mxu2 %v8946_v57 }
 0xe0d   :  { %5985 = vmatpush.bf16.msra.mxu2 %v10608_v44  ;;  %v8959_v44 = vld [vmem:[%s14213_s1 + $0x788] sm:$0xf0] }
 0xe11   :  { %5986 = vmatpush.bf16.msra.mxu2 %v10613_v58  ;;  %v8962_v58 = vor.u32 %v9960_v28, %v8959_v44 }
 0xe15   :  { %5987 = vmatpush.bf16.msra.mxu2 %v10616_v60  ;;  %v9964_v60 = vld [vmem:[%s14213_s1 + $0x79c] sm:$0xf] }
 0xe16   :  { %v8978_v63 = vor.u32 %v9964_v60, %v8975_v41 }
 0xe19   :  { %5988 = vmatpush.bf16.msra.mxu2 %v10621_v42  ;;  %v9968_v42 = vld [vmem:[%s14213_s1 + $0x7bc] sm:$0xf] }
 0xe1a   :  { %v8994_v47 = vor.u32 %v9968_v42, %v8991_v10 }
 0xe1c   :  { %5416 = vmatmul.bf16.gmra.mxu2 %v8962_v58  ;;  %v5382_v58 = vadd.f32 %v5381_v20, %v5349_v1 }
 0xe1d   :  { %5989 = vmatpush.bf16.msra.mxu2 %v10546_v15 }
 0xe21   :  { %5990 = vmatpush.bf16.msra.mxu2 %v10530_v11 }
 0xe25   :  { %5991 = vmatpush.bf16.msra.mxu2 %v10514_v54  ;;  %v8930_v54 = vld [vmem:[%s14213_s1 + $0x7d8] sm:$0xff] }
 0xe26   :  { %v5262_v11 = vunpack.c.l.b16 %v8930_v54  ;;  %v5263_v35 = vunpack.c.h.b16 %v8930_v54 }
 0xe28   :  { %v5282_v15 = vpack.c.b16 %v5262_v11, %v5262_v11  ;;  %v5283_v38 = vpack.c.b16 %v5263_v35, %v5263_v35 }
 0xe29   :  { %5992 = vmatpush.bf16.msra.mxu2 %v10490_v36 }
 0xe2a   :  { %5398 = vmatmul.bf16.gmra.mxu1 %v5282_v15 }
 0xe2b   :  { %v5384_v59 = vpop.f32.mrf.mxu1 }
 0xe2c   :  { %5421 = vmatmul.bf16.gmra.mxu2 %v8978_v63 }
 0xe33   :  { %v5386_v21 = vpop.f32.mrf.mxu1 }
 0xe3c   :  { %5426 = vmatmul.bf16.gmra.mxu2 %v8994_v47 }
 0xe3f   :  { %v5158_v36 = vpop.f32.mrf.mxu2 }
 0xe40   :  { %v13466_v23 = vadd.f32 %v5158_v36, %v13341_v48 }
 0xe47   :  { %v13468_v24 = vpop.f32.mrf.mxu2 }
 0xe4c   :  { %5431 = vmatmul.bf16.gmra.mxu2 %v5283_v38 }
 0xe4d   :  { %v5318_v16 = vpop.f32.mrf.mxu3 }
 0xe4f   :  { %v5163_v61 = vpop.f32.mrf.mxu2 }
 0xe50   :  { %v13471_v53 = vadd.f32 %v5163_v61, %v13349_v56  ;;  %v5351_v56 = vpop.f32.mrf.mxu0  ;;  %v5389_v25 = vpop.f32.mrf.mxu1 }
 0xe51   :  { %v5352_v15 = vadd.f32 %v5351_v56, %v5318_v16 }
 0xe53   :  { %v5385_v47 = vadd.f32 %v5384_v59, %v5352_v15 }
 0xe57   :  { %v13473_v45 = vpop.f32.mrf.mxu2 }
 0xe58   :  { %v5353_v43 = vpop.f32.mrf.mxu0  ;;  %v5391_v28 = vpop.f32.mrf.mxu1 }
 0xe5f   :  { %v5168_v13 = vpop.f32.mrf.mxu2 }
 0xe60   :  { %v13476_v27 = vadd.f32 %v5168_v13, %v13360_v12  ;;  %v5320_v12 = vpop.f32.mrf.mxu3  ;;  %v5356_v19 = vpop.f32.mrf.mxu0 }
 0xe61   :  { %v5354_v42 = vadd.f32 %v5353_v43, %v5320_v12 }
 0xe63   :  { %v5387_v35 = vadd.f32 %v5386_v21, %v5354_v42 }
 0xe67   :  { %v13478_v48 = vpop.f32.mrf.mxu2 }
 0xe68   :  { %v5323_v57 = vpop.f32.mrf.mxu3  ;;  %v5358_v5 = vpop.f32.mrf.mxu0 }
 0xe69   :  { %v5357_v9 = vadd.f32 %v5356_v19, %v5323_v57 }
 0xe6f   :  { %v5173_v29 = vpop.f32.mrf.mxu2 }
 0xe70   :  { %v13481_v37 = vadd.f32 %v5173_v29, %v13369_v31  ;;  %v5347_v31 = vadd.f32 %v5346_v4, %v5313_v50  ;;  %v5325_v17 = vpop.f32.mrf.mxu3  ;;  %v5361_v34 = vpop.f32.mrf.mxu0  ;;  %v5390_v29 = vadd.f32 %v5389_v25, %v5357_v9  ;;  %v9042_v9 = vld [vmem:[%s14213_s1 + $0x7f8] sm:$0xf0] }
 0xe72   :  { %v5380_v44 = vadd.f32 %v5379_v32, %v5347_v31 }
 0xe77   :  { %v13483_v46 = vpop.f32.mrf.mxu2 }
 0xe78   :  { %v5328_v54 = vpop.f32.mrf.mxu3  ;;  %v5363_v10 = vpop.f32.mrf.mxu0 }
 0xe7f   :  { %v5178_v30 = vpop.f32.mrf.mxu2 }
 0xe80   :  { %v13486_v7 = vadd.f32 %v5178_v30, %v13378_v40  ;;  %v5394_v40 = vpop.f32.mrf.mxu1  ;;  %v5330_v36 = vpop.f32.mrf.mxu3 }
 0xe81   :  { %v5366_v32 = vpop.f32.mrf.mxu0  ;;  %v5364_v25 = vadd.f32 %v5363_v10, %v5330_v36 }
 0xe87   :  { %v5180_v49 = vpop.f32.mrf.mxu2 }
 0xe88   :  { %v5396_v38 = vpop.f32.mrf.mxu1  ;;  %v5362_v49 = vadd.f32 %v5361_v34, %v5328_v54  ;;  %v9979_v34 = vld [vmem:[%s14213_s1 + $0x80c] sm:$0xf0]  ;;  %v9050_v54 = vld [vmem:[%s14213_s1 + $0x810] sm:$0xf0] }
 0xe89   :  { %v5368_v20 = vpop.f32.mrf.mxu0 }
 0xe8a   :  { %v9088_v20 = vld [vmem:[%s14213_s1 + $0x848] sm:$0xf] }
 0xe8f   :  { %v5412_v52 = vpop.f32.mrf.mxu2 }
 0xe90   :  { %v5413_v41 = vadd.f32 %v5412_v52, %v5380_v44  ;;  %v5397_v52 = vadd.f32 %v5396_v38, %v5364_v25  ;;  %v9984_v38 = vld [vmem:[%s14213_s1 + $0x834] sm:$0xf0] }
 0xe97   :  { %v5414_v60 = vpop.f32.mrf.mxu2 }
 0xe98   :  { %v5415_v39 = vadd.f32 %v5414_v60, %v5382_v58  ;;  %v9056_v58 = vld [vmem:[%s14213_s1 + $0x808] sm:$0xf]  ;;  %v9980_v60 = vld [vmem:[%s14213_s1 + $0x814] sm:$0xf0] }
 0xe9a   :  { %v5436_v63 = vpack.c.bf16 %v5415_v39, %v5413_v41  ;;  %v9048_v41 = vld [vmem:[%s14213_s1 + $0x800] sm:$0xf]  ;;  %v9057_v39 = vor.u32 %v9980_v60, %v9056_v58 }
 0xe9c   :  { %9007 = vmatmul.msk.bf16.vlgmr.msra.gmra.mxu3 %vm1518_vm0, %v5436_v63  ;;  %v9977_v63 = vld [vmem:[%s14213_s1 + $0x804] sm:$0xf] }
 0xe9d   :  { %6018 = vmatpush.bf16.msra.mxu3 %v10768_v0  ;;  %v5333_v0 = vpop.f32.mrf.mxu3 }
 0xe9e   :  { %v5367_v44 = vadd.f32 %v5366_v32, %v5333_v0  ;;  %v9066_v32 = vld [vmem:[%s14213_s1 + $0x830] sm:$0xf0] }
 0xe9f   :  { %v5417_v11 = vpop.f32.mrf.mxu2 }
 0xea0   :  { %v5418_v13 = vadd.f32 %v5417_v11, %v5385_v47  ;;  %v9053_v11 = vor.u32 %v9977_v63, %v9050_v54 }
 0xea1   :  { %6019 = vmatpush.bf16.msra.mxu3 %v14270_v51 }
 0xea5   :  { %6020 = vmatpush.bf16.msra.mxu3 %v14271_v14  ;;  %v5359_v14 = vadd.f32 %v5358_v5, %v5325_v17  ;;  %v5335_v56 = vpop.f32.mrf.mxu3  ;;  %v5395_v5 = vadd.f32 %v5394_v40, %v5362_v49  ;;  %v9049_v40 = vor.u32 %v9979_v34, %v9048_v41 }
 0xea6   :  { %v9080_v56 = vld [vmem:[%s14213_s1 + $0x840] sm:$0xf] }
 0xea7   :  { %v5419_v61 = vpop.f32.mrf.mxu2  ;;  %v5399_v51 = vpop.f32.mrf.mxu1  ;;  %v5392_v16 = vadd.f32 %v5391_v28, %v5359_v14  ;;  %5641 = vmatmul.bf16.gmra.mxu0 %v9049_v40 }
 0xea8   :  { %v5420_v50 = vadd.f32 %v5419_v61, %v5387_v35  ;;  %v5400_v42 = vadd.f32 %v5399_v51, %v5367_v44  ;;  %v9072_v35 = vld [vmem:[%s14213_s1 + $0x828] sm:$0xf]  ;;  %v9064_v61 = vld [vmem:[%s14213_s1 + $0x820] sm:$0xf]  ;;  %v9090_v44 = vld [vmem:[%s14213_s1 + $0x858] sm:$0xf0] }
 0xea9   :  { %6021 = vmatpush.bf16.msra.mxu3 %v14272_v33 }
 0xeaa   :  { %v5437_v4 = vpack.c.bf16 %v5420_v50, %v5418_v13  ;;  %v9073_v13 = vor.u32 %v9984_v38, %v9072_v35  ;;  %v9983_v50 = vld [vmem:[%s14213_s1 + $0x82c] sm:$0xf0] }
 0xeab   :  { %v9065_v0 = vor.u32 %v9983_v50, %v9064_v61 }
 0xeac   :  { %9008 = vmatmul.msk.bf16.gmra.mxu3 %vm1518_vm0, %v5437_v4  ;;  %v9981_v4 = vld [vmem:[%s14213_s1 + $0x824] sm:$0xf] }
 0xead   :  { %6022 = vmatpush.bf16.msra.mxu3 %v14273_v8  ;;  %v9040_v8 = vld [vmem:[%s14213_s1 + $0x7e8] sm:$0xf]  ;;  %v9069_v51 = vor.u32 %v9981_v4, %v9066_v32 }
 0xeaf   :  { %v5422_v55 = vpop.f32.mrf.mxu2  ;;  %v5401_v33 = vpop.f32.mrf.mxu1 }
 0xeb0   :  { %v5423_v43 = vadd.f32 %v5422_v55, %v5390_v29  ;;  %v9974_v55 = vld [vmem:[%s14213_s1 + $0x7ec] sm:$0xf]  ;;  %v9988_v29 = vld [vmem:[%s14213_s1 + $0x854] sm:$0xf0]  ;;  %v9987_v33 = vld [vmem:[%s14213_s1 + $0x84c] sm:$0xf0] }
 0xeb1   :  { %6023 = vmatpush.bf16.msra.mxu3 %v14274_v26  ;;  %v9976_v26 = vld [vmem:[%s14213_s1 + $0x7f4] sm:$0xf0]  ;;  %v9045_v14 = vor.u32 %v9974_v55, %v9042_v9 }
 0xeb2   :  { %v9041_v30 = vor.u32 %v9976_v26, %v9040_v8  ;;  %v9978_v8 = vld [vmem:[%s14213_s1 + $0x80c] sm:$0xf]  ;;  %v9058_v26 = vld [vmem:[%s14213_s1 + $0x818] sm:$0xf0] }
 0xeb4   :  { %5702 = vmatmul.bf16.vlgmr.msrb.gmra.mxu2 %v9041_v30  ;;  %v9982_v30 = vld [vmem:[%s14213_s1 + $0x82c] sm:$0xf] }
 0xeb5   :  { %6024 = vmatpush.bf16.msra.mxu3 %v14275_v62  ;;  %v9973_v62 = vld [vmem:[%s14213_s1 + $0x7e4] sm:$0xf] }
 0xeb7   :  { %v5424_v59 = vpop.f32.mrf.mxu2  ;;  %5646 = vmatmul.bf16.gmra.mxu0 %v9065_v0 }
 0xeb8   :  { %v5425_v12 = vadd.f32 %v5424_v59, %v5392_v16  ;;  %v9089_v16 = vor.u32 %v9988_v29, %v9088_v20  ;;  %v9985_v59 = vld [vmem:[%s14213_s1 + $0x844] sm:$0xf] }
 0xeb9   :  { %6025 = vmatpush.bf16.msra.mxu3 %v14276_v6  ;;  %v9034_v6 = vld [vmem:[%s14213_s1 + $0x7f0] sm:$0xf0] }
 0xeba   :  { %v5438_v21 = vpack.c.bf16 %v5425_v12, %v5423_v43  ;;  %v9037_v19 = vor.u32 %v9973_v62, %v9034_v6  ;;  %v9082_v43 = vld [vmem:[%s14213_s1 + $0x850] sm:$0xf0]  ;;  %v9081_v12 = vor.u32 %v9987_v33, %v9080_v56  ;;  %v9061_v62 = vor.u32 %v9978_v8, %v9058_v26  ;;  %v9074_v6 = vld [vmem:[%s14213_s1 + $0x838] sm:$0xf0] }
 0xebb   :  { %v9077_v49 = vor.u32 %v9982_v30, %v9074_v6 }
 0xebc   :  { %9009 = vmatmul.msk.bf16.gmra.mxu3 %vm1518_vm0, %v5438_v21  ;;  %5669 = vmatmul.bf16.vlgmr.msrb.gmra.mxu1 %v9037_v19  ;;  %v9085_v21 = vor.u32 %v9985_v59, %v9082_v43  ;;  %v9029_v19 = vld [vmem:[%s14213_s1 + $0x868] sm:$0xff] }
 0xebf   :  { %v5427_v57 = vpop.f32.mrf.mxu2 }
 0xec0   :  { %v5428_v17 = vadd.f32 %v5427_v57, %v5395_v5  ;;  %v5586_v57 = vunpack.c.l.b16 %v9029_v19  ;;  %v9028_v5 = vld [vmem:[%s14213_s1 + $0x860] sm:$0xff] }
 0xec2   :  { %v5606_v25 = vpack.c.b16 %v5586_v57, %v5586_v57 }
 0xec4   :  { %5707 = vmatmul.bf16.gmra.mxu2 %v9057_v39  ;;  %v5587_v39 = vunpack.c.h.b16 %v9029_v19 }
 0xec6   :  { %v5607_v63 = vpack.c.b16 %v5587_v39, %v5587_v39 }
 0xec7   :  { %v5429_v31 = vpop.f32.mrf.mxu2  ;;  %5651 = vmatmul.bf16.gmra.mxu0 %v9081_v12 }
 0xec8   :  { %v5430_v1 = vadd.f32 %v5429_v31, %v5397_v52  ;;  %v5584_v52 = vunpack.c.l.b16 %v9028_v5  ;;  %v5585_v31 = vunpack.c.h.b16 %v9028_v5 }
 0xeca   :  { %v5439_v28 = vpack.c.bf16 %v5430_v1, %v5428_v17  ;;  %v5604_v17 = vpack.c.b16 %v5584_v52, %v5584_v52  ;;  %v5605_v1 = vpack.c.b16 %v5585_v31, %v5585_v31 }
 0xecc   :  { %9010 = vmatmul.msk.bf16.gmra.mxu3 %vm1518_vm0, %v5439_v28  ;;  %5674 = vmatmul.bf16.gmra.mxu1 %v9053_v11  ;;  %v9986_v28 = vld [vmem:[%s14213_s1 + $0x84c] sm:$0xf] }
 0xecd   :  { %v9093_v58 = vor.u32 %v9986_v28, %v9090_v44 }
 0xecf   :  { %v5432_v15 = vpop.f32.mrf.mxu2 }
 0xed0   :  { %v5433_v10 = vadd.f32 %v5432_v15, %v5400_v42 }
 0xed2   :  { %v5440_v36 = vpack.c.bf16 %v5433_v10, %v5433_v10  ;;  %v5637_v10 = vpop.f32.mrf.mxu0 }
 0xed4   :  { %5712 = vmatmul.bf16.gmra.mxu2 %v9073_v13 }
 0xed7   :  { %v5434_v47 = vpop.f32.mrf.mxu2  ;;  %5656 = vmatmul.bf16.gmra.mxu0 %v5604_v17 }
 0xeda   :  { %v5639_v35 = vpop.f32.mrf.mxu0 }
 0xedc   :  { %9011 = vmatmul.msk.bf16.gmra.mxu3 %vm1518_vm0, %v5440_v36  ;;  %5679 = vmatmul.bf16.gmra.mxu1 %v9069_v51 }
 0xee4   :  { %5717 = vmatmul.bf16.gmra.mxu2 %v9089_v16 }
 0xeec   :  { %5735 = vmatmul.bf16.vlgmr.msrb.gmra.mxu3 %v9045_v14  ;;  %5684 = vmatmul.bf16.gmra.mxu1 %v9085_v21 }
 0xef4   :  { %5722 = vmatmul.bf16.gmra.mxu2 %v5606_v25 }
 0xefc   :  { %5740 = vmatmul.bf16.gmra.mxu3 %v9061_v62  ;;  %5689 = vmatmul.bf16.gmra.mxu1 %v5605_v1 }
 0xf0c   :  { %5745 = vmatmul.bf16.gmra.mxu3 %v9077_v49 }
 0xf1c   :  { %5750 = vmatmul.bf16.gmra.mxu3 %v9093_v58 }
 0xf1f   :  { %v5482_v60 = vpop.f32.mrf.mxu3 }
 0xf20   :  { %v13598_v41 = vadd.f32 %v5482_v60, %v13466_v23 }
 0xf27   :  { %v13600_v34 = vpop.f32.mrf.mxu3 }
 0xf2c   :  { %5755 = vmatmul.bf16.gmra.mxu3 %v5607_v63 }
 0xf2f   :  { %v5487_v54 = vpop.f32.mrf.mxu3 }
 0xf30   :  { %v13603_v40 = vadd.f32 %v5487_v54, %v13471_v53  ;;  %v5642_v53 = vpop.f32.mrf.mxu0 }
 0xf37   :  { %v13605_v11 = vpop.f32.mrf.mxu3  ;;  %v5703_v36 = vpop.f32.mrf.mxu2 }
 0xf38   :  { %v5644_v51 = vpop.f32.mrf.mxu0 }
 0xf39   :  { %v5670_v47 = vpop.f32.mrf.mxu1 }
 0xf3a   :  { %v5671_v59 = vadd.f32 %v5670_v47, %v5637_v10 }
 0xf3c   :  { %v5704_v8 = vadd.f32 %v5703_v36, %v5671_v59  ;;  %v9131_v59 = vld [vmem:[%s14213_s1 + $0x870] sm:$0xf] }
 0xf3f   :  { %v5492_v15 = vpop.f32.mrf.mxu3  ;;  %v5705_v61 = vpop.f32.mrf.mxu2 }
 0xf40   :  { %v13608_v42 = vadd.f32 %v5492_v15, %v13476_v27  ;;  %v5647_v20 = vpop.f32.mrf.mxu0 }
 0xf41   :  { %v5672_v38 = vpop.f32.mrf.mxu1 }
 0xf42   :  { %v5673_v12 = vadd.f32 %v5672_v38, %v5639_v35 }
 0xf44   :  { %v5706_v26 = vadd.f32 %v5705_v61, %v5673_v12 }
 0xf47   :  { %v13610_v23 = vpop.f32.mrf.mxu3  ;;  %v5708_v32 = vpop.f32.mrf.mxu2 }
 0xf49   :  { %v5675_v4 = vpop.f32.mrf.mxu1 }
 0xf4a   :  { %v5676_v5 = vadd.f32 %v5675_v4, %v5642_v53 }
 0xf4c   :  { %v5709_v31 = vadd.f32 %v5708_v32, %v5676_v5 }
 0xf4f   :  { %v5497_v13 = vpop.f32.mrf.mxu3  ;;  %v5710_v55 = vpop.f32.mrf.mxu2 }
 0xf50   :  { %v13613_v50 = vadd.f32 %v5497_v13, %v13481_v37  ;;  %v5649_v37 = vpop.f32.mrf.mxu0 }
 0xf51   :  { %v5677_v27 = vpop.f32.mrf.mxu1 }
 0xf52   :  { %v5678_v52 = vadd.f32 %v5677_v27, %v5644_v51  ;;  %v9991_v51 = vld [vmem:[%s14213_s1 + $0x874] sm:$0xf]  ;;  %v9133_v27 = vld [vmem:[%s14213_s1 + $0x880] sm:$0xf0] }
 0xf54   :  { %v5711_v28 = vadd.f32 %v5710_v55, %v5678_v52 }
 0xf57   :  { %v13615_v0 = vpop.f32.mrf.mxu3  ;;  %v5713_v16 = vpop.f32.mrf.mxu2 }
 0xf58   :  { %v5652_v57 = vpop.f32.mrf.mxu0 }
 0xf59   :  { %v5680_v29 = vpop.f32.mrf.mxu1 }
 0xf5a   :  { %v5681_v36 = vadd.f32 %v5680_v29, %v5647_v20  ;;  %v9139_v20 = vld [vmem:[%s14213_s1 + $0x878] sm:$0xf]  ;;  %v9994_v29 = vld [vmem:[%s14213_s1 + $0x884] sm:$0xf0] }
 0xf5c   :  { %v5714_v38 = vadd.f32 %v5713_v16, %v5681_v36  ;;  %v9140_v16 = vor.u32 %v9994_v29, %v9139_v20  ;;  %v10002_v36 = vld [vmem:[%s14213_s1 + $0x8c4] sm:$0xf0]  ;;  %v9179_v29 = vld [vmem:[%s14213_s1 + $0x8d0] sm:$0xf] }
 0xf5e   :  { %6026 = vmatmul.bf16.vlgmr.msra.gmra.mxu3 %v9140_v16  ;;  %v10005_v16 = vld [vmem:[%s14213_s1 + $0x8dc] sm:$0xf0] }
 0xf5f   :  { %v5502_v9 = vpop.f32.mrf.mxu3  ;;  %v5715_v21 = vpop.f32.mrf.mxu2 }
 0xf60   :  { %v13618_v14 = vadd.f32 %v5502_v9, %v13486_v7  ;;  %v5654_v17 = vpop.f32.mrf.mxu0 }
 0xf61   :  { %v5682_v43 = vpop.f32.mrf.mxu1 }
 0xf62   :  { %v5683_v35 = vadd.f32 %v5682_v43, %v5649_v37  ;;  %v9993_v37 = vld [vmem:[%s14213_s1 + $0x87c] sm:$0xf0] }
 0xf63   :  { %v9132_v43 = vor.u32 %v9993_v37, %v9131_v59  ;;  %v9180_v59 = vor.u32 %v10005_v16, %v9179_v29  ;;  %v9996_v37 = vld [vmem:[%s14213_s1 + $0x89c] sm:$0xf] }
 0xf64   :  { %v5716_v53 = vadd.f32 %v5715_v21, %v5683_v35 }
 0xf65   :  { %5960 = vmatmul.bf16.vlgmr.msra.gmra.mxu1 %v9132_v43  ;;  %v9157_v43 = vld [vmem:[%s14213_s1 + $0x8a8] sm:$0xf0] }
 0xf67   :  { %v5504_v56 = vpop.f32.mrf.mxu3  ;;  %v5718_v7 = vpop.f32.mrf.mxu2 }
 0xf68   :  { %v5657_v54 = vpop.f32.mrf.mxu0  ;;  %v9136_v56 = vor.u32 %v9991_v51, %v9133_v27  ;;  %v9992_v51 = vld [vmem:[%s14213_s1 + $0x87c] sm:$0xf]  ;;  %v9141_v27 = vld [vmem:[%s14213_s1 + $0x888] sm:$0xf0] }
 0xf69   :  { %v5685_v49 = vpop.f32.mrf.mxu1 }
 0xf6a   :  { %5993 = vmatmul.bf16.vlgmr.msra.gmra.mxu2 %v9136_v56  ;;  %v5686_v21 = vadd.f32 %v5685_v49, %v5652_v57  ;;  %v9998_v57 = vld [vmem:[%s14213_s1 + $0x8a4] sm:$0xf0] }
 0xf6b   :  { %v10006_v56 = vld [vmem:[%s14213_s1 + $0x8e4] sm:$0xf0] }
 0xf6f   :  { %v5736_v33 = vpop.f32.mrf.mxu3  ;;  %v5720_v44 = vpop.f32.mrf.mxu2 }
 0xf70   :  { %v5737_v30 = vadd.f32 %v5736_v33, %v5704_v8  ;;  %v5659_v61 = vpop.f32.mrf.mxu0 }
 0xf71   :  { %v5687_v1 = vpop.f32.mrf.mxu1  ;;  %v9163_v61 = vld [vmem:[%s14213_s1 + $0x8b0] sm:$0xf] }
 0xf72   :  { %v5688_v8 = vadd.f32 %v5687_v1, %v5654_v17 }
 0xf77   :  { %v5738_v62 = vpop.f32.mrf.mxu3  ;;  %v5723_v10 = vpop.f32.mrf.mxu2 }
 0xf78   :  { %v5739_v6 = vadd.f32 %v5738_v62, %v5706_v26  ;;  %v9995_v26 = vld [vmem:[%s14213_s1 + $0x894] sm:$0xf]  ;;  %v9149_v62 = vld [vmem:[%s14213_s1 + $0x8a0] sm:$0xf0] }
 0xf79   :  { %v5690_v15 = vpop.f32.mrf.mxu1 }
 0xf7a   :  { %v5760_v19 = vpack.c.bf16 %v5739_v6, %v5737_v30  ;;  %v5719_v30 = vadd.f32 %v5718_v7, %v5686_v21  ;;  %v5721_v6 = vadd.f32 %v5720_v44, %v5688_v8  ;;  %v5691_v1 = vadd.f32 %v5690_v15, %v5657_v54  ;;  %v9147_v7 = vld [vmem:[%s14213_s1 + $0x890] sm:$0xf] }
 0xf7b   :  { %v9127_v21 = vld [vmem:[%s14213_s1 + $0x8f0] sm:$0xff] }
 0xf7c   :  { %9106 = vmatmul.msk.bf16.vlgmr.msra.gmra.mxu0 %vm1518_vm0, %v5760_v19  ;;  %v9152_v19 = vor.u32 %v9995_v26, %v9149_v62  ;;  %v5909_v8 = vunpack.c.h.b16 %v9127_v21  ;;  %v9128_v26 = vld [vmem:[%s14213_s1 + $0x8f8] sm:$0xff] }
 0xf7e   :  { %5998 = vmatmul.bf16.gmra.mxu2 %v9152_v19  ;;  %v5929_v62 = vpack.c.b16 %v5909_v8, %v5909_v8 }
 0xf7f   :  { %v5741_v25 = vpop.f32.mrf.mxu3  ;;  %v5725_v4 = vpop.f32.mrf.mxu2 }
 0xf80   :  { %v5742_v60 = vadd.f32 %v5741_v25, %v5709_v31  ;;  %v9155_v25 = vld [vmem:[%s14213_s1 + $0x898] sm:$0xf]  ;;  %v10003_v4 = vld [vmem:[%s14213_s1 + $0x8d4] sm:$0xf] }
 0xf81   :  { %v5692_v13 = vpop.f32.mrf.mxu1  ;;  %v9156_v31 = vor.u32 %v9998_v57, %v9155_v25  ;;  %v10000_v57 = vld [vmem:[%s14213_s1 + $0x8bc] sm:$0xf] }
 0xf82   :  { %v10001_v13 = vld [vmem:[%s14213_s1 + $0x8bc] sm:$0xf0] }
 0xf83   :  { %6031 = vmatmul.bf16.gmra.mxu3 %v9156_v31  ;;  %v9189_v31 = vld [vmem:[%s14213_s1 + $0x8e8] sm:$0xf0] }
 0xf87   :  { %v5743_v58 = vpop.f32.mrf.mxu3 }
 0xf88   :  { %v5744_v39 = vadd.f32 %v5743_v58, %v5711_v28  ;;  %v9997_v28 = vld [vmem:[%s14213_s1 + $0x89c] sm:$0xf0] }
 0xf89   :  { %v9148_v44 = vor.u32 %v9997_v28, %v9147_v7 }
 0xf8a   :  { %v5761_v63 = vpack.c.bf16 %v5744_v39, %v5742_v60  ;;  %v5724_v60 = vadd.f32 %v5723_v10, %v5691_v1  ;;  %v9999_v39 = vld [vmem:[%s14213_s1 + $0x8b4] sm:$0xf] }
 0xf8b   :  { %5965 = vmatmul.bf16.gmra.mxu1 %v9148_v44  ;;  %v5911_v44 = vunpack.c.h.b16 %v9128_v26 }
 0xf8c   :  { %9107 = vmatmul.msk.bf16.gmra.mxu0 %vm1518_vm0, %v5761_v63  ;;  %v9165_v63 = vld [vmem:[%s14213_s1 + $0x8c0] sm:$0xf0] }
 0xf8d   :  { %v9168_v15 = vor.u32 %v9999_v39, %v9165_v63 }
 0xf8f   :  { %v5746_v47 = vpop.f32.mrf.mxu3  ;;  %6003 = vmatmul.bf16.gmra.mxu2 %v9168_v15 }
 0xf90   :  { %v5747_v55 = vadd.f32 %v5746_v47, %v5714_v38  ;;  %v9171_v47 = vld [vmem:[%s14213_s1 + $0x8b8] sm:$0xf] }
 0xf91   :  { %v9172_v38 = vor.u32 %v10002_v36, %v9171_v47 }
 0xf93   :  { %6036 = vmatmul.bf16.gmra.mxu3 %v9172_v38 }
 0xf97   :  { %v5748_v32 = vpop.f32.mrf.mxu3 }
 0xf98   :  { %v5749_v9 = vadd.f32 %v5748_v32, %v5716_v53  ;;  %v9164_v53 = vor.u32 %v10001_v13, %v9163_v61  ;;  %v9181_v32 = vld [vmem:[%s14213_s1 + $0x8e0] sm:$0xf0] }
 0xf9a   :  { %v5762_v33 = vpack.c.bf16 %v5749_v9, %v5747_v55  ;;  %v9184_v55 = vor.u32 %v10003_v4, %v9181_v32  ;;  %v9187_v9 = vld [vmem:[%s14213_s1 + $0x8d8] sm:$0xf] }
 0xf9b   :  { %5970 = vmatmul.bf16.gmra.mxu1 %v9164_v53  ;;  %v9188_v20 = vor.u32 %v10006_v56, %v9187_v9 }
 0xf9c   :  { %9108 = vmatmul.msk.bf16.gmra.mxu0 %vm1518_vm0, %v5762_v33  ;;  %v9144_v33 = vor.u32 %v9992_v51, %v9141_v27  ;;  %v10007_v27 = vld [vmem:[%s14214_s6 + $0xf0] sm:$0xff] }
 0xf9f   :  { %v5751_v12 = vpop.f32.mrf.mxu3  ;;  %6008 = vmatmul.bf16.gmra.mxu2 %v9184_v55 }
 0xfa0   :  { %v5752_v5 = vadd.f32 %v5751_v12, %v5719_v30  ;;  %v9160_v12 = vor.u32 %v9996_v37, %v9157_v43  ;;  %v5910_v30 = vunpack.c.l.b16 %v9128_v26 }
 0xfa2   :  { %v5930_v19 = vpack.c.b16 %v5910_v30, %v5910_v30 }
 0xfa3   :  { %6041 = vmatmul.bf16.gmra.mxu3 %v9188_v20 }
 0xfa7   :  { %v5753_v49 = vpop.f32.mrf.mxu3 }
 0xfa8   :  { %v5754_v52 = vadd.f32 %v5753_v49, %v5721_v6  ;;  %v5908_v6 = vunpack.c.l.b16 %v9127_v21  ;;  %v9173_v49 = vld [vmem:[%s14213_s1 + $0x8c8] sm:$0xf0] }
 0xfaa   :  { %v5763_v17 = vpack.c.bf16 %v5754_v52, %v5752_v5  ;;  %v5928_v25 = vpack.c.b16 %v5908_v6, %v5908_v6  ;;  %v9176_v5 = vor.u32 %v10000_v57, %v9173_v49  ;;  %v10004_v52 = vld [vmem:[%s14213_s1 + $0x8dc] sm:$0xf] }
 0xfab   :  { %5975 = vmatmul.bf16.gmra.mxu1 %v9180_v59 }
 0xfac   :  { %9109 = vmatmul.msk.bf16.gmra.mxu0 %vm1518_vm0, %v5763_v17  ;;  %v9192_v17 = vor.u32 %v10004_v52, %v9189_v31 }
 0xfaf   :  { %v5756_v58 = vpop.f32.mrf.mxu3  ;;  %6013 = vmatmul.bf16.gmra.mxu2 %v5929_v62 }
 0xfb0   :  { %v5757_v54 = vadd.f32 %v5756_v58, %v5724_v60  ;;  %v5931_v58 = vpack.c.b16 %v5911_v44, %v5911_v44 }
 0xfb2   :  { %v5764_v10 = vpack.c.bf16 %v5757_v54, %v5757_v54 }
 0xfb3   :  { %6046 = vmatmul.bf16.gmra.mxu3 %v5930_v19 }
 0xfb7   :  { %v5758_v35 = vpop.f32.mrf.mxu3 }
 0xfbb   :  { %5980 = vmatmul.bf16.gmra.mxu1 %v5928_v25 }
 0xfbc   :  { %9110 = vmatmul.msk.bf16.gmra.mxu0 %vm1518_vm0, %v5764_v10  ;;  %v10008_v10 = vld [vmem:[%s14214_s6 + $0xf8] sm:$0xff] }
 0xfbd   :  { %6127 = vmatpush.bf16.msrb.mxu1 %v10008_v10 }
 0xfc1   :  { %6128 = vmatpush.bf16.msrb.mxu1 %v10007_v27 }
 0xfcc   :  { %6059 = vmatmul.bf16.vlgmr.msrb.gmra.mxu0 %v9144_v33 }
 0xfdc   :  { %6064 = vmatmul.bf16.gmra.mxu0 %v9160_v12 }
 0xfe2   :  { %v5961_v47 = vpop.f32.mrf.mxu1 }
 0xfea   :  { %v5963_v38 = vpop.f32.mrf.mxu1 }
 0xfec   :  { %6069 = vmatmul.bf16.gmra.mxu0 %v9176_v5 }
 0xfed   :  { %v5994_v36 = vpop.f32.mrf.mxu2 }
 0xfee   :  { %v5995_v12 = vadd.f32 %v5994_v36, %v5961_v47 }
 0xff9   :  { %v5806_v1 = vpop.f32.mrf.mxu0 }
 0xffa   :  { %v13728_v7 = vadd.f32 %v5806_v1, %v13598_v41  ;;  %v6027_v41 = vpop.f32.mrf.mxu3 }
 0xffb   :  { %v6028_v62 = vadd.f32 %v6027_v41, %v5995_v12 }
 0xffc   :  { %6074 = vmatmul.bf16.gmra.mxu0 %v9192_v17 }
0x1001   :  { %v13730_v28 = vpop.f32.mrf.mxu0 }
0x1002   :  { %v6029_v61 = vpop.f32.mrf.mxu3 }
0x1008   :  { %v5966_v4 = vpop.f32.mrf.mxu1 }
0x1009   :  { %v5811_v60 = vpop.f32.mrf.mxu0 }
0x100a   :  { %v13733_v39 = vadd.f32 %v5811_v60, %v13603_v40  ;;  %v5996_v40 = vpop.f32.mrf.mxu2  ;;  %v6032_v32 = vpop.f32.mrf.mxu3 }
0x100b   :  { %v5997_v8 = vadd.f32 %v5996_v40, %v5963_v38 }
0x100c   :  { %6079 = vmatmul.bf16.gmra.mxu0 %v5931_v58 }
0x100d   :  { %v6030_v30 = vadd.f32 %v6029_v61, %v5997_v8 }
0x1010   :  { %v5968_v55 = vpop.f32.mrf.mxu1 }
0x1011   :  { %v13735_v63 = vpop.f32.mrf.mxu0 }
0x1012   :  { %v6034_v56 = vpop.f32.mrf.mxu3 }
0x1018   :  { %v5971_v29 = vpop.f32.mrf.mxu1 }
0x1019   :  { %v5816_v54 = vpop.f32.mrf.mxu0 }
0x101a   :  { %v13738_v15 = vadd.f32 %v5816_v54, %v13608_v42  ;;  %v5999_v42 = vpop.f32.mrf.mxu2  ;;  %v6037_v59 = vpop.f32.mrf.mxu3 }
0x101b   :  { %v6000_v31 = vadd.f32 %v5999_v42, %v5966_v4 }
0x101d   :  { %v6033_v44 = vadd.f32 %v6032_v32, %v6000_v31 }
0x1020   :  { %v5973_v37 = vpop.f32.mrf.mxu1 }
0x1021   :  { %v13740_v35 = vpop.f32.mrf.mxu0 }
0x1022   :  { %v6001_v9 = vpop.f32.mrf.mxu2  ;;  %v6039_v26 = vpop.f32.mrf.mxu3 }
0x1023   :  { %v6002_v17 = vadd.f32 %v6001_v9, %v5968_v55 }
0x1025   :  { %v6035_v60 = vadd.f32 %v6034_v56, %v6002_v17 }
0x1028   :  { %v5976_v57 = vpop.f32.mrf.mxu1 }
0x1029   :  { %v5821_v13 = vpop.f32.mrf.mxu0 }
0x102a   :  { %v13746_v53 = vadd.f32 %v5821_v13, %v13613_v50  ;;  %v6004_v50 = vpop.f32.mrf.mxu2 }
0x102b   :  { %v6005_v27 = vadd.f32 %v6004_v50, %v5971_v29 }
0x102d   :  { %v6038_v4 = vadd.f32 %v6037_v59, %v6005_v27 }
0x1030   :  { %v5978_v1 = vpop.f32.mrf.mxu1 }
0x1031   :  { %v13748_v51 = vpop.f32.mrf.mxu0 }
0x1032   :  { %v6006_v21 = vpop.f32.mrf.mxu2 }
0x1038   :  { %v5981_v38 = vpop.f32.mrf.mxu1 }
0x1039   :  { %v5826_v33 = vpop.f32.mrf.mxu0 }
0x103a   :  { %v13754_v20 = vadd.f32 %v5826_v33, %v13618_v14  ;;  %v6009_v5 = vpop.f32.mrf.mxu2  ;;  %v6042_v14 = vpop.f32.mrf.mxu3  ;;  %v6007_v33 = vadd.f32 %v6006_v21, %v5973_v37 }
0x103c   :  { %v6040_v55 = vadd.f32 %v6039_v26, %v6007_v33 }
0x1041   :  { %v5828_v16 = vpop.f32.mrf.mxu0 }
0x1042   :  { %v6011_v58 = vpop.f32.mrf.mxu2  ;;  %v6044_v54 = vpop.f32.mrf.mxu3 }
0x1043   :  { %v5983_v16 = vpop.f32.mrf.mxu1 }
0x1049   :  { %v6060_v43 = vpop.f32.mrf.mxu0 }
0x104a   :  { %v6061_v19 = vadd.f32 %v6060_v43, %v6028_v62  ;;  %v6014_v40 = vpop.f32.mrf.mxu2  ;;  %v6047_v61 = vpop.f32.mrf.mxu3  ;;  %v6010_v62 = vadd.f32 %v6009_v5, %v5976_v57 }
0x104b   :  { %v6015_v37 = vadd.f32 %v6014_v40, %v5981_v38 }
0x104d   :  { %v6048_v21 = vadd.f32 %v6047_v61, %v6015_v37 }
0x1051   :  { %v6062_v6 = vpop.f32.mrf.mxu0 }
0x1052   :  { %v6063_v25 = vadd.f32 %v6062_v6, %v6030_v30  ;;  %v6016_v42 = vpop.f32.mrf.mxu2  ;;  %v6049_v32 = vpop.f32.mrf.mxu3  ;;  %v6012_v30 = vadd.f32 %v6011_v58, %v5978_v1  ;;  %v6043_v6 = vadd.f32 %v6042_v14, %v6010_v62  ;;  %v10094_v58 = vld [vmem:[%s14215_s7] ss:$0 sm:$0xff] }
0x1054   :  { %v6084_v49 = vpack.c.bf16 %v6063_v25, %v6061_v19  ;;  %v6045_v19 = vadd.f32 %v6044_v54, %v6012_v30 }
0x1056   :  { %9205 = vmatmul.msk.bf16.vlgmr.msrb.gmra.mxu1 %vm1518_vm0, %v6084_v49 }
0x1059   :  { %v6065_v52 = vpop.f32.mrf.mxu0 }
0x105a   :  { %v6066_v36 = vadd.f32 %v6065_v52, %v6033_v44  ;;  %v14419_v44 = vld [vmem:[#allocation13_spill] sm:$0xff] }
0x105b   :  { %v4859_v57 = vadd.f32 %v13345_v18, %v14419_v44 }
0x105d   :  { %v5183_v14 = vadd.f32 %v13468_v24, %v4859_v57  ;;  %v9211_v57 = vld [vmem:[%s14217_s2 + $0x4] sm:$0xf] }
0x105f   :  { %v5507_v1 = vadd.f32 %v13600_v34, %v5183_v14  ;;  %v10015_v14 = vld [vmem:[%s14216_s8 + $0x30] sm:$0xff] }
0x1061   :  { %v6067_v47 = vpop.f32.mrf.mxu0 }
0x1062   :  { %v6068_v41 = vadd.f32 %v6067_v47, %v6035_v60  ;;  %v5831_v60 = vadd.f32 %v13730_v28, %v5507_v1  ;;  %v10014_v1 = vld [vmem:[%s14216_s8 + $0x28] sm:$0xff] }
0x1064   :  { %v6085_v10 = vpack.c.bf16 %v6068_v41, %v6066_v36 }
0x1066   :  { %9206 = vmatmul.msk.bf16.gmra.mxu1 %vm1518_vm0, %v6085_v10 }
0x1069   :  { %v6070_v13 = vpop.f32.mrf.mxu0 }
0x106a   :  { %v6071_v56 = vadd.f32 %v6070_v13, %v6038_v4 }
0x1071   :  { %v6072_v9 = vpop.f32.mrf.mxu0 }
0x1072   :  { %v6073_v43 = vadd.f32 %v6072_v9, %v6040_v55 }
0x1074   :  { %v6086_v12 = vpack.c.bf16 %v6073_v43, %v6071_v56  ;;  %v14421_v56 = vld [vmem:[#allocation15_spill] sm:$0xff] }
0x1076   :  { %9207 = vmatmul.msk.bf16.gmra.mxu1 %vm1518_vm0, %v6086_v12 }
0x1079   :  { %v6075_v8 = vpop.f32.mrf.mxu0 }
0x107a   :  { %v6076_v49 = vadd.f32 %v6075_v8, %v6043_v6 }
0x1081   :  { %v6077_v25 = vpop.f32.mrf.mxu0 }
0x1082   :  { %v6078_v29 = vadd.f32 %v6077_v25, %v6045_v19 }
0x1084   :  { %v6087_v50 = vpack.c.bf16 %v6078_v29, %v6076_v49  ;;  %v14422_v49 = vld [vmem:[#allocation12_spill] sm:$0xff] }
0x1086   :  { %9208 = vmatmul.msk.bf16.gmra.mxu1 %vm1518_vm0, %v6087_v50 }
0x1089   :  { %v6080_v59 = vpop.f32.mrf.mxu0 }
0x108a   :  { %v6081_v26 = vadd.f32 %v6080_v59, %v6048_v21 }
0x108c   :  { %v6088_v31 = vpack.c.bf16 %v6081_v26, %v6081_v26 }
0x1091   :  { %v6082_v52 = vpop.f32.mrf.mxu0 }
0x1096   :  { %9209 = vmatmul.msk.bf16.gmra.mxu1 %vm1518_vm0, %v6088_v31 }
0x10d3   :  { %v6130_v17 = vpop.f32.mrf.mxu1 }
0x10d4   :  { %v6154_v5 = vadd.f32 %v6130_v17, %v13728_v7  ;;  %v14420_v7 = vld [vmem:[#allocation14_spill] sm:$0xff] }
0x10d5   :  { %v4861_v24 = vadd.f32 %v13351_v22, %v14420_v7  ;;  %v4863_v22 = vadd.f32 %v13364_v2, %v14421_v56  ;;  %v4865_v2 = vadd.f32 %v13373_v3, %v14422_v49  ;;  %v10018_v7 = vld [vmem:[%s14216_s8 + $0x48] sm:$0xff] }
0x10d6   :  { %v6167_v47 = vadd.f32 %v10094_v58, %v6154_v5  ;;  %v9255_v5 = vld [vmem:[%s14217_s2 + $0x8] sm:$0xf]  ;;  %v9282_v49 = vld [vmem:[%s14217_s2 + $0xc] sm:$0xf] }
0x10d7   :  { %v5185_v34 = vadd.f32 %v13473_v45, %v4861_v24  ;;  %v5187_v45 = vadd.f32 %v13478_v48, %v4863_v22  ;;  %v5189_v48 = vadd.f32 %v13483_v46, %v4865_v2  ;;  %v10010_v24 = vld [vmem:[%s14216_s8 + $0x8] sm:$0xff] }
0x10d8   :  { %v6176_v10 = vmax.f32 %v6167_v47, 0.0  ;;  %v10012_v47 = vld [vmem:[%s14216_s8 + $0x18] sm:$0xff] }
0x10d9   :  { %v5509_v61 = vadd.f32 %v13605_v11, %v5185_v34  ;;  %v5511_v11 = vadd.f32 %v13610_v23, %v5187_v45  ;;  %v5513_v23 = vadd.f32 %v13615_v0, %v5189_v48  ;;  %v10033_v34 = vld [vmem:[%s14216_s8 + $0xc0] sm:$0xff] }
0x10db   :  { %v6132_v54 = vpop.f32.mrf.mxu1  ;;  %v5833_v28 = vadd.f32 %v13735_v63, %v5509_v61  ;;  %v5835_v63 = vadd.f32 %v13740_v35, %v5511_v11  ;;  %v5837_v35 = vadd.f32 %v13748_v51, %v5513_v23  ;;  %v10016_v51 = vld [vmem:[%s14216_s8 + $0x38] sm:$0xff]  ;;  %v10017_v61 = vld [vmem:[%s14216_s8 + $0x40] sm:$0xff] }
0x10dc   :  { %v6155_v36 = vadd.f32 %v6132_v54, %v5831_v60  ;;  %v10036_v60 = vld [vmem:[%s14216_s8 + $0xd8] sm:$0xff] }
0x10dd   :  { %v10020_v54 = vld [vmem:[%s14216_s8 + $0x58] sm:$0xff] }
0x10de   :  { %v6168_v41 = vadd.f32 %v10094_v58, %v6155_v36  ;;  %v9309_v36 = vld [vmem:[%s14217_s2 + $0x10] sm:$0xf]  ;;  %6389 = vmatpush.bf16.msra.mxu1 %v10020_v54 }
0x10e0   :  { %v6177_v38 = vmax.f32 %v6168_v41, 0.0  ;;  %v10035_v41 = vld [vmem:[%s14216_s8 + $0xd0] sm:$0xff] }
0x10e2   :  { %v13770_v40 = vpack.c.bf16 %v6177_v38, %v6176_v10  ;;  %v10019_v10 = vld [vmem:[%s14216_s8 + $0x50] sm:$0xff] }
0x10e3   :  { %v6135_v18 = vpop.f32.mrf.mxu1  ;;  %v10011_v38 = vld [vmem:[%s14216_s8 + $0x10] sm:$0xff]  ;;  %6390 = vmatpush.bf16.msra.mxu1 %v10019_v10 }
0x10e4   :  { %v6156_v13 = vadd.f32 %v6135_v18, %v13733_v39  ;;  %v10034_v18 = vld [vmem:[%s14216_s8 + $0xc8] sm:$0xff]  ;;  %v10043_v10 = vld [vmem:[%s14216_s8 + $0x110] sm:$0xff] }
0x10e6   :  { %v6169_v33 = vadd.f32 %v10094_v58, %v6156_v13  ;;  %v10028_v13 = vld [vmem:[%s14216_s8 + $0x98] sm:$0xff] }
0x10e7   :  { %6391 = vmatpush.bf16.msra.mxu1 %v10018_v7  ;;  %v10042_v7 = vld [vmem:[%s14216_s8 + $0x108] sm:$0xff] }
0x10e8   :  { %v6178_v42 = vmax.f32 %v6169_v33, 0.0  ;;  %v10027_v33 = vld [vmem:[%s14216_s8 + $0x90] sm:$0xff] }
0x10eb   :  { %v6137_v27 = vpop.f32.mrf.mxu1  ;;  %6392 = vmatpush.bf16.msra.mxu1 %v10017_v61 }
0x10ec   :  { %v6157_v16 = vadd.f32 %v6137_v27, %v5833_v28  ;;  %v10009_v28 = vld [vmem:[%s14216_s8] sm:$0xff]  ;;  %v10024_v27 = vld [vmem:[%s14216_s8 + $0x78] sm:$0xff] }
0x10ee   :  { %v6170_v4 = vadd.f32 %v10094_v58, %v6157_v16  ;;  %v10026_v16 = vld [vmem:[%s14216_s8 + $0x88] sm:$0xff] }
0x10ef   :  { %6527 = vmatpush.bf16.msrb.mxu1 %v10028_v13 }
0x10f0   :  { %v6179_v55 = vmax.f32 %v6170_v4, 0.0  ;;  %v10023_v4 = vld [vmem:[%s14216_s8 + $0x70] sm:$0xff] }
0x10f2   :  { %v13778_v32 = vpack.c.bf16 %v6179_v55, %v6178_v42  ;;  %v10025_v42 = vld [vmem:[%s14216_s8 + $0x80] sm:$0xff]  ;;  %v10022_v55 = vld [vmem:[%s14216_s8 + $0x68] sm:$0xff] }
0x10f3   :  { %v6140_v9 = vpop.f32.mrf.mxu1  ;;  %6528 = vmatpush.bf16.msrb.mxu1 %v10027_v33 }
0x10f4   :  { %v6158_v39 = vadd.f32 %v6140_v9, %v13738_v15  ;;  %v10021_v9 = vld [vmem:[%s14216_s8 + $0x60] sm:$0xff] }
0x10f6   :  { %v6171_v12 = vadd.f32 %v10094_v58, %v6158_v39  ;;  %v10032_v39 = vld [vmem:[%s14216_s8 + $0xb8] sm:$0xff] }
0x10f7   :  { %6529 = vmatpush.bf16.msrb.mxu1 %v10026_v16 }
0x10f8   :  { %v6180_v30 = vmax.f32 %v6171_v12, 0.0 }
0x10fb   :  { %v6142_v43 = vpop.f32.mrf.mxu1  ;;  %6530 = vmatpush.bf16.msrb.mxu1 %v10025_v42 }
0x10fc   :  { %v6159_v8 = vadd.f32 %v6142_v43, %v5835_v63 }
0x10fe   :  { %v6172_v62 = vadd.f32 %v10094_v58, %v6159_v8  ;;  %v10031_v8 = vld [vmem:[%s14216_s8 + $0xb0] sm:$0xff] }
0x1100   :  { %v6181_v6 = vmax.f32 %v6172_v62, 0.0  ;;  %v10030_v62 = vld [vmem:[%s14216_s8 + $0xa8] sm:$0xff] }
0x1102   :  { %v13786_v19 = vpack.c.bf16 %v6181_v6, %v6180_v30 }
0x1103   :  { %v6145_v25 = vpop.f32.mrf.mxu1 }
0x1104   :  { %v6160_v15 = vadd.f32 %v6145_v25, %v13746_v53  ;;  %v10029_v25 = vld [vmem:[%s14216_s8 + $0xa0] sm:$0xff] }
0x1106   :  { %v6173_v50 = vadd.f32 %v10094_v58, %v6160_v15 }
0x1108   :  { %v6182_v21 = vmax.f32 %v6173_v50, 0.0 }
0x110b   :  { %v6147_v29 = vpop.f32.mrf.mxu1 }
0x110c   :  { %v6161_v37 = vadd.f32 %v6147_v29, %v5837_v35 }
0x110e   :  { %v6174_v59 = vadd.f32 %v10094_v58, %v6161_v37 }
0x1110   :  { %v6183_v26 = vmax.f32 %v6174_v59, 0.0  ;;  %v9363_v59 = vld [vmem:[%s14217_s2 + $0x18] sm:$0xf] }
0x1112   :  { %v13794_v52 = vpack.c.bf16 %v6183_v26, %v6182_v21 }
0x1113   :  { %v6150_v31 = vpop.f32.mrf.mxu1 }
0x1114   :  { %v6162_v17 = vadd.f32 %v6150_v31, %v13754_v20  ;;  %v6190_v20 = vld [vmem:[%s14217_s2] sm:$0xf]  ;;  %v9336_v31 = vld [vmem:[%s14217_s2 + $0x14] sm:$0xf] }
0x1116   :  { %v6175_v3 = vadd.f32 %v10094_v58, %v6162_v17  ;;  %v10013_v58 = vld [vmem:[%s14216_s8 + $0x20] sm:$0xff] }
0x1118   :  { %v6184_v44 = vmax.f32 %v6175_v3, 0.0 }
0x111a   :  { %v6189_v46 = vpack.c.bf16 %v6184_v44, %v6184_v44 }
0x111b   :  { %v6152_v0 = vpop.f32.mrf.mxu1 }
0x111c   :  { %v13798_v53 = vsel %vm6195_vm1, %v6189_v46, 0 }
0x111d   :  { %6202 = vmatpush.bf16.msrb.mxu2 %v13798_v53  ;;  %6229 = vmatpush.bf16.msrb.mxu3 %v13798_v53 }
0x111e   :  { %6338 = vmatpush.bf16.msra.mxu0 %v13798_v53 }
0x1121   :  { %6203 = vmatpush.bf16.msrb.mxu2 %v13794_v52  ;;  %6230 = vmatpush.bf16.msrb.mxu3 %v13794_v52 }
0x1122   :  { %6339 = vmatpush.bf16.msra.mxu0 %v13794_v52 }
0x1125   :  { %6204 = vmatpush.bf16.msrb.mxu2 %v13786_v19  ;;  %6231 = vmatpush.bf16.msrb.mxu3 %v13786_v19 }
0x1126   :  { %6340 = vmatpush.bf16.msra.mxu0 %v13786_v19 }
0x1129   :  { %6205 = vmatpush.bf16.msrb.mxu2 %v13778_v32  ;;  %6232 = vmatpush.bf16.msrb.mxu3 %v13778_v32 }
0x112a   :  { %6341 = vmatpush.bf16.msra.mxu0 %v13778_v32 }
0x112d   :  { %6206 = vmatpush.bf16.msrb.mxu2 %v13770_v40  ;;  %6233 = vmatpush.bf16.msrb.mxu3 %v13770_v40 }
0x112e   :  { %6342 = vmatpush.bf16.msra.mxu0 %v13770_v40 }
0x1130   :  { %9210 = vmatmul.msk.bf16.vlgmr.msrb.gmra.mxu2 %vm6191_vm2, %v6190_v20  ;;  %9212 = vmatmul.msk.bf16.vlgmr.msrb.gmra.mxu3 %vm6191_vm2, %v9211_v57  ;;  %v9417_v57 = vld [vmem:[%s14217_s2 + $0x20] sm:$0xf] }
0x1131   :  { %6281 = vmatpush.bf16.msra.mxu2 %v10016_v51  ;;  %9256 = vmatmul.msk.bf16.vlgmr.msra.gmra.mxu0 %vm6191_vm2, %v9255_v5 }
0x1132   :  { %6476 = vmatpush.bf16.msrb.mxu0 %v13798_v53  ;;  %6321 = vmatpush.bf16.msra.mxu3 %v10012_v47  ;;  %v10040_v47 = vld [vmem:[%s14216_s8 + $0xf8] sm:$0xff] }
0x1135   :  { %6282 = vmatpush.bf16.msra.mxu2 %v10015_v14 }
0x1136   :  { %6477 = vmatpush.bf16.msrb.mxu0 %v13794_v52  ;;  %6322 = vmatpush.bf16.msra.mxu3 %v10011_v38 }
0x1139   :  { %6283 = vmatpush.bf16.msra.mxu2 %v10014_v1 }
0x113a   :  { %6478 = vmatpush.bf16.msrb.mxu0 %v13786_v19  ;;  %6323 = vmatpush.bf16.msra.mxu3 %v10010_v24  ;;  %v10037_v24 = vld [vmem:[%s14216_s8 + $0xe0] sm:$0xff] }
0x113d   :  { %6284 = vmatpush.bf16.msra.mxu2 %v10013_v58 }
0x113e   :  { %6479 = vmatpush.bf16.msrb.mxu0 %v13778_v32  ;;  %6324 = vmatpush.bf16.msra.mxu3 %v10009_v28 }
0x1141   :  { %6407 = vmatpush.bf16.msrb.mxu2 %v13798_v53 }
0x1142   :  { %6480 = vmatpush.bf16.msrb.mxu0 %v13770_v40  ;;  %6458 = vmatpush.bf16.msrb.mxu3 %v10024_v27 }
0x1145   :  { %6408 = vmatpush.bf16.msrb.mxu2 %v13794_v52  ;;  %9310 = vmatmul.msk.bf16.vlgmr.msrb.gmra.mxu0 %vm6191_vm2, %v9309_v36  ;;  %v10044_v36 = vld [vmem:[%s14216_s8 + $0x118] sm:$0xff] }
0x1146   :  { %6665 = vmatpush.bf16.msra.mxu0 %v10036_v60  ;;  %6459 = vmatpush.bf16.msrb.mxu3 %v10023_v4  ;;  %v9390_v60 = vld [vmem:[%s14217_s2 + $0x1c] sm:$0xf] }
0x1149   :  { %6409 = vmatpush.bf16.msrb.mxu2 %v13786_v19 }
0x114a   :  { %6666 = vmatpush.bf16.msra.mxu0 %v10035_v41  ;;  %6460 = vmatpush.bf16.msrb.mxu3 %v10022_v55  ;;  %v10039_v41 = vld [vmem:[%s14216_s8 + $0xf0] sm:$0xff] }
0x114d   :  { %6410 = vmatpush.bf16.msrb.mxu2 %v13778_v32 }
0x114e   :  { %6667 = vmatpush.bf16.msra.mxu0 %v10034_v18  ;;  %6461 = vmatpush.bf16.msrb.mxu3 %v10021_v9  ;;  %v10038_v18 = vld [vmem:[%s14216_s8 + $0xe8] sm:$0xff] }
0x1151   :  { %6411 = vmatpush.bf16.msrb.mxu2 %v13770_v40 }
0x1152   :  { %6668 = vmatpush.bf16.msra.mxu0 %v10033_v34  ;;  %v10041_v34 = vld [vmem:[%s14216_s8 + $0x100] sm:$0xff] }
0x1156   :  { %6752 = vmatpush.bf16.msrb.mxu0 %v13798_v53 }
0x115a   :  { %6753 = vmatpush.bf16.msrb.mxu0 %v13794_v52 }
0x115e   :  { %6754 = vmatpush.bf16.msrb.mxu0 %v13786_v19 }
0x1162   :  { %6755 = vmatpush.bf16.msrb.mxu0 %v13778_v32 }
0x1166   :  { %6756 = vmatpush.bf16.msrb.mxu0 %v13770_v40 }
0x11ae   :  { %v6344_v56 = vpop.f32.mrf.mxu0 }
0x11af   :  { %v6348_v22 = vpack.c.bf16 %v6344_v56, %v6344_v56 }
0x11b1   :  { %9281 = vmatmul.msk.bf16.vlgmr.msra.gmra.mxu1 %vm6273_vm3, %v6348_v22 }
0x11b2   :  { %6614 = vmatpush.bf16.msra.mxu1 %v13798_v53 }
0x11b3   :  { %v6208_v45 = vpop.f32.mrf.mxu2  ;;  %v6235_v11 = vpop.f32.mrf.mxu3 }
0x11b4   :  { %v6212_v63 = vpack.c.bf16 %v6208_v45, %v6208_v45  ;;  %v6239_v43 = vpack.c.bf16 %v6235_v11, %v6235_v11  ;;  %v9495_v45 = vld [vmem:[%s14219_s10 + $0x60] sm:$0xf]  ;;  %v10059_v11 = vld [vmem:[%s14219_s10 + $0x6c] sm:$0xf0] }
0x11b6   :  { %6615 = vmatpush.bf16.msra.mxu1 %v13794_v52  ;;  %9237 = vmatmul.msk.bf16.vlgmr.msra.gmra.mxu2 %vm6273_vm3, %v6239_v43  ;;  %v6346_v12 = vpop.f32.mrf.mxu0  ;;  %v10055_v43 = vld [vmem:[%s14219_s10 + $0x4c] sm:$0xf0] }
0x11b7   :  { %9254 = vmatmul.msk.bf16.vlgmr.msra.gmra.mxu3 %vm6273_vm3, %v6212_v63  ;;  %6596 = vmatpush.bf16.msra.mxu2 %v10032_v39  ;;  %v9479_v39 = vld [vmem:[%s14219_s10 + $0x40] sm:$0xf]  ;;  %v9496_v63 = vor.u32 %v10059_v11, %v9495_v45  ;;  %v10083_v45 = vld [vmem:[%s14221_s12 + $0xb0] sm:$0xff] }
0x11b8   :  { %6545 = vmatpush.bf16.msra.mxu3 %v13798_v53  ;;  %v9480_v12 = vor.u32 %v10055_v43, %v9479_v39  ;;  %v10091_v11 = vld [vmem:[%s14221_s12 + $0xf0] sm:$0xff]  ;;  %v10066_v39 = vld [vmem:[%s14221_s12 + $0x28] sm:$0xff] }
0x11b9   :  { %v10082_v43 = vld [vmem:[%s14221_s12 + $0xa8] sm:$0xff] }
0x11ba   :  { %6616 = vmatpush.bf16.msra.mxu1 %v13786_v19 }
0x11bb   :  { %6597 = vmatpush.bf16.msra.mxu2 %v10031_v8  ;;  %v6237_v30 = vpop.f32.mrf.mxu3  ;;  %v6210_v6 = vpop.f32.mrf.mxu2  ;;  %v9463_v8 = vld [vmem:[%s14219_s10 + $0x20] sm:$0xf] }
0x11bc   :  { %6546 = vmatpush.bf16.msra.mxu3 %v13794_v52  ;;  %v9497_v30 = vld [vmem:[%s14219_s10 + $0x70] sm:$0xf0]  ;;  %v10051_v6 = vld [vmem:[%s14219_s10 + $0x2c] sm:$0xf0] }
0x11be   :  { %6617 = vmatpush.bf16.msra.mxu1 %v13778_v32 }
0x11bf   :  { %6598 = vmatpush.bf16.msra.mxu2 %v10030_v62  ;;  %v10057_v62 = vld [vmem:[%s14219_s10 + $0x64] sm:$0xf] }
0x11c0   :  { %6547 = vmatpush.bf16.msra.mxu3 %v13786_v19 }
0x11c2   :  { %6618 = vmatpush.bf16.msra.mxu1 %v13770_v40  ;;  %v6482_v2 = vpop.f32.mrf.mxu0 }
0x11c3   :  { %6599 = vmatpush.bf16.msra.mxu2 %v10029_v25  ;;  %v6486_v48 = vpack.c.bf16 %v6482_v2, %v6482_v2  ;;  %v9500_v25 = vor.u32 %v10057_v62, %v9497_v30  ;;  %v9505_v2 = vld [vmem:[%s14219_s10 + $0x78] sm:$0xf0]  ;;  %v10073_v62 = vld [vmem:[%s14221_s12 + $0x60] sm:$0xff] }
0x11c4   :  { %6548 = vmatpush.bf16.msra.mxu3 %v13778_v32  ;;  %v10081_v30 = vld [vmem:[%s14221_s12 + $0xa0] sm:$0xff] }
0x11c5   :  { %9335 = vmatmul.msk.bf16.vlgmr.msrb.gmra.mxu1 %vm6273_vm3, %v6486_v48 }
0x11c6   :  { %9283 = vmatmul.msk.bf16.vlgmr.msrb.gmra.mxu2 %vm6191_vm2, %v9282_v49  ;;  %6803 = vmatpush.bf16.msrb.mxu1 %v10044_v36  ;;  %v10058_v49 = vld [vmem:[%s14219_s10 + $0x6c] sm:$0xf] }
0x11c7   :  { %6683 = vmatpush.bf16.msrb.mxu2 %v13798_v53  ;;  %v9508_v48 = vor.u32 %v10058_v49, %v9505_v2  ;;  %v10072_v49 = vld [vmem:[%s14221_s12 + $0x58] sm:$0xff] }
0x11c8   :  { %6549 = vmatpush.bf16.msra.mxu3 %v13770_v40  ;;  %v10080_v2 = vld [vmem:[%s14221_s12 + $0x98] sm:$0xff] }
0x11ca   :  { %v6484_v15 = vpop.f32.mrf.mxu0  ;;  %6804 = vmatpush.bf16.msrb.mxu1 %v10043_v10  ;;  %v9447_v10 = vld [vmem:[%s14219_s10] sm:$0xf] }
0x11cb   :  { %6684 = vmatpush.bf16.msrb.mxu2 %v13794_v52 }
0x11ce   :  { %6805 = vmatpush.bf16.msrb.mxu1 %v10042_v7 }
0x11cf   :  { %6685 = vmatpush.bf16.msrb.mxu2 %v13786_v19 }
0x11d2   :  { %6806 = vmatpush.bf16.msrb.mxu1 %v10041_v34  ;;  %v10045_v34 = vld [vmem:[%s14219_s10 + $0x4] sm:$0xf] }
0x11d3   :  { %6686 = vmatpush.bf16.msrb.mxu2 %v13778_v32 }
0x11d5   :  { %9364 = vmatmul.msk.bf16.vlgmr.msra.gmra.mxu1 %vm6191_vm2, %v9363_v59  ;;  %v9503_v59 = vld [vmem:[%s14219_s10 + $0x68] sm:$0xf] }
0x11d6   :  { %6968 = vmatpush.bf16.msra.mxu1 %v9500_v25  ;;  %v10064_v25 = vld [vmem:[%s14221_s12 + $0x18] sm:$0xff] }
0x11d7   :  { %6687 = vmatpush.bf16.msrb.mxu2 %v13770_v40 }
0x122e   :  { %v6394_v23 = vpop.f32.mrf.mxu1 }
0x1236   :  { %v6396_v35 = vpop.f32.mrf.mxu1 }
0x1239   :  { %v6286_v29 = vpop.f32.mrf.mxu2 }
0x123a   :  { %v6326_v50 = vpop.f32.mrf.mxu3 }
0x123b   :  { %v6327_v37 = vadd.f32 %v6326_v50, %v6286_v29  ;;  %v10095_v29 = vld [vmem:[%s14218_s9] ss:$0 sm:$0xff] }
0x123d   :  { %v6398_v21 = vadd.f32 %v6394_v23, %v6327_v37  ;;  %v9464_v23 = vor.u32 %v10051_v6, %v9463_v8  ;;  %v10065_v8 = vld [vmem:[%s14221_s12 + $0x20] sm:$0xff] }
0x123e   :  { %v10089_v6 = vld [vmem:[%s14221_s12 + $0xe0] sm:$0xff] }
0x1241   :  { %v6288_v32 = vpop.f32.mrf.mxu2 }
0x1242   :  { %v6328_v19 = vpop.f32.mrf.mxu3  ;;  %v6532_v17 = vpop.f32.mrf.mxu1 }
0x1249   :  { %v6413_v40 = vpop.f32.mrf.mxu2 }
0x124a   :  { %v6417_v26 = vpack.c.bf16 %v6413_v40, %v6413_v40  ;;  %v6534_v3 = vpop.f32.mrf.mxu1 }
0x124b   :  { %v6820_v3 = vld [vmem:[%s14220_s3] sm:$0xf] }
0x124c   :  { %9308 = vmatmul.msk.bf16.vlgmr.msrb.gmra.mxu3 %vm6273_vm3, %v6417_v26 }
0x124d   :  { %6734 = vmatpush.bf16.msrb.mxu3 %v10040_v47  ;;  %v9473_v47 = vld [vmem:[%s14219_s10 + $0x38] sm:$0xf0] }
0x1251   :  { %v6415_v52 = vpop.f32.mrf.mxu2  ;;  %6735 = vmatpush.bf16.msrb.mxu3 %v10039_v41 }
0x1252   :  { %v6620_v44 = vpop.f32.mrf.mxu1  ;;  %v9487_v52 = vld [vmem:[%s14219_s10 + $0x48] sm:$0xf] }
0x1253   :  { %v6624_v46 = vpack.c.bf16 %v6620_v44, %v6620_v44 }
0x1255   :  { %9389 = vmatmul.msk.bf16.vlgmr.msra.gmra.mxu0 %vm6273_vm3, %v6624_v46  ;;  %6736 = vmatpush.bf16.msrb.mxu3 %v10038_v18  ;;  %v10053_v46 = vld [vmem:[%s14219_s10 + $0x44] sm:$0xf]  ;;  %v9455_v18 = vld [vmem:[%s14219_s10 + $0x8] sm:$0xf] }
0x1256   :  { %6994 = vmatpush.bf16.msra.mxu0 %v9508_v48  ;;  %v10088_v48 = vld [vmem:[%s14221_s12 + $0xd8] sm:$0xff] }
0x1259   :  { %6737 = vmatpush.bf16.msrb.mxu3 %v10037_v24  ;;  %v10048_v24 = vld [vmem:[%s14219_s10 + $0x14] sm:$0xf0] }
0x125a   :  { %v6622_v0 = vpop.f32.mrf.mxu1 }
0x125b   :  { %v9481_v0 = vld [vmem:[%s14219_s10 + $0x50] sm:$0xf0] }
0x125c   :  { %9337 = vmatmul.msk.bf16.vlgmr.msra.gmra.mxu3 %vm6191_vm2, %v9336_v31  ;;  %v10056_v31 = vld [vmem:[%s14219_s10 + $0x54] sm:$0xf0] }
0x125d   :  { %v9488_v44 = vor.u32 %v10056_v31, %v9487_v52  ;;  %v10078_v52 = vld [vmem:[%s14221_s12 + $0x88] sm:$0xff]  ;;  %v10061_v31 = vld [vmem:[%s14221_s12] sm:$0xff] }
0x1265   :  { %9418 = vmatmul.msk.bf16.vlgmr.msrb.gmra.mxu0 %vm6191_vm2, %v9417_v57 }
0x12cf   :  { %v6463_v53 = vpop.f32.mrf.mxu3 }
0x12d0   :  { %v6467_v51 = vadd.f32 %v6463_v53, %v6398_v21  ;;  %v10060_v21 = vld [vmem:[%s14219_s10 + $0x74] sm:$0xf0]  ;;  %v10054_v53 = vld [vmem:[%s14219_s10 + $0x4c] sm:$0xf] }
0x12d1   :  { %v9504_v26 = vor.u32 %v10060_v21, %v9503_v59  ;;  %v10070_v59 = vld [vmem:[%s14221_s12 + $0x48] sm:$0xff] }
0x12d2   :  { %v6536_v20 = vadd.f32 %v6532_v17, %v6467_v51  ;;  %v6670_v54 = vpop.f32.mrf.mxu0  ;;  %v9484_v51 = vor.u32 %v10053_v46, %v9481_v0  ;;  %v10086_v21 = vld [vmem:[%s14221_s12 + $0xc8] sm:$0xff] }
0x12d4   :  { %6969 = vmatpush.bf16.msra.mxu1 %v9484_v51 }
0x12d7   :  { %v6465_v5 = vpop.f32.mrf.mxu3 }
0x12d8   :  { %v9471_v5 = vld [vmem:[%s14219_s10 + $0x28] sm:$0xf] }
0x12da   :  { %v6672_v38 = vpop.f32.mrf.mxu0 }
0x12db   :  { %v10047_v38 = vld [vmem:[%s14219_s10 + $0xc] sm:$0xf0] }
0x12dc   :  { %v9448_v7 = vor.u32 %v10047_v38, %v9447_v10 }
0x12df   :  { %v6551_v14 = vpop.f32.mrf.mxu3 }
0x12e0   :  { %v6555_v1 = vpack.c.bf16 %v6551_v14, %v6551_v14  ;;  %v10052_v14 = vld [vmem:[%s14219_s10 + $0x34] sm:$0xf0] }
0x12e2   :  { %9362 = vmatmul.msk.bf16.vlgmr.msra.gmra.mxu2 %vm6273_vm3, %v6555_v1  ;;  %v6758_v61 = vpop.f32.mrf.mxu0  ;;  %v10049_v1 = vld [vmem:[%s14219_s10 + $0x24] sm:$0xf] }
0x12e3   :  { %v6762_v13 = vpack.c.bf16 %v6758_v61, %v6758_v61  ;;  %6955 = vmatpush.bf16.msra.mxu2 %v9496_v63  ;;  %v9449_v61 = vld [vmem:[%s14219_s10 + $0x10] sm:$0xf0]  ;;  %v10074_v63 = vld [vmem:[%s14221_s12 + $0x68] sm:$0xff] }
0x12e5   :  { %9443 = vmatmul.msk.bf16.vlgmr.msrb.gmra.mxu1 %vm6273_vm3, %v6762_v13  ;;  %v9456_v13 = vor.u32 %v10048_v24, %v9455_v18 }
0x12e7   :  { %v6553_v58 = vpop.f32.mrf.mxu3  ;;  %6956 = vmatpush.bf16.msra.mxu2 %v9480_v12  ;;  %v10090_v12 = vld [vmem:[%s14221_s12 + $0xe8] sm:$0xff] }
0x12e8   :  { %v9472_v58 = vor.u32 %v10052_v14, %v9471_v5 }
0x12ea   :  { %v6760_v28 = vpop.f32.mrf.mxu0 }
0x12eb   :  { %6957 = vmatpush.bf16.msra.mxu2 %v9464_v23  ;;  %v9452_v28 = vor.u32 %v10045_v34, %v9449_v61  ;;  %v10063_v23 = vld [vmem:[%s14221_s12 + $0x10] sm:$0xff] }
0x12ef   :  { %6958 = vmatpush.bf16.msra.mxu2 %v9448_v7 }
0x12f2   :  { %9391 = vmatmul.msk.bf16.vlgmr.msrb.gmra.mxu2 %vm6191_vm2, %v9390_v60  ;;  %v9465_v60 = vld [vmem:[%s14219_s10 + $0x30] sm:$0xf0] }
0x12f3   :  { %v9468_v36 = vor.u32 %v10049_v1, %v9465_v60 }
0x12f5   :  { %6970 = vmatpush.bf16.msra.mxu1 %v9468_v36 }
0x12f9   :  { %6971 = vmatpush.bf16.msra.mxu1 %v9452_v28 }
0x1362   :  { %v6808_v56 = vpop.f32.mrf.mxu1 }
0x1365   :  { %v6601_v27 = vpop.f32.mrf.mxu2 }
0x1366   :  { %v6605_v33 = vadd.f32 %v6601_v27, %v6536_v20  ;;  %v9489_v20 = vld [vmem:[%s14219_s10 + $0x58] sm:$0xf0]  ;;  %v10046_v27 = vld [vmem:[%s14219_s10 + $0xc] sm:$0xf] }
0x1367   :  { %v9492_v57 = vor.u32 %v10054_v53, %v9489_v20 }
0x1368   :  { %v6674_v16 = vadd.f32 %v6670_v54, %v6605_v33  ;;  %v10050_v54 = vld [vmem:[%s14219_s10 + $0x2c] sm:$0xf]  ;;  %v9457_v33 = vld [vmem:[%s14219_s10 + $0x18] sm:$0xf0] }
0x1369   :  { %6995 = vmatpush.bf16.msra.mxu0 %v9492_v57  ;;  %v9476_v41 = vor.u32 %v10050_v54, %v9473_v47 }
0x136a   :  { %v6810_v22 = vpop.f32.mrf.mxu1 }
0x136b   :  { %v10075_v22 = vld [vmem:[%s14221_s12 + $0x70] sm:$0xff] }
0x136d   :  { %v6603_v4 = vpop.f32.mrf.mxu2  ;;  %6996 = vmatpush.bf16.msra.mxu0 %v9476_v41 }
0x136e   :  { %v10068_v4 = vld [vmem:[%s14221_s12 + $0x38] sm:$0xff] }
0x136f   :  { %7271 = vmatpush.bf16.msrb.mxu2 %v10068_v4 }
0x1375   :  { %v6689_v42 = vpop.f32.mrf.mxu2 }
0x1376   :  { %v6693_v55 = vpack.c.bf16 %v6689_v42, %v6689_v42  ;;  %v10076_v42 = vld [vmem:[%s14221_s12 + $0x78] sm:$0xff] }
0x1377   :  { %7284 = vmatpush.bf16.msrb.mxu1 %v10076_v42 }
0x1378   :  { %9416 = vmatmul.msk.bf16.vlgmr.msrb.gmra.mxu3 %vm6273_vm3, %v6693_v55  ;;  %v10084_v55 = vld [vmem:[%s14221_s12 + $0xb8] sm:$0xff] }
0x137b   :  { %7285 = vmatpush.bf16.msrb.mxu1 %v10075_v22 }
0x137d   :  { %v6691_v9 = vpop.f32.mrf.mxu2 }
0x137e   :  { %v10092_v9 = vld [vmem:[%s14221_s12 + $0xf8] sm:$0xff] }
0x137f   :  { %7286 = vmatpush.bf16.msrb.mxu1 %v10074_v63 }
0x1383   :  { %7287 = vmatpush.bf16.msrb.mxu1 %v10073_v62 }
0x1387   :  { %7288 = vmatpush.bf16.msrb.mxu1 %v10072_v49 }
0x13fb   :  { %v6739_v15 = vpop.f32.mrf.mxu3 }
0x13fc   :  { %v6743_v35 = vadd.f32 %v6739_v15, %v6674_v16  ;;  %v9460_v16 = vor.u32 %v10046_v27, %v9457_v33  ;;  %v10096_v33 = vld [vmem:[%s14223_s13] ss:$0 sm:$0xff] }
0x13fe   :  { %v6812_v50 = vadd.f32 %v6808_v56, %v6743_v35  ;;  %6997 = vmatpush.bf16.msra.mxu0 %v9460_v16  ;;  %v10067_v56 = vld [vmem:[%s14221_s12 + $0x30] sm:$0xff] }
0x13ff   :  { %7272 = vmatpush.bf16.msrb.mxu2 %v10067_v56 }
0x1400   :  { %v6817_v37 = vadd.f32 %v10095_v29, %v6812_v50  ;;  %v10071_v50 = vld [vmem:[%s14221_s12 + $0x50] sm:$0xff] }
0x1401   :  { %7289 = vmatpush.bf16.msrb.mxu1 %v10071_v50 }
0x1402   :  { %v6818_v32 = vmax.f32 %v6817_v37, 0.0  ;;  %7310 = vmatpush.bf16.msrb.mxu0 %v10092_v9  ;;  %v10087_v37 = vld [vmem:[%s14221_s12 + $0xd0] sm:$0xff] }
0x1403   :  { %v6741_v19 = vpop.f32.mrf.mxu3  ;;  %7273 = vmatpush.bf16.msrb.mxu2 %v10066_v39 }
0x1404   :  { %v6819_v40 = vpack.c.bf16 %v6818_v32, %v6818_v32  ;;  %v10079_v32 = vld [vmem:[%s14221_s12 + $0x90] sm:$0xff]  ;;  %v10069_v19 = vld [vmem:[%s14221_s12 + $0x40] sm:$0xff] }
0x1405   :  { %7290 = vmatpush.bf16.msrb.mxu1 %v10070_v59 }
0x1406   :  { %v6826_v17 = vsel %vm6195_vm1, %v6819_v40, 0  ;;  %7311 = vmatpush.bf16.msrb.mxu0 %v10091_v11  ;;  %v10085_v40 = vld [vmem:[%s14221_s12 + $0xc0] sm:$0xff] }
0x1407   :  { %6835 = vmatpush.bf16.msra.mxu3 %v6826_v17  ;;  %7274 = vmatpush.bf16.msrb.mxu2 %v10065_v8  ;;  %v10077_v17 = vld [vmem:[%s14221_s12 + $0x80] sm:$0xff] }
0x1409   :  { %7291 = vmatpush.bf16.msrb.mxu1 %v10069_v19 }
0x140a   :  { %9444 = vmatmul.msk.bf16.vlgmr.msra.gmra.mxu3 %vm6821_vm4, %v6820_v3  ;;  %7312 = vmatpush.bf16.msrb.mxu0 %v10090_v12  ;;  %v6858_v3 = vld [vmem:[%s14222_s11] sm:$0xf] }
0x140b   :  { %6981 = vmatpush.bf16.msrb.mxu3 %v9504_v26  ;;  %7275 = vmatpush.bf16.msrb.mxu2 %v10064_v25  ;;  %v10062_v26 = vld [vmem:[%s14221_s12 + $0x8] sm:$0xff]  ;;  %v6863_v46 = vperm.slane %v6858_v3, 3  ;;  %v6860_v57 = vperm.slane %v6858_v3, 0  ;;  %v6862_v5 = vperm.slane %v6858_v3, 2 }
0x140e   :  { %7313 = vmatpush.bf16.msrb.mxu0 %v10089_v6 }
0x140f   :  { %6982 = vmatpush.bf16.msrb.mxu3 %v9488_v44  ;;  %7276 = vmatpush.bf16.msrb.mxu2 %v10063_v23  ;;  %v6861_v44 = vperm.slane %v6858_v3, 1 }
0x1412   :  { %7314 = vmatpush.bf16.msrb.mxu0 %v10088_v48 }
0x1413   :  { %6983 = vmatpush.bf16.msrb.mxu3 %v9472_v58  ;;  %7277 = vmatpush.bf16.msrb.mxu2 %v10062_v26 }
0x1416   :  { %7315 = vmatpush.bf16.msrb.mxu0 %v10087_v37 }
0x1417   :  { %6984 = vmatpush.bf16.msrb.mxu3 %v9456_v13  ;;  %7278 = vmatpush.bf16.msrb.mxu2 %v10061_v31 }
0x141a   :  { %7316 = vmatpush.bf16.msrb.mxu0 %v10086_v21 }
0x141b   :  { %7297 = vmatpush.bf16.msra.mxu3 %v10084_v55 }
0x141e   :  { %7317 = vmatpush.bf16.msrb.mxu0 %v10085_v40 }
0x141f   :  { %7298 = vmatpush.bf16.msra.mxu3 %v10083_v45 }
0x1423   :  { %7299 = vmatpush.bf16.msra.mxu3 %v10082_v43 }
0x1427   :  { %7300 = vmatpush.bf16.msra.mxu3 %v10081_v30 }
0x142b   :  { %7301 = vmatpush.bf16.msra.mxu3 %v10080_v2 }
0x142f   :  { %7302 = vmatpush.bf16.msra.mxu3 %v10079_v32 }
0x1433   :  { %7303 = vmatpush.bf16.msra.mxu3 %v10078_v52 }
0x1437   :  { %7304 = vmatpush.bf16.msra.mxu3 %v10077_v17 }
0x148d   :  { %v6837_v15 = vpop.f32.mrf.mxu3 }
0x148e   :  { %v6841_v35 = vpack.c.bf16 %v6837_v15, %v6837_v15 }
0x1490   :  { %9509 = vmatmul.msk.bf16.vlgmr.msra.gmra.mxu2 %vm6273_vm3, %v6841_v35  ;;  %9511 = vmatmul.msk.bf16.vlgmr.msrb.gmra.mxu3 %vm6273_vm3, %v6841_v35 }
0x1491   :  { %9510 = vmatmul.msk.bf16.vlgmr.msra.gmra.mxu1 %vm6273_vm3, %v6841_v35  ;;  %9512 = vmatmul.msk.bf16.vlgmr.msra.gmra.mxu0 %vm6273_vm3, %v6841_v35 }
0x1495   :  { %v6839_v29 = vpop.f32.mrf.mxu3 }
0x150e   :  { %v6973_v0 = vpop.f32.mrf.mxu1  ;;  %v6999_v53 = vpop.f32.mrf.mxu0 }
0x150f   :  { %v6974_v51 = vadd.f32 %v6973_v0, %v6861_v44  ;;  %v7000_v20 = vadd.f32 %v6999_v53, %v6863_v46 }
0x1511   :  { %v7004_v14 = vmax.f32 %v6974_v51, 0.0  ;;  %v7006_v1 = vmax.f32 %v7000_v20, 0.0 }
0x1513   :  { %v6960_v58 = vpop.f32.mrf.mxu2  ;;  %v7008_v60 = vpack.c.bf16 %v7004_v14, %v7004_v14  ;;  %v6986_v54 = vpop.f32.mrf.mxu3  ;;  %v7010_v47 = vpack.c.bf16 %v7006_v1, %v7006_v1 }
0x1514   :  { %v6961_v36 = vadd.f32 %v6960_v58, %v6860_v57  ;;  %v6987_v41 = vadd.f32 %v6986_v54, %v6862_v5 }
0x1515   :  { %7292 = vmatmul.bf16.vlgmr.msrb.gmra.mxu1 %v7008_v60  ;;  %7318 = vmatmul.bf16.vlgmr.msrb.gmra.mxu0 %v7010_v47 }
0x1516   :  { %v7003_v10 = vmax.f32 %v6961_v36, 0.0  ;;  %v7005_v38 = vmax.f32 %v6987_v41, 0.0  ;;  %v6975_v18 = vpop.f32.mrf.mxu1  ;;  %v7001_v7 = vpop.f32.mrf.mxu0 }
0x1518   :  { %v7007_v24 = vpack.c.bf16 %v7003_v10, %v7003_v10  ;;  %v7009_v34 = vpack.c.bf16 %v7005_v38, %v7005_v38 }
0x151a   :  { %7279 = vmatmul.bf16.vlgmr.msrb.gmra.mxu2 %v7007_v24  ;;  %7305 = vmatmul.bf16.vlgmr.msra.gmra.mxu3 %v7009_v34 }
0x151b   :  { %v6962_v61 = vpop.f32.mrf.mxu2  ;;  %v6988_v13 = vpop.f32.mrf.mxu3 }
0x1592   :  { %v7293_v28 = vpop.f32.mrf.mxu1  ;;  %v7319_v27 = vpop.f32.mrf.mxu0 }
0x159a   :  { %v7295_v16 = vpop.f32.mrf.mxu1  ;;  %v7321_v4 = vpop.f32.mrf.mxu0 }
0x159d   :  { %v7280_v42 = vpop.f32.mrf.mxu2  ;;  %v7306_v55 = vpop.f32.mrf.mxu3 }
0x159e   :  { %v7281_v9 = vadd.f32 %v10096_v33, %v7280_v42 }
0x15a0   :  { %v7294_v56 = vadd.f32 %v7293_v28, %v7281_v9 }
0x15a2   :  { %v7307_v22 = vadd.f32 %v7306_v55, %v7294_v56 }
0x15a4   :  { %v7320_v45 = vadd.f32 %v7319_v27, %v7307_v22 }
0x15a5   :  { %v7282_v11 = vpop.f32.mrf.mxu2  ;;  %v7308_v39 = vpop.f32.mrf.mxu3 }
0x15a6   :  { %7323 = vst [vmem:[%s14224_s14] sm:$0xff] %v7320_v45 }

</bundles_post_ra>
